<compile_context>
chip_gen: v7x
topology: tpu7x:2x2x1
jax: 0.10.0
libtpu: 0.0.40
codegen_flags: <defaults>
</compile_context>

<pallas_src>
import functools

import jax
import jax.numpy as jnp
from jax import lax
from jax.experimental import pallas as pl
from jax.experimental.pallas import tpu as pltpu

# Keep the in-kernel MXU dots and the pure-JAX reference on the same (full f32) precision.
jax.config.update("jax_default_matmul_precision", "highest")


def encoder_kernel(x_ref, w_in_ref, b_in_ref,
                   w_ih_ref, w_hh_ref, b_lstm_ref,
                   w_out_ref, b_out_ref,
                   out_ref, hdec_ref,
                   buf0_ref, buf1_ref, gxf_ref, gxb_ref,
                   *, unroll=True):
    S, Bb, I = x_ref.shape
    H = w_in_ref.shape[1]
    L = w_ih_ref.shape[0] // 2
    D = w_out_ref.shape[1]
    dec_layers = hdec_ref.shape[0]
    G = 4 * H

    # ---- embedded = dropout(tanh(input_linear(input)))  (dropout == identity, eval)
    # input_dim is tiny -> VPU outer-product accumulation (no K=4 MXU fire). Result lands
    # in the fwd lane-half of the layer-0 ping-pong buffer (no separate emb scratch).
    x = x_ref[...]                                               # [S, Bb, I]
    w_in = w_in_ref[...]                                         # [I, H]
    acc = jnp.broadcast_to(b_in_ref[...], (S, Bb, H))            # [S, Bb, H]
    for i in range(I):
        acc = acc + x[:, :, i:i + 1] * w_in[i:i + 1, :][None, :, :]
    buf0_ref[:, :, 0:H] = jnp.tanh(acc)

    bufs = (buf0_ref, buf1_ref)
    h_f_last = h_b_last = None
    for layer in range(L):
        in_ref = bufs[layer % 2]
        last = layer == L - 1
        # Last layer writes straight into out_ref lane halves -> no epilogue copy.
        out_dir = out_ref if last else bufs[(layer + 1) % 2]

        kin = H if layer == 0 else 2 * H

        # ---- hoisted x-projection (+ fused bias) for BOTH directions:
        # one [S*Bb, kin] x [kin, 4H] matmul each, off the recurrence critical path.
        lin2 = in_ref[:, :, 0:kin].reshape(S * Bb, kin)
        gxf_ref[...] = (
            jnp.dot(lin2, w_ih_ref[2 * layer, 0:kin, :],
                    preferred_element_type=jnp.float32)
            + b_lstm_ref[2 * layer]).reshape(S, Bb, G)
        gxb_ref[...] = (
            jnp.dot(lin2, w_ih_ref[2 * layer + 1, 0:kin, :],
                    preferred_element_type=jnp.float32)
            + b_lstm_ref[2 * layer + 1]).reshape(S, Bb, G)

        # Timestep-invariant recurrent weights, hoisted out of the loop.
        w_hf = w_hh_ref[2 * layer]                               # [H, 4H]
        w_hb = w_hh_ref[2 * layer + 1]                           # [H, 4H]

        def body(i, carry, w_hf=w_hf, w_hb=w_hb, out_dir=out_dir):
            h_f, c_f, h_b, c_b = carry
            t_f = i
            t_b = S - 1 - i
            # Only h @ w_hh remains on the serial chain; fwd / bwd chains are independent
            # so their MXU / EUP latencies interleave inside one loop body.
            g_f = gxf_ref[t_f] + jnp.dot(h_f, w_hf, preferred_element_type=jnp.float32)
            g_b = gxb_ref[t_b] + jnp.dot(h_b, w_hb, preferred_element_type=jnp.float32)

            def cell_update(g, c):
                # activations on the full [Bb, 4H] lane-dense tile, slice afterwards
                sig = jax.nn.sigmoid(g)
                th = jnp.tanh(g)
                c_n = sig[:, H:2 * H] * c + sig[:, 0:H] * th[:, 2 * H:3 * H]
                h_n = sig[:, 3 * H:4 * H] * jnp.tanh(c_n)
                return h_n, c_n

            h_f_n, c_f_n = cell_update(g_f, c_f)
            h_b_n, c_b_n = cell_update(g_b, c_b)
            out_dir[t_f, :, 0:H] = h_f_n
            out_dir[t_b, :, H:2 * H] = h_b_n
            return (h_f_n, c_f_n, h_b_n, c_b_n)

        zero = jnp.zeros((Bb, H), jnp.float32)
        h_f_last, _, h_b_last, _ = lax.fori_loop(
            0, S, body, (zero, zero, zero, zero), unroll=unroll)

    # ---- hidden = tanh(output_linear(cat(h_fwd_last, h_bwd_last))); split dot, no concat
    dec_h = jnp.tanh(
        jnp.dot(h_f_last, w_out_ref[0:H, :], preferred_element_type=jnp.float32)
        + jnp.dot(h_b_last, w_out_ref[H:2 * H, :], preferred_element_type=jnp.float32)
        + b_out_ref[...])                                        # [Bb, D]
    # hidden.repeat(dec_layers, 1, 1)
    hdec_ref[...] = jnp.broadcast_to(dec_h[None, :, :], (dec_layers, Bb, D))


def encoder_forward(x, params, dec_layers, *, batch_block=None, unroll=True):
    """x: [S, B, input_dim] (PyTorch seq-major). Returns (outputs, (hidden, cell))."""
    S, B, I = x.shape
    H = params["w_in"].shape[1]
    D = params["w_out"].shape[1]
    if batch_block is None:
        # Single TensorCore (v5e/v6e): one grid step over the whole batch avoids the
        # per-grid-step overhead.  On v7x (2 TCs) pass batch_block=B // 2 so the
        # "parallel" grid axis feeds both cores.
        batch_block = B
    assert B % batch_block == 0, "batch must be a multiple of batch_block"
    assert batch_block % 8 == 0, "batch_block must be sublane-aligned (multiple of 8)"
    nb = B // batch_block

    def full_spec(shape):
        return pl.BlockSpec(shape, lambda b, _n=len(shape): (0,) * _n)

    in_specs = [
        pl.BlockSpec((S, batch_block, I), lambda b: (0, b, 0)),
        full_spec(params["w_in"].shape),
        full_spec(params["b_in"].shape),
        full_spec(params["w_ih"].shape),
        full_spec(params["w_hh"].shape),
        full_spec(params["b_lstm"].shape),
        full_spec(params["w_out"].shape),
        full_spec(params["b_out"].shape),
    ]
    out_specs = (
        pl.BlockSpec((S, batch_block, 2 * H), lambda b: (0, b, 0)),
        pl.BlockSpec((dec_layers, batch_block, D), lambda b: (0, b, 0)),
    )
    out_shapes = (
        jax.ShapeDtypeStruct((S, B, 2 * H), jnp.float32),
        jax.ShapeDtypeStruct((dec_layers, B, D), jnp.float32),
    )
    scratch = [
        pltpu.VMEM((S, batch_block, 2 * H), jnp.float32),   # layer ping-pong buffer 0
        pltpu.VMEM((S, batch_block, 2 * H), jnp.float32),   # layer ping-pong buffer 1
        pltpu.VMEM((S, batch_block, 4 * H), jnp.float32),   # hoisted fwd x-gates
        pltpu.VMEM((S, batch_block, 4 * H), jnp.float32),   # hoisted bwd x-gates
    ]

    outputs, hidden = pl.pallas_call(
        functools.partial(encoder_kernel, unroll=unroll),
        out_shape=out_shapes,
        grid=(nb,),
        in_specs=in_specs,
        out_specs=out_specs,
        scratch_shapes=scratch,
        compiler_params=pltpu.CompilerParams(
            dimension_semantics=("parallel",)),      # batch blocks -> both TCs on v7x
    )(x, params["w_in"], params["b_in"],
      params["w_ih"], params["w_hh"], params["b_lstm"],
      params["w_out"], params["b_out"])
    # PyTorch returns (outputs, (hidden, hidden))
    return outputs, (hidden, hidden)


def encoder_reference(x, params, dec_layers):
    """Pure-JAX mirror of the kernel math (for correctness checking)."""
    S, B, I = x.shape
    H = params["w_in"].shape[1]
    L = params["w_ih"].shape[0] // 2
    sig = jax.nn.sigmoid

    emb = jnp.tanh(jnp.einsum("sbi,ih->sbh", x, params["w_in"]) + params["b_in"])

    def cell(x_in, h, c, w_ih, w_hh, b):
        gates = x_in @ w_ih + h @ w_hh + b
        i_g = sig(gates[:, 0:H])
        f_g = sig(gates[:, H:2 * H])
        g_g = jnp.tanh(gates[:, 2 * H:3 * H])
        o_g = sig(gates[:, 3 * H:4 * H])
        c_new = f_g * c + i_g * g_g
        return o_g * jnp.tanh(c_new), c_new

    layer_in = emb
    h_f_last = h_b_last = None
    for l in range(L):
        in_dim = H if l == 0 else 2 * H
        w_f, w_b = params["w_ih"][2 * l, :in_dim], params["w_ih"][2 * l + 1, :in_dim]
        wh_f, wh_b = params["w_hh"][2 * l], params["w_hh"][2 * l + 1]
        b_f, b_b = params["b_lstm"][2 * l], params["b_lstm"][2 * l + 1]

        h = c = jnp.zeros((B, H), jnp.float32)
        outs_f = []
        for t in range(S):
            h, c = cell(layer_in[t], h, c, w_f, wh_f, b_f)
            outs_f.append(h)
        h_f_last = h

        h = c = jnp.zeros((B, H), jnp.float32)
        outs_b = [None] * S
        for t in range(S - 1, -1, -1):
            h, c = cell(layer_in[t], h, c, w_b, wh_b, b_b)
            outs_b[t] = h
        h_b_last = h

        layer_in = jnp.concatenate([jnp.stack(outs_f), jnp.stack(outs_b)], axis=-1)

    outputs = layer_in
    dec_h = jnp.tanh(jnp.concatenate([h_f_last, h_b_last], axis=-1) @ params["w_out"]
                     + params["b_out"])
    hidden = jnp.broadcast_to(dec_h[None], (dec_layers, B, dec_h.shape[-1]))
    return outputs, (hidden, hidden)


def init_params(key, I, H, D, enc_layers):
    L2 = 2 * enc_layers
    ks = jax.random.split(key, 7)
    s = 0.2
    w_ih = jnp.zeros((L2, 2 * H, 4 * H), jnp.float32)
    for idx in range(L2):
        in_dim = H if idx < 2 else 2 * H        # layer 0 (fwd/bwd) input dim = H
        w_ih = w_ih.at[idx, :in_dim, :].set(
            s * jax.random.normal(jax.random.fold_in(ks[2], idx),
                                  (in_dim, 4 * H), jnp.float32))
    return {
        "w_in":   s * jax.random.normal(ks[0], (I, H), jnp.float32),
        "b_in":   s * jax.random.normal(ks[1], (1, H), jnp.float32),
        "w_ih":   w_ih,                                        # [2L, 2H, 4H]
        "w_hh":   s * jax.random.normal(ks[3], (L2, H, 4 * H), jnp.float32),
        "b_lstm": s * jax.random.normal(ks[4], (L2, 1, 4 * H), jnp.float32),
        "w_out":  s * jax.random.normal(ks[5], (2 * H, D), jnp.float32),
        "b_out":  s * jax.random.normal(ks[6], (1, D), jnp.float32),
    }


if __name__ == "__main__":
    S, B, I = 8, 16, 4          # src_len, batch, input_dim
    H, D = 32, 32               # enc_hid_dim, dec_hid_dim
    enc_layers, dec_layers = 2, 2

    key = jax.random.PRNGKey(0)
    kx, kp = jax.random.split(key)
    x = jax.random.normal(kx, (S, B, I), jnp.float32)
    params = init_params(kp, I, H, D, enc_layers)

    outputs, (hidden, cell) = encoder_forward(x, params, dec_layers)
    jax.block_until_ready((outputs, hidden, cell))

    ref_out, (ref_h, ref_c) = encoder_reference(x, params, dec_layers)
    # Tolerance covers MXU vs XLA f32 matmul pass differences through the 8-step recurrence.
    assert jnp.allclose(outputs, ref_out, rtol=2e-3, atol=2e-3)
    assert jnp.allclose(hidden, ref_h, rtol=2e-3, atol=2e-3)
    assert jnp.allclose(cell, ref_c, rtol=2e-3, atol=2e-3)

    print("KERNEL_OK")
</pallas_src>

<mosaic_0001>
module attributes {stable_mosaic.version = 11 : i64} {
  func.func @encoder_kernel(%arg0: i32, %arg1: memref<8x16x4xf32, #tpu.memory_space<vmem>>, %arg2: memref<4x32xf32, #tpu.memory_space<vmem>>, %arg3: memref<1x32xf32, #tpu.memory_space<vmem>>, %arg4: memref<4x64x128xf32, #tpu.memory_space<vmem>>, %arg5: memref<4x32x128xf32, #tpu.memory_space<vmem>>, %arg6: memref<4x1x128xf32, #tpu.memory_space<vmem>>, %arg7: memref<64x32xf32, #tpu.memory_space<vmem>>, %arg8: memref<1x32xf32, #tpu.memory_space<vmem>>, %arg9: memref<8x16x64xf32, #tpu.memory_space<vmem>>, %arg10: memref<2x16x32xf32, #tpu.memory_space<vmem>>, %arg11: memref<8x16x64xf32, #tpu.memory_space<vmem>>, %arg12: memref<8x16x64xf32, #tpu.memory_space<vmem>>, %arg13: memref<8x16x128xf32, #tpu.memory_space<vmem>>, %arg14: memref<8x16x128xf32, #tpu.memory_space<vmem>>) attributes {dimension_semantics = [#tpu.dimension_semantics<parallel>], iteration_bounds = array<i64: 1>, scalar_prefetch = 0 : i64, scratch_operands = 4 : i64, tpu.core_type = #tpu.core_type<tc>, window_params = [{transform_indices = @transform_0, window_bounds = array<i64: 8, 16, 4>}, {pipeline_mode = #tpu.pipeline_mode<synchronous>, transform_indices = @transform_1, window_bounds = array<i64: 4, 32>}, {pipeline_mode = #tpu.pipeline_mode<synchronous>, transform_indices = @transform_2, window_bounds = array<i64: 1, 32>}, {pipeline_mode = #tpu.pipeline_mode<synchronous>, transform_indices = @transform_3, window_bounds = array<i64: 4, 64, 128>}, {pipeline_mode = #tpu.pipeline_mode<synchronous>, transform_indices = @transform_4, window_bounds = array<i64: 4, 32, 128>}, {pipeline_mode = #tpu.pipeline_mode<synchronous>, transform_indices = @transform_5, window_bounds = array<i64: 4, 1, 128>}, {pipeline_mode = #tpu.pipeline_mode<synchronous>, transform_indices = @transform_6, window_bounds = array<i64: 64, 32>}, {pipeline_mode = #tpu.pipeline_mode<synchronous>, transform_indices = @transform_7, window_bounds = array<i64: 1, 32>}, {transform_indices = @transform_8, window_bounds = array<i64: 8, 16, 64>}, {transform_indices = @transform_9, window_bounds = array<i64: 2, 16, 32>}]} {
    %c0 = arith.constant 0 : index
    %c0_0 = arith.constant 0 : index
    %c0_1 = arith.constant 0 : index
    %0 = vector.load %arg1[%c0, %c0_0, %c0_1] : memref<8x16x4xf32, #tpu.memory_space<vmem>>, vector<8x16x4xf32>
    %c0_2 = arith.constant 0 : index
    %c0_3 = arith.constant 0 : index
    %1 = vector.load %arg2[%c0_2, %c0_3] : memref<4x32xf32, #tpu.memory_space<vmem>>, vector<4x32xf32>
    %c0_4 = arith.constant 0 : index
    %c0_5 = arith.constant 0 : index
    %2 = vector.load %arg3[%c0_4, %c0_5] : memref<1x32xf32, #tpu.memory_space<vmem>>, vector<1x32xf32>
    %3 = vector.shape_cast %2 : vector<1x32xf32> to vector<1x1x32xf32>
    %4 = vector.broadcast %3 : vector<1x1x32xf32> to vector<8x16x32xf32>
    %5 = vector.extract_strided_slice %0 {offsets = [0, 0, 0], sizes = [8, 16, 1], strides = [1, 1, 1]} : vector<8x16x4xf32> to vector<8x16x1xf32>
    %6 = vector.extract_strided_slice %1 {offsets = [0, 0], sizes = [1, 32], strides = [1, 1]} : vector<4x32xf32> to vector<1x32xf32>
    %7 = vector.shape_cast %6 : vector<1x32xf32> to vector<1x1x32xf32>
    %8 = vector.broadcast %5 : vector<8x16x1xf32> to vector<8x16x32xf32>
    %9 = vector.broadcast %7 : vector<1x1x32xf32> to vector<8x16x32xf32>
    %10 = arith.mulf %8, %9 : vector<8x16x32xf32>
    %11 = arith.addf %4, %10 : vector<8x16x32xf32>
    %12 = vector.extract_strided_slice %0 {offsets = [0, 0, 1], sizes = [8, 16, 1], strides = [1, 1, 1]} : vector<8x16x4xf32> to vector<8x16x1xf32>
    %13 = vector.extract_strided_slice %1 {offsets = [1, 0], sizes = [1, 32], strides = [1, 1]} : vector<4x32xf32> to vector<1x32xf32>
    %14 = vector.shape_cast %13 : vector<1x32xf32> to vector<1x1x32xf32>
    %15 = vector.broadcast %12 : vector<8x16x1xf32> to vector<8x16x32xf32>
    %16 = vector.broadcast %14 : vector<1x1x32xf32> to vector<8x16x32xf32>
    %17 = arith.mulf %15, %16 : vector<8x16x32xf32>
    %18 = arith.addf %11, %17 : vector<8x16x32xf32>
    %19 = vector.extract_strided_slice %0 {offsets = [0, 0, 2], sizes = [8, 16, 1], strides = [1, 1, 1]} : vector<8x16x4xf32> to vector<8x16x1xf32>
    %20 = vector.extract_strided_slice %1 {offsets = [2, 0], sizes = [1, 32], strides = [1, 1]} : vector<4x32xf32> to vector<1x32xf32>
    %21 = vector.shape_cast %20 : vector<1x32xf32> to vector<1x1x32xf32>
    %22 = vector.broadcast %19 : vector<8x16x1xf32> to vector<8x16x32xf32>
    %23 = vector.broadcast %21 : vector<1x1x32xf32> to vector<8x16x32xf32>
    %24 = arith.mulf %22, %23 : vector<8x16x32xf32>
    %25 = arith.addf %18, %24 : vector<8x16x32xf32>
    %26 = vector.extract_strided_slice %0 {offsets = [0, 0, 3], sizes = [8, 16, 1], strides = [1, 1, 1]} : vector<8x16x4xf32> to vector<8x16x1xf32>
    %27 = vector.extract_strided_slice %1 {offsets = [3, 0], sizes = [1, 32], strides = [1, 1]} : vector<4x32xf32> to vector<1x32xf32>
    %28 = vector.shape_cast %27 : vector<1x32xf32> to vector<1x1x32xf32>
    %29 = vector.broadcast %26 : vector<8x16x1xf32> to vector<8x16x32xf32>
    %30 = vector.broadcast %28 : vector<1x1x32xf32> to vector<8x16x32xf32>
    %31 = arith.mulf %29, %30 : vector<8x16x32xf32>
    %32 = arith.addf %25, %31 : vector<8x16x32xf32>
    %33 = math.tanh %32 : vector<8x16x32xf32>
    %c0_6 = arith.constant 0 : index
    %c0_7 = arith.constant 0 : index
    %c0_8 = arith.constant 0 : index
    %34 = vector.load %arg11[%c0_6, %c0_7, %c0_8] : memref<8x16x64xf32, #tpu.memory_space<vmem>>, vector<8x16x32xf32>
    tpu.vector_store %arg11[%c0_6, %c0_7, %c0_8], %33 {strides = array<i32>} : memref<8x16x64xf32, #tpu.memory_space<vmem>>, vector<8x16x32xf32>,
    %c0_9 = arith.constant 0 : index
    %c0_10 = arith.constant 0 : index
    %c0_11 = arith.constant 0 : index
    %35 = vector.load %arg11[%c0_9, %c0_10, %c0_11] : memref<8x16x64xf32, #tpu.memory_space<vmem>>, vector<8x16x32xf32>
    %36 = vector.shape_cast %35 : vector<8x16x32xf32> to vector<128x32xf32>
    %c0_12 = arith.constant 0 : index
    %c0_13 = arith.constant 0 : index
    %c0_14 = arith.constant 0 : index
    %37 = vector.load %arg4[%c0_12, %c0_13, %c0_14] : memref<4x64x128xf32, #tpu.memory_space<vmem>>, vector<1x32x128xf32>
    %38 = vector.shape_cast %37 : vector<1x32x128xf32> to vector<32x128xf32>
    %cst = arith.constant dense<0.000000e+00> : vector<128x128xf32>
    %39 = tpu.matmul %36, %38, %cst {dimension_numbers = #tpu.dot_dimension_numbers<[1], [0], [0], [1], [0, 0, 1, 1], [], []>, precision = #tpu.contract_precision<fp32>} : vector<128x32xf32>, vector<32x128xf32>, vector<128x128xf32> -> vector<128x128xf32>
    %c0_15 = arith.constant 0 : index
    %c0_16 = arith.constant 0 : index
    %c0_17 = arith.constant 0 : index
    %40 = vector.load %arg6[%c0_15, %c0_16, %c0_17] : memref<4x1x128xf32, #tpu.memory_space<vmem>>, vector<1x1x128xf32>
    %41 = vector.shape_cast %40 : vector<1x1x128xf32> to vector<1x128xf32>
    %42 = vector.broadcast %41 : vector<1x128xf32> to vector<128x128xf32>
    %43 = arith.addf %39, %42 : vector<128x128xf32>
    %44 = vector.shape_cast %43 : vector<128x128xf32> to vector<8x16x128xf32>
    %c0_18 = arith.constant 0 : index
    %c0_19 = arith.constant 0 : index
    %c0_20 = arith.constant 0 : index
    %45 = vector.load %arg13[%c0_18, %c0_19, %c0_20] : memref<8x16x128xf32, #tpu.memory_space<vmem>>, vector<8x16x128xf32>
    tpu.vector_store %arg13[%c0_18, %c0_19, %c0_20], %44 {strides = array<i32>} : memref<8x16x128xf32, #tpu.memory_space<vmem>>, vector<8x16x128xf32>,
    %c1 = arith.constant 1 : index
    %c0_21 = arith.constant 0 : index
    %c0_22 = arith.constant 0 : index
    %46 = vector.load %arg4[%c1, %c0_21, %c0_22] : memref<4x64x128xf32, #tpu.memory_space<vmem>>, vector<1x32x128xf32>
    %47 = vector.shape_cast %46 : vector<1x32x128xf32> to vector<32x128xf32>
    %cst_23 = arith.constant dense<0.000000e+00> : vector<128x128xf32>
    %48 = tpu.matmul %36, %47, %cst_23 {dimension_numbers = #tpu.dot_dimension_numbers<[1], [0], [0], [1], [0, 0, 1, 1], [], []>, precision = #tpu.contract_precision<fp32>} : vector<128x32xf32>, vector<32x128xf32>, vector<128x128xf32> -> vector<128x128xf32>
    %c1_24 = arith.constant 1 : index
    %c0_25 = arith.constant 0 : index
    %c0_26 = arith.constant 0 : index
    %49 = vector.load %arg6[%c1_24, %c0_25, %c0_26] : memref<4x1x128xf32, #tpu.memory_space<vmem>>, vector<1x1x128xf32>
    %50 = vector.shape_cast %49 : vector<1x1x128xf32> to vector<1x128xf32>
    %51 = vector.broadcast %50 : vector<1x128xf32> to vector<128x128xf32>
    %52 = arith.addf %48, %51 : vector<128x128xf32>
    %53 = vector.shape_cast %52 : vector<128x128xf32> to vector<8x16x128xf32>
    %c0_27 = arith.constant 0 : index
    %c0_28 = arith.constant 0 : index
    %c0_29 = arith.constant 0 : index
    %54 = vector.load %arg14[%c0_27, %c0_28, %c0_29] : memref<8x16x128xf32, #tpu.memory_space<vmem>>, vector<8x16x128xf32>
    tpu.vector_store %arg14[%c0_27, %c0_28, %c0_29], %53 {strides = array<i32>} : memref<8x16x128xf32, #tpu.memory_space<vmem>>, vector<8x16x128xf32>,
    %c0_30 = arith.constant 0 : index
    %c0_31 = arith.constant 0 : index
    %c0_32 = arith.constant 0 : index
    %55 = vector.load %arg5[%c0_30, %c0_31, %c0_32] : memref<4x32x128xf32, #tpu.memory_space<vmem>>, vector<1x32x128xf32>
    %56 = vector.shape_cast %55 : vector<1x32x128xf32> to vector<32x128xf32>
    %c1_33 = arith.constant 1 : index
    %c0_34 = arith.constant 0 : index
    %c0_35 = arith.constant 0 : index
    %57 = vector.load %arg5[%c1_33, %c0_34, %c0_35] : memref<4x32x128xf32, #tpu.memory_space<vmem>>, vector<1x32x128xf32>
    %58 = vector.shape_cast %57 : vector<1x32x128xf32> to vector<32x128xf32>
    %cst_36 = arith.constant 0.000000e+00 : f32
    %59 = vector.broadcast %cst_36 : f32 to vector<16x32xf32>
    %c0_i32 = arith.constant 0 : i32
    %c7_i32 = arith.constant 7 : i32
    %60 = arith.subi %c7_i32, %c0_i32 : i32
    %61 = arith.index_cast %c0_i32 : i32 to index
    %c0_37 = arith.constant 0 : index
    %c0_38 = arith.constant 0 : index
    %62 = vector.load %arg13[%61, %c0_37, %c0_38] : memref<8x16x128xf32, #tpu.memory_space<vmem>>, vector<1x16x128xf32>
    %63 = vector.shape_cast %62 : vector<1x16x128xf32> to vector<16x128xf32>
    %cst_39 = arith.constant dense<0.000000e+00> : vector<16x128xf32>
    %64 = tpu.matmul %59, %56, %cst_39 {dimension_numbers = #tpu.dot_dimension_numbers<[1], [0], [0], [1], [0, 0, 1, 1], [], []>, precision = #tpu.contract_precision<fp32>} : vector<16x32xf32>, vector<32x128xf32>, vector<16x128xf32> -> vector<16x128xf32>
    %65 = arith.addf %63, %64 : vector<16x128xf32>
    %66 = arith.index_cast %60 : i32 to index
    %c0_40 = arith.constant 0 : index
    %c0_41 = arith.constant 0 : index
    %67 = vector.load %arg14[%66, %c0_40, %c0_41] : memref<8x16x128xf32, #tpu.memory_space<vmem>>, vector<1x16x128xf32>
    %68 = vector.shape_cast %67 : vector<1x16x128xf32> to vector<16x128xf32>
    %cst_42 = arith.constant dense<0.000000e+00> : vector<16x128xf32>
    %69 = tpu.matmul %59, %58, %cst_42 {dimension_numbers = #tpu.dot_dimension_numbers<[1], [0], [0], [1], [0, 0, 1, 1], [], []>, precision = #tpu.contract_precision<fp32>} : vector<16x32xf32>, vector<32x128xf32>, vector<16x128xf32> -> vector<16x128xf32>
    %70 = arith.addf %68, %69 : vector<16x128xf32>
    %71 = arith.negf %65 : vector<16x128xf32>
    %72 = math.exp %71 : vector<16x128xf32>
    %cst_43 = arith.constant 1.000000e+00 : f32
    %73 = vector.broadcast %cst_43 : f32 to vector<16x128xf32>
    %74 = arith.addf %73, %72 : vector<16x128xf32>
    %75 = arith.divf %73, %74 : vector<16x128xf32>
    %76 = math.tanh %65 : vector<16x128xf32>
    %77 = vector.extract_strided_slice %75 {offsets = [0, 32], sizes = [16, 32], strides = [1, 1]} : vector<16x128xf32> to vector<16x32xf32>
    %78 = arith.mulf %77, %59 : vector<16x32xf32>
    %79 = vector.extract_strided_slice %75 {offsets = [0, 0], sizes = [16, 32], strides = [1, 1]} : vector<16x128xf32> to vector<16x32xf32>
    %80 = vector.extract_strided_slice %76 {offsets = [0, 64], sizes = [16, 32], strides = [1, 1]} : vector<16x128xf32> to vector<16x32xf32>
    %81 = arith.mulf %79, %80 : vector<16x32xf32>
    %82 = arith.addf %78, %81 : vector<16x32xf32>
    %83 = vector.extract_strided_slice %75 {offsets = [0, 96], sizes = [16, 32], strides = [1, 1]} : vector<16x128xf32> to vector<16x32xf32>
    %84 = math.tanh %82 : vector<16x32xf32>
    %85 = arith.mulf %83, %84 : vector<16x32xf32>
    %86 = arith.negf %70 : vector<16x128xf32>
    %87 = math.exp %86 : vector<16x128xf32>
    %cst_44 = arith.constant 1.000000e+00 : f32
    %88 = vector.broadcast %cst_44 : f32 to vector<16x128xf32>
    %89 = arith.addf %88, %87 : vector<16x128xf32>
    %90 = arith.divf %88, %89 : vector<16x128xf32>
    %91 = math.tanh %70 : vector<16x128xf32>
    %92 = vector.extract_strided_slice %90 {offsets = [0, 32], sizes = [16, 32], strides = [1, 1]} : vector<16x128xf32> to vector<16x32xf32>
    %93 = arith.mulf %92, %59 : vector<16x32xf32>
    %94 = vector.extract_strided_slice %90 {offsets = [0, 0], sizes = [16, 32], strides = [1, 1]} : vector<16x128xf32> to vector<16x32xf32>
    %95 = vector.extract_strided_slice %91 {offsets = [0, 64], sizes = [16, 32], strides = [1, 1]} : vector<16x128xf32> to vector<16x32xf32>
    %96 = arith.mulf %94, %95 : vector<16x32xf32>
    %97 = arith.addf %93, %96 : vector<16x32xf32>
    %98 = vector.extract_strided_slice %90 {offsets = [0, 96], sizes = [16, 32], strides = [1, 1]} : vector<16x128xf32> to vector<16x32xf32>
    %99 = math.tanh %97 : vector<16x32xf32>
    %100 = arith.mulf %98, %99 : vector<16x32xf32>
    %101 = arith.index_cast %c0_i32 : i32 to index
    %c0_45 = arith.constant 0 : index
    %c0_46 = arith.constant 0 : index
    %102 = vector.load %arg12[%101, %c0_45, %c0_46] : memref<8x16x64xf32, #tpu.memory_space<vmem>>, vector<1x16x32xf32>
    %103 = vector.shape_cast %102 : vector<1x16x32xf32> to vector<16x32xf32>
    %104 = vector.shape_cast %85 : vector<16x32xf32> to vector<1x16x32xf32>
    tpu.vector_store %arg12[%101, %c0_45, %c0_46], %104 {strides = array<i32>} : memref<8x16x64xf32, #tpu.memory_space<vmem>>, vector<1x16x32xf32>,
    %105 = arith.index_cast %60 : i32 to index
    %c0_47 = arith.constant 0 : index
    %c32 = arith.constant 32 : index
    %106 = vector.load %arg12[%105, %c0_47, %c32] : memref<8x16x64xf32, #tpu.memory_space<vmem>>, vector<1x16x32xf32>
    %107 = vector.shape_cast %106 : vector<1x16x32xf32> to vector<16x32xf32>
    %108 = vector.shape_cast %100 : vector<16x32xf32> to vector<1x16x32xf32>
    tpu.vector_store %arg12[%105, %c0_47, %c32], %108 {strides = array<i32>} : memref<8x16x64xf32, #tpu.memory_space<vmem>>, vector<1x16x32xf32>,
    %c1_i32 = arith.constant 1 : i32
    %c7_i32_48 = arith.constant 7 : i32
    %109 = arith.subi %c7_i32_48, %c1_i32 : i32
    %110 = arith.index_cast %c1_i32 : i32 to index
    %c0_49 = arith.constant 0 : index
    %c0_50 = arith.constant 0 : index
    %111 = vector.load %arg13[%110, %c0_49, %c0_50] : memref<8x16x128xf32, #tpu.memory_space<vmem>>, vector<1x16x128xf32>
    %112 = vector.shape_cast %111 : vector<1x16x128xf32> to vector<16x128xf32>
    %cst_51 = arith.constant dense<0.000000e+00> : vector<16x128xf32>
    %113 = tpu.matmul %85, %56, %cst_51 {dimension_numbers = #tpu.dot_dimension_numbers<[1], [0], [0], [1], [0, 0, 1, 1], [], []>, precision = #tpu.contract_precision<fp32>} : vector<16x32xf32>, vector<32x128xf32>, vector<16x128xf32> -> vector<16x128xf32>
    %114 = arith.addf %112, %113 : vector<16x128xf32>
    %115 = arith.index_cast %109 : i32 to index
    %c0_52 = arith.constant 0 : index
    %c0_53 = arith.constant 0 : index
    %116 = vector.load %arg14[%115, %c0_52, %c0_53] : memref<8x16x128xf32, #tpu.memory_space<vmem>>, vector<1x16x128xf32>
    %117 = vector.shape_cast %116 : vector<1x16x128xf32> to vector<16x128xf32>
    %cst_54 = arith.constant dense<0.000000e+00> : vector<16x128xf32>
    %118 = tpu.matmul %100, %58, %cst_54 {dimension_numbers = #tpu.dot_dimension_numbers<[1], [0], [0], [1], [0, 0, 1, 1], [], []>, precision = #tpu.contract_precision<fp32>} : vector<16x32xf32>, vector<32x128xf32>, vector<16x128xf32> -> vector<16x128xf32>
    %119 = arith.addf %117, %118 : vector<16x128xf32>
    %120 = arith.negf %114 : vector<16x128xf32>
    %121 = math.exp %120 : vector<16x128xf32>
    %cst_55 = arith.constant 1.000000e+00 : f32
    %122 = vector.broadcast %cst_55 : f32 to vector<16x128xf32>
    %123 = arith.addf %122, %121 : vector<16x128xf32>
    %124 = arith.divf %122, %123 : vector<16x128xf32>
    %125 = math.tanh %114 : vector<16x128xf32>
    %126 = vector.extract_strided_slice %124 {offsets = [0, 32], sizes = [16, 32], strides = [1, 1]} : vector<16x128xf32> to vector<16x32xf32>
    %127 = arith.mulf %126, %82 : vector<16x32xf32>
    %128 = vector.extract_strided_slice %124 {offsets = [0, 0], sizes = [16, 32], strides = [1, 1]} : vector<16x128xf32> to vector<16x32xf32>
    %129 = vector.extract_strided_slice %125 {offsets = [0, 64], sizes = [16, 32], strides = [1, 1]} : vector<16x128xf32> to vector<16x32xf32>
    %130 = arith.mulf %128, %129 : vector<16x32xf32>
    %131 = arith.addf %127, %130 : vector<16x32xf32>
    %132 = vector.extract_strided_slice %124 {offsets = [0, 96], sizes = [16, 32], strides = [1, 1]} : vector<16x128xf32> to vector<16x32xf32>
    %133 = math.tanh %131 : vector<16x32xf32>
    %134 = arith.mulf %132, %133 : vector<16x32xf32>
    %135 = arith.negf %119 : vector<16x128xf32>
    %136 = math.exp %135 : vector<16x128xf32>
    %cst_56 = arith.constant 1.000000e+00 : f32
    %137 = vector.broadcast %cst_56 : f32 to vector<16x128xf32>
    %138 = arith.addf %137, %136 : vector<16x128xf32>
    %139 = arith.divf %137, %138 : vector<16x128xf32>
    %140 = math.tanh %119 : vector<16x128xf32>
    %141 = vector.extract_strided_slice %139 {offsets = [0, 32], sizes = [16, 32], strides = [1, 1]} : vector<16x128xf32> to vector<16x32xf32>
    %142 = arith.mulf %141, %97 : vector<16x32xf32>
    %143 = vector.extract_strided_slice %139 {offsets = [0, 0], sizes = [16, 32], strides = [1, 1]} : vector<16x128xf32> to vector<16x32xf32>
    %144 = vector.extract_strided_slice %140 {offsets = [0, 64], sizes = [16, 32], strides = [1, 1]} : vector<16x128xf32> to vector<16x32xf32>
    %145 = arith.mulf %143, %144 : vector<16x32xf32>
    %146 = arith.addf %142, %145 : vector<16x32xf32>
    %147 = vector.extract_strided_slice %139 {offsets = [0, 96], sizes = [16, 32], strides = [1, 1]} : vector<16x128xf32> to vector<16x32xf32>
    %148 = math.tanh %146 : vector<16x32xf32>
    %149 = arith.mulf %147, %148 : vector<16x32xf32>
    %150 = arith.index_cast %c1_i32 : i32 to index
    %c0_57 = arith.constant 0 : index
    %c0_58 = arith.constant 0 : index
    %151 = vector.load %arg12[%150, %c0_57, %c0_58] : memref<8x16x64xf32, #tpu.memory_space<vmem>>, vector<1x16x32xf32>
    %152 = vector.shape_cast %151 : vector<1x16x32xf32> to vector<16x32xf32>
    %153 = vector.shape_cast %134 : vector<16x32xf32> to vector<1x16x32xf32>
    tpu.vector_store %arg12[%150, %c0_57, %c0_58], %153 {strides = array<i32>} : memref<8x16x64xf32, #tpu.memory_space<vmem>>, vector<1x16x32xf32>,
    %154 = arith.index_cast %109 : i32 to index
    %c0_59 = arith.constant 0 : index
    %c32_60 = arith.constant 32 : index
    %155 = vector.load %arg12[%154, %c0_59, %c32_60] : memref<8x16x64xf32, #tpu.memory_space<vmem>>, vector<1x16x32xf32>
    %156 = vector.shape_cast %155 : vector<1x16x32xf32> to vector<16x32xf32>
    %157 = vector.shape_cast %149 : vector<16x32xf32> to vector<1x16x32xf32>
    tpu.vector_store %arg12[%154, %c0_59, %c32_60], %157 {strides = array<i32>} : memref<8x16x64xf32, #tpu.memory_space<vmem>>, vector<1x16x32xf32>,
    %c2_i32 = arith.constant 2 : i32
    %c7_i32_61 = arith.constant 7 : i32
    %158 = arith.subi %c7_i32_61, %c2_i32 : i32
    %159 = arith.index_cast %c2_i32 : i32 to index
    %c0_62 = arith.constant 0 : index
    %c0_63 = arith.constant 0 : index
    %160 = vector.load %arg13[%159, %c0_62, %c0_63] : memref<8x16x128xf32, #tpu.memory_space<vmem>>, vector<1x16x128xf32>
    %161 = vector.shape_cast %160 : vector<1x16x128xf32> to vector<16x128xf32>
    %cst_64 = arith.constant dense<0.000000e+00> : vector<16x128xf32>
    %162 = tpu.matmul %134, %56, %cst_64 {dimension_numbers = #tpu.dot_dimension_numbers<[1], [0], [0], [1], [0, 0, 1, 1], [], []>, precision = #tpu.contract_precision<fp32>} : vector<16x32xf32>, vector<32x128xf32>, vector<16x128xf32> -> vector<16x128xf32>
    %163 = arith.addf %161, %162 : vector<16x128xf32>
    %164 = arith.index_cast %158 : i32 to index
    %c0_65 = arith.constant 0 : index
    %c0_66 = arith.constant 0 : index
    %165 = vector.load %arg14[%164, %c0_65, %c0_66] : memref<8x16x128xf32, #tpu.memory_space<vmem>>, vector<1x16x128xf32>
    %166 = vector.shape_cast %165 : vector<1x16x128xf32> to vector<16x128xf32>
    %cst_67 = arith.constant dense<0.000000e+00> : vector<16x128xf32>
    %167 = tpu.matmul %149, %58, %cst_67 {dimension_numbers = #tpu.dot_dimension_numbers<[1], [0], [0], [1], [0, 0, 1, 1], [], []>, precision = #tpu.contract_precision<fp32>} : vector<16x32xf32>, vector<32x128xf32>, vector<16x128xf32> -> vector<16x128xf32>
    %168 = arith.addf %166, %167 : vector<16x128xf32>
    %169 = arith.negf %163 : vector<16x128xf32>
    %170 = math.exp %169 : vector<16x128xf32>
    %cst_68 = arith.constant 1.000000e+00 : f32
    %171 = vector.broadcast %cst_68 : f32 to vector<16x128xf32>
    %172 = arith.addf %171, %170 : vector<16x128xf32>
    %173 = arith.divf %171, %172 : vector<16x128xf32>
    %174 = math.tanh %163 : vector<16x128xf32>
    %175 = vector.extract_strided_slice %173 {offsets = [0, 32], sizes = [16, 32], strides = [1, 1]} : vector<16x128xf32> to vector<16x32xf32>
    %176 = arith.mulf %175, %131 : vector<16x32xf32>
    %177 = vector.extract_strided_slice %173 {offsets = [0, 0], sizes = [16, 32], strides = [1, 1]} : vector<16x128xf32> to vector<16x32xf32>
    %178 = vector.extract_strided_slice %174 {offsets = [0, 64], sizes = [16, 32], strides = [1, 1]} : vector<16x128xf32> to vector<16x32xf32>
    %179 = arith.mulf %177, %178 : vector<16x32xf32>
    %180 = arith.addf %176, %179 : vector<16x32xf32>
    %181 = vector.extract_strided_slice %173 {offsets = [0, 96], sizes = [16, 32], strides = [1, 1]} : vector<16x128xf32> to vector<16x32xf32>
    %182 = math.tanh %180 : vector<16x32xf32>
    %183 = arith.mulf %181, %182 : vector<16x32xf32>
    %184 = arith.negf %168 : vector<16x128xf32>
    %185 = math.exp %184 : vector<16x128xf32>
    %cst_69 = arith.constant 1.000000e+00 : f32
    %186 = vector.broadcast %cst_69 : f32 to vector<16x128xf32>
    %187 = arith.addf %186, %185 : vector<16x128xf32>
    %188 = arith.divf %186, %187 : vector<16x128xf32>
    %189 = math.tanh %168 : vector<16x128xf32>
    %190 = vector.extract_strided_slice %188 {offsets = [0, 32], sizes = [16, 32], strides = [1, 1]} : vector<16x128xf32> to vector<16x32xf32>
    %191 = arith.mulf %190, %146 : vector<16x32xf32>
    %192 = vector.extract_strided_slice %188 {offsets = [0, 0], sizes = [16, 32], strides = [1, 1]} : vector<16x128xf32> to vector<16x32xf32>
    %193 = vector.extract_strided_slice %189 {offsets = [0, 64], sizes = [16, 32], strides = [1, 1]} : vector<16x128xf32> to vector<16x32xf32>
    %194 = arith.mulf %192, %193 : vector<16x32xf32>
    %195 = arith.addf %191, %194 : vector<16x32xf32>
    %196 = vector.extract_strided_slice %188 {offsets = [0, 96], sizes = [16, 32], strides = [1, 1]} : vector<16x128xf32> to vector<16x32xf32>
    %197 = math.tanh %195 : vector<16x32xf32>
    %198 = arith.mulf %196, %197 : vector<16x32xf32>
    %199 = arith.index_cast %c2_i32 : i32 to index
    %c0_70 = arith.constant 0 : index
    %c0_71 = arith.constant 0 : index
    %200 = vector.load %arg12[%199, %c0_70, %c0_71] : memref<8x16x64xf32, #tpu.memory_space<vmem>>, vector<1x16x32xf32>
    %201 = vector.shape_cast %200 : vector<1x16x32xf32> to vector<16x32xf32>
    %202 = vector.shape_cast %183 : vector<16x32xf32> to vector<1x16x32xf32>
    tpu.vector_store %arg12[%199, %c0_70, %c0_71], %202 {strides = array<i32>} : memref<8x16x64xf32, #tpu.memory_space<vmem>>, vector<1x16x32xf32>,
    %203 = arith.index_cast %158 : i32 to index
    %c0_72 = arith.constant 0 : index
    %c32_73 = arith.constant 32 : index
    %204 = vector.load %arg12[%203, %c0_72, %c32_73] : memref<8x16x64xf32, #tpu.memory_space<vmem>>, vector<1x16x32xf32>
    %205 = vector.shape_cast %204 : vector<1x16x32xf32> to vector<16x32xf32>
    %206 = vector.shape_cast %198 : vector<16x32xf32> to vector<1x16x32xf32>
    tpu.vector_store %arg12[%203, %c0_72, %c32_73], %206 {strides = array<i32>} : memref<8x16x64xf32, #tpu.memory_space<vmem>>, vector<1x16x32xf32>,
    %c3_i32 = arith.constant 3 : i32
    %c7_i32_74 = arith.constant 7 : i32
    %207 = arith.subi %c7_i32_74, %c3_i32 : i32
    %208 = arith.index_cast %c3_i32 : i32 to index
    %c0_75 = arith.constant 0 : index
    %c0_76 = arith.constant 0 : index
    %209 = vector.load %arg13[%208, %c0_75, %c0_76] : memref<8x16x128xf32, #tpu.memory_space<vmem>>, vector<1x16x128xf32>
    %210 = vector.shape_cast %209 : vector<1x16x128xf32> to vector<16x128xf32>
    %cst_77 = arith.constant dense<0.000000e+00> : vector<16x128xf32>
    %211 = tpu.matmul %183, %56, %cst_77 {dimension_numbers = #tpu.dot_dimension_numbers<[1], [0], [0], [1], [0, 0, 1, 1], [], []>, precision = #tpu.contract_precision<fp32>} : vector<16x32xf32>, vector<32x128xf32>, vector<16x128xf32> -> vector<16x128xf32>
    %212 = arith.addf %210, %211 : vector<16x128xf32>
    %213 = arith.index_cast %207 : i32 to index
    %c0_78 = arith.constant 0 : index
    %c0_79 = arith.constant 0 : index
    %214 = vector.load %arg14[%213, %c0_78, %c0_79] : memref<8x16x128xf32, #tpu.memory_space<vmem>>, vector<1x16x128xf32>
    %215 = vector.shape_cast %214 : vector<1x16x128xf32> to vector<16x128xf32>
    %cst_80 = arith.constant dense<0.000000e+00> : vector<16x128xf32>
    %216 = tpu.matmul %198, %58, %cst_80 {dimension_numbers = #tpu.dot_dimension_numbers<[1], [0], [0], [1], [0, 0, 1, 1], [], []>, precision = #tpu.contract_precision<fp32>} : vector<16x32xf32>, vector<32x128xf32>, vector<16x128xf32> -> vector<16x128xf32>
    %217 = arith.addf %215, %216 : vector<16x128xf32>
    %218 = arith.negf %212 : vector<16x128xf32>
    %219 = math.exp %218 : vector<16x128xf32>
    %cst_81 = arith.constant 1.000000e+00 : f32
    %220 = vector.broadcast %cst_81 : f32 to vector<16x128xf32>
    %221 = arith.addf %220, %219 : vector<16x128xf32>
    %222 = arith.divf %220, %221 : vector<16x128xf32>
    %223 = math.tanh %212 : vector<16x128xf32>
    %224 = vector.extract_strided_slice %222 {offsets = [0, 32], sizes = [16, 32], strides = [1, 1]} : vector<16x128xf32> to vector<16x32xf32>
    %225 = arith.mulf %224, %180 : vector<16x32xf32>
    %226 = vector.extract_strided_slice %222 {offsets = [0, 0], sizes = [16, 32], strides = [1, 1]} : vector<16x128xf32> to vector<16x32xf32>
    %227 = vector.extract_strided_slice %223 {offsets = [0, 64], sizes = [16, 32], strides = [1, 1]} : vector<16x128xf32> to vector<16x32xf32>
    %228 = arith.mulf %226, %227 : vector<16x32xf32>
    %229 = arith.addf %225, %228 : vector<16x32xf32>
    %230 = vector.extract_strided_slice %222 {offsets = [0, 96], sizes = [16, 32], strides = [1, 1]} : vector<16x128xf32> to vector<16x32xf32>
    %231 = math.tanh %229 : vector<16x32xf32>
    %232 = arith.mulf %230, %231 : vector<16x32xf32>
    %233 = arith.negf %217 : vector<16x128xf32>
    %234 = math.exp %233 : vector<16x128xf32>
    %cst_82 = arith.constant 1.000000e+00 : f32
    %235 = vector.broadcast %cst_82 : f32 to vector<16x128xf32>
    %236 = arith.addf %235, %234 : vector<16x128xf32>
    %237 = arith.divf %235, %236 : vector<16x128xf32>
    %238 = math.tanh %217 : vector<16x128xf32>
    %239 = vector.extract_strided_slice %237 {offsets = [0, 32], sizes = [16, 32], strides = [1, 1]} : vector<16x128xf32> to vector<16x32xf32>
    %240 = arith.mulf %239, %195 : vector<16x32xf32>
    %241 = vector.extract_strided_slice %237 {offsets = [0, 0], sizes = [16, 32], strides = [1, 1]} : vector<16x128xf32> to vector<16x32xf32>
    %242 = vector.extract_strided_slice %238 {offsets = [0, 64], sizes = [16, 32], strides = [1, 1]} : vector<16x128xf32> to vector<16x32xf32>
    %243 = arith.mulf %241, %242 : vector<16x32xf32>
    %244 = arith.addf %240, %243 : vector<16x32xf32>
    %245 = vector.extract_strided_slice %237 {offsets = [0, 96], sizes = [16, 32], strides = [1, 1]} : vector<16x128xf32> to vector<16x32xf32>
    %246 = math.tanh %244 : vector<16x32xf32>
    %247 = arith.mulf %245, %246 : vector<16x32xf32>
    %248 = arith.index_cast %c3_i32 : i32 to index
    %c0_83 = arith.constant 0 : index
    %c0_84 = arith.constant 0 : index
    %249 = vector.load %arg12[%248, %c0_83, %c0_84] : memref<8x16x64xf32, #tpu.memory_space<vmem>>, vector<1x16x32xf32>
    %250 = vector.shape_cast %249 : vector<1x16x32xf32> to vector<16x32xf32>
    %251 = vector.shape_cast %232 : vector<16x32xf32> to vector<1x16x32xf32>
    tpu.vector_store %arg12[%248, %c0_83, %c0_84], %251 {strides = array<i32>} : memref<8x16x64xf32, #tpu.memory_space<vmem>>, vector<1x16x32xf32>,
    %252 = arith.index_cast %207 : i32 to index
    %c0_85 = arith.constant 0 : index
    %c32_86 = arith.constant 32 : index
    %253 = vector.load %arg12[%252, %c0_85, %c32_86] : memref<8x16x64xf32, #tpu.memory_space<vmem>>, vector<1x16x32xf32>
    %254 = vector.shape_cast %253 : vector<1x16x32xf32> to vector<16x32xf32>
    %255 = vector.shape_cast %247 : vector<16x32xf32> to vector<1x16x32xf32>
    tpu.vector_store %arg12[%252, %c0_85, %c32_86], %255 {strides = array<i32>} : memref<8x16x64xf32, #tpu.memory_space<vmem>>, vector<1x16x32xf32>,
    %c4_i32 = arith.constant 4 : i32
    %c7_i32_87 = arith.constant 7 : i32
    %256 = arith.subi %c7_i32_87, %c4_i32 : i32
    %257 = arith.index_cast %c4_i32 : i32 to index
    %c0_88 = arith.constant 0 : index
    %c0_89 = arith.constant 0 : index
    %258 = vector.load %arg13[%257, %c0_88, %c0_89] : memref<8x16x128xf32, #tpu.memory_space<vmem>>, vector<1x16x128xf32>
    %259 = vector.shape_cast %258 : vector<1x16x128xf32> to vector<16x128xf32>
    %cst_90 = arith.constant dense<0.000000e+00> : vector<16x128xf32>
    %260 = tpu.matmul %232, %56, %cst_90 {dimension_numbers = #tpu.dot_dimension_numbers<[1], [0], [0], [1], [0, 0, 1, 1], [], []>, precision = #tpu.contract_precision<fp32>} : vector<16x32xf32>, vector<32x128xf32>, vector<16x128xf32> -> vector<16x128xf32>
    %261 = arith.addf %259, %260 : vector<16x128xf32>
    %262 = arith.index_cast %256 : i32 to index
    %c0_91 = arith.constant 0 : index
    %c0_92 = arith.constant 0 : index
    %263 = vector.load %arg14[%262, %c0_91, %c0_92] : memref<8x16x128xf32, #tpu.memory_space<vmem>>, vector<1x16x128xf32>
    %264 = vector.shape_cast %263 : vector<1x16x128xf32> to vector<16x128xf32>
    %cst_93 = arith.constant dense<0.000000e+00> : vector<16x128xf32>
    %265 = tpu.matmul %247, %58, %cst_93 {dimension_numbers = #tpu.dot_dimension_numbers<[1], [0], [0], [1], [0, 0, 1, 1], [], []>, precision = #tpu.contract_precision<fp32>} : vector<16x32xf32>, vector<32x128xf32>, vector<16x128xf32> -> vector<16x128xf32>
    %266 = arith.addf %264, %265 : vector<16x128xf32>
    %267 = arith.negf %261 : vector<16x128xf32>
    %268 = math.exp %267 : vector<16x128xf32>
    %cst_94 = arith.constant 1.000000e+00 : f32
    %269 = vector.broadcast %cst_94 : f32 to vector<16x128xf32>
    %270 = arith.addf %269, %268 : vector<16x128xf32>
    %271 = arith.divf %269, %270 : vector<16x128xf32>
    %272 = math.tanh %261 : vector<16x128xf32>
    %273 = vector.extract_strided_slice %271 {offsets = [0, 32], sizes = [16, 32], strides = [1, 1]} : vector<16x128xf32> to vector<16x32xf32>
    %274 = arith.mulf %273, %229 : vector<16x32xf32>
    %275 = vector.extract_strided_slice %271 {offsets = [0, 0], sizes = [16, 32], strides = [1, 1]} : vector<16x128xf32> to vector<16x32xf32>
    %276 = vector.extract_strided_slice %272 {offsets = [0, 64], sizes = [16, 32], strides = [1, 1]} : vector<16x128xf32> to vector<16x32xf32>
    %277 = arith.mulf %275, %276 : vector<16x32xf32>
    %278 = arith.addf %274, %277 : vector<16x32xf32>
    %279 = vector.extract_strided_slice %271 {offsets = [0, 96], sizes = [16, 32], strides = [1, 1]} : vector<16x128xf32> to vector<16x32xf32>
    %280 = math.tanh %278 : vector<16x32xf32>
    %281 = arith.mulf %279, %280 : vector<16x32xf32>
    %282 = arith.negf %266 : vector<16x128xf32>
    %283 = math.exp %282 : vector<16x128xf32>
    %cst_95 = arith.constant 1.000000e+00 : f32
    %284 = vector.broadcast %cst_95 : f32 to vector<16x128xf32>
    %285 = arith.addf %284, %283 : vector<16x128xf32>
    %286 = arith.divf %284, %285 : vector<16x128xf32>
    %287 = math.tanh %266 : vector<16x128xf32>
    %288 = vector.extract_strided_slice %286 {offsets = [0, 32], sizes = [16, 32], strides = [1, 1]} : vector<16x128xf32> to vector<16x32xf32>
    %289 = arith.mulf %288, %244 : vector<16x32xf32>
    %290 = vector.extract_strided_slice %286 {offsets = [0, 0], sizes = [16, 32], strides = [1, 1]} : vector<16x128xf32> to vector<16x32xf32>
    %291 = vector.extract_strided_slice %287 {offsets = [0, 64], sizes = [16, 32], strides = [1, 1]} : vector<16x128xf32> to vector<16x32xf32>
    %292 = arith.mulf %290, %291 : vector<16x32xf32>
    %293 = arith.addf %289, %292 : vector<16x32xf32>
    %294 = vector.extract_strided_slice %286 {offsets = [0, 96], sizes = [16, 32], strides = [1, 1]} : vector<16x128xf32> to vector<16x32xf32>
    %295 = math.tanh %293 : vector<16x32xf32>
    %296 = arith.mulf %294, %295 : vector<16x32xf32>
    %297 = arith.index_cast %c4_i32 : i32 to index
    %c0_96 = arith.constant 0 : index
    %c0_97 = arith.constant 0 : index
    %298 = vector.load %arg12[%297, %c0_96, %c0_97] : memref<8x16x64xf32, #tpu.memory_space<vmem>>, vector<1x16x32xf32>
    %299 = vector.shape_cast %298 : vector<1x16x32xf32> to vector<16x32xf32>
    %300 = vector.shape_cast %281 : vector<16x32xf32> to vector<1x16x32xf32>
    tpu.vector_store %arg12[%297, %c0_96, %c0_97], %300 {strides = array<i32>} : memref<8x16x64xf32, #tpu.memory_space<vmem>>, vector<1x16x32xf32>,
    %301 = arith.index_cast %256 : i32 to index
    %c0_98 = arith.constant 0 : index
    %c32_99 = arith.constant 32 : index
    %302 = vector.load %arg12[%301, %c0_98, %c32_99] : memref<8x16x64xf32, #tpu.memory_space<vmem>>, vector<1x16x32xf32>
    %303 = vector.shape_cast %302 : vector<1x16x32xf32> to vector<16x32xf32>
    %304 = vector.shape_cast %296 : vector<16x32xf32> to vector<1x16x32xf32>
    tpu.vector_store %arg12[%301, %c0_98, %c32_99], %304 {strides = array<i32>} : memref<8x16x64xf32, #tpu.memory_space<vmem>>, vector<1x16x32xf32>,
    %c5_i32 = arith.constant 5 : i32
    %c7_i32_100 = arith.constant 7 : i32
    %305 = arith.subi %c7_i32_100, %c5_i32 : i32
    %306 = arith.index_cast %c5_i32 : i32 to index
    %c0_101 = arith.constant 0 : index
    %c0_102 = arith.constant 0 : index
    %307 = vector.load %arg13[%306, %c0_101, %c0_102] : memref<8x16x128xf32, #tpu.memory_space<vmem>>, vector<1x16x128xf32>
    %308 = vector.shape_cast %307 : vector<1x16x128xf32> to vector<16x128xf32>
    %cst_103 = arith.constant dense<0.000000e+00> : vector<16x128xf32>
    %309 = tpu.matmul %281, %56, %cst_103 {dimension_numbers = #tpu.dot_dimension_numbers<[1], [0], [0], [1], [0, 0, 1, 1], [], []>, precision = #tpu.contract_precision<fp32>} : vector<16x32xf32>, vector<32x128xf32>, vector<16x128xf32> -> vector<16x128xf32>
    %310 = arith.addf %308, %309 : vector<16x128xf32>
    %311 = arith.index_cast %305 : i32 to index
    %c0_104 = arith.constant 0 : index
    %c0_105 = arith.constant 0 : index
    %312 = vector.load %arg14[%311, %c0_104, %c0_105] : memref<8x16x128xf32, #tpu.memory_space<vmem>>, vector<1x16x128xf32>
    %313 = vector.shape_cast %312 : vector<1x16x128xf32> to vector<16x128xf32>
    %cst_106 = arith.constant dense<0.000000e+00> : vector<16x128xf32>
    %314 = tpu.matmul %296, %58, %cst_106 {dimension_numbers = #tpu.dot_dimension_numbers<[1], [0], [0], [1], [0, 0, 1, 1], [], []>, precision = #tpu.contract_precision<fp32>} : vector<16x32xf32>, vector<32x128xf32>, vector<16x128xf32> -> vector<16x128xf32>
    %315 = arith.addf %313, %314 : vector<16x128xf32>
    %316 = arith.negf %310 : vector<16x128xf32>
    %317 = math.exp %316 : vector<16x128xf32>
    %cst_107 = arith.constant 1.000000e+00 : f32
    %318 = vector.broadcast %cst_107 : f32 to vector<16x128xf32>
    %319 = arith.addf %318, %317 : vector<16x128xf32>
    %320 = arith.divf %318, %319 : vector<16x128xf32>
    %321 = math.tanh %310 : vector<16x128xf32>
    %322 = vector.extract_strided_slice %320 {offsets = [0, 32], sizes = [16, 32], strides = [1, 1]} : vector<16x128xf32> to vector<16x32xf32>
    %323 = arith.mulf %322, %278 : vector<16x32xf32>
    %324 = vector.extract_strided_slice %320 {offsets = [0, 0], sizes = [16, 32], strides = [1, 1]} : vector<16x128xf32> to vector<16x32xf32>
    %325 = vector.extract_strided_slice %321 {offsets = [0, 64], sizes = [16, 32], strides = [1, 1]} : vector<16x128xf32> to vector<16x32xf32>
    %326 = arith.mulf %324, %325 : vector<16x32xf32>
    %327 = arith.addf %323, %326 : vector<16x32xf32>
    %328 = vector.extract_strided_slice %320 {offsets = [0, 96], sizes = [16, 32], strides = [1, 1]} : vector<16x128xf32> to vector<16x32xf32>
    %329 = math.tanh %327 : vector<16x32xf32>
    %330 = arith.mulf %328, %329 : vector<16x32xf32>
    %331 = arith.negf %315 : vector<16x128xf32>
    %332 = math.exp %331 : vector<16x128xf32>
    %cst_108 = arith.constant 1.000000e+00 : f32
    %333 = vector.broadcast %cst_108 : f32 to vector<16x128xf32>
    %334 = arith.addf %333, %332 : vector<16x128xf32>
    %335 = arith.divf %333, %334 : vector<16x128xf32>
    %336 = math.tanh %315 : vector<16x128xf32>
    %337 = vector.extract_strided_slice %335 {offsets = [0, 32], sizes = [16, 32], strides = [1, 1]} : vector<16x128xf32> to vector<16x32xf32>
    %338 = arith.mulf %337, %293 : vector<16x32xf32>
    %339 = vector.extract_strided_slice %335 {offsets = [0, 0], sizes = [16, 32], strides = [1, 1]} : vector<16x128xf32> to vector<16x32xf32>
    %340 = vector.extract_strided_slice %336 {offsets = [0, 64], sizes = [16, 32], strides = [1, 1]} : vector<16x128xf32> to vector<16x32xf32>
    %341 = arith.mulf %339, %340 : vector<16x32xf32>
    %342 = arith.addf %338, %341 : vector<16x32xf32>
    %343 = vector.extract_strided_slice %335 {offsets = [0, 96], sizes = [16, 32], strides = [1, 1]} : vector<16x128xf32> to vector<16x32xf32>
    %344 = math.tanh %342 : vector<16x32xf32>
    %345 = arith.mulf %343, %344 : vector<16x32xf32>
    %346 = arith.index_cast %c5_i32 : i32 to index
    %c0_109 = arith.constant 0 : index
    %c0_110 = arith.constant 0 : index
    %347 = vector.load %arg12[%346, %c0_109, %c0_110] : memref<8x16x64xf32, #tpu.memory_space<vmem>>, vector<1x16x32xf32>
    %348 = vector.shape_cast %347 : vector<1x16x32xf32> to vector<16x32xf32>
    %349 = vector.shape_cast %330 : vector<16x32xf32> to vector<1x16x32xf32>
    tpu.vector_store %arg12[%346, %c0_109, %c0_110], %349 {strides = array<i32>} : memref<8x16x64xf32, #tpu.memory_space<vmem>>, vector<1x16x32xf32>,
    %350 = arith.index_cast %305 : i32 to index
    %c0_111 = arith.constant 0 : index
    %c32_112 = arith.constant 32 : index
    %351 = vector.load %arg12[%350, %c0_111, %c32_112] : memref<8x16x64xf32, #tpu.memory_space<vmem>>, vector<1x16x32xf32>
    %352 = vector.shape_cast %351 : vector<1x16x32xf32> to vector<16x32xf32>
    %353 = vector.shape_cast %345 : vector<16x32xf32> to vector<1x16x32xf32>
    tpu.vector_store %arg12[%350, %c0_111, %c32_112], %353 {strides = array<i32>} : memref<8x16x64xf32, #tpu.memory_space<vmem>>, vector<1x16x32xf32>,
    %c6_i32 = arith.constant 6 : i32
    %c7_i32_113 = arith.constant 7 : i32
    %354 = arith.subi %c7_i32_113, %c6_i32 : i32
    %355 = arith.index_cast %c6_i32 : i32 to index
    %c0_114 = arith.constant 0 : index
    %c0_115 = arith.constant 0 : index
    %356 = vector.load %arg13[%355, %c0_114, %c0_115] : memref<8x16x128xf32, #tpu.memory_space<vmem>>, vector<1x16x128xf32>
    %357 = vector.shape_cast %356 : vector<1x16x128xf32> to vector<16x128xf32>
    %cst_116 = arith.constant dense<0.000000e+00> : vector<16x128xf32>
    %358 = tpu.matmul %330, %56, %cst_116 {dimension_numbers = #tpu.dot_dimension_numbers<[1], [0], [0], [1], [0, 0, 1, 1], [], []>, precision = #tpu.contract_precision<fp32>} : vector<16x32xf32>, vector<32x128xf32>, vector<16x128xf32> -> vector<16x128xf32>
    %359 = arith.addf %357, %358 : vector<16x128xf32>
    %360 = arith.index_cast %354 : i32 to index
    %c0_117 = arith.constant 0 : index
    %c0_118 = arith.constant 0 : index
    %361 = vector.load %arg14[%360, %c0_117, %c0_118] : memref<8x16x128xf32, #tpu.memory_space<vmem>>, vector<1x16x128xf32>
    %362 = vector.shape_cast %361 : vector<1x16x128xf32> to vector<16x128xf32>
    %cst_119 = arith.constant dense<0.000000e+00> : vector<16x128xf32>
    %363 = tpu.matmul %345, %58, %cst_119 {dimension_numbers = #tpu.dot_dimension_numbers<[1], [0], [0], [1], [0, 0, 1, 1], [], []>, precision = #tpu.contract_precision<fp32>} : vector<16x32xf32>, vector<32x128xf32>, vector<16x128xf32> -> vector<16x128xf32>
    %364 = arith.addf %362, %363 : vector<16x128xf32>
    %365 = arith.negf %359 : vector<16x128xf32>
    %366 = math.exp %365 : vector<16x128xf32>
    %cst_120 = arith.constant 1.000000e+00 : f32
    %367 = vector.broadcast %cst_120 : f32 to vector<16x128xf32>
    %368 = arith.addf %367, %366 : vector<16x128xf32>
    %369 = arith.divf %367, %368 : vector<16x128xf32>
    %370 = math.tanh %359 : vector<16x128xf32>
    %371 = vector.extract_strided_slice %369 {offsets = [0, 32], sizes = [16, 32], strides = [1, 1]} : vector<16x128xf32> to vector<16x32xf32>
    %372 = arith.mulf %371, %327 : vector<16x32xf32>
    %373 = vector.extract_strided_slice %369 {offsets = [0, 0], sizes = [16, 32], strides = [1, 1]} : vector<16x128xf32> to vector<16x32xf32>
    %374 = vector.extract_strided_slice %370 {offsets = [0, 64], sizes = [16, 32], strides = [1, 1]} : vector<16x128xf32> to vector<16x32xf32>
    %375 = arith.mulf %373, %374 : vector<16x32xf32>
    %376 = arith.addf %372, %375 : vector<16x32xf32>
    %377 = vector.extract_strided_slice %369 {offsets = [0, 96], sizes = [16, 32], strides = [1, 1]} : vector<16x128xf32> to vector<16x32xf32>
    %378 = math.tanh %376 : vector<16x32xf32>
    %379 = arith.mulf %377, %378 : vector<16x32xf32>
    %380 = arith.negf %364 : vector<16x128xf32>
    %381 = math.exp %380 : vector<16x128xf32>
    %cst_121 = arith.constant 1.000000e+00 : f32
    %382 = vector.broadcast %cst_121 : f32 to vector<16x128xf32>
    %383 = arith.addf %382, %381 : vector<16x128xf32>
    %384 = arith.divf %382, %383 : vector<16x128xf32>
    %385 = math.tanh %364 : vector<16x128xf32>
    %386 = vector.extract_strided_slice %384 {offsets = [0, 32], sizes = [16, 32], strides = [1, 1]} : vector<16x128xf32> to vector<16x32xf32>
    %387 = arith.mulf %386, %342 : vector<16x32xf32>
    %388 = vector.extract_strided_slice %384 {offsets = [0, 0], sizes = [16, 32], strides = [1, 1]} : vector<16x128xf32> to vector<16x32xf32>
    %389 = vector.extract_strided_slice %385 {offsets = [0, 64], sizes = [16, 32], strides = [1, 1]} : vector<16x128xf32> to vector<16x32xf32>
    %390 = arith.mulf %388, %389 : vector<16x32xf32>
    %391 = arith.addf %387, %390 : vector<16x32xf32>
    %392 = vector.extract_strided_slice %384 {offsets = [0, 96], sizes = [16, 32], strides = [1, 1]} : vector<16x128xf32> to vector<16x32xf32>
    %393 = math.tanh %391 : vector<16x32xf32>
    %394 = arith.mulf %392, %393 : vector<16x32xf32>
    %395 = arith.index_cast %c6_i32 : i32 to index
    %c0_122 = arith.constant 0 : index
    %c0_123 = arith.constant 0 : index
    %396 = vector.load %arg12[%395, %c0_122, %c0_123] : memref<8x16x64xf32, #tpu.memory_space<vmem>>, vector<1x16x32xf32>
    %397 = vector.shape_cast %396 : vector<1x16x32xf32> to vector<16x32xf32>
    %398 = vector.shape_cast %379 : vector<16x32xf32> to vector<1x16x32xf32>
    tpu.vector_store %arg12[%395, %c0_122, %c0_123], %398 {strides = array<i32>} : memref<8x16x64xf32, #tpu.memory_space<vmem>>, vector<1x16x32xf32>,
    %399 = arith.index_cast %354 : i32 to index
    %c0_124 = arith.constant 0 : index
    %c32_125 = arith.constant 32 : index
    %400 = vector.load %arg12[%399, %c0_124, %c32_125] : memref<8x16x64xf32, #tpu.memory_space<vmem>>, vector<1x16x32xf32>
    %401 = vector.shape_cast %400 : vector<1x16x32xf32> to vector<16x32xf32>
    %402 = vector.shape_cast %394 : vector<16x32xf32> to vector<1x16x32xf32>
    tpu.vector_store %arg12[%399, %c0_124, %c32_125], %402 {strides = array<i32>} : memref<8x16x64xf32, #tpu.memory_space<vmem>>, vector<1x16x32xf32>,
    %c7_i32_126 = arith.constant 7 : i32
    %c7_i32_127 = arith.constant 7 : i32
    %403 = arith.subi %c7_i32_127, %c7_i32_126 : i32
    %404 = arith.index_cast %c7_i32_126 : i32 to index
    %c0_128 = arith.constant 0 : index
    %c0_129 = arith.constant 0 : index
    %405 = vector.load %arg13[%404, %c0_128, %c0_129] : memref<8x16x128xf32, #tpu.memory_space<vmem>>, vector<1x16x128xf32>
    %406 = vector.shape_cast %405 : vector<1x16x128xf32> to vector<16x128xf32>
    %cst_130 = arith.constant dense<0.000000e+00> : vector<16x128xf32>
    %407 = tpu.matmul %379, %56, %cst_130 {dimension_numbers = #tpu.dot_dimension_numbers<[1], [0], [0], [1], [0, 0, 1, 1], [], []>, precision = #tpu.contract_precision<fp32>} : vector<16x32xf32>, vector<32x128xf32>, vector<16x128xf32> -> vector<16x128xf32>
    %408 = arith.addf %406, %407 : vector<16x128xf32>
    %409 = arith.index_cast %403 : i32 to index
    %c0_131 = arith.constant 0 : index
    %c0_132 = arith.constant 0 : index
    %410 = vector.load %arg14[%409, %c0_131, %c0_132] : memref<8x16x128xf32, #tpu.memory_space<vmem>>, vector<1x16x128xf32>
    %411 = vector.shape_cast %410 : vector<1x16x128xf32> to vector<16x128xf32>
    %cst_133 = arith.constant dense<0.000000e+00> : vector<16x128xf32>
    %412 = tpu.matmul %394, %58, %cst_133 {dimension_numbers = #tpu.dot_dimension_numbers<[1], [0], [0], [1], [0, 0, 1, 1], [], []>, precision = #tpu.contract_precision<fp32>} : vector<16x32xf32>, vector<32x128xf32>, vector<16x128xf32> -> vector<16x128xf32>
    %413 = arith.addf %411, %412 : vector<16x128xf32>
    %414 = arith.negf %408 : vector<16x128xf32>
    %415 = math.exp %414 : vector<16x128xf32>
    %cst_134 = arith.constant 1.000000e+00 : f32
    %416 = vector.broadcast %cst_134 : f32 to vector<16x128xf32>
    %417 = arith.addf %416, %415 : vector<16x128xf32>
    %418 = arith.divf %416, %417 : vector<16x128xf32>
    %419 = math.tanh %408 : vector<16x128xf32>
    %420 = vector.extract_strided_slice %418 {offsets = [0, 32], sizes = [16, 32], strides = [1, 1]} : vector<16x128xf32> to vector<16x32xf32>
    %421 = arith.mulf %420, %376 : vector<16x32xf32>
    %422 = vector.extract_strided_slice %418 {offsets = [0, 0], sizes = [16, 32], strides = [1, 1]} : vector<16x128xf32> to vector<16x32xf32>
    %423 = vector.extract_strided_slice %419 {offsets = [0, 64], sizes = [16, 32], strides = [1, 1]} : vector<16x128xf32> to vector<16x32xf32>
    %424 = arith.mulf %422, %423 : vector<16x32xf32>
    %425 = arith.addf %421, %424 : vector<16x32xf32>
    %426 = vector.extract_strided_slice %418 {offsets = [0, 96], sizes = [16, 32], strides = [1, 1]} : vector<16x128xf32> to vector<16x32xf32>
    %427 = math.tanh %425 : vector<16x32xf32>
    %428 = arith.mulf %426, %427 : vector<16x32xf32>
    %429 = arith.negf %413 : vector<16x128xf32>
    %430 = math.exp %429 : vector<16x128xf32>
    %cst_135 = arith.constant 1.000000e+00 : f32
    %431 = vector.broadcast %cst_135 : f32 to vector<16x128xf32>
    %432 = arith.addf %431, %430 : vector<16x128xf32>
    %433 = arith.divf %431, %432 : vector<16x128xf32>
    %434 = math.tanh %413 : vector<16x128xf32>
    %435 = vector.extract_strided_slice %433 {offsets = [0, 32], sizes = [16, 32], strides = [1, 1]} : vector<16x128xf32> to vector<16x32xf32>
    %436 = arith.mulf %435, %391 : vector<16x32xf32>
    %437 = vector.extract_strided_slice %433 {offsets = [0, 0], sizes = [16, 32], strides = [1, 1]} : vector<16x128xf32> to vector<16x32xf32>
    %438 = vector.extract_strided_slice %434 {offsets = [0, 64], sizes = [16, 32], strides = [1, 1]} : vector<16x128xf32> to vector<16x32xf32>
    %439 = arith.mulf %437, %438 : vector<16x32xf32>
    %440 = arith.addf %436, %439 : vector<16x32xf32>
    %441 = vector.extract_strided_slice %433 {offsets = [0, 96], sizes = [16, 32], strides = [1, 1]} : vector<16x128xf32> to vector<16x32xf32>
    %442 = math.tanh %440 : vector<16x32xf32>
    %443 = arith.mulf %441, %442 : vector<16x32xf32>
    %444 = arith.index_cast %c7_i32_126 : i32 to index
    %c0_136 = arith.constant 0 : index
    %c0_137 = arith.constant 0 : index
    %445 = vector.load %arg12[%444, %c0_136, %c0_137] : memref<8x16x64xf32, #tpu.memory_space<vmem>>, vector<1x16x32xf32>
    %446 = vector.shape_cast %445 : vector<1x16x32xf32> to vector<16x32xf32>
    %447 = vector.shape_cast %428 : vector<16x32xf32> to vector<1x16x32xf32>
    tpu.vector_store %arg12[%444, %c0_136, %c0_137], %447 {strides = array<i32>} : memref<8x16x64xf32, #tpu.memory_space<vmem>>, vector<1x16x32xf32>,
    %448 = arith.index_cast %403 : i32 to index
    %c0_138 = arith.constant 0 : index
    %c32_139 = arith.constant 32 : index
    %449 = vector.load %arg12[%448, %c0_138, %c32_139] : memref<8x16x64xf32, #tpu.memory_space<vmem>>, vector<1x16x32xf32>
    %450 = vector.shape_cast %449 : vector<1x16x32xf32> to vector<16x32xf32>
    %451 = vector.shape_cast %443 : vector<16x32xf32> to vector<1x16x32xf32>
    tpu.vector_store %arg12[%448, %c0_138, %c32_139], %451 {strides = array<i32>} : memref<8x16x64xf32, #tpu.memory_space<vmem>>, vector<1x16x32xf32>,
    %c8_i32 = arith.constant 8 : i32
    %c0_140 = arith.constant 0 : index
    %c0_141 = arith.constant 0 : index
    %c0_142 = arith.constant 0 : index
    %452 = vector.load %arg12[%c0_140, %c0_141, %c0_142] : memref<8x16x64xf32, #tpu.memory_space<vmem>>, vector<8x16x64xf32>
    %453 = vector.shape_cast %452 : vector<8x16x64xf32> to vector<128x64xf32>
    %c2 = arith.constant 2 : index
    %c0_143 = arith.constant 0 : index
    %c0_144 = arith.constant 0 : index
    %454 = vector.load %arg4[%c2, %c0_143, %c0_144] : memref<4x64x128xf32, #tpu.memory_space<vmem>>, vector<1x64x128xf32>
    %455 = vector.shape_cast %454 : vector<1x64x128xf32> to vector<64x128xf32>
    %cst_145 = arith.constant dense<0.000000e+00> : vector<128x128xf32>
    %456 = tpu.matmul %453, %455, %cst_145 {dimension_numbers = #tpu.dot_dimension_numbers<[1], [0], [0], [1], [0, 0, 1, 1], [], []>, precision = #tpu.contract_precision<fp32>} : vector<128x64xf32>, vector<64x128xf32>, vector<128x128xf32> -> vector<128x128xf32>
    %c2_146 = arith.constant 2 : index
    %c0_147 = arith.constant 0 : index
    %c0_148 = arith.constant 0 : index
    %457 = vector.load %arg6[%c2_146, %c0_147, %c0_148] : memref<4x1x128xf32, #tpu.memory_space<vmem>>, vector<1x1x128xf32>
    %458 = vector.shape_cast %457 : vector<1x1x128xf32> to vector<1x128xf32>
    %459 = vector.broadcast %458 : vector<1x128xf32> to vector<128x128xf32>
    %460 = arith.addf %456, %459 : vector<128x128xf32>
    %461 = vector.shape_cast %460 : vector<128x128xf32> to vector<8x16x128xf32>
    %c0_149 = arith.constant 0 : index
    %c0_150 = arith.constant 0 : index
    %c0_151 = arith.constant 0 : index
    %462 = vector.load %arg13[%c0_149, %c0_150, %c0_151] : memref<8x16x128xf32, #tpu.memory_space<vmem>>, vector<8x16x128xf32>
    tpu.vector_store %arg13[%c0_149, %c0_150, %c0_151], %461 {strides = array<i32>} : memref<8x16x128xf32, #tpu.memory_space<vmem>>, vector<8x16x128xf32>,
    %c3 = arith.constant 3 : index
    %c0_152 = arith.constant 0 : index
    %c0_153 = arith.constant 0 : index
    %463 = vector.load %arg4[%c3, %c0_152, %c0_153] : memref<4x64x128xf32, #tpu.memory_space<vmem>>, vector<1x64x128xf32>
    %464 = vector.shape_cast %463 : vector<1x64x128xf32> to vector<64x128xf32>
    %cst_154 = arith.constant dense<0.000000e+00> : vector<128x128xf32>
    %465 = tpu.matmul %453, %464, %cst_154 {dimension_numbers = #tpu.dot_dimension_numbers<[1], [0], [0], [1], [0, 0, 1, 1], [], []>, precision = #tpu.contract_precision<fp32>} : vector<128x64xf32>, vector<64x128xf32>, vector<128x128xf32> -> vector<128x128xf32>
    %c3_155 = arith.constant 3 : index
    %c0_156 = arith.constant 0 : index
    %c0_157 = arith.constant 0 : index
    %466 = vector.load %arg6[%c3_155, %c0_156, %c0_157] : memref<4x1x128xf32, #tpu.memory_space<vmem>>, vector<1x1x128xf32>
    %467 = vector.shape_cast %466 : vector<1x1x128xf32> to vector<1x128xf32>
    %468 = vector.broadcast %467 : vector<1x128xf32> to vector<128x128xf32>
    %469 = arith.addf %465, %468 : vector<128x128xf32>
    %470 = vector.shape_cast %469 : vector<128x128xf32> to vector<8x16x128xf32>
    %c0_158 = arith.constant 0 : index
    %c0_159 = arith.constant 0 : index
    %c0_160 = arith.constant 0 : index
    %471 = vector.load %arg14[%c0_158, %c0_159, %c0_160] : memref<8x16x128xf32, #tpu.memory_space<vmem>>, vector<8x16x128xf32>
    tpu.vector_store %arg14[%c0_158, %c0_159, %c0_160], %470 {strides = array<i32>} : memref<8x16x128xf32, #tpu.memory_space<vmem>>, vector<8x16x128xf32>,
    %c2_161 = arith.constant 2 : index
    %c0_162 = arith.constant 0 : index
    %c0_163 = arith.constant 0 : index
    %472 = vector.load %arg5[%c2_161, %c0_162, %c0_163] : memref<4x32x128xf32, #tpu.memory_space<vmem>>, vector<1x32x128xf32>
    %473 = vector.shape_cast %472 : vector<1x32x128xf32> to vector<32x128xf32>
    %c3_164 = arith.constant 3 : index
    %c0_165 = arith.constant 0 : index
    %c0_166 = arith.constant 0 : index
    %474 = vector.load %arg5[%c3_164, %c0_165, %c0_166] : memref<4x32x128xf32, #tpu.memory_space<vmem>>, vector<1x32x128xf32>
    %475 = vector.shape_cast %474 : vector<1x32x128xf32> to vector<32x128xf32>
    %cst_167 = arith.constant 0.000000e+00 : f32
    %476 = vector.broadcast %cst_167 : f32 to vector<16x32xf32>
    %c0_i32_168 = arith.constant 0 : i32
    %c7_i32_169 = arith.constant 7 : i32
    %477 = arith.subi %c7_i32_169, %c0_i32_168 : i32
    %478 = arith.index_cast %c0_i32_168 : i32 to index
    %c0_170 = arith.constant 0 : index
    %c0_171 = arith.constant 0 : index
    %479 = vector.load %arg13[%478, %c0_170, %c0_171] : memref<8x16x128xf32, #tpu.memory_space<vmem>>, vector<1x16x128xf32>
    %480 = vector.shape_cast %479 : vector<1x16x128xf32> to vector<16x128xf32>
    %cst_172 = arith.constant dense<0.000000e+00> : vector<16x128xf32>
    %481 = tpu.matmul %476, %473, %cst_172 {dimension_numbers = #tpu.dot_dimension_numbers<[1], [0], [0], [1], [0, 0, 1, 1], [], []>, precision = #tpu.contract_precision<fp32>} : vector<16x32xf32>, vector<32x128xf32>, vector<16x128xf32> -> vector<16x128xf32>
    %482 = arith.addf %480, %481 : vector<16x128xf32>
    %483 = arith.index_cast %477 : i32 to index
    %c0_173 = arith.constant 0 : index
    %c0_174 = arith.constant 0 : index
    %484 = vector.load %arg14[%483, %c0_173, %c0_174] : memref<8x16x128xf32, #tpu.memory_space<vmem>>, vector<1x16x128xf32>
    %485 = vector.shape_cast %484 : vector<1x16x128xf32> to vector<16x128xf32>
    %cst_175 = arith.constant dense<0.000000e+00> : vector<16x128xf32>
    %486 = tpu.matmul %476, %475, %cst_175 {dimension_numbers = #tpu.dot_dimension_numbers<[1], [0], [0], [1], [0, 0, 1, 1], [], []>, precision = #tpu.contract_precision<fp32>} : vector<16x32xf32>, vector<32x128xf32>, vector<16x128xf32> -> vector<16x128xf32>
    %487 = arith.addf %485, %486 : vector<16x128xf32>
    %488 = arith.negf %482 : vector<16x128xf32>
    %489 = math.exp %488 : vector<16x128xf32>
    %cst_176 = arith.constant 1.000000e+00 : f32
    %490 = vector.broadcast %cst_176 : f32 to vector<16x128xf32>
    %491 = arith.addf %490, %489 : vector<16x128xf32>
    %492 = arith.divf %490, %491 : vector<16x128xf32>
    %493 = math.tanh %482 : vector<16x128xf32>
    %494 = vector.extract_strided_slice %492 {offsets = [0, 32], sizes = [16, 32], strides = [1, 1]} : vector<16x128xf32> to vector<16x32xf32>
    %495 = arith.mulf %494, %476 : vector<16x32xf32>
    %496 = vector.extract_strided_slice %492 {offsets = [0, 0], sizes = [16, 32], strides = [1, 1]} : vector<16x128xf32> to vector<16x32xf32>
    %497 = vector.extract_strided_slice %493 {offsets = [0, 64], sizes = [16, 32], strides = [1, 1]} : vector<16x128xf32> to vector<16x32xf32>
    %498 = arith.mulf %496, %497 : vector<16x32xf32>
    %499 = arith.addf %495, %498 : vector<16x32xf32>
    %500 = vector.extract_strided_slice %492 {offsets = [0, 96], sizes = [16, 32], strides = [1, 1]} : vector<16x128xf32> to vector<16x32xf32>
    %501 = math.tanh %499 : vector<16x32xf32>
    %502 = arith.mulf %500, %501 : vector<16x32xf32>
    %503 = arith.negf %487 : vector<16x128xf32>
    %504 = math.exp %503 : vector<16x128xf32>
    %cst_177 = arith.constant 1.000000e+00 : f32
    %505 = vector.broadcast %cst_177 : f32 to vector<16x128xf32>
    %506 = arith.addf %505, %504 : vector<16x128xf32>
    %507 = arith.divf %505, %506 : vector<16x128xf32>
    %508 = math.tanh %487 : vector<16x128xf32>
    %509 = vector.extract_strided_slice %507 {offsets = [0, 32], sizes = [16, 32], strides = [1, 1]} : vector<16x128xf32> to vector<16x32xf32>
    %510 = arith.mulf %509, %476 : vector<16x32xf32>
    %511 = vector.extract_strided_slice %507 {offsets = [0, 0], sizes = [16, 32], strides = [1, 1]} : vector<16x128xf32> to vector<16x32xf32>
    %512 = vector.extract_strided_slice %508 {offsets = [0, 64], sizes = [16, 32], strides = [1, 1]} : vector<16x128xf32> to vector<16x32xf32>
    %513 = arith.mulf %511, %512 : vector<16x32xf32>
    %514 = arith.addf %510, %513 : vector<16x32xf32>
    %515 = vector.extract_strided_slice %507 {offsets = [0, 96], sizes = [16, 32], strides = [1, 1]} : vector<16x128xf32> to vector<16x32xf32>
    %516 = math.tanh %514 : vector<16x32xf32>
    %517 = arith.mulf %515, %516 : vector<16x32xf32>
    %518 = arith.index_cast %c0_i32_168 : i32 to index
    %c0_178 = arith.constant 0 : index
    %c0_179 = arith.constant 0 : index
    %519 = vector.load %arg9[%518, %c0_178, %c0_179] : memref<8x16x64xf32, #tpu.memory_space<vmem>>, vector<1x16x32xf32>
    %520 = vector.shape_cast %519 : vector<1x16x32xf32> to vector<16x32xf32>
    %521 = vector.shape_cast %502 : vector<16x32xf32> to vector<1x16x32xf32>
    tpu.vector_store %arg9[%518, %c0_178, %c0_179], %521 {strides = array<i32>} : memref<8x16x64xf32, #tpu.memory_space<vmem>>, vector<1x16x32xf32>,
    %522 = arith.index_cast %477 : i32 to index
    %c0_180 = arith.constant 0 : index
    %c32_181 = arith.constant 32 : index
    %523 = vector.load %arg9[%522, %c0_180, %c32_181] : memref<8x16x64xf32, #tpu.memory_space<vmem>>, vector<1x16x32xf32>
    %524 = vector.shape_cast %523 : vector<1x16x32xf32> to vector<16x32xf32>
    %525 = vector.shape_cast %517 : vector<16x32xf32> to vector<1x16x32xf32>
    tpu.vector_store %arg9[%522, %c0_180, %c32_181], %525 {strides = array<i32>} : memref<8x16x64xf32, #tpu.memory_space<vmem>>, vector<1x16x32xf32>,
    %c1_i32_182 = arith.constant 1 : i32
    %c7_i32_183 = arith.constant 7 : i32
    %526 = arith.subi %c7_i32_183, %c1_i32_182 : i32
    %527 = arith.index_cast %c1_i32_182 : i32 to index
    %c0_184 = arith.constant 0 : index
    %c0_185 = arith.constant 0 : index
    %528 = vector.load %arg13[%527, %c0_184, %c0_185] : memref<8x16x128xf32, #tpu.memory_space<vmem>>, vector<1x16x128xf32>
    %529 = vector.shape_cast %528 : vector<1x16x128xf32> to vector<16x128xf32>
    %cst_186 = arith.constant dense<0.000000e+00> : vector<16x128xf32>
    %530 = tpu.matmul %502, %473, %cst_186 {dimension_numbers = #tpu.dot_dimension_numbers<[1], [0], [0], [1], [0, 0, 1, 1], [], []>, precision = #tpu.contract_precision<fp32>} : vector<16x32xf32>, vector<32x128xf32>, vector<16x128xf32> -> vector<16x128xf32>
    %531 = arith.addf %529, %530 : vector<16x128xf32>
    %532 = arith.index_cast %526 : i32 to index
    %c0_187 = arith.constant 0 : index
    %c0_188 = arith.constant 0 : index
    %533 = vector.load %arg14[%532, %c0_187, %c0_188] : memref<8x16x128xf32, #tpu.memory_space<vmem>>, vector<1x16x128xf32>
    %534 = vector.shape_cast %533 : vector<1x16x128xf32> to vector<16x128xf32>
    %cst_189 = arith.constant dense<0.000000e+00> : vector<16x128xf32>
    %535 = tpu.matmul %517, %475, %cst_189 {dimension_numbers = #tpu.dot_dimension_numbers<[1], [0], [0], [1], [0, 0, 1, 1], [], []>, precision = #tpu.contract_precision<fp32>} : vector<16x32xf32>, vector<32x128xf32>, vector<16x128xf32> -> vector<16x128xf32>
    %536 = arith.addf %534, %535 : vector<16x128xf32>
    %537 = arith.negf %531 : vector<16x128xf32>
    %538 = math.exp %537 : vector<16x128xf32>
    %cst_190 = arith.constant 1.000000e+00 : f32
    %539 = vector.broadcast %cst_190 : f32 to vector<16x128xf32>
    %540 = arith.addf %539, %538 : vector<16x128xf32>
    %541 = arith.divf %539, %540 : vector<16x128xf32>
    %542 = math.tanh %531 : vector<16x128xf32>
    %543 = vector.extract_strided_slice %541 {offsets = [0, 32], sizes = [16, 32], strides = [1, 1]} : vector<16x128xf32> to vector<16x32xf32>
    %544 = arith.mulf %543, %499 : vector<16x32xf32>
    %545 = vector.extract_strided_slice %541 {offsets = [0, 0], sizes = [16, 32], strides = [1, 1]} : vector<16x128xf32> to vector<16x32xf32>
    %546 = vector.extract_strided_slice %542 {offsets = [0, 64], sizes = [16, 32], strides = [1, 1]} : vector<16x128xf32> to vector<16x32xf32>
    %547 = arith.mulf %545, %546 : vector<16x32xf32>
    %548 = arith.addf %544, %547 : vector<16x32xf32>
    %549 = vector.extract_strided_slice %541 {offsets = [0, 96], sizes = [16, 32], strides = [1, 1]} : vector<16x128xf32> to vector<16x32xf32>
    %550 = math.tanh %548 : vector<16x32xf32>
    %551 = arith.mulf %549, %550 : vector<16x32xf32>
    %552 = arith.negf %536 : vector<16x128xf32>
    %553 = math.exp %552 : vector<16x128xf32>
    %cst_191 = arith.constant 1.000000e+00 : f32
    %554 = vector.broadcast %cst_191 : f32 to vector<16x128xf32>
    %555 = arith.addf %554, %553 : vector<16x128xf32>
    %556 = arith.divf %554, %555 : vector<16x128xf32>
    %557 = math.tanh %536 : vector<16x128xf32>
    %558 = vector.extract_strided_slice %556 {offsets = [0, 32], sizes = [16, 32], strides = [1, 1]} : vector<16x128xf32> to vector<16x32xf32>
    %559 = arith.mulf %558, %514 : vector<16x32xf32>
    %560 = vector.extract_strided_slice %556 {offsets = [0, 0], sizes = [16, 32], strides = [1, 1]} : vector<16x128xf32> to vector<16x32xf32>
    %561 = vector.extract_strided_slice %557 {offsets = [0, 64], sizes = [16, 32], strides = [1, 1]} : vector<16x128xf32> to vector<16x32xf32>
    %562 = arith.mulf %560, %561 : vector<16x32xf32>
    %563 = arith.addf %559, %562 : vector<16x32xf32>
    %564 = vector.extract_strided_slice %556 {offsets = [0, 96], sizes = [16, 32], strides = [1, 1]} : vector<16x128xf32> to vector<16x32xf32>
    %565 = math.tanh %563 : vector<16x32xf32>
    %566 = arith.mulf %564, %565 : vector<16x32xf32>
    %567 = arith.index_cast %c1_i32_182 : i32 to index
    %c0_192 = arith.constant 0 : index
    %c0_193 = arith.constant 0 : index
    %568 = vector.load %arg9[%567, %c0_192, %c0_193] : memref<8x16x64xf32, #tpu.memory_space<vmem>>, vector<1x16x32xf32>
    %569 = vector.shape_cast %568 : vector<1x16x32xf32> to vector<16x32xf32>
    %570 = vector.shape_cast %551 : vector<16x32xf32> to vector<1x16x32xf32>
    tpu.vector_store %arg9[%567, %c0_192, %c0_193], %570 {strides = array<i32>} : memref<8x16x64xf32, #tpu.memory_space<vmem>>, vector<1x16x32xf32>,
    %571 = arith.index_cast %526 : i32 to index
    %c0_194 = arith.constant 0 : index
    %c32_195 = arith.constant 32 : index
    %572 = vector.load %arg9[%571, %c0_194, %c32_195] : memref<8x16x64xf32, #tpu.memory_space<vmem>>, vector<1x16x32xf32>
    %573 = vector.shape_cast %572 : vector<1x16x32xf32> to vector<16x32xf32>
    %574 = vector.shape_cast %566 : vector<16x32xf32> to vector<1x16x32xf32>
    tpu.vector_store %arg9[%571, %c0_194, %c32_195], %574 {strides = array<i32>} : memref<8x16x64xf32, #tpu.memory_space<vmem>>, vector<1x16x32xf32>,
    %c2_i32_196 = arith.constant 2 : i32
    %c7_i32_197 = arith.constant 7 : i32
    %575 = arith.subi %c7_i32_197, %c2_i32_196 : i32
    %576 = arith.index_cast %c2_i32_196 : i32 to index
    %c0_198 = arith.constant 0 : index
    %c0_199 = arith.constant 0 : index
    %577 = vector.load %arg13[%576, %c0_198, %c0_199] : memref<8x16x128xf32, #tpu.memory_space<vmem>>, vector<1x16x128xf32>
    %578 = vector.shape_cast %577 : vector<1x16x128xf32> to vector<16x128xf32>
    %cst_200 = arith.constant dense<0.000000e+00> : vector<16x128xf32>
    %579 = tpu.matmul %551, %473, %cst_200 {dimension_numbers = #tpu.dot_dimension_numbers<[1], [0], [0], [1], [0, 0, 1, 1], [], []>, precision = #tpu.contract_precision<fp32>} : vector<16x32xf32>, vector<32x128xf32>, vector<16x128xf32> -> vector<16x128xf32>
    %580 = arith.addf %578, %579 : vector<16x128xf32>
    %581 = arith.index_cast %575 : i32 to index
    %c0_201 = arith.constant 0 : index
    %c0_202 = arith.constant 0 : index
    %582 = vector.load %arg14[%581, %c0_201, %c0_202] : memref<8x16x128xf32, #tpu.memory_space<vmem>>, vector<1x16x128xf32>
    %583 = vector.shape_cast %582 : vector<1x16x128xf32> to vector<16x128xf32>
    %cst_203 = arith.constant dense<0.000000e+00> : vector<16x128xf32>
    %584 = tpu.matmul %566, %475, %cst_203 {dimension_numbers = #tpu.dot_dimension_numbers<[1], [0], [0], [1], [0, 0, 1, 1], [], []>, precision = #tpu.contract_precision<fp32>} : vector<16x32xf32>, vector<32x128xf32>, vector<16x128xf32> -> vector<16x128xf32>
    %585 = arith.addf %583, %584 : vector<16x128xf32>
    %586 = arith.negf %580 : vector<16x128xf32>
    %587 = math.exp %586 : vector<16x128xf32>
    %cst_204 = arith.constant 1.000000e+00 : f32
    %588 = vector.broadcast %cst_204 : f32 to vector<16x128xf32>
    %589 = arith.addf %588, %587 : vector<16x128xf32>
    %590 = arith.divf %588, %589 : vector<16x128xf32>
    %591 = math.tanh %580 : vector<16x128xf32>
    %592 = vector.extract_strided_slice %590 {offsets = [0, 32], sizes = [16, 32], strides = [1, 1]} : vector<16x128xf32> to vector<16x32xf32>
    %593 = arith.mulf %592, %548 : vector<16x32xf32>
    %594 = vector.extract_strided_slice %590 {offsets = [0, 0], sizes = [16, 32], strides = [1, 1]} : vector<16x128xf32> to vector<16x32xf32>
    %595 = vector.extract_strided_slice %591 {offsets = [0, 64], sizes = [16, 32], strides = [1, 1]} : vector<16x128xf32> to vector<16x32xf32>
    %596 = arith.mulf %594, %595 : vector<16x32xf32>
    %597 = arith.addf %593, %596 : vector<16x32xf32>
    %598 = vector.extract_strided_slice %590 {offsets = [0, 96], sizes = [16, 32], strides = [1, 1]} : vector<16x128xf32> to vector<16x32xf32>
    %599 = math.tanh %597 : vector<16x32xf32>
    %600 = arith.mulf %598, %599 : vector<16x32xf32>
    %601 = arith.negf %585 : vector<16x128xf32>
    %602 = math.exp %601 : vector<16x128xf32>
    %cst_205 = arith.constant 1.000000e+00 : f32
    %603 = vector.broadcast %cst_205 : f32 to vector<16x128xf32>
    %604 = arith.addf %603, %602 : vector<16x128xf32>
    %605 = arith.divf %603, %604 : vector<16x128xf32>
    %606 = math.tanh %585 : vector<16x128xf32>
    %607 = vector.extract_strided_slice %605 {offsets = [0, 32], sizes = [16, 32], strides = [1, 1]} : vector<16x128xf32> to vector<16x32xf32>
    %608 = arith.mulf %607, %563 : vector<16x32xf32>
    %609 = vector.extract_strided_slice %605 {offsets = [0, 0], sizes = [16, 32], strides = [1, 1]} : vector<16x128xf32> to vector<16x32xf32>
    %610 = vector.extract_strided_slice %606 {offsets = [0, 64], sizes = [16, 32], strides = [1, 1]} : vector<16x128xf32> to vector<16x32xf32>
    %611 = arith.mulf %609, %610 : vector<16x32xf32>
    %612 = arith.addf %608, %611 : vector<16x32xf32>
    %613 = vector.extract_strided_slice %605 {offsets = [0, 96], sizes = [16, 32], strides = [1, 1]} : vector<16x128xf32> to vector<16x32xf32>
    %614 = math.tanh %612 : vector<16x32xf32>
    %615 = arith.mulf %613, %614 : vector<16x32xf32>
    %616 = arith.index_cast %c2_i32_196 : i32 to index
    %c0_206 = arith.constant 0 : index
    %c0_207 = arith.constant 0 : index
    %617 = vector.load %arg9[%616, %c0_206, %c0_207] : memref<8x16x64xf32, #tpu.memory_space<vmem>>, vector<1x16x32xf32>
    %618 = vector.shape_cast %617 : vector<1x16x32xf32> to vector<16x32xf32>
    %619 = vector.shape_cast %600 : vector<16x32xf32> to vector<1x16x32xf32>
    tpu.vector_store %arg9[%616, %c0_206, %c0_207], %619 {strides = array<i32>} : memref<8x16x64xf32, #tpu.memory_space<vmem>>, vector<1x16x32xf32>,
    %620 = arith.index_cast %575 : i32 to index
    %c0_208 = arith.constant 0 : index
    %c32_209 = arith.constant 32 : index
    %621 = vector.load %arg9[%620, %c0_208, %c32_209] : memref<8x16x64xf32, #tpu.memory_space<vmem>>, vector<1x16x32xf32>
    %622 = vector.shape_cast %621 : vector<1x16x32xf32> to vector<16x32xf32>
    %623 = vector.shape_cast %615 : vector<16x32xf32> to vector<1x16x32xf32>
    tpu.vector_store %arg9[%620, %c0_208, %c32_209], %623 {strides = array<i32>} : memref<8x16x64xf32, #tpu.memory_space<vmem>>, vector<1x16x32xf32>,
    %c3_i32_210 = arith.constant 3 : i32
    %c7_i32_211 = arith.constant 7 : i32
    %624 = arith.subi %c7_i32_211, %c3_i32_210 : i32
    %625 = arith.index_cast %c3_i32_210 : i32 to index
    %c0_212 = arith.constant 0 : index
    %c0_213 = arith.constant 0 : index
    %626 = vector.load %arg13[%625, %c0_212, %c0_213] : memref<8x16x128xf32, #tpu.memory_space<vmem>>, vector<1x16x128xf32>
    %627 = vector.shape_cast %626 : vector<1x16x128xf32> to vector<16x128xf32>
    %cst_214 = arith.constant dense<0.000000e+00> : vector<16x128xf32>
    %628 = tpu.matmul %600, %473, %cst_214 {dimension_numbers = #tpu.dot_dimension_numbers<[1], [0], [0], [1], [0, 0, 1, 1], [], []>, precision = #tpu.contract_precision<fp32>} : vector<16x32xf32>, vector<32x128xf32>, vector<16x128xf32> -> vector<16x128xf32>
    %629 = arith.addf %627, %628 : vector<16x128xf32>
    %630 = arith.index_cast %624 : i32 to index
    %c0_215 = arith.constant 0 : index
    %c0_216 = arith.constant 0 : index
    %631 = vector.load %arg14[%630, %c0_215, %c0_216] : memref<8x16x128xf32, #tpu.memory_space<vmem>>, vector<1x16x128xf32>
    %632 = vector.shape_cast %631 : vector<1x16x128xf32> to vector<16x128xf32>
    %cst_217 = arith.constant dense<0.000000e+00> : vector<16x128xf32>
    %633 = tpu.matmul %615, %475, %cst_217 {dimension_numbers = #tpu.dot_dimension_numbers<[1], [0], [0], [1], [0, 0, 1, 1], [], []>, precision = #tpu.contract_precision<fp32>} : vector<16x32xf32>, vector<32x128xf32>, vector<16x128xf32> -> vector<16x128xf32>
    %634 = arith.addf %632, %633 : vector<16x128xf32>
    %635 = arith.negf %629 : vector<16x128xf32>
    %636 = math.exp %635 : vector<16x128xf32>
    %cst_218 = arith.constant 1.000000e+00 : f32
    %637 = vector.broadcast %cst_218 : f32 to vector<16x128xf32>
    %638 = arith.addf %637, %636 : vector<16x128xf32>
    %639 = arith.divf %637, %638 : vector<16x128xf32>
    %640 = math.tanh %629 : vector<16x128xf32>
    %641 = vector.extract_strided_slice %639 {offsets = [0, 32], sizes = [16, 32], strides = [1, 1]} : vector<16x128xf32> to vector<16x32xf32>
    %642 = arith.mulf %641, %597 : vector<16x32xf32>
    %643 = vector.extract_strided_slice %639 {offsets = [0, 0], sizes = [16, 32], strides = [1, 1]} : vector<16x128xf32> to vector<16x32xf32>
    %644 = vector.extract_strided_slice %640 {offsets = [0, 64], sizes = [16, 32], strides = [1, 1]} : vector<16x128xf32> to vector<16x32xf32>
    %645 = arith.mulf %643, %644 : vector<16x32xf32>
    %646 = arith.addf %642, %645 : vector<16x32xf32>
    %647 = vector.extract_strided_slice %639 {offsets = [0, 96], sizes = [16, 32], strides = [1, 1]} : vector<16x128xf32> to vector<16x32xf32>
    %648 = math.tanh %646 : vector<16x32xf32>
    %649 = arith.mulf %647, %648 : vector<16x32xf32>
    %650 = arith.negf %634 : vector<16x128xf32>
    %651 = math.exp %650 : vector<16x128xf32>
    %cst_219 = arith.constant 1.000000e+00 : f32
    %652 = vector.broadcast %cst_219 : f32 to vector<16x128xf32>
    %653 = arith.addf %652, %651 : vector<16x128xf32>
    %654 = arith.divf %652, %653 : vector<16x128xf32>
    %655 = math.tanh %634 : vector<16x128xf32>
    %656 = vector.extract_strided_slice %654 {offsets = [0, 32], sizes = [16, 32], strides = [1, 1]} : vector<16x128xf32> to vector<16x32xf32>
    %657 = arith.mulf %656, %612 : vector<16x32xf32>
    %658 = vector.extract_strided_slice %654 {offsets = [0, 0], sizes = [16, 32], strides = [1, 1]} : vector<16x128xf32> to vector<16x32xf32>
    %659 = vector.extract_strided_slice %655 {offsets = [0, 64], sizes = [16, 32], strides = [1, 1]} : vector<16x128xf32> to vector<16x32xf32>
    %660 = arith.mulf %658, %659 : vector<16x32xf32>
    %661 = arith.addf %657, %660 : vector<16x32xf32>
    %662 = vector.extract_strided_slice %654 {offsets = [0, 96], sizes = [16, 32], strides = [1, 1]} : vector<16x128xf32> to vector<16x32xf32>
    %663 = math.tanh %661 : vector<16x32xf32>
    %664 = arith.mulf %662, %663 : vector<16x32xf32>
    %665 = arith.index_cast %c3_i32_210 : i32 to index
    %c0_220 = arith.constant 0 : index
    %c0_221 = arith.constant 0 : index
    %666 = vector.load %arg9[%665, %c0_220, %c0_221] : memref<8x16x64xf32, #tpu.memory_space<vmem>>, vector<1x16x32xf32>
    %667 = vector.shape_cast %666 : vector<1x16x32xf32> to vector<16x32xf32>
    %668 = vector.shape_cast %649 : vector<16x32xf32> to vector<1x16x32xf32>
    tpu.vector_store %arg9[%665, %c0_220, %c0_221], %668 {strides = array<i32>} : memref<8x16x64xf32, #tpu.memory_space<vmem>>, vector<1x16x32xf32>,
    %669 = arith.index_cast %624 : i32 to index
    %c0_222 = arith.constant 0 : index
    %c32_223 = arith.constant 32 : index
    %670 = vector.load %arg9[%669, %c0_222, %c32_223] : memref<8x16x64xf32, #tpu.memory_space<vmem>>, vector<1x16x32xf32>
    %671 = vector.shape_cast %670 : vector<1x16x32xf32> to vector<16x32xf32>
    %672 = vector.shape_cast %664 : vector<16x32xf32> to vector<1x16x32xf32>
    tpu.vector_store %arg9[%669, %c0_222, %c32_223], %672 {strides = array<i32>} : memref<8x16x64xf32, #tpu.memory_space<vmem>>, vector<1x16x32xf32>,
    %c4_i32_224 = arith.constant 4 : i32
    %c7_i32_225 = arith.constant 7 : i32
    %673 = arith.subi %c7_i32_225, %c4_i32_224 : i32
    %674 = arith.index_cast %c4_i32_224 : i32 to index
    %c0_226 = arith.constant 0 : index
    %c0_227 = arith.constant 0 : index
    %675 = vector.load %arg13[%674, %c0_226, %c0_227] : memref<8x16x128xf32, #tpu.memory_space<vmem>>, vector<1x16x128xf32>
    %676 = vector.shape_cast %675 : vector<1x16x128xf32> to vector<16x128xf32>
    %cst_228 = arith.constant dense<0.000000e+00> : vector<16x128xf32>
    %677 = tpu.matmul %649, %473, %cst_228 {dimension_numbers = #tpu.dot_dimension_numbers<[1], [0], [0], [1], [0, 0, 1, 1], [], []>, precision = #tpu.contract_precision<fp32>} : vector<16x32xf32>, vector<32x128xf32>, vector<16x128xf32> -> vector<16x128xf32>
    %678 = arith.addf %676, %677 : vector<16x128xf32>
    %679 = arith.index_cast %673 : i32 to index
    %c0_229 = arith.constant 0 : index
    %c0_230 = arith.constant 0 : index
    %680 = vector.load %arg14[%679, %c0_229, %c0_230] : memref<8x16x128xf32, #tpu.memory_space<vmem>>, vector<1x16x128xf32>
    %681 = vector.shape_cast %680 : vector<1x16x128xf32> to vector<16x128xf32>
    %cst_231 = arith.constant dense<0.000000e+00> : vector<16x128xf32>
    %682 = tpu.matmul %664, %475, %cst_231 {dimension_numbers = #tpu.dot_dimension_numbers<[1], [0], [0], [1], [0, 0, 1, 1], [], []>, precision = #tpu.contract_precision<fp32>} : vector<16x32xf32>, vector<32x128xf32>, vector<16x128xf32> -> vector<16x128xf32>
    %683 = arith.addf %681, %682 : vector<16x128xf32>
    %684 = arith.negf %678 : vector<16x128xf32>
    %685 = math.exp %684 : vector<16x128xf32>
    %cst_232 = arith.constant 1.000000e+00 : f32
    %686 = vector.broadcast %cst_232 : f32 to vector<16x128xf32>
    %687 = arith.addf %686, %685 : vector<16x128xf32>
    %688 = arith.divf %686, %687 : vector<16x128xf32>
    %689 = math.tanh %678 : vector<16x128xf32>
    %690 = vector.extract_strided_slice %688 {offsets = [0, 32], sizes = [16, 32], strides = [1, 1]} : vector<16x128xf32> to vector<16x32xf32>
    %691 = arith.mulf %690, %646 : vector<16x32xf32>
    %692 = vector.extract_strided_slice %688 {offsets = [0, 0], sizes = [16, 32], strides = [1, 1]} : vector<16x128xf32> to vector<16x32xf32>
    %693 = vector.extract_strided_slice %689 {offsets = [0, 64], sizes = [16, 32], strides = [1, 1]} : vector<16x128xf32> to vector<16x32xf32>
    %694 = arith.mulf %692, %693 : vector<16x32xf32>
    %695 = arith.addf %691, %694 : vector<16x32xf32>
    %696 = vector.extract_strided_slice %688 {offsets = [0, 96], sizes = [16, 32], strides = [1, 1]} : vector<16x128xf32> to vector<16x32xf32>
    %697 = math.tanh %695 : vector<16x32xf32>
    %698 = arith.mulf %696, %697 : vector<16x32xf32>
    %699 = arith.negf %683 : vector<16x128xf32>
    %700 = math.exp %699 : vector<16x128xf32>
    %cst_233 = arith.constant 1.000000e+00 : f32
    %701 = vector.broadcast %cst_233 : f32 to vector<16x128xf32>
    %702 = arith.addf %701, %700 : vector<16x128xf32>
    %703 = arith.divf %701, %702 : vector<16x128xf32>
    %704 = math.tanh %683 : vector<16x128xf32>
    %705 = vector.extract_strided_slice %703 {offsets = [0, 32], sizes = [16, 32], strides = [1, 1]} : vector<16x128xf32> to vector<16x32xf32>
    %706 = arith.mulf %705, %661 : vector<16x32xf32>
    %707 = vector.extract_strided_slice %703 {offsets = [0, 0], sizes = [16, 32], strides = [1, 1]} : vector<16x128xf32> to vector<16x32xf32>
    %708 = vector.extract_strided_slice %704 {offsets = [0, 64], sizes = [16, 32], strides = [1, 1]} : vector<16x128xf32> to vector<16x32xf32>
    %709 = arith.mulf %707, %708 : vector<16x32xf32>
    %710 = arith.addf %706, %709 : vector<16x32xf32>
    %711 = vector.extract_strided_slice %703 {offsets = [0, 96], sizes = [16, 32], strides = [1, 1]} : vector<16x128xf32> to vector<16x32xf32>
    %712 = math.tanh %710 : vector<16x32xf32>
    %713 = arith.mulf %711, %712 : vector<16x32xf32>
    %714 = arith.index_cast %c4_i32_224 : i32 to index
    %c0_234 = arith.constant 0 : index
    %c0_235 = arith.constant 0 : index
    %715 = vector.load %arg9[%714, %c0_234, %c0_235] : memref<8x16x64xf32, #tpu.memory_space<vmem>>, vector<1x16x32xf32>
    %716 = vector.shape_cast %715 : vector<1x16x32xf32> to vector<16x32xf32>
    %717 = vector.shape_cast %698 : vector<16x32xf32> to vector<1x16x32xf32>
    tpu.vector_store %arg9[%714, %c0_234, %c0_235], %717 {strides = array<i32>} : memref<8x16x64xf32, #tpu.memory_space<vmem>>, vector<1x16x32xf32>,
    %718 = arith.index_cast %673 : i32 to index
    %c0_236 = arith.constant 0 : index
    %c32_237 = arith.constant 32 : index
    %719 = vector.load %arg9[%718, %c0_236, %c32_237] : memref<8x16x64xf32, #tpu.memory_space<vmem>>, vector<1x16x32xf32>
    %720 = vector.shape_cast %719 : vector<1x16x32xf32> to vector<16x32xf32>
    %721 = vector.shape_cast %713 : vector<16x32xf32> to vector<1x16x32xf32>
    tpu.vector_store %arg9[%718, %c0_236, %c32_237], %721 {strides = array<i32>} : memref<8x16x64xf32, #tpu.memory_space<vmem>>, vector<1x16x32xf32>,
    %c5_i32_238 = arith.constant 5 : i32
    %c7_i32_239 = arith.constant 7 : i32
    %722 = arith.subi %c7_i32_239, %c5_i32_238 : i32
    %723 = arith.index_cast %c5_i32_238 : i32 to index
    %c0_240 = arith.constant 0 : index
    %c0_241 = arith.constant 0 : index
    %724 = vector.load %arg13[%723, %c0_240, %c0_241] : memref<8x16x128xf32, #tpu.memory_space<vmem>>, vector<1x16x128xf32>
    %725 = vector.shape_cast %724 : vector<1x16x128xf32> to vector<16x128xf32>
    %cst_242 = arith.constant dense<0.000000e+00> : vector<16x128xf32>
    %726 = tpu.matmul %698, %473, %cst_242 {dimension_numbers = #tpu.dot_dimension_numbers<[1], [0], [0], [1], [0, 0, 1, 1], [], []>, precision = #tpu.contract_precision<fp32>} : vector<16x32xf32>, vector<32x128xf32>, vector<16x128xf32> -> vector<16x128xf32>
    %727 = arith.addf %725, %726 : vector<16x128xf32>
    %728 = arith.index_cast %722 : i32 to index
    %c0_243 = arith.constant 0 : index
    %c0_244 = arith.constant 0 : index
    %729 = vector.load %arg14[%728, %c0_243, %c0_244] : memref<8x16x128xf32, #tpu.memory_space<vmem>>, vector<1x16x128xf32>
    %730 = vector.shape_cast %729 : vector<1x16x128xf32> to vector<16x128xf32>
    %cst_245 = arith.constant dense<0.000000e+00> : vector<16x128xf32>
    %731 = tpu.matmul %713, %475, %cst_245 {dimension_numbers = #tpu.dot_dimension_numbers<[1], [0], [0], [1], [0, 0, 1, 1], [], []>, precision = #tpu.contract_precision<fp32>} : vector<16x32xf32>, vector<32x128xf32>, vector<16x128xf32> -> vector<16x128xf32>
    %732 = arith.addf %730, %731 : vector<16x128xf32>
    %733 = arith.negf %727 : vector<16x128xf32>
    %734 = math.exp %733 : vector<16x128xf32>
    %cst_246 = arith.constant 1.000000e+00 : f32
    %735 = vector.broadcast %cst_246 : f32 to vector<16x128xf32>
    %736 = arith.addf %735, %734 : vector<16x128xf32>
    %737 = arith.divf %735, %736 : vector<16x128xf32>
    %738 = math.tanh %727 : vector<16x128xf32>
    %739 = vector.extract_strided_slice %737 {offsets = [0, 32], sizes = [16, 32], strides = [1, 1]} : vector<16x128xf32> to vector<16x32xf32>
    %740 = arith.mulf %739, %695 : vector<16x32xf32>
    %741 = vector.extract_strided_slice %737 {offsets = [0, 0], sizes = [16, 32], strides = [1, 1]} : vector<16x128xf32> to vector<16x32xf32>
    %742 = vector.extract_strided_slice %738 {offsets = [0, 64], sizes = [16, 32], strides = [1, 1]} : vector<16x128xf32> to vector<16x32xf32>
    %743 = arith.mulf %741, %742 : vector<16x32xf32>
    %744 = arith.addf %740, %743 : vector<16x32xf32>
    %745 = vector.extract_strided_slice %737 {offsets = [0, 96], sizes = [16, 32], strides = [1, 1]} : vector<16x128xf32> to vector<16x32xf32>
    %746 = math.tanh %744 : vector<16x32xf32>
    %747 = arith.mulf %745, %746 : vector<16x32xf32>
    %748 = arith.negf %732 : vector<16x128xf32>
    %749 = math.exp %748 : vector<16x128xf32>
    %cst_247 = arith.constant 1.000000e+00 : f32
    %750 = vector.broadcast %cst_247 : f32 to vector<16x128xf32>
    %751 = arith.addf %750, %749 : vector<16x128xf32>
    %752 = arith.divf %750, %751 : vector<16x128xf32>
    %753 = math.tanh %732 : vector<16x128xf32>
    %754 = vector.extract_strided_slice %752 {offsets = [0, 32], sizes = [16, 32], strides = [1, 1]} : vector<16x128xf32> to vector<16x32xf32>
    %755 = arith.mulf %754, %710 : vector<16x32xf32>
    %756 = vector.extract_strided_slice %752 {offsets = [0, 0], sizes = [16, 32], strides = [1, 1]} : vector<16x128xf32> to vector<16x32xf32>
    %757 = vector.extract_strided_slice %753 {offsets = [0, 64], sizes = [16, 32], strides = [1, 1]} : vector<16x128xf32> to vector<16x32xf32>
    %758 = arith.mulf %756, %757 : vector<16x32xf32>
    %759 = arith.addf %755, %758 : vector<16x32xf32>
    %760 = vector.extract_strided_slice %752 {offsets = [0, 96], sizes = [16, 32], strides = [1, 1]} : vector<16x128xf32> to vector<16x32xf32>
    %761 = math.tanh %759 : vector<16x32xf32>
    %762 = arith.mulf %760, %761 : vector<16x32xf32>
    %763 = arith.index_cast %c5_i32_238 : i32 to index
    %c0_248 = arith.constant 0 : index
    %c0_249 = arith.constant 0 : index
    %764 = vector.load %arg9[%763, %c0_248, %c0_249] : memref<8x16x64xf32, #tpu.memory_space<vmem>>, vector<1x16x32xf32>
    %765 = vector.shape_cast %764 : vector<1x16x32xf32> to vector<16x32xf32>
    %766 = vector.shape_cast %747 : vector<16x32xf32> to vector<1x16x32xf32>
    tpu.vector_store %arg9[%763, %c0_248, %c0_249], %766 {strides = array<i32>} : memref<8x16x64xf32, #tpu.memory_space<vmem>>, vector<1x16x32xf32>,
    %767 = arith.index_cast %722 : i32 to index
    %c0_250 = arith.constant 0 : index
    %c32_251 = arith.constant 32 : index
    %768 = vector.load %arg9[%767, %c0_250, %c32_251] : memref<8x16x64xf32, #tpu.memory_space<vmem>>, vector<1x16x32xf32>
    %769 = vector.shape_cast %768 : vector<1x16x32xf32> to vector<16x32xf32>
    %770 = vector.shape_cast %762 : vector<16x32xf32> to vector<1x16x32xf32>
    tpu.vector_store %arg9[%767, %c0_250, %c32_251], %770 {strides = array<i32>} : memref<8x16x64xf32, #tpu.memory_space<vmem>>, vector<1x16x32xf32>,
    %c6_i32_252 = arith.constant 6 : i32
    %c7_i32_253 = arith.constant 7 : i32
    %771 = arith.subi %c7_i32_253, %c6_i32_252 : i32
    %772 = arith.index_cast %c6_i32_252 : i32 to index
    %c0_254 = arith.constant 0 : index
    %c0_255 = arith.constant 0 : index
    %773 = vector.load %arg13[%772, %c0_254, %c0_255] : memref<8x16x128xf32, #tpu.memory_space<vmem>>, vector<1x16x128xf32>
    %774 = vector.shape_cast %773 : vector<1x16x128xf32> to vector<16x128xf32>
    %cst_256 = arith.constant dense<0.000000e+00> : vector<16x128xf32>
    %775 = tpu.matmul %747, %473, %cst_256 {dimension_numbers = #tpu.dot_dimension_numbers<[1], [0], [0], [1], [0, 0, 1, 1], [], []>, precision = #tpu.contract_precision<fp32>} : vector<16x32xf32>, vector<32x128xf32>, vector<16x128xf32> -> vector<16x128xf32>
    %776 = arith.addf %774, %775 : vector<16x128xf32>
    %777 = arith.index_cast %771 : i32 to index
    %c0_257 = arith.constant 0 : index
    %c0_258 = arith.constant 0 : index
    %778 = vector.load %arg14[%777, %c0_257, %c0_258] : memref<8x16x128xf32, #tpu.memory_space<vmem>>, vector<1x16x128xf32>
    %779 = vector.shape_cast %778 : vector<1x16x128xf32> to vector<16x128xf32>
    %cst_259 = arith.constant dense<0.000000e+00> : vector<16x128xf32>
    %780 = tpu.matmul %762, %475, %cst_259 {dimension_numbers = #tpu.dot_dimension_numbers<[1], [0], [0], [1], [0, 0, 1, 1], [], []>, precision = #tpu.contract_precision<fp32>} : vector<16x32xf32>, vector<32x128xf32>, vector<16x128xf32> -> vector<16x128xf32>
    %781 = arith.addf %779, %780 : vector<16x128xf32>
    %782 = arith.negf %776 : vector<16x128xf32>
    %783 = math.exp %782 : vector<16x128xf32>
    %cst_260 = arith.constant 1.000000e+00 : f32
    %784 = vector.broadcast %cst_260 : f32 to vector<16x128xf32>
    %785 = arith.addf %784, %783 : vector<16x128xf32>
    %786 = arith.divf %784, %785 : vector<16x128xf32>
    %787 = math.tanh %776 : vector<16x128xf32>
    %788 = vector.extract_strided_slice %786 {offsets = [0, 32], sizes = [16, 32], strides = [1, 1]} : vector<16x128xf32> to vector<16x32xf32>
    %789 = arith.mulf %788, %744 : vector<16x32xf32>
    %790 = vector.extract_strided_slice %786 {offsets = [0, 0], sizes = [16, 32], strides = [1, 1]} : vector<16x128xf32> to vector<16x32xf32>
    %791 = vector.extract_strided_slice %787 {offsets = [0, 64], sizes = [16, 32], strides = [1, 1]} : vector<16x128xf32> to vector<16x32xf32>
    %792 = arith.mulf %790, %791 : vector<16x32xf32>
    %793 = arith.addf %789, %792 : vector<16x32xf32>
    %794 = vector.extract_strided_slice %786 {offsets = [0, 96], sizes = [16, 32], strides = [1, 1]} : vector<16x128xf32> to vector<16x32xf32>
    %795 = math.tanh %793 : vector<16x32xf32>
    %796 = arith.mulf %794, %795 : vector<16x32xf32>
    %797 = arith.negf %781 : vector<16x128xf32>
    %798 = math.exp %797 : vector<16x128xf32>
    %cst_261 = arith.constant 1.000000e+00 : f32
    %799 = vector.broadcast %cst_261 : f32 to vector<16x128xf32>
    %800 = arith.addf %799, %798 : vector<16x128xf32>
    %801 = arith.divf %799, %800 : vector<16x128xf32>
    %802 = math.tanh %781 : vector<16x128xf32>
    %803 = vector.extract_strided_slice %801 {offsets = [0, 32], sizes = [16, 32], strides = [1, 1]} : vector<16x128xf32> to vector<16x32xf32>
    %804 = arith.mulf %803, %759 : vector<16x32xf32>
    %805 = vector.extract_strided_slice %801 {offsets = [0, 0], sizes = [16, 32], strides = [1, 1]} : vector<16x128xf32> to vector<16x32xf32>
    %806 = vector.extract_strided_slice %802 {offsets = [0, 64], sizes = [16, 32], strides = [1, 1]} : vector<16x128xf32> to vector<16x32xf32>
    %807 = arith.mulf %805, %806 : vector<16x32xf32>
    %808 = arith.addf %804, %807 : vector<16x32xf32>
    %809 = vector.extract_strided_slice %801 {offsets = [0, 96], sizes = [16, 32], strides = [1, 1]} : vector<16x128xf32> to vector<16x32xf32>
    %810 = math.tanh %808 : vector<16x32xf32>
    %811 = arith.mulf %809, %810 : vector<16x32xf32>
    %812 = arith.index_cast %c6_i32_252 : i32 to index
    %c0_262 = arith.constant 0 : index
    %c0_263 = arith.constant 0 : index
    %813 = vector.load %arg9[%812, %c0_262, %c0_263] : memref<8x16x64xf32, #tpu.memory_space<vmem>>, vector<1x16x32xf32>
    %814 = vector.shape_cast %813 : vector<1x16x32xf32> to vector<16x32xf32>
    %815 = vector.shape_cast %796 : vector<16x32xf32> to vector<1x16x32xf32>
    tpu.vector_store %arg9[%812, %c0_262, %c0_263], %815 {strides = array<i32>} : memref<8x16x64xf32, #tpu.memory_space<vmem>>, vector<1x16x32xf32>,
    %816 = arith.index_cast %771 : i32 to index
    %c0_264 = arith.constant 0 : index
    %c32_265 = arith.constant 32 : index
    %817 = vector.load %arg9[%816, %c0_264, %c32_265] : memref<8x16x64xf32, #tpu.memory_space<vmem>>, vector<1x16x32xf32>
    %818 = vector.shape_cast %817 : vector<1x16x32xf32> to vector<16x32xf32>
    %819 = vector.shape_cast %811 : vector<16x32xf32> to vector<1x16x32xf32>
    tpu.vector_store %arg9[%816, %c0_264, %c32_265], %819 {strides = array<i32>} : memref<8x16x64xf32, #tpu.memory_space<vmem>>, vector<1x16x32xf32>,
    %c7_i32_266 = arith.constant 7 : i32
    %c7_i32_267 = arith.constant 7 : i32
    %820 = arith.subi %c7_i32_267, %c7_i32_266 : i32
    %821 = arith.index_cast %c7_i32_266 : i32 to index
    %c0_268 = arith.constant 0 : index
    %c0_269 = arith.constant 0 : index
    %822 = vector.load %arg13[%821, %c0_268, %c0_269] : memref<8x16x128xf32, #tpu.memory_space<vmem>>, vector<1x16x128xf32>
    %823 = vector.shape_cast %822 : vector<1x16x128xf32> to vector<16x128xf32>
    %cst_270 = arith.constant dense<0.000000e+00> : vector<16x128xf32>
    %824 = tpu.matmul %796, %473, %cst_270 {dimension_numbers = #tpu.dot_dimension_numbers<[1], [0], [0], [1], [0, 0, 1, 1], [], []>, precision = #tpu.contract_precision<fp32>} : vector<16x32xf32>, vector<32x128xf32>, vector<16x128xf32> -> vector<16x128xf32>
    %825 = arith.addf %823, %824 : vector<16x128xf32>
    %826 = arith.index_cast %820 : i32 to index
    %c0_271 = arith.constant 0 : index
    %c0_272 = arith.constant 0 : index
    %827 = vector.load %arg14[%826, %c0_271, %c0_272] : memref<8x16x128xf32, #tpu.memory_space<vmem>>, vector<1x16x128xf32>
    %828 = vector.shape_cast %827 : vector<1x16x128xf32> to vector<16x128xf32>
    %cst_273 = arith.constant dense<0.000000e+00> : vector<16x128xf32>
    %829 = tpu.matmul %811, %475, %cst_273 {dimension_numbers = #tpu.dot_dimension_numbers<[1], [0], [0], [1], [0, 0, 1, 1], [], []>, precision = #tpu.contract_precision<fp32>} : vector<16x32xf32>, vector<32x128xf32>, vector<16x128xf32> -> vector<16x128xf32>
    %830 = arith.addf %828, %829 : vector<16x128xf32>
    %831 = arith.negf %825 : vector<16x128xf32>
    %832 = math.exp %831 : vector<16x128xf32>
    %cst_274 = arith.constant 1.000000e+00 : f32
    %833 = vector.broadcast %cst_274 : f32 to vector<16x128xf32>
    %834 = arith.addf %833, %832 : vector<16x128xf32>
    %835 = arith.divf %833, %834 : vector<16x128xf32>
    %836 = math.tanh %825 : vector<16x128xf32>
    %837 = vector.extract_strided_slice %835 {offsets = [0, 32], sizes = [16, 32], strides = [1, 1]} : vector<16x128xf32> to vector<16x32xf32>
    %838 = arith.mulf %837, %793 : vector<16x32xf32>
    %839 = vector.extract_strided_slice %835 {offsets = [0, 0], sizes = [16, 32], strides = [1, 1]} : vector<16x128xf32> to vector<16x32xf32>
    %840 = vector.extract_strided_slice %836 {offsets = [0, 64], sizes = [16, 32], strides = [1, 1]} : vector<16x128xf32> to vector<16x32xf32>
    %841 = arith.mulf %839, %840 : vector<16x32xf32>
    %842 = arith.addf %838, %841 : vector<16x32xf32>
    %843 = vector.extract_strided_slice %835 {offsets = [0, 96], sizes = [16, 32], strides = [1, 1]} : vector<16x128xf32> to vector<16x32xf32>
    %844 = math.tanh %842 : vector<16x32xf32>
    %845 = arith.mulf %843, %844 : vector<16x32xf32>
    %846 = arith.negf %830 : vector<16x128xf32>
    %847 = math.exp %846 : vector<16x128xf32>
    %cst_275 = arith.constant 1.000000e+00 : f32
    %848 = vector.broadcast %cst_275 : f32 to vector<16x128xf32>
    %849 = arith.addf %848, %847 : vector<16x128xf32>
    %850 = arith.divf %848, %849 : vector<16x128xf32>
    %851 = math.tanh %830 : vector<16x128xf32>
    %852 = vector.extract_strided_slice %850 {offsets = [0, 32], sizes = [16, 32], strides = [1, 1]} : vector<16x128xf32> to vector<16x32xf32>
    %853 = arith.mulf %852, %808 : vector<16x32xf32>
    %854 = vector.extract_strided_slice %850 {offsets = [0, 0], sizes = [16, 32], strides = [1, 1]} : vector<16x128xf32> to vector<16x32xf32>
    %855 = vector.extract_strided_slice %851 {offsets = [0, 64], sizes = [16, 32], strides = [1, 1]} : vector<16x128xf32> to vector<16x32xf32>
    %856 = arith.mulf %854, %855 : vector<16x32xf32>
    %857 = arith.addf %853, %856 : vector<16x32xf32>
    %858 = vector.extract_strided_slice %850 {offsets = [0, 96], sizes = [16, 32], strides = [1, 1]} : vector<16x128xf32> to vector<16x32xf32>
    %859 = math.tanh %857 : vector<16x32xf32>
    %860 = arith.mulf %858, %859 : vector<16x32xf32>
    %861 = arith.index_cast %c7_i32_266 : i32 to index
    %c0_276 = arith.constant 0 : index
    %c0_277 = arith.constant 0 : index
    %862 = vector.load %arg9[%861, %c0_276, %c0_277] : memref<8x16x64xf32, #tpu.memory_space<vmem>>, vector<1x16x32xf32>
    %863 = vector.shape_cast %862 : vector<1x16x32xf32> to vector<16x32xf32>
    %864 = vector.shape_cast %845 : vector<16x32xf32> to vector<1x16x32xf32>
    tpu.vector_store %arg9[%861, %c0_276, %c0_277], %864 {strides = array<i32>} : memref<8x16x64xf32, #tpu.memory_space<vmem>>, vector<1x16x32xf32>,
    %865 = arith.index_cast %820 : i32 to index
    %c0_278 = arith.constant 0 : index
    %c32_279 = arith.constant 32 : index
    %866 = vector.load %arg9[%865, %c0_278, %c32_279] : memref<8x16x64xf32, #tpu.memory_space<vmem>>, vector<1x16x32xf32>
    %867 = vector.shape_cast %866 : vector<1x16x32xf32> to vector<16x32xf32>
    %868 = vector.shape_cast %860 : vector<16x32xf32> to vector<1x16x32xf32>
    tpu.vector_store %arg9[%865, %c0_278, %c32_279], %868 {strides = array<i32>} : memref<8x16x64xf32, #tpu.memory_space<vmem>>, vector<1x16x32xf32>,
    %c8_i32_280 = arith.constant 8 : i32
    %c0_281 = arith.constant 0 : index
    %c0_282 = arith.constant 0 : index
    %869 = vector.load %arg7[%c0_281, %c0_282] : memref<64x32xf32, #tpu.memory_space<vmem>>, vector<32x32xf32>
    %cst_283 = arith.constant dense<0.000000e+00> : vector<16x32xf32>
    %870 = tpu.matmul %845, %869, %cst_283 {dimension_numbers = #tpu.dot_dimension_numbers<[1], [0], [0], [1], [0, 0, 1, 1], [], []>, precision = #tpu.contract_precision<fp32>} : vector<16x32xf32>, vector<32x32xf32>, vector<16x32xf32> -> vector<16x32xf32>
    %c32_284 = arith.constant 32 : index
    %c0_285 = arith.constant 0 : index
    %871 = vector.load %arg7[%c32_284, %c0_285] : memref<64x32xf32, #tpu.memory_space<vmem>>, vector<32x32xf32>
    %cst_286 = arith.constant dense<0.000000e+00> : vector<16x32xf32>
    %872 = tpu.matmul %860, %871, %cst_286 {dimension_numbers = #tpu.dot_dimension_numbers<[1], [0], [0], [1], [0, 0, 1, 1], [], []>, precision = #tpu.contract_precision<fp32>} : vector<16x32xf32>, vector<32x32xf32>, vector<16x32xf32> -> vector<16x32xf32>
    %873 = arith.addf %870, %872 : vector<16x32xf32>
    %c0_287 = arith.constant 0 : index
    %c0_288 = arith.constant 0 : index
    %874 = vector.load %arg8[%c0_287, %c0_288] : memref<1x32xf32, #tpu.memory_space<vmem>>, vector<1x32xf32>
    %875 = vector.broadcast %874 : vector<1x32xf32> to vector<16x32xf32>
    %876 = arith.addf %873, %875 : vector<16x32xf32>
    %877 = math.tanh %876 : vector<16x32xf32>
    %878 = vector.shape_cast %877 : vector<16x32xf32> to vector<1x16x32xf32>
    %879 = vector.shape_cast %878 : vector<1x16x32xf32> to vector<1x16x32xf32>
    %880 = vector.broadcast %879 : vector<1x16x32xf32> to vector<2x16x32xf32>
    %c0_289 = arith.constant 0 : index
    %c0_290 = arith.constant 0 : index
    %c0_291 = arith.constant 0 : index
    %881 = vector.load %arg10[%c0_289, %c0_290, %c0_291] : memref<2x16x32xf32, #tpu.memory_space<vmem>>, vector<2x16x32xf32>
    tpu.vector_store %arg10[%c0_289, %c0_290, %c0_291], %880 {strides = array<i32>} : memref<2x16x32xf32, #tpu.memory_space<vmem>>, vector<2x16x32xf32>,
    return
  }
  func.func @transform_0(%arg0: i32) -> (i32, i32, i32) {
    %c0_i32 = arith.constant 0 : i32
    %c0_i32_0 = arith.constant 0 : i32
    %c0_i32_1 = arith.constant 0 : i32
    return %c0_i32, %arg0, %c0_i32_0 : i32, i32, i32
  }
  func.func @transform_1(%arg0: i32) -> (i32, i32) {
    %c0_i32 = arith.constant 0 : i32
    %c0_i32_0 = arith.constant 0 : i32
    %c0_i32_1 = arith.constant 0 : i32
    return %c0_i32, %c0_i32_0 : i32, i32
  }
  func.func @transform_2(%arg0: i32) -> (i32, i32) {
    %c0_i32 = arith.constant 0 : i32
    %c0_i32_0 = arith.constant 0 : i32
    %c0_i32_1 = arith.constant 0 : i32
    return %c0_i32, %c0_i32_0 : i32, i32
  }
  func.func @transform_3(%arg0: i32) -> (i32, i32, i32) {
    %c0_i32 = arith.constant 0 : i32
    %c0_i32_0 = arith.constant 0 : i32
    %c0_i32_1 = arith.constant 0 : i32
    %c0_i32_2 = arith.constant 0 : i32
    return %c0_i32, %c0_i32_0, %c0_i32_1 : i32, i32, i32
  }
  func.func @transform_4(%arg0: i32) -> (i32, i32, i32) {
    %c0_i32 = arith.constant 0 : i32
    %c0_i32_0 = arith.constant 0 : i32
    %c0_i32_1 = arith.constant 0 : i32
    %c0_i32_2 = arith.constant 0 : i32
    return %c0_i32, %c0_i32_0, %c0_i32_1 : i32, i32, i32
  }
  func.func @transform_5(%arg0: i32) -> (i32, i32, i32) {
    %c0_i32 = arith.constant 0 : i32
    %c0_i32_0 = arith.constant 0 : i32
    %c0_i32_1 = arith.constant 0 : i32
    %c0_i32_2 = arith.constant 0 : i32
    return %c0_i32, %c0_i32_0, %c0_i32_1 : i32, i32, i32
  }
  func.func @transform_6(%arg0: i32) -> (i32, i32) {
    %c0_i32 = arith.constant 0 : i32
    %c0_i32_0 = arith.constant 0 : i32
    %c0_i32_1 = arith.constant 0 : i32
    return %c0_i32, %c0_i32_0 : i32, i32
  }
  func.func @transform_7(%arg0: i32) -> (i32, i32) {
    %c0_i32 = arith.constant 0 : i32
    %c0_i32_0 = arith.constant 0 : i32
    %c0_i32_1 = arith.constant 0 : i32
    return %c0_i32, %c0_i32_0 : i32, i32
  }
  func.func @transform_8(%arg0: i32) -> (i32, i32, i32) {
    %c0_i32 = arith.constant 0 : i32
    %c0_i32_0 = arith.constant 0 : i32
    %c0_i32_1 = arith.constant 0 : i32
    return %c0_i32, %arg0, %c0_i32_0 : i32, i32, i32
  }
  func.func @transform_9(%arg0: i32) -> (i32, i32, i32) {
    %c0_i32 = arith.constant 0 : i32
    %c0_i32_0 = arith.constant 0 : i32
    %c0_i32_1 = arith.constant 0 : i32
    return %c0_i32, %arg0, %c0_i32_0 : i32, i32, i32
  }
}

</mosaic_0001>

<bundles_post_ra>
// kernel: tpu_custom_call.1
= control target key start
LH: loop header
LB: loop body
LE: loop exit
PB: predicated region body
PF: predicated region fallthrough
CT: control target
= control target key end

     0   :  { %15 = vsyncpa [#allocation7], 0  ;;  %s38186_s0 = inlined_call_operand.vmem [shape: f32[8,16,4], index: 0, kind: input, shape index: {}]   ;;  %s38187_s1 = inlined_call_operand.vmem [shape: f32[4,32], index: 1, kind: input, shape index: {}]   ;;  %s38188_s2 = inlined_call_operand.vmem [shape: f32[1,32], index: 2, kind: input, shape index: {}]   ;;  %s38189_s3 = inlined_call_operand.vmem [shape: f32[4,64,128], index: 3, kind: input, shape index: {}]   ;;  %s38190_s4 = inlined_call_operand.hbm [shape: f32[4,32,128], index: 4, kind: input, shape index: {}]   ;;  %s38191_s5 = inlined_call_operand.vmem [shape: f32[4,1,128], index: 5, kind: input, shape index: {}]   ;;  %s38192_s6 = inlined_call_operand.vmem [shape: f32[64,32], index: 6, kind: input, shape index: {}]   ;;  %s38193_s7 = inlined_call_operand.vmem [shape: f32[1,32], index: 7, kind: input, shape index: {}]   ;;  %s38194_s8 = inlined_call_operand.hbm [shape: f32[8,16,64], index: 8, kind: output, shape index: {0}]   ;;  %s38195_s9 = inlined_call_operand.hbm [shape: f32[2,16,32], index: 9, kind: output, shape index: {1}]  }
   0x1   :  { %16 = vsyncpa [#allocation8], 0 }
   0x2   :  { %17 = vsyncpa [#allocation11], 0  ;;  %s33960_s30 = smov [#allocation6]   ;;  %s33888_s13 = scalar_lea.hbm %s38190_s4, 2048 }
   0x3   :  { %s31_s10 = sshll.u32 %s33960_s30, 4  ;;  %p33889_p0 = scmp.ne.s32.totalorder %s38190_s4, %s33888_s13  ;;  %s32_s10 = int_to_ptr.vmem [resolvable:$true] %s31_s10 }
   0x4   :  { %p33892_p1 = scmp.lt.u32.totalorder %s33888_s13, %s38190_s4 }
   0x6   :  { %p33894_p2 = pnand %p33892_p1, %p33889_p0 }
   0x8   :  { %33897 = shalt.err (!%p33894_p2)
}
   0x9   :  { %s33898_s18 = scalar_lea.vmem %s32_s10, 2048  ;;  %p33903_p4 = scmp.lt.s32.totalorder %s32_s10, %s32_s10 }
   0xa   :  { %p33899_p3 = scmp.ne.s32.totalorder %s32_s10, %s33898_s18  ;;  %p33904_p5 = scmp.lt.s32.totalorder %s33898_s18, %s33898_s18 }
   0xc   :  { %p33905_p6 = por %p33904_p5, %p33903_p4 }
   0xe   :  { %p33906_p7 = pnand %p33905_p6, %p33899_p3 }
  0x10   :  { %33909 = shalt.err (!%p33906_p7)
}
  0x11   :  { %s33961_s19 = smov 128   ;;  %s33962_s20 = smov 8  }
  0x12   :  { %37 = dma.hbm_to_vmem [thread:$0]  %s38190_s4, 2048, %s32_s10, [#allocation7], %s33961_s19, %s33961_s19, %s33962_s20  }
  0x13   :  { %33954 = dma.done.wait [#allocation7], 2048  }
  0x14   :  { %33955 = vsyncadd [#allocation7], 4294965248  ;;  %v33963_v0 = vmov 3   ;;  %v33964_v1 = vmov 1   ;;  %v48_v2 = vld [vmem:[%s38186_s0 + $0x8] sm:$0xff]  ;;  %v47_v3 = vld [vmem:[%s38186_s0] sm:$0xff]  ;;  %v151_v50 = vlaneseq }
  0x15   :  { %33301 = vset.pattern.permute.xlu0 %v33963_v0  ;;  %33297 = vset.pattern.permute.xlu1 %v33964_v1  ;;  %v34048_v4 = vld [vmem:[%s38186_s0 + $0x10] sm:$0xff]  ;;  %v34054_v5 = vld [vmem:[%s38186_s0 + $0x38] sm:$0xff]  ;;  %v33965_v6 = vmov 2   ;;  %v34061_v7 = vld [vmem:[%s38186_s0 + $0x40] sm:$0xff]  ;;  %v33966_v8 = vmov 0   ;;  %vm503_vm0 = vcmask 261120  }
  0x16   :  { %392 = vperm.xlu0 %33301, %v48_v2   ;;  %188 = vperm.xlu1 %33297, %v47_v3   ;;  %v50_v9 = vld [vmem:[%s38186_s0 + $0x18] sm:$0xff]  ;;  %v34074_v10 = vld [vmem:[%s38186_s0 + $0x20] sm:$0xff]  ;;  %v34081_v11 = vld [vmem:[%s38186_s0 + $0x28] sm:$0xff]  ;;  %v152_v53 = vshrl.u32 %v151_v50, 7  ;;  %s33968_s14 = smov 64   ;;  %s33969_s15 = smov 32  }
  0x17   :  { %v536_v12 = vld [vmem:[%s38189_s3] sm:$0xff]  ;;  %v537_v13 = vld [vmem:[%s38189_s3 + $0x8] sm:$0xff]  ;;  %v34095_v16 = vld [vmem:[%s38186_s0 + $0x30] sm:$0xff]  ;;  %vm4092_vm1 = vcmask 523520   ;;  %vm12491_vm2 = vcmask 523264  }
  0x18   :  { %v596_v14 = vand.u32 4294901760, %v536_v12  ;;  %v599_v15 = vand.u32 4294901760, %v537_v13  ;;  %v538_v19 = vld [vmem:[%s38189_s3 + $0x10] sm:$0xff]  ;;  %v539_v20 = vld [vmem:[%s38189_s3 + $0x18] sm:$0xff]  ;;  %v34133_v34 = vld [vmem:[%s38186_s0 + $0x60] sm:$0xff]  ;;  %v153_v56 = vsub.s32 0, %v152_v53 }
  0x19   :  { %v602_v23 = vand.u32 4294901760, %v538_v19  ;;  %v605_v24 = vand.u32 4294901760, %v539_v20  ;;  %v34113_v25 = vld [vmem:[%s38186_s0 + $0x58] sm:$0xff]  ;;  %v34182_v43 = vld [vmem:[%s38186_s0 + $0x68] sm:$0xff]  ;;  %v34193_v45 = vld [vmem:[%s38186_s0 + $0x70] sm:$0xff]  ;;  %v253_v57 = vsub.s32 1, %v152_v53 }
  0x1a   :  { %396 = vperm.xlu0 %33301, %v34048_v4   ;;  %192 = vperm.xlu1 %33297, %v48_v2   ;;  %v34097_v17 = vsub.f32 %v536_v12, %v596_v14  ;;  %v34099_v18 = vsub.f32 %v537_v13, %v599_v15  ;;  %v34154_v41 = vpack.c.bf16 %v599_v15, %v596_v14  ;;  %v56_v44 = vld [vmem:[%s38186_s0 + $0x48] sm:$0xff]  ;;  %v57_v46 = vld [vmem:[%s38186_s0 + $0x50] sm:$0xff]  ;;  %v63_v59 = vld [vmem:[%s38187_s1] sm:$0xf]  ;;  %v353_v61 = vsub.s32 2, %v152_v53 }
  0x1b   :  { %v34121_v28 = vsub.f32 %v538_v19, %v602_v23  ;;  %v34123_v29 = vsub.f32 %v539_v20, %v605_v24  ;;  %v34160_v42 = vpack.c.bf16 %v605_v24, %v602_v23  ;;  %v34231_v62 = vrot.slane %v63_v59, %v153_v56 }
  0x1c   :  { %v38201_v21 = vand.u32 4294901760, %v34097_v17  ;;  %v38198_v22 = vand.u32 4294901760, %v34099_v18  ;;  %30572 = vmatprep.subr.bf16.mxu1 %v34154_v41  ;;  %v34212_v47 = vpack.c.bf16 %v34099_v18, %v34097_v17  ;;  %v34234_v63 = vrot.slane %v63_v59, %v253_v57 }
  0x1d   :  { %v38197_v32 = vand.u32 4294901760, %v34121_v28  ;;  %v38196_v33 = vand.u32 4294901760, %v34123_v29  ;;  %30574 = vmatpush3.bf16.msra.mxu1 %v34154_v41 }
  0x1e   :  { %416 = vperm.xlu0 %33301, %v34054_v5   ;;  %33298 = vset.pattern.permute.xlu1 %v33965_v6  ;;  %v828_v26 = vsub.f32 %v34097_v17, %v38201_v21  ;;  %v835_v27 = vsub.f32 %v34099_v18, %v38198_v22 }
  0x1f   :  { %288 = vperm.xlu1 %33298, %v47_v3   ;;  %v842_v36 = vsub.f32 %v34121_v28, %v38197_v32  ;;  %v849_v37 = vsub.f32 %v34123_v29, %v38196_v33  ;;  %30576 = vmatprep.subr.bf16.mxu1 %v34160_v42 }
  0x20   :  { %v829_v30 = vand.u32 4294901760, %v828_v26  ;;  %v836_v31 = vand.u32 4294901760, %v835_v27 }
  0x21   :  { %v843_v38 = vand.u32 4294901760, %v842_v36  ;;  %v850_v39 = vand.u32 4294901760, %v849_v37  ;;  %30578 = vmatpush3.bf16.msra.mxu1 %v34160_v42 }
  0x22   :  { %420 = vperm.xlu0 %33301, %v34061_v7   ;;  %v34135_v35 = vpack.c.bf16 %v836_v31, %v829_v30 }
  0x23   :  { %292 = vperm.xlu1 %33298, %v48_v2   ;;  %v34147_v40 = vpack.c.bf16 %v850_v39, %v843_v38 }
  0x24   :  { %30580 = vmatprep.subr.bf16.mxu0 %v34135_v35  ;;  %32491 = vmatprep.subr.bf16.mxu1 %v34135_v35 }
  0x25   :  { %30582 = vmatpush3.bf16.msra.mxu0 %v34135_v35 }
  0x26   :  { %33317 = vset.pattern.permute.xlu0 %v33966_v8  ;;  %30584 = vmatprep.subr.bf16.mxu0 %v34147_v40 }
  0x27   :  { %73 = vperm.xlu0 %33317, %v47_v3   ;;  %33299 = vset.pattern.permute.xlu1 %v33963_v0 }
  0x28   :  { %388 = vperm.xlu1 %33299, %v47_v3   ;;  %v34239_v3 = vld [vmem:[%s38188_s2] ss:$0 sm:$0xff] }
  0x29   :  { %30586 = vmatpush3.bf16.msra.mxu0 %v34147_v40 }
  0x2a   :  { %30588 = vmatprep.subr.bf16.mxu0 %v34212_v47 }
  0x2b   :  { %78 = vperm.xlu0 %33317, %v48_v2   ;;  %v453_v2 = vsub.s32 3, %v152_v53 }
  0x2c   :  { %33300 = vset.pattern.permute.xlu1 %v33964_v1 }
  0x2d   :  { %200 = vperm.xlu1 %33300, %v50_v9  }
  0x2f   :  { %83 = vperm.xlu0 %33317, %v34048_v4  }
  0x31   :  { %33302 = vset.pattern.permute.xlu1 %v33966_v8 }
  0x32   :  { %93 = vperm.xlu1 %33302, %v34074_v10  }
  0x33   :  { %88 = vperm.xlu0 %33317, %v50_v9  }
  0x36   :  { %33303 = vset.pattern.permute.xlu1 %v33965_v6 }
  0x37   :  { %98 = vperm.xlu0 %33317, %v34081_v11   ;;  %296 = vperm.xlu1 %33303, %v34048_v4  }
  0x3b   :  { %103 = vperm.xlu0 %33317, %v34095_v16   ;;  %300 = vperm.xlu1 %33303, %v50_v9  }
  0x3f   :  { %128 = vperm.xlu0 %33317, %v34113_v25   ;;  %33304 = vset.pattern.permute.xlu1 %v33964_v1 }
  0x40   :  { %204 = vperm.xlu1 %33304, %v34074_v10  }
  0x43   :  { %133 = vperm.xlu0 %33317, %v34133_v34  }
  0x44   :  { %208 = vperm.xlu1 %33304, %v34081_v11  }
  0x47   :  { %33319 = vset.pattern.permute.xlu0 %v33965_v6 }
  0x48   :  { %308 = vperm.xlu0 %33319, %v34081_v11   ;;  %33305 = vset.pattern.permute.xlu1 %v33963_v0 }
  0x49   :  { %400 = vperm.xlu1 %33305, %v50_v9  }
  0x4c   :  { %312 = vperm.xlu0 %33319, %v34095_v16  }
  0x4d   :  { %33306 = vset.pattern.permute.xlu1 %v33965_v6 }
  0x4e   :  { %304 = vperm.xlu1 %33306, %v34074_v10  }
  0x50   :  { %332 = vperm.xlu0 %33319, %v34113_v25  }
  0x52   :  { %33307 = vset.pattern.permute.xlu1 %v33966_v8 }
  0x53   :  { %108 = vperm.xlu1 %33307, %v34054_v5  }
  0x54   :  { %336 = vperm.xlu0 %33319, %v34133_v34  }
  0x57   :  { %33308 = vset.pattern.permute.xlu1 %v33964_v1 }
  0x58   :  { %33325 = vset.pattern.permute.xlu0 %v33964_v1  ;;  %212 = vperm.xlu1 %33308, %v34095_v16  }
  0x59   :  { %196 = vperm.xlu0 %33325, %v34048_v4  }
  0x5c   :  { %33309 = vset.pattern.permute.xlu1 %v33963_v0 }
  0x5d   :  { %216 = vperm.xlu0 %33325, %v34054_v5   ;;  %404 = vperm.xlu1 %33309, %v34074_v10  }
  0x61   :  { %408 = vperm.xlu1 %33309, %v34081_v11   ;;  %220 = vperm.xlu0 %33325, %v34061_v7   ;;  %v34246_v11 = vrot.slane %v63_v59, %v453_v2 }
  0x65   :  { %33310 = vset.pattern.permute.xlu1 %v33966_v8  ;;  %240 = vperm.xlu0 %33325, %v34182_v43  }
  0x66   :  { %113 = vperm.xlu1 %33310, %v34061_v7  }
  0x69   :  { %244 = vperm.xlu0 %33325, %v34193_v45  }
  0x6a   :  { %118 = vperm.xlu1 %33310, %v56_v44  }
  0x6d   :  { %33329 = vset.pattern.permute.xlu0 %v33963_v0 }
  0x6e   :  { %33311 = vset.pattern.permute.xlu1 %v33965_v6  ;;  %440 = vperm.xlu0 %33329, %v34182_v43  }
  0x6f   :  { %316 = vperm.xlu1 %33311, %v34054_v5   ;;  %v34241_v5 = vrot.slane %v63_v59, %v353_v61 }
  0x72   :  { %444 = vperm.xlu0 %33329, %v34193_v45  }
  0x73   :  { %33312 = vset.pattern.permute.xlu1 %v33963_v0 }
  0x74   :  { %412 = vperm.xlu1 %33312, %v34095_v16  }
  0x78   :  { %33313 = vset.pattern.permute.xlu1 %v33964_v1 }
  0x79   :  { %224 = vperm.xlu1 %33313, %v56_v44  }
  0x7d   :  { %33314 = vset.pattern.permute.xlu1 %v33966_v8 }
  0x7e   :  { %123 = vperm.xlu1 %33314, %v57_v46  }
  0x82   :  { %33315 = vset.pattern.permute.xlu1 %v33965_v6 }
  0x83   :  { %320 = vperm.xlu1 %33315, %v34061_v7  }
  0x87   :  { %324 = vperm.xlu1 %33315, %v56_v44  }
  0x8b   :  { %33316 = vset.pattern.permute.xlu1 %v33964_v1 }
  0x8c   :  { %228 = vperm.xlu1 %33316, %v57_v46  }
  0x90   :  { %232 = vperm.xlu1 %33316, %v34113_v25  }
  0x94   :  { %33318 = vset.pattern.permute.xlu1 %v33963_v0 }
  0x95   :  { %424 = vperm.xlu1 %33318, %v56_v44   ;;  %v189_v48 = vpop.permute.xlu1 %188  ;;  %v393_v49 = vpop.permute.xlu0 %392 }
  0x96   :  { %v255_v10 = vmul.f32 %v34234_v63, %v189_v48  ;;  %v456_v30 = vmul.f32 %v34246_v11, %v393_v49 }
  0x99   :  { %33320 = vset.pattern.permute.xlu1 %v33965_v6  ;;  %v193_v51 = vpop.permute.xlu1 %192  ;;  %v34219_v52 = vpop.permute.xlu0 %396 }
  0x9a   :  { %328 = vperm.xlu1 %33320, %v57_v46   ;;  %v256_v20 = vmul.f32 %v34234_v63, %v193_v51 }
  0x9d   :  { %v34221_v54 = vpop.permute.xlu0 %416 }
  0x9e   :  { %33321 = vset.pattern.permute.xlu1 %v33966_v8  ;;  %v289_v55 = vpop.permute.xlu1 %288 }
  0x9f   :  { %138 = vperm.xlu1 %33321, %v34182_v43   ;;  %v355_v14 = vmul.f32 %v34241_v5, %v289_v55 }
  0xa1   :  { %v34225_v58 = vpop.permute.xlu0 %420 }
  0xa2   :  { %v293_v60 = vpop.permute.xlu1 %292 }
  0xa3   :  { %33322 = vset.pattern.permute.xlu1 %v33964_v1  ;;  %v356_v31 = vmul.f32 %v34241_v5, %v293_v60 }
  0xa4   :  { %236 = vperm.xlu1 %33322, %v34133_v34  }
  0xa6   :  { %v74_v4 = vpop.permute.xlu0 %73 }
  0xa7   :  { %v155_v7 = vmul.f32 %v34231_v62, %v74_v4  ;;  %v389_v9 = vpop.permute.xlu1 %388 }
  0xa8   :  { %33323 = vset.pattern.permute.xlu1 %v33963_v0  ;;  %v455_v24 = vmul.f32 %v34246_v11, %v389_v9 }
  0xa9   :  { %v171_v12 = vadd.f32 %v34239_v3, %v155_v7  ;;  %428 = vperm.xlu1 %33323, %v57_v46  }
  0xaa   :  { %v79_v13 = vpop.permute.xlu0 %78 }
  0xab   :  { %v271_v15 = vadd.f32 %v255_v10, %v171_v12  ;;  %v156_v16 = vmul.f32 %v34231_v62, %v79_v13 }
  0xac   :  { %v201_v19 = vpop.permute.xlu1 %200 }
  0xad   :  { %v371_v23 = vadd.f32 %v355_v14, %v271_v15  ;;  %v172_v26 = vadd.f32 %v34239_v3, %v156_v16  ;;  %432 = vperm.xlu1 %33323, %v34113_v25   ;;  %v34266_v25 = vld [vmem:[%s38186_s0 + $0x78] sm:$0xff]  ;;  %v258_v4 = vmul.f32 %v34234_v63, %v201_v19  ;;  %v30591_v15 = vpack.c.bf16 %v34123_v29, %v34121_v28 }
  0xae   :  { %v34255_v27 = vpop.permute.xlu0 %83 }
  0xaf   :  { %v471_v36 = vadd.f32 %v455_v24, %v371_v23  ;;  %v272_v37 = vadd.f32 %v256_v20, %v172_v26 }
  0xb1   :  { %33332 = vtanh.f32 %v471_v36  ;;  %v372_v38 = vadd.f32 %v356_v31, %v272_v37  ;;  %33324 = vset.pattern.permute.xlu1 %v33966_v8  ;;  %v34260_v39 = vpop.permute.xlu1 %93 }
  0xb2   :  { %v89_v44 = vpop.permute.xlu0 %88  ;;  %143 = vperm.xlu1 %33324, %v34193_v45  }
  0xb3   :  { %v472_v46 = vadd.f32 %v456_v30, %v372_v38  ;;  %v158_v56 = vmul.f32 %v34231_v62, %v89_v44 }
  0xb5   :  { %33334 = vtanh.f32 %v472_v46  ;;  %v174_v60 = vadd.f32 %v34239_v3, %v158_v56  ;;  %v157_v46 = vmul.f32 %v34231_v62, %v34255_v27 }
  0xb6   :  { %148 = vperm.xlu1 %33324, %v34266_v25   ;;  %v34269_v48 = vpop.permute.xlu1 %296  ;;  %v34271_v49 = vpop.permute.xlu0 %98 }
  0xb7   :  { %v160_v56 = vmul.f32 %v34231_v62, %v34271_v49  ;;  %v357_v49 = vmul.f32 %v34241_v5, %v34269_v48 }
  0xba   :  { %33326 = vset.pattern.permute.xlu1 %v33965_v6  ;;  %v301_v8 = vpop.permute.xlu1 %300  ;;  %v34274_v50 = vpop.permute.xlu0 %103 }
  0xbb   :  { %v33333_v51 = vpop.eup %33332  ;;  %340 = vperm.xlu1 %33326, %v34182_v43   ;;  %v358_v7 = vmul.f32 %v34241_v5, %v301_v8 }
  0xbc   :  { %504 = vst.msk [vmem:[#allocation2] sm:$0xff] %vm503_vm0, %v33333_v51  ;;  %v159_v51 = vmul.f32 %v34231_v62, %v34260_v39 }
  0xbe   :  { %v34278_v53 = vpop.permute.xlu0 %128 }
  0xbf   :  { %v33335_v55 = vpop.eup %33334  ;;  %33327 = vset.pattern.permute.xlu1 %v33963_v0  ;;  %v205_v57 = vpop.permute.xlu1 %204 }
  0xc0   :  { %505 = vst.msk [vmem:[#allocation2 + $0x8] sm:$0xff] %vm503_vm0, %v33335_v55  ;;  %436 = vperm.xlu1 %33327, %v34133_v34   ;;  %v274_v34 = vadd.f32 %v258_v4, %v174_v60  ;;  %v259_v27 = vmul.f32 %v34234_v63, %v205_v57  ;;  %v176_v57 = vadd.f32 %v34239_v3, %v160_v56 }
  0xc2   :  { %v34284_v59 = vpop.permute.xlu0 %133  ;;  %v374_v16 = vadd.f32 %v358_v7, %v274_v34 }
  0xc3   :  { %v34287_v61 = vpop.permute.xlu1 %208  ;;  %v520_v43 = vld [vmem:[#allocation2] sm:$0xff] }
  0xc4   :  { %33328 = vset.pattern.permute.xlu1 %v33964_v1  ;;  %v548_v2 = vsel %vm503_vm0, %v520_v43, 0  ;;  %v260_v7 = vmul.f32 %v34234_v63, %v34287_v61 }
  0xc5   :  { %248 = vperm.xlu1 %33328, %v34266_v25   ;;  %v34294_v9 = vand.u32 4294901760, %v548_v2 }
  0xc7   :  { %v309_v10 = vpop.permute.xlu0 %308  ;;  %27503 = vmatprep.mubr.f32.mxu0 %v34294_v9  ;;  %v521_v12 = vld [vmem:[#allocation2 + $0x8] sm:$0xff]  ;;  %v34298_v13 = vsub.f32 %v548_v2, %v34294_v9  ;;  %v457_v2 = vmul.f32 %v34246_v11, %v34219_v52 }
  0xc8   :  { %v401_v14 = vpop.permute.xlu1 %400  ;;  %v551_v1 = vsel %vm503_vm0, %v521_v12, 0  ;;  %v360_v12 = vmul.f32 %v34241_v5, %v309_v10 }
  0xc9   :  { %38279 = vst [vmem:[#allocation15_spill] sm:$0xff] %v34298_v13  ;;  %v458_v19 = vmul.f32 %v34246_v11, %v401_v14  ;;  %33330 = vset.pattern.permute.xlu1 %v33965_v6  ;;  %v34305_v20 = vand.u32 4294901760, %v551_v1  ;;  %v34308_v23 = vand.u32 4294901760, %v34298_v13 }
  0xca   :  { %344 = vperm.xlu1 %33330, %v34193_v45  }
  0xcb   :  { %38280 = vst [vmem:[#allocation16_spill] sm:$0xff] %v34308_v23  ;;  %v474_v24 = vadd.f32 %v458_v19, %v374_v16  ;;  %27504 = vmatmul.mubr.f32.vlgmr.msra.gmra.mrb[0].mxu0 %v34305_v20  ;;  %v34312_v26 = vpop.permute.xlu0 %312  ;;  %v667_v30 = vsub.f32 %v34298_v13, %v34308_v23  ;;  %v34317_v31 = vsub.f32 %v551_v1, %v34305_v20 }
  0xcc   :  { %30590 = vmatpush3.bf16.msra.mxu0 %v34212_v47  ;;  %v276_v16 = vadd.f32 %v260_v7, %v176_v57  ;;  %v361_v7 = vmul.f32 %v34241_v5, %v34312_v26 }
  0xcd   :  { %38281 = vst [vmem:[#allocation17_spill] sm:$0xff] %v34317_v31  ;;  %33336 = vtanh.f32 %v474_v24  ;;  %v305_v6 = vpop.permute.xlu1 %304  ;;  %v34320_v36 = vand.u32 4294901760, %v667_v30  ;;  %v34323_v37 = vand.u32 4294901760, %v34317_v31  ;;  %30592 = vmatprep.subr.bf16.mxu0 %v30591_v15 }
  0xce   :  { %348 = vperm.xlu1 %33330, %v34266_v25   ;;  %v359_v39 = vmul.f32 %v34241_v5, %v305_v6  ;;  %v376_v30 = vadd.f32 %v360_v12, %v276_v16 }
  0xcf   :  { %27471 = vmatprep.mubr.f32.mxu1 %v34320_v36  ;;  %v34327_v45 = vpop.permute.xlu0 %332  ;;  %v677_v38 = vsub.f32 %v34317_v31, %v34323_v37 }
  0xd0   :  { %30594 = vmatpush3.bf16.msra.mxu0 %v30591_v15 }
  0xd1   :  { %v34331_v44 = vand.u32 4294901760, %v677_v38  ;;  %30596 = vmatprep.subr.bf16.mxu0 %v34154_v41  ;;  %v161_v38 = vmul.f32 %v34231_v62, %v34274_v50 }
  0xd2   :  { %33331 = vset.pattern.permute.xlu1 %v33963_v0  ;;  %v109_v47 = vpop.permute.xlu1 %108  ;;  %v173_v0 = vadd.f32 %v34239_v3, %v157_v46 }
  0xd3   :  { %448 = vperm.xlu1 %33331, %v34266_v25   ;;  %27472 = vmatmul.mubr.f32.vlgmr.msra.gmra.mrb[0].mxu1 %v34331_v44  ;;  %v34339_v8 = vpop.permute.xlu0 %336 }
  0xd4   :  { %32493 = vmatpush3.bf16.msra.mxu1 %v34135_v35  ;;  %v175_v35 = vadd.f32 %v34239_v3, %v159_v51  ;;  %v162_v51 = vmul.f32 %v34231_v62, %v109_v47 }
  0xd5   :  { %32492 = vmatprep.subr.bf16.mxu1 %v34147_v40 }
  0xd6   :  { %v275_v4 = vadd.f32 %v259_v27, %v175_v35  ;;  %v177_v35 = vadd.f32 %v34239_v3, %v161_v38  ;;  %v178_v50 = vadd.f32 %v34239_v3, %v162_v51 }
  0xd7   :  { %v33337_v55 = vpop.eup %33336  ;;  %v213_v25 = vpop.permute.xlu1 %212 }
  0xd8   :  { %507 = vst.msk [vmem:[#allocation2 + $0x18] sm:$0xff] %vm503_vm0, %v33337_v55  ;;  %v197_v60 = vpop.permute.xlu0 %196  ;;  %32494 = vmatpush3.bf16.msra.mxu1 %v34147_v40  ;;  %v375_v14 = vadd.f32 %v359_v39, %v275_v4  ;;  %v261_v39 = vmul.f32 %v34234_v63, %v213_v25 }
  0xd9   :  { %v257_v43 = vmul.f32 %v34234_v63, %v197_v60 }
  0xda   :  { %v277_v25 = vadd.f32 %v261_v39, %v177_v35 }
  0xdb   :  { %v273_v34 = vadd.f32 %v257_v43, %v173_v0 }
  0xdc   :  { %v405_v40 = vpop.permute.xlu1 %404  ;;  %v217_v10 = vpop.permute.xlu0 %216 }
  0xdd   :  { %v373_v1 = vadd.f32 %v357_v49, %v273_v34  ;;  %v459_v15 = vmul.f32 %v34246_v11, %v405_v40  ;;  %v262_v56 = vmul.f32 %v34234_v63, %v217_v10  ;;  %v462_v49 = vmul.f32 %v34246_v11, %v34221_v54 }
  0xdf   :  { %v473_v19 = vadd.f32 %v457_v2, %v373_v1  ;;  %v475_v52 = vadd.f32 %v459_v15, %v375_v14  ;;  %v523_v46 = vld [vmem:[#allocation2 + $0x18] sm:$0xff]  ;;  %v278_v57 = vadd.f32 %v262_v56, %v178_v50  ;;  %v377_v15 = vadd.f32 %v361_v7, %v277_v25  ;;  %v25621_v56 = vld [vmem:[%s38189_s3 + $0x48] sm:$0xff] }
  0xe0   :  { %v409_v24 = vpop.permute.xlu1 %408  ;;  %v557_v27 = vsel %vm503_vm0, %v523_v46, 0 }
  0xe1   :  { %33338 = vtanh.f32 %v473_v19  ;;  %v460_v48 = vmul.f32 %v34246_v11, %v409_v24  ;;  %v34376_v47 = vand.u32 4294901760, %v557_v27 }
  0xe2   :  { %33340 = vtanh.f32 %v475_v52 }
  0xe3   :  { %v476_v6 = vadd.f32 %v460_v48, %v376_v30  ;;  %v34385_v40 = vsub.f32 %v557_v27, %v34376_v47 }
  0xe5   :  { %33342 = vtanh.f32 %v476_v6  ;;  %v114_v61 = vpop.permute.xlu1 %113  ;;  %38282 = vst [vmem:[#allocation18_spill] sm:$0xff] %v34385_v40  ;;  %v34395_v48 = vand.u32 4294901760, %v34385_v40 }
  0xe7   :  { %v697_v39 = vsub.f32 %v34385_v40, %v34395_v48 }
  0xe9   :  { %v34367_v55 = vpop.permute.xlu1 %118 }
  0xeb   :  { %v33339_v0 = vpop.eup %33338 }
  0xec   :  { %v33341_v60 = vpop.eup %33340  ;;  %506 = vst.msk [vmem:[#allocation2 + $0x10] sm:$0xff] %vm503_vm0, %v33339_v0  ;;  %v25620_v0 = vld [vmem:[%s38189_s3 + $0x40] sm:$0xff] }
  0xed   :  { %508 = vst.msk [vmem:[#allocation2 + $0x20] sm:$0xff] %vm503_vm0, %v33341_v60  ;;  %v1755_v35 = vand.u32 4294901760, %v25620_v0 }
  0xee   :  { %v317_v43 = vpop.permute.xlu1 %316 }
  0xef   :  { %v33343_v2 = vpop.eup %33342  ;;  %v362_v4 = vmul.f32 %v34241_v5, %v317_v43  ;;  %v1758_v43 = vand.u32 4294901760, %v25621_v56 }
  0xf0   :  { %509 = vst.msk [vmem:[#allocation2 + $0x28] sm:$0xff] %vm503_vm0, %v33343_v2  ;;  %v163_v2 = vmul.f32 %v34231_v62, %v114_v61 }
  0xf1   :  { %v378_v34 = vadd.f32 %v362_v4, %v278_v57  ;;  %v221_v4 = vpop.permute.xlu0 %220  ;;  %v34434_v25 = vpack.c.bf16 %v1758_v43, %v1755_v35  ;;  %v34466_v32 = vsub.f32 %v25621_v56, %v1758_v43 }
  0xf3   :  { %v478_v12 = vadd.f32 %v462_v49, %v378_v34  ;;  %v413_v14 = vpop.permute.xlu1 %412  ;;  %v522_v1 = vld [vmem:[#allocation2 + $0x10] sm:$0xff]  ;;  %30620 = vmatprep.subr.bf16.mxu1 %v34434_v25  ;;  %38287 = vst [vmem:[#allocation23_spill] sm:$0xff] %v34466_v32 }
  0xf4   :  { %v461_v16 = vmul.f32 %v34246_v11, %v413_v14  ;;  %v554_v54 = vsel %vm503_vm0, %v522_v1, 0  ;;  %v524_v19 = vld [vmem:[#allocation2 + $0x20] sm:$0xff]  ;;  %v34443_v14 = vand.u32 4294901760, %v697_v39 }
  0xf5   :  { %33344 = vtanh.f32 %v478_v12  ;;  %v34389_v52 = vand.u32 4294901760, %v554_v54  ;;  %v560_v26 = vsel %vm503_vm0, %v524_v19, 0 }
  0xf6   :  { %v477_v24 = vadd.f32 %v461_v16, %v377_v15  ;;  %v34392_v30 = vand.u32 4294901760, %v560_v26  ;;  %v179_v15 = vadd.f32 %v34239_v3, %v163_v2  ;;  %v263_v16 = vmul.f32 %v34234_v63, %v221_v4 }
  0xf7   :  { %27506 = vmatprep.mubr.f32.mxu0 %v34389_v52  ;;  %v525_v6 = vld [vmem:[#allocation2 + $0x28] sm:$0xff]  ;;  %v34399_v38 = vsub.f32 %v554_v54, %v34389_v52  ;;  %v463_v2 = vmul.f32 %v34246_v11, %v34225_v58 }
  0xf8   :  { %33346 = vtanh.f32 %v477_v24  ;;  %27507 = vmatmul.mubr.f32.gmra.mrb[2].mxu0 %v34376_v47  ;;  %v34402_v10 = vpop.permute.xlu1 %224  ;;  %v563_v46 = vsel %vm503_vm0, %v525_v6, 0  ;;  %v34406_v51 = vsub.f32 %v560_v26, %v34392_v30 }
  0xf9   :  { %38283 = vst [vmem:[#allocation19_spill] sm:$0xff] %v34399_v38  ;;  %27509 = vmatprep.mubr.f32.mxu0 %v34392_v30  ;;  %v34415_v27 = vand.u32 4294901760, %v563_v46  ;;  %v34418_v60 = vand.u32 4294901760, %v34399_v38 }
  0xfa   :  { %38284 = vst [vmem:[#allocation20_spill] sm:$0xff] %v34406_v51  ;;  %v34423_v50 = vand.u32 4294901760, %v34406_v51 }
  0xfb   :  { %v687_v49 = vsub.f32 %v34399_v38, %v34418_v60  ;;  %v34429_v57 = vsub.f32 %v563_v46, %v34415_v27  ;;  %v279_v46 = vadd.f32 %v263_v16, %v179_v15 }
  0xfc   :  { %27510 = vmatmul.mubr.f32.gmra.mrb[4].mxu0 %v34415_v27  ;;  %v707_v7 = vsub.f32 %v34406_v51, %v34423_v50 }
  0xfd   :  { %38285 = vst [vmem:[#allocation21_spill] sm:$0xff] %v34429_v57  ;;  %v34436_v34 = vpop.permute.xlu1 %123  ;;  %v34438_v12 = vand.u32 4294901760, %v687_v49  ;;  %v34441_v61 = vand.u32 4294901760, %v34429_v57 }
  0xfe   :  { %v34449_v54 = vand.u32 4294901760, %v707_v7 }
  0xff   :  { %v33345_v1 = vpop.eup %33344  ;;  %27474 = vmatprep.mubr.f32.mxu1 %v34438_v12  ;;  %v717_v19 = vsub.f32 %v34429_v57, %v34441_v61 }
 0x100   :  { %511 = vst.msk [vmem:[#allocation2 + $0x38] sm:$0xff] %vm503_vm0, %v33345_v1  ;;  %27475 = vmatmul.mubr.f32.gmra.mrb[2].mxu1 %v34443_v14 }
 0x101   :  { %27477 = vmatprep.mubr.f32.mxu1 %v34449_v54  ;;  %v34456_v26 = vand.u32 4294901760, %v717_v19  ;;  %v34464_v19 = vsub.f32 %v25620_v0, %v1755_v35  ;;  %v164_v35 = vmul.f32 %v34231_v62, %v34367_v55 }
 0x102   :  { %v33347_v24 = vpop.eup %33346  ;;  %v321_v6 = vpop.permute.xlu1 %320 }
 0x103   :  { %510 = vst.msk [vmem:[#allocation2 + $0x30] sm:$0xff] %vm503_vm0, %v33347_v24  ;;  %v363_v39 = vmul.f32 %v34241_v5, %v321_v6  ;;  %38286 = vst [vmem:[#allocation22_spill] sm:$0xff] %v34464_v19  ;;  %v38200_v24 = vand.u32 4294901760, %v34464_v19  ;;  %v38199_v6 = vand.u32 4294901760, %v34466_v32 }
 0x104   :  { %27478 = vmatmul.mubr.f32.gmra.mrb[4].mxu1 %v34456_v26 }
 0x105   :  { %v379_v49 = vadd.f32 %v363_v39, %v279_v46  ;;  %v1987_v0 = vsub.f32 %v34464_v19, %v38200_v24  ;;  %v1994_v56 = vsub.f32 %v34466_v32, %v38199_v6  ;;  %v180_v6 = vadd.f32 %v34239_v3, %v164_v35 }
 0x106   :  { %v325_v4 = vpop.permute.xlu1 %324 }
 0x107   :  { %v479_v7 = vadd.f32 %v463_v2, %v379_v49  ;;  %v527_v1 = vld [vmem:[#allocation2 + $0x38] sm:$0xff]  ;;  %v1988_v2 = vand.u32 4294901760, %v1987_v0  ;;  %v1995_v49 = vand.u32 4294901760, %v1994_v56 }
 0x108   :  { %v569_v33 = vsel %vm503_vm0, %v527_v1, 0 }
 0x109   :  { %33348 = vtanh.f32 %v479_v7  ;;  %v34468_v15 = vand.u32 4294901760, %v569_v33  ;;  %v264_v7 = vmul.f32 %v34234_v63, %v34402_v10 }
 0x10a   :  { %v526_v16 = vld [vmem:[#allocation2 + $0x30] sm:$0xff] }
 0x10b   :  { %38288 = vst [vmem:[#allocation24_spill] sm:$0xff] %v34468_v15  ;;  %v229_v22 = vpop.permute.xlu1 %228  ;;  %v566_v58 = vsel %vm503_vm0, %v526_v16, 0  ;;  %v34474_v46 = vsub.f32 %v569_v33, %v34468_v15  ;;  %v34500_v16 = vpack.c.bf16 %v1995_v49, %v1988_v2  ;;  %v280_v24 = vadd.f32 %v264_v7, %v180_v6 }
 0x10c   :  { %v34476_v39 = vand.u32 4294901760, %v566_v58  ;;  %v38292_v6 = vand.u32 4294901760, %v34097_v17  ;;  %v38293_v7 = vand.u32 4294901760, %v34099_v18 }
 0x10d   :  { %38289 = vst [vmem:[#allocation25_spill] sm:$0xff] %v34474_v46  ;;  %v34487_v43 = vand.u32 4294901760, %v34474_v46 }
 0x10e   :  { %38290 = vst [vmem:[#allocation26_spill] sm:$0xff] %v34476_v39  ;;  %27512 = vmatprep.mubr.f32.mxu0 %v34476_v39  ;;  %v34491_v33 = vsub.f32 %v566_v58, %v34476_v39  ;;  %v364_v58 = vmul.f32 %v34241_v5, %v325_v4 }
 0x10f   :  { %27513 = vmatmul.mubr.f32.gmra.mrb[6].mxu0 %v34468_v15  ;;  %v233_v1 = vpop.permute.xlu1 %232  ;;  %v737_v0 = vsub.f32 %v34474_v46, %v34487_v43 }
 0x110   :  { %38291 = vst [vmem:[#allocation27_spill] sm:$0xff] %v34491_v33  ;;  %27535 = vmatprep.mubr.f32.mxu0 %v34298_v13  ;;  %v34498_v55 = vand.u32 4294901760, %v34491_v33  ;;  %v380_v4 = vadd.f32 %v364_v58, %v280_v24 }
 0x111   :  { %v34515_v21 = vand.u32 4294901760, %v737_v0 }
 0x112   :  { %v727_v10 = vsub.f32 %v34491_v33, %v34498_v55 }
 0x113   :  { %v33349_v56 = vpop.eup %33348  ;;  %27536 = vmatmul.mubr.f32.vlgmr.msra.gmra.mrb[0].mxu0 %v34317_v31  ;;  %v34522_v31 = vpack.c.bf16 %v38293_v7, %v38292_v6  ;;  %v166_v6 = vmul.f32 %v34231_v62, %v34278_v53  ;;  %v265_v7 = vmul.f32 %v34234_v63, %v229_v22  ;;  %v34560_v53 = vpack.c.bf16 %v34466_v32, %v34464_v19 }
 0x114   :  { %512 = vst.msk [vmem:[#allocation2 + $0x40] sm:$0xff] %vm503_vm0, %v33349_v56  ;;  %27538 = vmatprep.mubr.f32.mxu0 %v34399_v38  ;;  %v425_v2 = vpop.permute.xlu1 %424  ;;  %v34511_v49 = vand.u32 4294901760, %v727_v10  ;;  %30598 = vmatpush3.bf16.msra.mxu0 %v34154_v41 }
 0x115   :  { %v464_v35 = vmul.f32 %v34246_v11, %v425_v2  ;;  %30600 = vmatprep.subr.bf16.mxu0 %v34160_v42  ;;  %v165_v2 = vmul.f32 %v34231_v62, %v34436_v34  ;;  %v266_v34 = vmul.f32 %v34234_v63, %v233_v1 }
 0x116   :  { %27480 = vmatprep.mubr.f32.mxu1 %v34511_v49 }
 0x117   :  { %v480_v56 = vadd.f32 %v464_v35, %v380_v4  ;;  %27481 = vmatmul.mubr.f32.gmra.mrb[6].mxu1 %v34515_v21  ;;  %27539 = vmatmul.mubr.f32.gmra.mrb[2].mxu0 %v34385_v40 }
 0x118   :  { %27541 = vmatprep.mubr.f32.mxu0 %v34406_v51  ;;  %30602 = vmatpush3.bf16.msra.mxu0 %v34160_v42 }
 0x119   :  { %33350 = vtanh.f32 %v480_v56  ;;  %v329_v24 = vpop.permute.xlu1 %328  ;;  %30604 = vmatprep.subr.bf16.mxu0 %v34522_v31 }
 0x11b   :  { %27542 = vmatmul.mubr.f32.gmra.mrb[4].mxu0 %v34429_v57  ;;  %v528_v17 = vld [vmem:[#allocation2 + $0x40] sm:$0xff]  ;;  %v182_v57 = vadd.f32 %v34239_v3, %v166_v6 }
 0x11c   :  { %27544 = vmatprep.mubr.f32.mxu0 %v34491_v33  ;;  %v572_v18 = vsel %vm503_vm0, %v528_v17, 0 }
 0x11d   :  { %v34533_v58 = vand.u32 4294901760, %v572_v18 }
 0x11e   :  { %v139_v0 = vpop.permute.xlu1 %138 }
 0x11f   :  { %27545 = vmatmul.mubr.f32.gmra.mrb[6].mxu0 %v34474_v46  ;;  %v34537_v10 = vsub.f32 %v572_v18, %v34533_v58  ;;  %v181_v18 = vadd.f32 %v34239_v3, %v165_v2  ;;  %v365_v46 = vmul.f32 %v34241_v5, %v329_v24  ;;  %v282_v2 = vadd.f32 %v266_v34, %v182_v57 }
 0x121   :  { %38294 = vst [vmem:[#allocation28_spill] sm:$0xff] %v34537_v10  ;;  %27547 = vmatprep.mubr.f32.mxu0 %v34537_v10  ;;  %v34543_v4 = vand.u32 4294901760, %v34537_v10  ;;  %v281_v51 = vadd.f32 %v265_v7, %v181_v18 }
 0x123   :  { %v33351_v35 = vpop.eup %33350  ;;  %v237_v56 = vpop.permute.xlu1 %236  ;;  %v747_v17 = vsub.f32 %v34537_v10, %v34543_v4  ;;  %v381_v10 = vadd.f32 %v365_v46, %v281_v51  ;;  %v168_v46 = vmul.f32 %v34231_v62, %v139_v0 }
 0x124   :  { %513 = vst.msk [vmem:[#allocation2 + $0x48] sm:$0xff] %vm503_vm0, %v33351_v35  ;;  %v366_v35 = vmul.f32 %v34241_v5, %v34327_v45  ;;  %v241_v45 = vpop.permute.xlu0 %240 }
 0x125   :  { %v34554_v33 = vand.u32 4294901760, %v747_v17 }
 0x126   :  { %v382_v7 = vadd.f32 %v366_v35, %v282_v2  ;;  %v167_v35 = vmul.f32 %v34231_v62, %v34284_v59 }
 0x127   :  { %27483 = vmatprep.mubr.f32.mxu1 %v34554_v33 }
 0x128   :  { %v429_v22 = vpop.permute.xlu1 %428 }
 0x129   :  { %v465_v1 = vmul.f32 %v34246_v11, %v429_v22 }
 0x12b   :  { %v481_v24 = vadd.f32 %v465_v1, %v381_v10  ;;  %v529_v17 = vld [vmem:[#allocation2 + $0x48] sm:$0xff]  ;;  %v268_v1 = vmul.f32 %v34234_v63, %v241_v45 }
 0x12c   :  { %v433_v40 = vpop.permute.xlu1 %432  ;;  %v575_v6 = vsel %vm503_vm0, %v529_v17, 0  ;;  %v183_v17 = vadd.f32 %v34239_v3, %v167_v35 }
 0x12d   :  { %33352 = vtanh.f32 %v481_v24  ;;  %v466_v18 = vmul.f32 %v34246_v11, %v433_v40  ;;  %v34567_v38 = vand.u32 4294901760, %v575_v6  ;;  %v245_v40 = vpop.permute.xlu0 %244  ;;  %v267_v24 = vmul.f32 %v34234_v63, %v237_v56 }
 0x12f   :  { %v482_v32 = vadd.f32 %v466_v18, %v382_v7  ;;  %v34570_v19 = vsub.f32 %v575_v6, %v34567_v38  ;;  %v283_v45 = vadd.f32 %v267_v24, %v183_v17 }
 0x131   :  { %38295 = vst [vmem:[#allocation29_spill] sm:$0xff] %v34570_v19  ;;  %33354 = vtanh.f32 %v482_v32  ;;  %27548 = vmatmul.mubr.f32.gmra.mrb[8].mxu0 %v34570_v19  ;;  %v144_v51 = vpop.permute.xlu1 %143  ;;  %v34574_v57 = vand.u32 4294901760, %v34570_v19  ;;  %v184_v32 = vadd.f32 %v34239_v3, %v168_v46  ;;  %v441_v0 = vpop.permute.xlu0 %440  ;;  %v367_v46 = vmul.f32 %v34241_v5, %v34339_v8 }
 0x132   :  { %v468_v59 = vmul.f32 %v34246_v11, %v441_v0 }
 0x133   :  { %v757_v10 = vsub.f32 %v34570_v19, %v34574_v57  ;;  %v284_v18 = vadd.f32 %v268_v1, %v184_v32  ;;  %v383_v15 = vadd.f32 %v367_v46, %v283_v45  ;;  %v169_v1 = vmul.f32 %v34231_v62, %v144_v51 }
 0x134   :  { %v269_v51 = vmul.f32 %v34234_v63, %v245_v40 }
 0x135   :  { %v149_v34 = vpop.permute.xlu1 %148  ;;  %v34579_v22 = vand.u32 4294901760, %v757_v10 }
 0x137   :  { %v33353_v2 = vpop.eup %33352  ;;  %27484 = vmatmul.mubr.f32.gmra.mrb[8].mxu1 %v34579_v22 }
 0x138   :  { %514 = vst.msk [vmem:[#allocation2 + $0x50] sm:$0xff] %vm503_vm0, %v33353_v2 }
 0x13a   :  { %v341_v6 = vpop.permute.xlu1 %340 }
 0x13b   :  { %v33355_v7 = vpop.eup %33354  ;;  %v368_v10 = vmul.f32 %v34241_v5, %v341_v6 }
 0x13c   :  { %515 = vst.msk [vmem:[#allocation2 + $0x58] sm:$0xff] %vm503_vm0, %v33355_v7  ;;  %v185_v7 = vadd.f32 %v34239_v3, %v169_v1 }
 0x13d   :  { %v384_v19 = vadd.f32 %v368_v10, %v284_v18 }
 0x13e   :  { %v285_v45 = vadd.f32 %v269_v51, %v185_v7 }
 0x13f   :  { %v484_v56 = vadd.f32 %v468_v59, %v384_v19  ;;  %v437_v13 = vpop.permute.xlu1 %436  ;;  %v530_v2 = vld [vmem:[#allocation2 + $0x50] sm:$0xff] }
 0x140   :  { %v467_v35 = vmul.f32 %v34246_v11, %v437_v13  ;;  %v578_v39 = vsel %vm503_vm0, %v530_v2, 0 }
 0x141   :  { %33356 = vtanh.f32 %v484_v56  ;;  %v34596_v32 = vand.u32 4294901760, %v578_v39 }
 0x142   :  { %v483_v0 = vadd.f32 %v467_v35, %v383_v15  ;;  %v170_v35 = vmul.f32 %v34231_v62, %v149_v34 }
 0x143   :  { %v34600_v8 = vsub.f32 %v578_v39, %v34596_v32  ;;  %v531_v24 = vld [vmem:[#allocation2 + $0x58] sm:$0xff]  ;;  %v445_v39 = vpop.permute.xlu0 %444 }
 0x144   :  { %33358 = vtanh.f32 %v483_v0  ;;  %v249_v17 = vpop.permute.xlu1 %248  ;;  %v581_v19 = vsel %vm503_vm0, %v531_v24, 0  ;;  %v469_v40 = vmul.f32 %v34246_v11, %v445_v39  ;;  %v186_v39 = vadd.f32 %v34239_v3, %v170_v35 }
 0x145   :  { %27550 = vmatprep.mubr.f32.mxu0 %v34600_v8  ;;  %v34604_v6 = vand.u32 4294901760, %v581_v19  ;;  %v34607_v13 = vand.u32 4294901760, %v34600_v8  ;;  %v270_v24 = vmul.f32 %v34234_v63, %v249_v17 }
 0x147   :  { %v34612_v15 = vsub.f32 %v581_v19, %v34604_v6  ;;  %v767_v18 = vsub.f32 %v34600_v8, %v34607_v13  ;;  %v286_v34 = vadd.f32 %v270_v24, %v186_v39 }
 0x149   :  { %27551 = vmatmul.mubr.f32.gmra.mrb[10].mxu0 %v34612_v15  ;;  %v345_v10 = vpop.permute.xlu1 %344  ;;  %v34617_v59 = vand.u32 4294901760, %v767_v18  ;;  %v34620_v46 = vand.u32 4294901760, %v34612_v15 }
 0x14a   :  { %v369_v56 = vmul.f32 %v34241_v5, %v345_v10 }
 0x14b   :  { %v33357_v2 = vpop.eup %33356  ;;  %27486 = vmatprep.mubr.f32.mxu1 %v34617_v59  ;;  %v777_v1 = vsub.f32 %v34612_v15, %v34620_v46 }
 0x14c   :  { %517 = vst.msk [vmem:[#allocation2 + $0x68] sm:$0xff] %vm503_vm0, %v33357_v2  ;;  %v385_v0 = vadd.f32 %v369_v56, %v285_v45 }
 0x14d   :  { %v349_v19 = vpop.permute.xlu1 %348  ;;  %v34630_v18 = vand.u32 4294901760, %v777_v1 }
 0x14e   :  { %v33359_v7 = vpop.eup %33358  ;;  %v485_v51 = vadd.f32 %v469_v40, %v385_v0  ;;  %v370_v62 = vmul.f32 %v34241_v5, %v349_v19 }
 0x14f   :  { %516 = vst.msk [vmem:[#allocation2 + $0x60] sm:$0xff] %vm503_vm0, %v33359_v7  ;;  %27487 = vmatmul.mubr.f32.gmra.mrb[10].mxu1 %v34630_v18 }
 0x150   :  { %33360 = vtanh.f32 %v485_v51  ;;  %v386_v2 = vadd.f32 %v370_v62, %v286_v34 }
 0x152   :  { %v449_v10 = vpop.permute.xlu1 %448 }
 0x153   :  { %v470_v45 = vmul.f32 %v34246_v11, %v449_v10  ;;  %v533_v63 = vld [vmem:[#allocation2 + $0x68] sm:$0xff] }
 0x154   :  { %v587_v17 = vsel %vm503_vm0, %v533_v63, 0 }
 0x155   :  { %v486_v56 = vadd.f32 %v470_v45, %v386_v2  ;;  %v34638_v1 = vand.u32 4294901760, %v587_v17 }
 0x156   :  { %v532_v40 = vld [vmem:[#allocation2 + $0x60] sm:$0xff] }
 0x157   :  { %33362 = vtanh.f32 %v486_v56  ;;  %v584_v3 = vsel %vm503_vm0, %v532_v40, 0  ;;  %v34642_v5 = vsub.f32 %v587_v17, %v34638_v1 }
 0x158   :  { %v34644_v35 = vand.u32 4294901760, %v584_v3 }
 0x159   :  { %38296 = vst [vmem:[#allocation30_spill] sm:$0xff] %v34642_v5  ;;  %v34647_v0 = vand.u32 4294901760, %v34642_v5 }
 0x15a   :  { %v33361_v24 = vpop.eup %33360  ;;  %v34650_v11 = vsub.f32 %v584_v3, %v34644_v35 }
 0x15b   :  { %518 = vst.msk [vmem:[#allocation2 + $0x70] sm:$0xff] %vm503_vm0, %v33361_v24  ;;  %v797_v7 = vsub.f32 %v34642_v5, %v34647_v0 }
 0x15c   :  { %38297 = vst [vmem:[#allocation31_spill] sm:$0xff] %v34650_v11  ;;  %27553 = vmatprep.mubr.f32.mxu0 %v34650_v11  ;;  %v34655_v19 = vand.u32 4294901760, %v34650_v11 }
 0x15d   :  { %27554 = vmatmul.mubr.f32.gmra.mrb[12].mxu0 %v34642_v5  ;;  %v34664_v34 = vand.u32 4294901760, %v797_v7 }
 0x15e   :  { %v787_v51 = vsub.f32 %v34650_v11, %v34655_v19 }
 0x160   :  { %v34662_v39 = vand.u32 4294901760, %v787_v51 }
 0x161   :  { %v33363_v62 = vpop.eup %33362 }
 0x162   :  { %519 = vst.msk [vmem:[#allocation2 + $0x78] sm:$0xff] %vm503_vm0, %v33363_v62  ;;  %27489 = vmatprep.mubr.f32.mxu1 %v34662_v39  ;;  %v534_v10 = vld [vmem:[#allocation2 + $0x70] sm:$0xff] }
 0x163   :  { %27490 = vmatmul.mubr.f32.gmra.mrb[12].mxu1 %v34664_v34  ;;  %v590_v2 = vsel %vm503_vm0, %v534_v10, 0  ;;  %v25622_v10 = vld [vmem:[%s38189_s3 + $0x50] sm:$0xff] }
 0x164   :  { %v34670_v45 = vand.u32 4294901760, %v590_v2 }
 0x166   :  { %v34673_v63 = vsub.f32 %v590_v2, %v34670_v45  ;;  %v25623_v2 = vld [vmem:[%s38189_s3 + $0x58] sm:$0xff] }
 0x167   :  { %v1764_v11 = vand.u32 4294901760, %v25623_v2 }
 0x168   :  { %38298 = vst [vmem:[#allocation32_spill] sm:$0xff] %v34673_v63  ;;  %27556 = vmatprep.mubr.f32.mxu0 %v34673_v63  ;;  %v34677_v17 = vand.u32 4294901760, %v34673_v63 }
 0x169   :  { %v535_v56 = vld [vmem:[#allocation2 + $0x78] sm:$0xff] }
 0x16a   :  { %v807_v40 = vsub.f32 %v34673_v63, %v34677_v17  ;;  %v593_v3 = vsel %vm503_vm0, %v535_v56, 0 }
 0x16b   :  { %v34682_v24 = vand.u32 4294901760, %v593_v3 }
 0x16c   :  { %v34684_v7 = vand.u32 4294901760, %v807_v40  ;;  %v38299_v40 = vand.u32 4294901760, %v34121_v28 }
 0x16d   :  { %v34687_v51 = vsub.f32 %v593_v3, %v34682_v24  ;;  %v38300_v3 = vand.u32 4294901760, %v34123_v29 }
 0x16e   :  { %27492 = vmatprep.mubr.f32.mxu1 %v34684_v7 }
 0x16f   :  { %27557 = vmatmul.mubr.f32.gmra.mrb[14].mxu0 %v34687_v51  ;;  %v34692_v62 = vand.u32 4294901760, %v34687_v51  ;;  %v30607_v63 = vpack.c.bf16 %v38300_v3, %v38299_v40  ;;  %v34719_v40 = vsub.f32 %v25623_v2, %v1764_v11  ;;  %v2901_v3 = vld [vmem:[#allocation6 + $0x8] sm:$0xff] }
 0x170   :  { %27567 = vmatprep.mubr.f32.mxu0 %v34308_v23  ;;  %v1761_v23 = vand.u32 4294901760, %v25622_v10 }
 0x171   :  { %v817_v56 = vsub.f32 %v34687_v51, %v34692_v62 }
 0x172   :  { %v34715_v28 = vpack.c.bf16 %v1764_v11, %v1761_v23  ;;  %v34717_v29 = vsub.f32 %v25622_v10, %v1761_v23 }
 0x173   :  { %27568 = vmatmul.mubr.f32.vlgmr.msra.gmra.mrb[0].mxu0 %v34323_v37  ;;  %v34708_v5 = vand.u32 4294901760, %v817_v56 }
 0x174   :  { %27570 = vmatprep.mubr.f32.mxu0 %v34418_v60  ;;  %30606 = vmatpush3.bf16.msra.mxu0 %v34522_v31  ;;  %v2000_v23 = vand.u32 4294901760, %v34717_v29  ;;  %v2007_v31 = vand.u32 4294901760, %v34719_v40 }
 0x175   :  { %27493 = vmatmul.mubr.f32.gmra.mrb[14].mxu1 %v34708_v5  ;;  %30608 = vmatprep.subr.bf16.mxu0 %v30607_v63 }
 0x176   :  { %27515 = vmatprep.mubr.f32.mxu1 %v34533_v58  ;;  %v2001_v11 = vsub.f32 %v34717_v29, %v2000_v23 }
 0x177   :  { %27571 = vmatmul.mubr.f32.gmra.mrb[2].mxu0 %v34395_v48 }
 0x178   :  { %27573 = vmatprep.mubr.f32.mxu0 %v34423_v50  ;;  %30610 = vmatpush3.bf16.msra.mxu0 %v30607_v63  ;;  %v2008_v63 = vsub.f32 %v34719_v40, %v2007_v31  ;;  %v2002_v10 = vand.u32 4294901760, %v2001_v11 }
 0x179   :  { %27516 = vmatmul.mubr.f32.vlgmr.msra.gmra.mrb[8].mxu1 %v34567_v38  ;;  %30612 = vmatprep.subr.bf16.mxu0 %v34154_v41 }
 0x17a   :  { %30622 = vmatpush3.bf16.msra.mxu1 %v34434_v25  ;;  %27518 = vmatprep.mubr.f32.mxu1 %v34596_v32  ;;  %v2009_v2 = vand.u32 4294901760, %v2008_v63 }
 0x17b   :  { %27574 = vmatmul.mubr.f32.gmra.mrb[4].mxu0 %v34441_v61  ;;  %30624 = vmatprep.subr.bf16.mxu1 %v34715_v28 }
 0x17c   :  { %27576 = vmatprep.mubr.f32.mxu0 %v34498_v55  ;;  %v30631_v56 = vpack.c.bf16 %v2009_v2, %v2002_v10 }
 0x17d   :  { %27519 = vmatmul.mubr.f32.gmra.mrb[10].mxu1 %v34604_v6 }
 0x17e   :  { %27521 = vmatprep.mubr.f32.mxu1 %v34644_v35  ;;  %30626 = vmatpush3.bf16.msra.mxu1 %v34715_v28 }
 0x17f   :  { %27577 = vmatmul.mubr.f32.gmra.mrb[6].mxu0 %v34487_v43  ;;  %30628 = vmatprep.subr.bf16.mxu1 %v34500_v16 }
 0x180   :  { %27579 = vmatprep.mubr.f32.mxu0 %v34543_v4 }
 0x181   :  { %27522 = vmatmul.mubr.f32.gmra.mrb[12].mxu1 %v34638_v1 }
 0x182   :  { %27524 = vmatprep.mubr.f32.mxu1 %v34670_v45 }
 0x183   :  { %27580 = vmatmul.mubr.f32.gmra.mrb[8].mxu0 %v34574_v57 }
 0x184   :  { %27582 = vmatprep.mubr.f32.mxu0 %v34607_v13 }
 0x185   :  { %27525 = vmatmul.mubr.f32.gmra.mrb[14].mxu1 %v34682_v24 }
 0x186   :  { %27663 = vmatprep.mubr.f32.mxu1 %v34320_v36  ;;  %v2900_v36 = vld [vmem:[#allocation6] sm:$0xff] }
 0x187   :  { %27583 = vmatmul.mubr.f32.gmra.mrb[10].mxu0 %v34620_v46 }
 0x188   :  { %27585 = vmatprep.mubr.f32.mxu0 %v34655_v19 }
 0x189   :  { %27664 = vmatmul.mubr.f32.vlgmr.msra.gmra.mrb[16].mxu1 %v34331_v44  ;;  %v2915_v44 = vand.u32 4294901760, %v2900_v36 }
 0x18a   :  { %30630 = vmatpush3.bf16.msra.mxu1 %v34500_v16  ;;  %27666 = vmatprep.mubr.f32.mxu1 %v34438_v12  ;;  %v2918_v12 = vand.u32 4294901760, %v2901_v3  ;;  %v30639_v16 = vpack.c.bf16 %v34719_v40, %v34717_v29 }
 0x18b   :  { %27586 = vmatmul.mubr.f32.gmra.mrb[12].mxu0 %v34647_v0  ;;  %30632 = vmatprep.subr.bf16.mxu1 %v30631_v56 }
 0x18c   :  { %27588 = vmatprep.mubr.f32.mxu0 %v34677_v17 }
 0x18d   :  { %27667 = vmatmul.mubr.f32.gmra.mrb[18].mxu1 %v34443_v14  ;;  %v34768_v14 = vpack.c.bf16 %v2918_v12, %v2915_v44 }
 0x18e   :  { %27669 = vmatprep.mubr.f32.mxu1 %v34449_v54  ;;  %30634 = vmatpush3.bf16.msra.mxu1 %v30631_v56  ;;  %v34790_v54 = vsub.f32 %v2901_v3, %v2918_v12  ;;  %v38304_v12 = vld [vmem:[#allocation17_spill] sm:$0xff] }
 0x18f   :  { %27589 = vmatmul.mubr.f32.gmra.mrb[14].mxu0 %v34692_v62  ;;  %30636 = vmatprep.subr.bf16.mxu1 %v34560_v53 }
 0x190   :  { %27599 = vmatprep.mubr.f32.mxu0 %v34294_v9 }
 0x191   :  { %27670 = vmatmul.mubr.f32.gmra.mrb[20].mxu1 %v34456_v26 }
 0x192   :  { %27672 = vmatprep.mubr.f32.mxu1 %v34511_v49 }
 0x193   :  { %27600 = vmatmul.mubr.f32.vlgmr.msra.gmra.mrb[0].mxu0 %v34305_v20 }
 0x194   :  { %27602 = vmatprep.mubr.f32.mxu0 %v34389_v52  ;;  %30614 = vmatpush3.bf16.msra.mxu0 %v34154_v41  ;;  %v38302_v41 = vld [vmem:[#allocation24_spill] sm:$0xff] }
 0x195   :  { %27673 = vmatmul.mubr.f32.gmra.mrb[22].mxu1 %v34515_v21  ;;  %30616 = vmatprep.subr.bf16.mxu0 %v34160_v42  ;;  %v38301_v21 = vld [vmem:[#allocation26_spill] sm:$0xff] }
 0x196   :  { %27675 = vmatprep.mubr.f32.mxu1 %v34554_v33 }
 0x197   :  { %27603 = vmatmul.mubr.f32.gmra.mrb[2].mxu0 %v34376_v47 }
 0x198   :  { %27605 = vmatprep.mubr.f32.mxu0 %v34392_v30  ;;  %30618 = vmatpush3.bf16.msra.mxu0 %v34160_v42  ;;  %v34788_v42 = vsub.f32 %v2900_v36, %v2915_v44  ;;  %v38303_v44 = vld [vmem:[#allocation15_spill] sm:$0xff] }
 0x199   :  { %27676 = vmatmul.mubr.f32.gmra.mrb[24].mxu1 %v34579_v22  ;;  %30668 = vmatprep.subr.bf16.mxu0 %v34768_v14  ;;  %v3013_v22 = vand.u32 4294901760, %v34790_v54 }
 0x19a   :  { %27678 = vmatprep.mubr.f32.mxu1 %v34617_v59  ;;  %v3006_v49 = vand.u32 4294901760, %v34788_v42  ;;  %v2902_v59 = vld [vmem:[#allocation6 + $0x10] sm:$0xff] }
 0x19b   :  { %27606 = vmatmul.mubr.f32.gmra.mrb[4].mxu0 %v34415_v27 }
 0x19c   :  { %27608 = vmatprep.mubr.f32.mxu0 %v38301_v21 }
 0x19d   :  { %27679 = vmatmul.mubr.f32.gmra.mrb[26].mxu1 %v34630_v18  ;;  %v2903_v18 = vld [vmem:[#allocation6 + $0x18] sm:$0xff] }
 0x19e   :  { %27681 = vmatprep.mubr.f32.mxu1 %v34662_v39  ;;  %v2924_v39 = vand.u32 4294901760, %v2903_v18 }
 0x19f   :  { %27609 = vmatmul.mubr.f32.gmra.mrb[6].mxu0 %v38302_v41 }
 0x1a0   :  { %27611 = vmatprep.mubr.f32.mxu0 %v34533_v58  ;;  %v34846_v56 = vsub.f32 %v2903_v18, %v2924_v39  ;;  %v38305_v18 = vld [vmem:[#allocation19_spill] sm:$0xff] }
 0x1a1   :  { %27682 = vmatmul.mubr.f32.gmra.mrb[28].mxu1 %v34664_v34  ;;  %v3007_v34 = vsub.f32 %v34788_v42, %v3006_v49 }
 0x1a2   :  { %27684 = vmatprep.mubr.f32.mxu1 %v34684_v7  ;;  %v3027_v3 = vand.u32 4294901760, %v34846_v56 }
 0x1a3   :  { %27612 = vmatmul.mubr.f32.gmra.mrb[8].mxu0 %v34567_v38  ;;  %v3008_v11 = vand.u32 4294901760, %v3007_v34  ;;  %v38308_v34 = vld [vmem:[#allocation23_spill] sm:$0xff] }
 0x1a4   :  { %27614 = vmatprep.mubr.f32.mxu0 %v34596_v32 }
 0x1a5   :  { %27685 = vmatmul.mubr.f32.gmra.mrb[30].mxu1 %v34708_v5  ;;  %v2921_v5 = vand.u32 4294901760, %v2902_v59 }
 0x1a6   :  { %v34792_v26 = vpop.f32.mrb[0].mxu1  ;;  %27695 = vmatprep.mubr.f32.mxu1 %v34294_v9 }
 0x1a7   :  { %v34795_v33 = vpop.f32.mrb[1].mxu1  ;;  %27615 = vmatmul.mubr.f32.gmra.mrb[10].mxu0 %v34604_v6  ;;  %v34820_v7 = vpack.c.bf16 %v2924_v39, %v2921_v5  ;;  %v34844_v2 = vsub.f32 %v2902_v59, %v2921_v5  ;;  %v3028_v59 = vsub.f32 %v34846_v56, %v3027_v3  ;;  %v38306_v5 = vld [vmem:[#allocation22_spill] sm:$0xff] }
 0x1a8   :  { %27617 = vmatprep.mubr.f32.mxu0 %v34644_v35  ;;  %v38307_v39 = vand.u32 4294901760, %v38306_v5  ;;  %v38312_v5 = vld [vmem:[#allocation21_spill] sm:$0xff] }
 0x1a9   :  { %27696 = vmatmul.mubr.f32.vlgmr.msra.gmra.mrb[16].mxu1 %v34305_v20  ;;  %v38222_v36 = vand.u32 4294901760, %v34844_v2 }
 0x1aa   :  { %30638 = vmatpush3.bf16.msra.mxu1 %v34560_v53  ;;  %27698 = vmatprep.mubr.f32.mxu1 %v34389_v52  ;;  %v3014_v53 = vsub.f32 %v34790_v54, %v3013_v22 }
 0x1ab   :  { %27618 = vmatmul.mubr.f32.gmra.mrb[12].mxu0 %v34638_v1  ;;  %30640 = vmatprep.subr.bf16.mxu1 %v30639_v16 }
 0x1ac   :  { %27620 = vmatprep.mubr.f32.mxu0 %v34670_v45  ;;  %v3015_v63 = vand.u32 4294901760, %v3014_v53  ;;  %v38309_v53 = vand.u32 4294901760, %v38308_v34 }
 0x1ad   :  { %27699 = vmatmul.mubr.f32.gmra.mrb[18].mxu1 %v34376_v47 }
 0x1ae   :  { %27701 = vmatprep.mubr.f32.mxu1 %v34392_v30  ;;  %30642 = vmatpush3.bf16.msra.mxu1 %v30639_v16  ;;  %v34828_v10 = vpack.c.bf16 %v3015_v63, %v3008_v11  ;;  %v3021_v16 = vsub.f32 %v34844_v2, %v38222_v36  ;;  %v30651_v11 = vpack.c.bf16 %v38309_v53, %v38307_v39  ;;  %v38310_v63 = vld [vmem:[#allocation18_spill] sm:$0xff]  ;;  %v38311_v36 = vld [vmem:[#allocation20_spill] sm:$0xff]  ;;  %v38313_v39 = vld [vmem:[#allocation27_spill] sm:$0xff] }
 0x1af   :  { %27621 = vmatmul.mubr.f32.gmra.mrb[14].mxu0 %v34682_v24  ;;  %30644 = vmatprep.subr.bf16.mxu1 %v34434_v25 }
 0x1b0   :  { %27631 = vmatprep.mubr.f32.mxu0 %v34294_v9 }
 0x1b1   :  { %27702 = vmatmul.mubr.f32.gmra.mrb[20].mxu1 %v34415_v27 }
 0x1b2   :  { %27704 = vmatprep.mubr.f32.mxu1 %v38301_v21 }
 0x1b3   :  { %27632 = vmatmul.mubr.f32.vlgmr.msra.gmra.mrb[0].mxu0 %v34305_v20 }
 0x1b4   :  { %27634 = vmatprep.mubr.f32.mxu0 %v34389_v52  ;;  %30670 = vmatpush3.bf16.msra.mxu0 %v34768_v14 }
 0x1b5   :  { %27705 = vmatmul.mubr.f32.gmra.mrb[22].mxu1 %v38302_v41  ;;  %30672 = vmatprep.subr.bf16.mxu0 %v34820_v7 }
 0x1b6   :  { %27707 = vmatprep.mubr.f32.mxu1 %v34533_v58 }
 0x1b7   :  { %27635 = vmatmul.mubr.f32.gmra.mrb[2].mxu0 %v34376_v47 }
 0x1b8   :  { %27637 = vmatprep.mubr.f32.mxu0 %v34392_v30  ;;  %30674 = vmatpush3.bf16.msra.mxu0 %v34820_v7 }
 0x1b9   :  { %27708 = vmatmul.mubr.f32.gmra.mrb[24].mxu1 %v34567_v38  ;;  %30676 = vmatprep.subr.bf16.mxu0 %v34828_v10 }
 0x1ba   :  { %27710 = vmatprep.mubr.f32.mxu1 %v34596_v32 }
 0x1bb   :  { %27638 = vmatmul.mubr.f32.gmra.mrb[4].mxu0 %v34415_v27 }
 0x1bc   :  { %27640 = vmatprep.mubr.f32.mxu0 %v38301_v21 }
 0x1bd   :  { %27711 = vmatmul.mubr.f32.gmra.mrb[26].mxu1 %v34604_v6 }
 0x1be   :  { %27713 = vmatprep.mubr.f32.mxu1 %v34644_v35 }
 0x1bf   :  { %27641 = vmatmul.mubr.f32.gmra.mrb[6].mxu0 %v38302_v41 }
 0x1c0   :  { %27643 = vmatprep.mubr.f32.mxu0 %v34533_v58 }
 0x1c1   :  { %27714 = vmatmul.mubr.f32.gmra.mrb[28].mxu1 %v34638_v1 }
 0x1c2   :  { %27716 = vmatprep.mubr.f32.mxu1 %v34670_v45 }
 0x1c3   :  { %27644 = vmatmul.mubr.f32.gmra.mrb[8].mxu0 %v34567_v38 }
 0x1c4   :  { %27646 = vmatprep.mubr.f32.mxu0 %v34596_v32 }
 0x1c5   :  { %27717 = vmatmul.mubr.f32.gmra.mrb[30].mxu1 %v34682_v24 }
 0x1c6   :  { %27727 = vmatprep.mubr.f32.mxu1 %v38303_v44  ;;  %v3022_v44 = vand.u32 4294901760, %v3021_v16 }
 0x1c7   :  { %27647 = vmatmul.mubr.f32.gmra.mrb[10].mxu0 %v34604_v6 }
 0x1c8   :  { %27649 = vmatprep.mubr.f32.mxu0 %v34644_v35 }
 0x1c9   :  { %27728 = vmatmul.mubr.f32.vlgmr.msra.gmra.mrb[16].mxu1 %v38304_v12  ;;  %v3029_v12 = vand.u32 4294901760, %v3028_v59  ;;  %v34891_v59 = vpack.c.bf16 %v34790_v54, %v34788_v42 }
 0x1ca   :  { %30646 = vmatpush3.bf16.msra.mxu1 %v34434_v25  ;;  %27730 = vmatprep.mubr.f32.mxu1 %v38305_v18  ;;  %v38223_v18 = vmov 0.0  }
 0x1cb   :  { %27650 = vmatmul.mubr.f32.gmra.mrb[12].mxu0 %v34638_v1  ;;  %30648 = vmatprep.subr.bf16.mxu1 %v34715_v28  ;;  %v34877_v34 = vpack.c.bf16 %v3029_v12, %v3022_v44 }
 0x1cc   :  { %27652 = vmatprep.mubr.f32.mxu0 %v34670_v45 }
 0x1cd   :  { %27731 = vmatmul.mubr.f32.gmra.mrb[18].mxu1 %v38310_v63  ;;  %v38315_v63 = vld [vmem:[#allocation28_spill] sm:$0xff] }
 0x1ce   :  { %27733 = vmatprep.mubr.f32.mxu1 %v38311_v36  ;;  %30650 = vmatpush3.bf16.msra.mxu1 %v34715_v28  ;;  %v38314_v36 = vld [vmem:[#allocation25_spill] sm:$0xff] }
 0x1cf   :  { %27653 = vmatmul.mubr.f32.gmra.mrb[14].mxu0 %v34682_v24  ;;  %30652 = vmatprep.subr.bf16.mxu1 %v30651_v11 }
 0x1d0   :  { %27855 = vmatprep.mubr.f32.mxu0 %v38223_v18 }
 0x1d1   :  { %27734 = vmatmul.mubr.f32.gmra.mrb[20].mxu1 %v38312_v5  ;;  %v38316_v5 = vld [vmem:[#allocation29_spill] sm:$0xff] }
 0x1d2   :  { %27736 = vmatprep.mubr.f32.mxu1 %v38313_v39  ;;  %v34903_v39 = vpack.c.bf16 %v34846_v56, %v34844_v2  ;;  %v38319_v56 = vld [vmem:[#allocation32_spill] sm:$0xff] }
 0x1d3   :  { %v34880_v53 = vpop.f32.mrb[2].mxu1  ;;  %27856 = vmatmul.mubr.f32.vlgmr.msra.gmra.mrb[0].mxu0 %v38223_v18 }
 0x1d4   :  { %v34883_v16 = vpop.f32.mrb[3].mxu1  ;;  %30678 = vmatpush3.bf16.msra.mxu0 %v34828_v10  ;;  %27866 = vmatprep.mubr.f32.mxu0 %v38223_v18 }
 0x1d5   :  { %27737 = vmatmul.mubr.f32.gmra.mrb[22].mxu1 %v38314_v36  ;;  %30680 = vmatprep.subr.bf16.mxu0 %v34877_v34  ;;  %v38317_v36 = vld [vmem:[#allocation31_spill] sm:$0xff] }
 0x1d6   :  { %27739 = vmatprep.mubr.f32.mxu1 %v38315_v63  ;;  %v38318_v63 = vld [vmem:[#allocation30_spill] sm:$0xff] }
 0x1d7   :  { %v34894_v44 = vpop.f32.mrb[4].mxu1 }
 0x1d8   :  { %v34896_v12 = vpop.f32.mrb[5].mxu1  ;;  %30682 = vmatpush3.bf16.msra.mxu0 %v34877_v34 }
 0x1d9   :  { %27740 = vmatmul.mubr.f32.gmra.mrb[24].mxu1 %v38316_v5  ;;  %30684 = vmatprep.subr.bf16.mxu0 %v34891_v59  ;;  %v30655_v5 = vpack.c.bf16 %v2007_v31, %v2000_v23 }
 0x1da   :  { %27742 = vmatprep.mubr.f32.mxu1 %v34600_v8  ;;  %v34925_v8 = vpack.c.bf16 %v3013_v22, %v3006_v49 }
 0x1db   :  { %27867 = vmatmul.mubr.f32.vlgmr.msra.gmra.mrb[0].mxu0 %v38223_v18 }
 0x1dc   :  { %30686 = vmatpush3.bf16.msra.mxu0 %v34891_v59  ;;  %27877 = vmatprep.mubr.f32.mxu0 %v38223_v18 }
 0x1dd   :  { %27743 = vmatmul.mubr.f32.gmra.mrb[26].mxu1 %v34612_v15  ;;  %30688 = vmatprep.subr.bf16.mxu0 %v34903_v39  ;;  %v38320_v15 = vld [vmem:[#allocation16_spill] sm:$0xff] }
 0x1de   :  { %27745 = vmatprep.mubr.f32.mxu1 %v38317_v36 }
 0x1e0   :  { %30690 = vmatpush3.bf16.msra.mxu0 %v34903_v39 }
 0x1e1   :  { %27746 = vmatmul.mubr.f32.gmra.mrb[28].mxu1 %v38318_v63  ;;  %30692 = vmatprep.subr.bf16.mxu0 %v34768_v14 }
 0x1e2   :  { %27748 = vmatprep.mubr.f32.mxu1 %v38319_v56 }
 0x1e3   :  { %27878 = vmatmul.mubr.f32.vlgmr.msra.gmra.mrb[0].mxu0 %v38223_v18 }
 0x1e4   :  { %30694 = vmatpush3.bf16.msra.mxu0 %v34768_v14  ;;  %27888 = vmatprep.mubr.f32.mxu0 %v38223_v18 }
 0x1e5   :  { %27749 = vmatmul.mubr.f32.gmra.mrb[30].mxu1 %v34687_v51  ;;  %30696 = vmatprep.subr.bf16.mxu0 %v34820_v7  ;;  %v38321_v51 = vand.u32 4294901760, %v34844_v2 }
 0x1e6   :  { %27759 = vmatprep.mubr.f32.mxu1 %v38320_v15 }
 0x1e7   :  { %v34937_v42 = vpack.c.bf16 %v3027_v3, %v38321_v51 }
 0x1e8   :  { %30698 = vmatpush3.bf16.msra.mxu0 %v34820_v7 }
 0x1e9   :  { %27760 = vmatmul.mubr.f32.vlgmr.msra.gmra.mrb[16].mxu1 %v34323_v37  ;;  %30700 = vmatprep.subr.bf16.mxu0 %v34925_v8  ;;  %v2905_v37 = vld [vmem:[#allocation6 + $0x20] sm:$0xff] }
 0x1ea   :  { %30654 = vmatpush3.bf16.msra.mxu1 %v30651_v11  ;;  %v34939_v54 = vpop.f32.mrb[6].mxu1  ;;  %27762 = vmatprep.mubr.f32.mxu1 %v34418_v60  ;;  %v3448_v60 = vand.u32 4294901760, %v2905_v37  ;;  %v35104_v11 = vld [vmem:[%s38191_s5] ss:$0 sm:$0xff] }
 0x1eb   :  { %v34942_v49 = vpop.f32.mrb[7].mxu1  ;;  %27889 = vmatmul.mubr.f32.vlgmr.msra.gmra.mrb[0].mxu0 %v38223_v18  ;;  %30656 = vmatprep.subr.bf16.mxu1 %v30655_v5  ;;  %v681_v36 = vadd.f32 %v34792_v26, %v35104_v11  ;;  %v671_v63 = vadd.f32 %v35104_v11, %v34795_v33 }
 0x1ec   :  { %30702 = vmatpush3.bf16.msra.mxu0 %v34925_v8  ;;  %27899 = vmatprep.mubr.f32.mxu0 %v38223_v18 }
 0x1ed   :  { %27763 = vmatmul.mubr.f32.gmra.mrb[18].mxu1 %v34395_v48  ;;  %30704 = vmatprep.subr.bf16.mxu0 %v34937_v42  ;;  %v2906_v48 = vld [vmem:[#allocation6 + $0x28] sm:$0xff] }
 0x1ee   :  { %27765 = vmatprep.mubr.f32.mxu1 %v34423_v50  ;;  %30658 = vmatpush3.bf16.msra.mxu1 %v30655_v5  ;;  %v3451_v50 = vand.u32 4294901760, %v2906_v48 }
 0x1ef   :  { %30660 = vmatprep.subr.bf16.mxu1 %v34434_v25 }
 0x1f0   :  { %30706 = vmatpush3.bf16.msra.mxu0 %v34937_v42 }
 0x1f1   :  { %27766 = vmatmul.mubr.f32.gmra.mrb[20].mxu1 %v34441_v61  ;;  %30708 = vmatprep.subr.bf16.mxu0 %v34768_v14  ;;  %v34980_v61 = vpack.c.bf16 %v3451_v50, %v3448_v60 }
 0x1f2   :  { %27768 = vmatprep.mubr.f32.mxu1 %v34498_v55 }
 0x1f3   :  { %27900 = vmatmul.mubr.f32.vlgmr.msra.gmra.mrb[0].mxu0 %v38223_v18 }
 0x1f4   :  { %30710 = vmatpush3.bf16.msra.mxu0 %v34768_v14  ;;  %27910 = vmatprep.mubr.f32.mxu0 %v38223_v18 }
 0x1f5   :  { %27769 = vmatmul.mubr.f32.gmra.mrb[22].mxu1 %v34487_v43  ;;  %30712 = vmatprep.subr.bf16.mxu0 %v34820_v7  ;;  %v34994_v43 = vsub.f32 %v2906_v48, %v3451_v50 }
 0x1f6   :  { %27771 = vmatprep.mubr.f32.mxu1 %v34543_v4 }
 0x1f7   :  { %v3546_v4 = vand.u32 4294901760, %v34994_v43 }
 0x1f8   :  { %30714 = vmatpush3.bf16.msra.mxu0 %v34820_v7 }
 0x1f9   :  { %27772 = vmatmul.mubr.f32.gmra.mrb[24].mxu1 %v34574_v57  ;;  %30764 = vmatprep.subr.bf16.mxu0 %v34768_v14  ;;  %v2907_v57 = vld [vmem:[#allocation6 + $0x30] sm:$0xff] }
 0x1fa   :  { %27774 = vmatprep.mubr.f32.mxu1 %v34607_v13  ;;  %v2908_v13 = vld [vmem:[#allocation6 + $0x38] sm:$0xff] }
 0x1fb   :  { %27911 = vmatmul.mubr.f32.vlgmr.msra.gmra.mrb[0].mxu0 %v38223_v18 }
 0x1fc   :  { %30766 = vmatpush3.bf16.msra.mxu0 %v34768_v14 }
 0x1fd   :  { %27775 = vmatmul.mubr.f32.gmra.mrb[26].mxu1 %v34620_v46  ;;  %30768 = vmatprep.subr.bf16.mxu0 %v34820_v7  ;;  %v3454_v46 = vand.u32 4294901760, %v2907_v57 }
 0x1fe   :  { %27777 = vmatprep.mubr.f32.mxu1 %v34655_v19 }
 0x200   :  { %30770 = vmatpush3.bf16.msra.mxu0 %v34820_v7 }
 0x201   :  { %27778 = vmatmul.mubr.f32.gmra.mrb[28].mxu1 %v34647_v0  ;;  %30772 = vmatprep.subr.bf16.mxu0 %v34828_v10  ;;  %v3457_v0 = vand.u32 4294901760, %v2908_v13 }
 0x202   :  { %27780 = vmatprep.mubr.f32.mxu1 %v34677_v17  ;;  %v3547_v17 = vsub.f32 %v34994_v43, %v3546_v4 }
 0x204   :  { %v3548_v29 = vand.u32 4294901760, %v3547_v17 }
 0x205   :  { %27781 = vmatmul.mubr.f32.gmra.mrb[30].mxu1 %v34692_v62  ;;  %v35010_v62 = vpack.c.bf16 %v3457_v0, %v3454_v46 }
 0x206   :  { %27791 = vmatprep.mubr.f32.mxu1 %v34294_v9 }
 0x209   :  { %27792 = vmatmul.mubr.f32.vlgmr.msra.gmra.mrb[16].mxu1 %v34305_v20 }
 0x20a   :  { %30662 = vmatpush3.bf16.msra.mxu1 %v34434_v25  ;;  %27794 = vmatprep.mubr.f32.mxu1 %v34389_v52  ;;  %v34992_v25 = vsub.f32 %v2905_v37, %v3448_v60  ;;  %v35113_v37 = vld [vmem:[%s38191_s5 + $0x1] ss:$0 sm:$0xff] }
 0x20b   :  { %30664 = vmatprep.subr.bf16.mxu1 %v34715_v28 }
 0x20c   :  { %v3539_v55 = vand.u32 4294901760, %v34992_v25 }
 0x20d   :  { %27795 = vmatmul.mubr.f32.gmra.mrb[18].mxu1 %v34376_v47 }
 0x20e   :  { %27797 = vmatprep.mubr.f32.mxu1 %v34392_v30  ;;  %30666 = vmatpush3.bf16.msra.mxu1 %v34715_v28  ;;  %v3540_v19 = vsub.f32 %v34992_v25, %v3539_v55  ;;  %v35078_v2 = vpack.c.bf16 %v3546_v4, %v3539_v55 }
 0x20f   :  { %30716 = vmatprep.subr.bf16.mxu1 %v34980_v61 }
 0x210   :  { %v3541_v28 = vand.u32 4294901760, %v3540_v19 }
 0x211   :  { %27798 = vmatmul.mubr.f32.gmra.mrb[20].mxu1 %v34415_v27 }
 0x212   :  { %27800 = vmatprep.mubr.f32.mxu1 %v38301_v21  ;;  %v35016_v40 = vpack.c.bf16 %v3548_v29, %v3541_v28 }
 0x215   :  { %27801 = vmatmul.mubr.f32.gmra.mrb[22].mxu1 %v38302_v41 }
 0x216   :  { %27803 = vmatprep.mubr.f32.mxu1 %v34533_v58 }
 0x219   :  { %27804 = vmatmul.mubr.f32.gmra.mrb[24].mxu1 %v34567_v38 }
 0x21a   :  { %27806 = vmatprep.mubr.f32.mxu1 %v34596_v32 }
 0x21d   :  { %27807 = vmatmul.mubr.f32.gmra.mrb[26].mxu1 %v34604_v6 }
 0x21e   :  { %27809 = vmatprep.mubr.f32.mxu1 %v34644_v35 }
 0x221   :  { %27810 = vmatmul.mubr.f32.gmra.mrb[28].mxu1 %v34638_v1 }
 0x222   :  { %27812 = vmatprep.mubr.f32.mxu1 %v34670_v45 }
 0x225   :  { %27813 = vmatmul.mubr.f32.gmra.mrb[30].mxu1 %v34682_v24 }
 0x226   :  { %27823 = vmatprep.mubr.f32.mxu1 %v34294_v9  ;;  %v3552_v9 = vsub.f32 %v2907_v57, %v3454_v46 }
 0x229   :  { %27824 = vmatmul.mubr.f32.vlgmr.msra.gmra.mrb[16].mxu1 %v34305_v20  ;;  %v3559_v20 = vsub.f32 %v2908_v13, %v3457_v0 }
 0x22a   :  { %30718 = vmatpush3.bf16.msra.mxu1 %v34980_v61  ;;  %27826 = vmatprep.mubr.f32.mxu1 %v34389_v52 }
 0x22b   :  { %30720 = vmatprep.subr.bf16.mxu1 %v35010_v62  ;;  %v3560_v52 = vand.u32 4294901760, %v3559_v20 }
 0x22d   :  { %27827 = vmatmul.mubr.f32.gmra.mrb[18].mxu1 %v34376_v47  ;;  %v3553_v47 = vand.u32 4294901760, %v3552_v9 }
 0x22e   :  { %27829 = vmatprep.mubr.f32.mxu1 %v34392_v30  ;;  %30722 = vmatpush3.bf16.msra.mxu1 %v35010_v62 }
 0x22f   :  { %30724 = vmatprep.subr.bf16.mxu1 %v35016_v40  ;;  %v3554_v30 = vsub.f32 %v3552_v9, %v3553_v47  ;;  %v35082_v3 = vpack.c.bf16 %v3560_v52, %v3553_v47 }
 0x231   :  { %27830 = vmatmul.mubr.f32.gmra.mrb[20].mxu1 %v34415_v27  ;;  %v3561_v27 = vsub.f32 %v3559_v20, %v3560_v52 }
 0x232   :  { %27832 = vmatprep.mubr.f32.mxu1 %v38301_v21 }
 0x235   :  { %27833 = vmatmul.mubr.f32.gmra.mrb[22].mxu1 %v38302_v41 }
 0x236   :  { %27835 = vmatprep.mubr.f32.mxu1 %v34533_v58  ;;  %v3562_v58 = vand.u32 4294901760, %v3561_v27 }
 0x239   :  { %27836 = vmatmul.mubr.f32.gmra.mrb[24].mxu1 %v34567_v38  ;;  %v3555_v38 = vand.u32 4294901760, %v3554_v30 }
 0x23a   :  { %27838 = vmatprep.mubr.f32.mxu1 %v34596_v32 }
 0x23b   :  { %v35034_v32 = vpack.c.bf16 %v3562_v58, %v3555_v38 }
 0x23d   :  { %27839 = vmatmul.mubr.f32.gmra.mrb[26].mxu1 %v34604_v6 }
 0x23e   :  { %27841 = vmatprep.mubr.f32.mxu1 %v34644_v35 }
 0x241   :  { %27842 = vmatmul.mubr.f32.gmra.mrb[28].mxu1 %v34638_v1  ;;  %v35046_v1 = vpack.c.bf16 %v34994_v43, %v34992_v25 }
 0x242   :  { %27844 = vmatprep.mubr.f32.mxu1 %v34670_v45 }
 0x245   :  { %27845 = vmatmul.mubr.f32.gmra.mrb[30].mxu1 %v34682_v24  ;;  %v35054_v24 = vpack.c.bf16 %v3559_v20, %v3552_v9 }
 0x246   :  { %27921 = vmatprep.mubr.f32.mxu1 %v38223_v18 }
 0x24c   :  { %v35036_v23 = vpop.f32.mrb[8].mxu1 }
 0x24d   :  { %v35038_v6 = vpop.f32.mrb[9].mxu1  ;;  %27922 = vmatmul.mubr.f32.vlgmr.msra.gmra.mrb[30].mxu1 %v38223_v18 }
 0x24e   :  { %30726 = vmatpush3.bf16.msra.mxu1 %v35016_v40  ;;  %27932 = vmatprep.mubr.f32.mxu1 %v38223_v18 }
 0x24f   :  { %30728 = vmatprep.subr.bf16.mxu1 %v35034_v32 }
 0x250   :  { %v35048_v35 = vpop.f32.mrb[10].mxu1 }
 0x251   :  { %v35050_v45 = vpop.f32.mrb[11].mxu1 }
 0x252   :  { %30730 = vmatpush3.bf16.msra.mxu1 %v35034_v32 }
 0x253   :  { %30732 = vmatprep.subr.bf16.mxu1 %v35046_v1 }
 0x254   :  { %v35056_v31 = vpop.f32.mrb[12].mxu1 }
 0x255   :  { %v35058_v21 = vpop.f32.mrb[13].mxu1  ;;  %27933 = vmatmul.mubr.f32.vlgmr.msra.gmra.mrb[30].mxu1 %v38223_v18 }
 0x256   :  { %30734 = vmatpush3.bf16.msra.mxu1 %v35046_v1  ;;  %27943 = vmatprep.mubr.f32.mxu1 %v38223_v18 }
 0x257   :  { %30736 = vmatprep.subr.bf16.mxu1 %v35054_v24 }
 0x258   :  { %v35064_v41 = vpop.f32.mrb[14].mxu1 }
 0x259   :  { %v35066_v22 = vpop.f32.mrb[15].mxu1 }
 0x25a   :  { %30738 = vmatpush3.bf16.msra.mxu1 %v35054_v24 }
 0x25b   :  { %30740 = vmatprep.subr.bf16.mxu1 %v34980_v61 }
 0x25d   :  { %27944 = vmatmul.mubr.f32.vlgmr.msra.gmra.mrb[30].mxu1 %v38223_v18 }
 0x25e   :  { %30742 = vmatpush3.bf16.msra.mxu1 %v34980_v61  ;;  %27954 = vmatprep.mubr.f32.mxu1 %v38223_v18 }
 0x25f   :  { %30744 = vmatprep.subr.bf16.mxu1 %v35010_v62 }
 0x262   :  { %30746 = vmatpush3.bf16.msra.mxu1 %v35010_v62 }
 0x263   :  { %30748 = vmatprep.subr.bf16.mxu1 %v35078_v2 }
 0x265   :  { %27955 = vmatmul.mubr.f32.vlgmr.msra.gmra.mrb[30].mxu1 %v38223_v18 }
 0x266   :  { %30750 = vmatpush3.bf16.msra.mxu1 %v35078_v2  ;;  %27965 = vmatprep.mubr.f32.mxu1 %v38223_v18 }
 0x267   :  { %30752 = vmatprep.subr.bf16.mxu1 %v35082_v3 }
 0x26a   :  { %30754 = vmatpush3.bf16.msra.mxu1 %v35082_v3 }
 0x26b   :  { %30756 = vmatprep.subr.bf16.mxu1 %v34980_v61 }
 0x26d   :  { %27966 = vmatmul.mubr.f32.vlgmr.msra.gmra.mrb[30].mxu1 %v38223_v18 }
 0x26e   :  { %30758 = vmatpush3.bf16.msra.mxu1 %v34980_v61  ;;  %27976 = vmatprep.mubr.f32.mxu1 %v38223_v18 }
 0x26f   :  { %30760 = vmatprep.subr.bf16.mxu1 %v35010_v62 }
 0x272   :  { %30762 = vmatpush3.bf16.msra.mxu1 %v35010_v62 }
 0x273   :  { %30812 = vmatprep.subr.bf16.mxu1 %v34980_v61 }
 0x275   :  { %27977 = vmatmul.mubr.f32.vlgmr.msra.gmra.mrb[30].mxu1 %v38223_v18 }
 0x276   :  { %30814 = vmatpush3.bf16.msra.mxu1 %v34980_v61 }
 0x277   :  { %30816 = vmatprep.subr.bf16.mxu1 %v35010_v62 }
 0x27a   :  { %30818 = vmatpush3.bf16.msra.mxu1 %v35010_v62 }
 0x27b   :  { %30820 = vmatprep.subr.bf16.mxu1 %v35016_v40 }
 0x2ce   :  { %v27912_v56 = vpop.f32.mrb[0].mxu0 }
 0x2cf   :  { %v32496_v15 = vadd.f32 %v27912_v56, %v681_v36  ;;  %v3432_v5 = vpop.f32.mrb[1].mxu0 }
 0x2d0   :  { %v32498_v51 = vadd.f32 %v3432_v5, %v671_v63 }
 0x2d1   :  { %v25627_v13 = vmul.f32 -1.442695, %v32496_v15 }
 0x2d2   :  { %v25626_v46 = vmul.f32 -1.442695, %v32498_v51 }
 0x348   :  { %v27978_v48 = vpop.f32.mrb[30].mxu1 }
 0x349   :  { %v32541_v60 = vadd.f32 %v27978_v48, %v35113_v37  ;;  %v3965_v50 = vpop.f32.mrb[31].mxu1 }
 0x34a   :  { %v32542_v25 = vadd.f32 %v35113_v37, %v3965_v50 }
 0x34b   :  { %33364 = vtanh.f32 %v32541_v60  ;;  %v25629_v4 = vmul.f32 -1.442695, %v32541_v60 }
 0x34c   :  { %33366 = vtanh.f32 %v32542_v25  ;;  %v25628_v57 = vmul.f32 -1.442695, %v32542_v25 }
 0x34d   :  { %33368 = vtanh.f32 %v32496_v15 }
 0x34e   :  { %33370 = vtanh.f32 %v32498_v51 }
 0x34f   :  { %33372 = vpow2.f32 %v25629_v4 }
 0x350   :  { %33374 = vpow2.f32 %v25628_v57 }
 0x351   :  { %33376 = vpow2.f32 %v25627_v13 }
 0x352   :  { %33378 = vpow2.f32 %v25626_v46 }
 0x355   :  { %v33365_v26 = vpop.eup %33364 }
 0x356   :  { %v33367_v33 = vpop.eup %33366  ;;  %4045 = vrot.lane.b32.xlu1 %v33365_v26, %s33968_s14 }
 0x357   :  { %4043 = vrot.lane.b32.xlu0 %v33367_v33, %s33968_s14  ;;  %v33369_v43 = vpop.eup %33368 }
 0x358   :  { %v33371_v55 = vpop.eup %33370 }
 0x359   :  { %v33373_v0 = vpop.eup %33372 }
 0x35a   :  { %3997 = vrot.lane.b32.xlu1 %v33369_v43, %s33968_s14  ;;  %v33375_v19 = vpop.eup %33374  ;;  %v4032_v17 = vadd.f32 1.0, %v33373_v0 }
 0x35b   :  { %3995 = vrot.lane.b32.xlu0 %v33371_v55, %s33968_s14  ;;  %v33377_v28 = vpop.eup %33376  ;;  %v4031_v29 = vadd.f32 1.0, %v33375_v19 }
 0x35c   :  { %v33379_v9 = vpop.eup %33378  ;;  %v3984_v20 = vadd.f32 1.0, %v33377_v28  ;;  %33380 = vrcp.f32 %v4032_v17 }
 0x35d   :  { %v3983_v47 = vadd.f32 1.0, %v33379_v9  ;;  %33382 = vrcp.f32 %v4031_v29 }
 0x35e   :  { %33384 = vrcp.f32 %v3984_v20 }
 0x35f   :  { %33386 = vrcp.f32 %v3983_v47 }
 0x366   :  { %v33381_v52 = vpop.eup %33380 }
 0x367   :  { %v33383_v27 = vpop.eup %33382  ;;  %v4040_v60 = vmul.f32 0.0, %v33381_v52 }
 0x368   :  { %v33385_v63 = vpop.eup %33384  ;;  %v4039_v25 = vmul.f32 0.0, %v33383_v27 }
 0x369   :  { %v33387_v15 = vpop.eup %33386  ;;  %v3992_v55 = vmul.f32 0.0, %v33385_v63 }
 0x36a   :  { %v3991_v57 = vmul.f32 0.0, %v33387_v15 }
 0x3c8   :  { %v4046_v30 = vpop.permute.xlu1 %4045 }
 0x3c9   :  { %v4050_v38 = vmul.f32 %v33381_v52, %v4046_v30  ;;  %v4044_v58 = vpop.permute.xlu0 %4043 }
 0x3ca   :  { %v4049_v36 = vmul.f32 %v33383_v27, %v4044_v58 }
 0x3cb   :  { %4055 = vrot.lane.b32.xlu1 %v4050_v38, %s33969_s15 }
 0x3cc   :  { %v3998_v56 = vpop.permute.xlu1 %3997  ;;  %4053 = vrot.lane.b32.xlu0 %v4049_v36, %s33969_s15 }
 0x3cd   :  { %v4002_v5 = vmul.f32 %v33385_v63, %v3998_v56  ;;  %v3996_v51 = vpop.permute.xlu0 %3995 }
 0x3ce   :  { %v4001_v48 = vmul.f32 %v33387_v15, %v3996_v51 }
 0x3cf   :  { %4007 = vrot.lane.b32.xlu1 %v4002_v5, %s33969_s15 }
 0x3d0   :  { %4005 = vrot.lane.b32.xlu0 %v4001_v48, %s33969_s15 }
 0x43d   :  { %v4056_v50 = vpop.permute.xlu1 %4055 }
 0x43e   :  { %v35125_v26 = vadd.f32 %v4056_v50, %v4040_v60  ;;  %v4054_v33 = vpop.permute.xlu0 %4053 }
 0x43f   :  { %v35127_v43 = vadd.f32 %v4054_v33, %v4039_v25 }
 0x440   :  { %33388 = vtanh.f32 %v35125_v26 }
 0x441   :  { %33390 = vtanh.f32 %v35127_v43  ;;  %v4008_v4 = vpop.permute.xlu1 %4007 }
 0x442   :  { %v35131_v13 = vadd.f32 %v4008_v4, %v3992_v55  ;;  %v4006_v46 = vpop.permute.xlu0 %4005 }
 0x443   :  { %v35133_v0 = vadd.f32 %v4006_v46, %v3991_v57 }
 0x444   :  { %33392 = vtanh.f32 %v35131_v13 }
 0x445   :  { %33394 = vtanh.f32 %v35133_v0 }
 0x44a   :  { %v33389_v19 = vpop.eup %33388 }
 0x44b   :  { %v33391_v17 = vpop.eup %33390  ;;  %4067 = vrot.lane.b32.xlu1 %v33389_v19, %s33968_s14 }
 0x44c   :  { %4065 = vrot.lane.b32.xlu0 %v33391_v17, %s33968_s14 }
 0x44e   :  { %v33393_v28 = vpop.eup %33392 }
 0x44f   :  { %v33395_v29 = vpop.eup %33394  ;;  %4019 = vrot.lane.b32.xlu1 %v33393_v28, %s33968_s14 }
 0x450   :  { %4017 = vrot.lane.b32.xlu0 %v33395_v29, %s33968_s14 }
 0x4bd   :  { %v4068_v9 = vpop.permute.xlu1 %4067 }
 0x4be   :  { %v35141_v20 = vmul.f32 %v33381_v52, %v4068_v9  ;;  %v4066_v47 = vpop.permute.xlu0 %4065 }
 0x4bf   :  { %v35143_v30 = vmul.f32 %v33383_v27, %v4066_v47 }
 0x4c0   :  { %4637 = vrot.lane.b32.xlu1 %v35141_v20, %s33969_s15 }
 0x4c1   :  { %v4020_v38 = vpop.permute.xlu1 %4019  ;;  %4635 = vrot.lane.b32.xlu0 %v35143_v30, %s33969_s15 }
 0x4c2   :  { %v4024_v58 = vmul.f32 %v33385_v63, %v4020_v38  ;;  %v4018_v36 = vpop.permute.xlu0 %4017 }
 0x4c3   :  { %v4023_v56 = vmul.f32 %v33387_v15, %v4018_v36 }
 0x4c4   :  { %4077 = vrot.lane.b32.xlu1 %v4024_v58, %s33969_s15 }
 0x4c5   :  { %4075 = vrot.lane.b32.xlu0 %v4023_v56, %s33969_s15 }
 0x532   :  { %v4638_v5 = vpop.permute.xlu1 %4637 }
 0x533   :  { %v4641_v52 = vsel %vm503_vm0, %v4638_v5, 0  ;;  %v4636_v51 = vpop.permute.xlu0 %4635 }
 0x534   :  { %v35152_v27 = vand.u32 4294901760, %v4641_v52  ;;  %v4639_v48 = vsel %vm503_vm0, %v4636_v51, 0 }
 0x535   :  { %v35155_v60 = vand.u32 4294901760, %v4639_v48 }
 0x536   :  { %v4723_v50 = vsub.f32 %v4641_v52, %v35152_v27  ;;  %v4078_v25 = vpop.permute.xlu1 %4077 }
 0x537   :  { %v4713_v63 = vsub.f32 %v4639_v48, %v35155_v60  ;;  %4082 = vst.msk [vmem:[#allocation3 + $0x8] sm:$0xff] %vm503_vm0, %v4078_v25  ;;  %v4100_v15 = vsel %vm503_vm0, %v4078_v25, 0  ;;  %v4076_v33 = vpop.permute.xlu0 %4075  ;;  %v701_v25 = vadd.f32 %v34880_v53, %v35104_v11 }
 0x538   :  { %v4724_v55 = vand.u32 4294901760, %v4723_v50  ;;  %v35161_v4 = vand.u32 4294901760, %v4100_v15  ;;  %4081 = vst.msk [vmem:[#allocation3] sm:$0xff] %vm503_vm0, %v4076_v33  ;;  %v4098_v57 = vsel %vm503_vm0, %v4076_v33, 0 }
 0x539   :  { %v35165_v46 = vand.u32 4294901760, %v4098_v57  ;;  %v4714_v19 = vand.u32 4294901760, %v4713_v63 }
 0x53a   :  { %v4725_v17 = vsub.f32 %v4723_v50, %v4724_v55  ;;  %v4182_v28 = vsub.f32 %v4100_v15, %v35161_v4 }
 0x53b   :  { %v4172_v29 = vsub.f32 %v4098_v57, %v35165_v46  ;;  %v4715_v9 = vsub.f32 %v4713_v63, %v4714_v19 }
 0x53c   :  { %v4183_v47 = vand.u32 4294901760, %v4182_v28  ;;  %v4726_v36 = vand.u32 4294901760, %v4725_v17 }
 0x53d   :  { %v4716_v38 = vand.u32 4294901760, %v4715_v9  ;;  %v4173_v58 = vand.u32 4294901760, %v4172_v29 }
 0x53e   :  { %v4184_v56 = vsub.f32 %v4182_v28, %v4183_v47 }
 0x53f   :  { %28053 = vmatprep.mubr.f32.mxu1 %v4716_v38  ;;  %v4174_v5 = vsub.f32 %v4172_v29, %v4173_v58 }
 0x540   :  { %28054 = vmatmul.mubr.f32.vlgmr.msra.gmra.mrb[28].mxu1 %v4726_v36  ;;  %v4185_v51 = vand.u32 4294901760, %v4184_v56 }
 0x541   :  { %30822 = vmatpush3.bf16.msra.mxu1 %v35016_v40  ;;  %28064 = vmatprep.mubr.f32.mxu1 %v35155_v60  ;;  %v4175_v52 = vand.u32 4294901760, %v4174_v5 }
 0x542   :  { %30824 = vmatprep.subr.bf16.mxu1 %v35034_v32 }
 0x543   :  { %27987 = vmatprep.mubr.f32.mxu0 %v4175_v52 }
 0x544   :  { %27988 = vmatmul.mubr.f32.vlgmr.msra.gmra.mrb[2].mxu0 %v4185_v51 }
 0x545   :  { %30826 = vmatpush3.bf16.msra.mxu1 %v35034_v32  ;;  %30774 = vmatpush3.bf16.msra.mxu0 %v34828_v10 }
 0x546   :  { %27998 = vmatprep.mubr.f32.mxu0 %v35165_v46  ;;  %30828 = vmatprep.subr.bf16.mxu1 %v35046_v1 }
 0x547   :  { %30776 = vmatprep.subr.bf16.mxu0 %v34877_v34 }
 0x548   :  { %28065 = vmatmul.mubr.f32.vlgmr.msra.gmra.mrb[28].mxu1 %v35152_v27 }
 0x549   :  { %30830 = vmatpush3.bf16.msra.mxu1 %v35046_v1  ;;  %30778 = vmatpush3.bf16.msra.mxu0 %v34877_v34 }
 0x54a   :  { %28075 = vmatprep.mubr.f32.mxu1 %v4713_v63  ;;  %30832 = vmatprep.subr.bf16.mxu1 %v35054_v24  ;;  %v691_v63 = vadd.f32 %v35104_v11, %v34883_v16 }
 0x54b   :  { %30780 = vmatprep.subr.bf16.mxu0 %v34891_v59 }
 0x54c   :  { %27999 = vmatmul.mubr.f32.vlgmr.msra.gmra.mrb[2].mxu0 %v35161_v4 }
 0x54d   :  { %30834 = vmatpush3.bf16.msra.mxu1 %v35054_v24  ;;  %30782 = vmatpush3.bf16.msra.mxu0 %v34891_v59 }
 0x54e   :  { %28009 = vmatprep.mubr.f32.mxu0 %v4172_v29  ;;  %30836 = vmatprep.subr.bf16.mxu1 %v34980_v61 }
 0x54f   :  { %30784 = vmatprep.subr.bf16.mxu0 %v34903_v39 }
 0x550   :  { %28076 = vmatmul.mubr.f32.vlgmr.msra.gmra.mrb[28].mxu1 %v4723_v50 }
 0x551   :  { %30838 = vmatpush3.bf16.msra.mxu1 %v34980_v61  ;;  %30786 = vmatpush3.bf16.msra.mxu0 %v34903_v39 }
 0x552   :  { %28086 = vmatprep.mubr.f32.mxu1 %v4714_v19  ;;  %30840 = vmatprep.subr.bf16.mxu1 %v35010_v62 }
 0x553   :  { %30788 = vmatprep.subr.bf16.mxu0 %v34768_v14 }
 0x554   :  { %28010 = vmatmul.mubr.f32.vlgmr.msra.gmra.mrb[2].mxu0 %v4182_v28 }
 0x555   :  { %30842 = vmatpush3.bf16.msra.mxu1 %v35010_v62  ;;  %30790 = vmatpush3.bf16.msra.mxu0 %v34768_v14 }
 0x556   :  { %28020 = vmatprep.mubr.f32.mxu0 %v4173_v58  ;;  %30844 = vmatprep.subr.bf16.mxu1 %v35078_v2 }
 0x557   :  { %30792 = vmatprep.subr.bf16.mxu0 %v34820_v7 }
 0x558   :  { %28087 = vmatmul.mubr.f32.vlgmr.msra.gmra.mrb[28].mxu1 %v4724_v55 }
 0x559   :  { %30846 = vmatpush3.bf16.msra.mxu1 %v35078_v2  ;;  %30794 = vmatpush3.bf16.msra.mxu0 %v34820_v7 }
 0x55a   :  { %28097 = vmatprep.mubr.f32.mxu1 %v35155_v60  ;;  %30848 = vmatprep.subr.bf16.mxu1 %v35082_v3 }
 0x55b   :  { %30796 = vmatprep.subr.bf16.mxu0 %v34925_v8 }
 0x55c   :  { %28021 = vmatmul.mubr.f32.vlgmr.msra.gmra.mrb[2].mxu0 %v4183_v47 }
 0x55d   :  { %30850 = vmatpush3.bf16.msra.mxu1 %v35082_v3  ;;  %30798 = vmatpush3.bf16.msra.mxu0 %v34925_v8 }
 0x55e   :  { %28031 = vmatprep.mubr.f32.mxu0 %v35165_v46  ;;  %30852 = vmatprep.subr.bf16.mxu1 %v34980_v61 }
 0x55f   :  { %30800 = vmatprep.subr.bf16.mxu0 %v34937_v42 }
 0x560   :  { %28098 = vmatmul.mubr.f32.vlgmr.msra.gmra.mrb[28].mxu1 %v35152_v27 }
 0x561   :  { %30854 = vmatpush3.bf16.msra.mxu1 %v34980_v61  ;;  %30802 = vmatpush3.bf16.msra.mxu0 %v34937_v42 }
 0x562   :  { %28108 = vmatprep.mubr.f32.mxu1 %v35155_v60  ;;  %30856 = vmatprep.subr.bf16.mxu1 %v35010_v62 }
 0x563   :  { %30804 = vmatprep.subr.bf16.mxu0 %v34768_v14 }
 0x564   :  { %28032 = vmatmul.mubr.f32.vlgmr.msra.gmra.mrb[2].mxu0 %v35161_v4 }
 0x565   :  { %30858 = vmatpush3.bf16.msra.mxu1 %v35010_v62  ;;  %30806 = vmatpush3.bf16.msra.mxu0 %v34768_v14 }
 0x566   :  { %28042 = vmatprep.mubr.f32.mxu0 %v35165_v46  ;;  %30808 = vmatprep.subr.bf16.mxu0 %v34820_v7 }
 0x567   :  { %30908 = vmatprep.subr.bf16.mxu1 %v34980_v61 }
 0x568   :  { %28109 = vmatmul.mubr.f32.vlgmr.msra.gmra.mrb[28].mxu1 %v35152_v27 }
 0x569   :  { %30810 = vmatpush3.bf16.msra.mxu0 %v34820_v7  ;;  %30910 = vmatpush3.bf16.msra.mxu1 %v34980_v61 }
 0x56a   :  { %30912 = vmatprep.subr.bf16.mxu1 %v35010_v62  ;;  %30860 = vmatprep.subr.bf16.mxu0 %v34768_v14 }
 0x56c   :  { %28043 = vmatmul.mubr.f32.vlgmr.msra.gmra.mrb[2].mxu0 %v35161_v4 }
 0x56d   :  { %30914 = vmatpush3.bf16.msra.mxu1 %v35010_v62  ;;  %30862 = vmatpush3.bf16.msra.mxu0 %v34768_v14 }
 0x56e   :  { %30916 = vmatprep.subr.bf16.mxu1 %v35016_v40  ;;  %30864 = vmatprep.subr.bf16.mxu0 %v34820_v7 }
 0x571   :  { %30866 = vmatpush3.bf16.msra.mxu0 %v34820_v7 }
 0x572   :  { %30868 = vmatprep.subr.bf16.mxu0 %v34828_v10 }
 0x63b   :  { %v28110_v27 = vpop.f32.mrb[28].mxu1 }
 0x63c   :  { %v32539_v48 = vadd.f32 %v28110_v27, %v35113_v37  ;;  %v5161_v60 = vpop.f32.mrb[29].mxu1 }
 0x63d   :  { %v32540_v50 = vadd.f32 %v35113_v37, %v5161_v60 }
 0x63e   :  { %33396 = vtanh.f32 %v32539_v48  ;;  %v25633_v53 = vmul.f32 -1.442695, %v32539_v48 }
 0x63f   :  { %33398 = vtanh.f32 %v32540_v50  ;;  %v28044_v15 = vpop.f32.mrb[2].mxu0  ;;  %v25632_v16 = vmul.f32 -1.442695, %v32540_v50 }
 0x640   :  { %v32500_v33 = vadd.f32 %v28044_v15, %v701_v25  ;;  %v4620_v55 = vpop.f32.mrb[3].mxu0 }
 0x641   :  { %v32502_v4 = vadd.f32 %v4620_v55, %v691_v63 }
 0x642   :  { %33400 = vtanh.f32 %v32500_v33  ;;  %v25631_v28 = vmul.f32 -1.442695, %v32500_v33 }
 0x643   :  { %33402 = vtanh.f32 %v32502_v4  ;;  %v25630_v29 = vmul.f32 -1.442695, %v32502_v4 }
 0x644   :  { %33404 = vpow2.f32 %v25633_v53 }
 0x645   :  { %33406 = vpow2.f32 %v25632_v16 }
 0x646   :  { %33408 = vpow2.f32 %v25631_v28 }
 0x647   :  { %33410 = vpow2.f32 %v25630_v29 }
 0x648   :  { %v33397_v57 = vpop.eup %33396 }
 0x649   :  { %v33399_v46 = vpop.eup %33398  ;;  %5241 = vrot.lane.b32.xlu1 %v33397_v57, %s33968_s14 }
 0x64a   :  { %5239 = vrot.lane.b32.xlu0 %v33399_v46, %s33968_s14 }
 0x64c   :  { %v33401_v19 = vpop.eup %33400 }
 0x64d   :  { %v33403_v17 = vpop.eup %33402  ;;  %5193 = vrot.lane.b32.xlu1 %v33401_v19, %s33968_s14 }
 0x64e   :  { %5191 = vrot.lane.b32.xlu0 %v33403_v17, %s33968_s14  ;;  %v33405_v9 = vpop.eup %33404 }
 0x64f   :  { %v33407_v47 = vpop.eup %33406  ;;  %v5228_v38 = vadd.f32 1.0, %v33405_v9 }
 0x650   :  { %v33409_v58 = vpop.eup %33408  ;;  %v5227_v36 = vadd.f32 1.0, %v33407_v47 }
 0x651   :  { %v33411_v56 = vpop.eup %33410  ;;  %33412 = vrcp.f32 %v5228_v38  ;;  %v5180_v5 = vadd.f32 1.0, %v33409_v58 }
 0x652   :  { %33414 = vrcp.f32 %v5227_v36  ;;  %v5179_v52 = vadd.f32 1.0, %v33411_v56 }
 0x653   :  { %33416 = vrcp.f32 %v5180_v5 }
 0x654   :  { %33418 = vrcp.f32 %v5179_v52 }
 0x65b   :  { %v33413_v51 = vpop.eup %33412 }
 0x65c   :  { %v33415_v48 = vpop.eup %33414  ;;  %v5236_v46 = vmul.f32 %v33413_v51, %v35125_v26 }
 0x65d   :  { %v33417_v63 = vpop.eup %33416  ;;  %v5235_v17 = vmul.f32 %v33415_v48, %v35127_v43 }
 0x65e   :  { %v33419_v33 = vpop.eup %33418  ;;  %v5188_v29 = vmul.f32 %v33417_v63, %v35131_v13 }
 0x65f   :  { %v5187_v47 = vmul.f32 %v33419_v33, %v35133_v0 }
 0x6bb   :  { %v5242_v27 = vpop.permute.xlu1 %5241 }
 0x6bc   :  { %v5246_v60 = vmul.f32 %v33413_v51, %v5242_v27  ;;  %v5240_v50 = vpop.permute.xlu0 %5239 }
 0x6bd   :  { %v5245_v25 = vmul.f32 %v33415_v48, %v5240_v50 }
 0x6be   :  { %5251 = vrot.lane.b32.xlu1 %v5246_v60, %s33969_s15 }
 0x6bf   :  { %v5194_v15 = vpop.permute.xlu1 %5193  ;;  %5249 = vrot.lane.b32.xlu0 %v5245_v25, %s33969_s15 }
 0x6c0   :  { %v5198_v55 = vmul.f32 %v33417_v63, %v5194_v15  ;;  %v5192_v4 = vpop.permute.xlu0 %5191 }
 0x6c1   :  { %v5197_v57 = vmul.f32 %v33419_v33, %v5192_v4 }
 0x6c2   :  { %5203 = vrot.lane.b32.xlu1 %v5198_v55, %s33969_s15 }
 0x6c3   :  { %5201 = vrot.lane.b32.xlu0 %v5197_v57, %s33969_s15 }
 0x730   :  { %v5252_v19 = vpop.permute.xlu1 %5251 }
 0x731   :  { %v35245_v53 = vadd.f32 %v5252_v19, %v5236_v46  ;;  %v5250_v16 = vpop.permute.xlu0 %5249 }
 0x732   :  { %v35247_v28 = vadd.f32 %v5250_v16, %v5235_v17 }
 0x733   :  { %33420 = vtanh.f32 %v35245_v53 }
 0x734   :  { %33422 = vtanh.f32 %v35247_v28  ;;  %v5204_v9 = vpop.permute.xlu1 %5203 }
 0x735   :  { %v35253_v38 = vadd.f32 %v5204_v9, %v5188_v29  ;;  %v5202_v26 = vpop.permute.xlu0 %5201 }
 0x736   :  { %v35255_v58 = vadd.f32 %v5202_v26, %v5187_v47 }
 0x737   :  { %33424 = vtanh.f32 %v35253_v38 }
 0x738   :  { %33426 = vtanh.f32 %v35255_v58 }
 0x73d   :  { %v33421_v43 = vpop.eup %33420 }
 0x73e   :  { %v33423_v36 = vpop.eup %33422  ;;  %5263 = vrot.lane.b32.xlu1 %v33421_v43, %s33968_s14 }
 0x73f   :  { %5261 = vrot.lane.b32.xlu0 %v33423_v36, %s33968_s14 }
 0x741   :  { %v33425_v13 = vpop.eup %33424 }
 0x742   :  { %v33427_v56 = vpop.eup %33426  ;;  %5215 = vrot.lane.b32.xlu1 %v33425_v13, %s33968_s14 }
 0x743   :  { %5213 = vrot.lane.b32.xlu0 %v33427_v56, %s33968_s14 }
 0x7b0   :  { %v5264_v0 = vpop.permute.xlu1 %5263 }
 0x7b1   :  { %v35263_v5 = vmul.f32 %v33413_v51, %v5264_v0  ;;  %v5262_v52 = vpop.permute.xlu0 %5261 }
 0x7b2   :  { %v35265_v27 = vmul.f32 %v33415_v48, %v5262_v52 }
 0x7b3   :  { %5833 = vrot.lane.b32.xlu1 %v35263_v5, %s33969_s15 }
 0x7b4   :  { %v5216_v60 = vpop.permute.xlu1 %5215  ;;  %5831 = vrot.lane.b32.xlu0 %v35265_v27, %s33969_s15 }
 0x7b5   :  { %v5220_v50 = vmul.f32 %v33417_v63, %v5216_v60  ;;  %v5214_v25 = vpop.permute.xlu0 %5213 }
 0x7b6   :  { %v5219_v15 = vmul.f32 %v33419_v33, %v5214_v25 }
 0x7b7   :  { %5273 = vrot.lane.b32.xlu1 %v5220_v50, %s33969_s15 }
 0x7b8   :  { %5271 = vrot.lane.b32.xlu0 %v5219_v15, %s33969_s15 }
 0x825   :  { %v5834_v55 = vpop.permute.xlu1 %5833 }
 0x826   :  { %v5837_v51 = vsel %vm503_vm0, %v5834_v55, 0  ;;  %v5832_v4 = vpop.permute.xlu0 %5831 }
 0x827   :  { %v35274_v48 = vand.u32 4294901760, %v5837_v51  ;;  %v5835_v57 = vsel %vm503_vm0, %v5832_v4, 0 }
 0x828   :  { %v35277_v46 = vand.u32 4294901760, %v5835_v57 }
 0x829   :  { %v5919_v19 = vsub.f32 %v5837_v51, %v35274_v48  ;;  %v5274_v17 = vpop.permute.xlu1 %5273 }
 0x82a   :  { %v5909_v63 = vsub.f32 %v5835_v57, %v35277_v46  ;;  %5279 = vst.msk [vmem:[#allocation3 + $0x18] sm:$0xff] %vm503_vm0, %v5274_v17  ;;  %v5296_v33 = vsel %vm503_vm0, %v5274_v17, 0  ;;  %v5272_v16 = vpop.permute.xlu0 %5271  ;;  %v721_v17 = vadd.f32 %v34894_v44, %v35104_v11 }
 0x82b   :  { %v5920_v29 = vand.u32 4294901760, %v5919_v19  ;;  %v35283_v9 = vand.u32 4294901760, %v5296_v33  ;;  %5278 = vst.msk [vmem:[#allocation3 + $0x10] sm:$0xff] %vm503_vm0, %v5272_v16  ;;  %v5294_v47 = vsel %vm503_vm0, %v5272_v16, 0 }
 0x82c   :  { %v35287_v26 = vand.u32 4294901760, %v5294_v47  ;;  %v5910_v43 = vand.u32 4294901760, %v5909_v63 }
 0x82d   :  { %v5921_v36 = vsub.f32 %v5919_v19, %v5920_v29  ;;  %v5378_v13 = vsub.f32 %v5296_v33, %v35283_v9 }
 0x82e   :  { %v5368_v56 = vsub.f32 %v5294_v47, %v35287_v26  ;;  %v5911_v0 = vsub.f32 %v5909_v63, %v5910_v43 }
 0x82f   :  { %v5379_v52 = vand.u32 4294901760, %v5378_v13  ;;  %v5922_v25 = vand.u32 4294901760, %v5921_v36 }
 0x830   :  { %v5912_v60 = vand.u32 4294901760, %v5911_v0  ;;  %v5369_v50 = vand.u32 4294901760, %v5368_v56 }
 0x831   :  { %v5380_v15 = vsub.f32 %v5378_v13, %v5379_v52 }
 0x832   :  { %28185 = vmatprep.mubr.f32.mxu1 %v5912_v60  ;;  %v5370_v55 = vsub.f32 %v5368_v56, %v5369_v50 }
 0x833   :  { %28186 = vmatmul.mubr.f32.vlgmr.msra.gmra.mrb[26].mxu1 %v5922_v25  ;;  %v5381_v4 = vand.u32 4294901760, %v5380_v15 }
 0x834   :  { %30918 = vmatpush3.bf16.msra.mxu1 %v35016_v40  ;;  %28196 = vmatprep.mubr.f32.mxu1 %v35277_v46  ;;  %v5371_v51 = vand.u32 4294901760, %v5370_v55 }
 0x835   :  { %30920 = vmatprep.subr.bf16.mxu1 %v35034_v32 }
 0x836   :  { %28119 = vmatprep.mubr.f32.mxu0 %v5371_v51 }
 0x837   :  { %28120 = vmatmul.mubr.f32.vlgmr.msra.gmra.mrb[4].mxu0 %v5381_v4 }
 0x838   :  { %30922 = vmatpush3.bf16.msra.mxu1 %v35034_v32  ;;  %30870 = vmatpush3.bf16.msra.mxu0 %v34828_v10 }
 0x839   :  { %28130 = vmatprep.mubr.f32.mxu0 %v35287_v26  ;;  %30924 = vmatprep.subr.bf16.mxu1 %v35046_v1 }
 0x83a   :  { %30872 = vmatprep.subr.bf16.mxu0 %v34877_v34 }
 0x83b   :  { %28197 = vmatmul.mubr.f32.vlgmr.msra.gmra.mrb[26].mxu1 %v35274_v48 }
 0x83c   :  { %30926 = vmatpush3.bf16.msra.mxu1 %v35046_v1  ;;  %30874 = vmatpush3.bf16.msra.mxu0 %v34877_v34 }
 0x83d   :  { %28207 = vmatprep.mubr.f32.mxu1 %v5909_v63  ;;  %30928 = vmatprep.subr.bf16.mxu1 %v35054_v24  ;;  %v711_v63 = vadd.f32 %v35104_v11, %v34896_v12 }
 0x83e   :  { %30876 = vmatprep.subr.bf16.mxu0 %v34891_v59 }
 0x83f   :  { %28131 = vmatmul.mubr.f32.vlgmr.msra.gmra.mrb[4].mxu0 %v35283_v9 }
 0x840   :  { %30930 = vmatpush3.bf16.msra.mxu1 %v35054_v24  ;;  %30878 = vmatpush3.bf16.msra.mxu0 %v34891_v59 }
 0x841   :  { %28141 = vmatprep.mubr.f32.mxu0 %v5368_v56  ;;  %30932 = vmatprep.subr.bf16.mxu1 %v34980_v61 }
 0x842   :  { %30880 = vmatprep.subr.bf16.mxu0 %v34903_v39 }
 0x843   :  { %28208 = vmatmul.mubr.f32.vlgmr.msra.gmra.mrb[26].mxu1 %v5919_v19 }
 0x844   :  { %30934 = vmatpush3.bf16.msra.mxu1 %v34980_v61  ;;  %30882 = vmatpush3.bf16.msra.mxu0 %v34903_v39 }
 0x845   :  { %28218 = vmatprep.mubr.f32.mxu1 %v5910_v43  ;;  %30936 = vmatprep.subr.bf16.mxu1 %v35010_v62 }
 0x846   :  { %30884 = vmatprep.subr.bf16.mxu0 %v34768_v14 }
 0x847   :  { %28142 = vmatmul.mubr.f32.vlgmr.msra.gmra.mrb[4].mxu0 %v5378_v13 }
 0x848   :  { %30938 = vmatpush3.bf16.msra.mxu1 %v35010_v62  ;;  %30886 = vmatpush3.bf16.msra.mxu0 %v34768_v14 }
 0x849   :  { %28152 = vmatprep.mubr.f32.mxu0 %v5369_v50  ;;  %30940 = vmatprep.subr.bf16.mxu1 %v35078_v2 }
 0x84a   :  { %30888 = vmatprep.subr.bf16.mxu0 %v34820_v7 }
 0x84b   :  { %28219 = vmatmul.mubr.f32.vlgmr.msra.gmra.mrb[26].mxu1 %v5920_v29 }
 0x84c   :  { %30942 = vmatpush3.bf16.msra.mxu1 %v35078_v2  ;;  %30890 = vmatpush3.bf16.msra.mxu0 %v34820_v7 }
 0x84d   :  { %28229 = vmatprep.mubr.f32.mxu1 %v35277_v46  ;;  %30944 = vmatprep.subr.bf16.mxu1 %v35082_v3 }
 0x84e   :  { %30892 = vmatprep.subr.bf16.mxu0 %v34925_v8 }
 0x84f   :  { %28153 = vmatmul.mubr.f32.vlgmr.msra.gmra.mrb[4].mxu0 %v5379_v52 }
 0x850   :  { %30946 = vmatpush3.bf16.msra.mxu1 %v35082_v3  ;;  %30894 = vmatpush3.bf16.msra.mxu0 %v34925_v8 }
 0x851   :  { %28163 = vmatprep.mubr.f32.mxu0 %v35287_v26  ;;  %30948 = vmatprep.subr.bf16.mxu1 %v34980_v61 }
 0x852   :  { %30896 = vmatprep.subr.bf16.mxu0 %v34937_v42 }
 0x853   :  { %28230 = vmatmul.mubr.f32.vlgmr.msra.gmra.mrb[26].mxu1 %v35274_v48 }
 0x854   :  { %30950 = vmatpush3.bf16.msra.mxu1 %v34980_v61  ;;  %30898 = vmatpush3.bf16.msra.mxu0 %v34937_v42 }
 0x855   :  { %28240 = vmatprep.mubr.f32.mxu1 %v35277_v46  ;;  %30952 = vmatprep.subr.bf16.mxu1 %v35010_v62 }
 0x856   :  { %30900 = vmatprep.subr.bf16.mxu0 %v34768_v14 }
 0x857   :  { %28164 = vmatmul.mubr.f32.vlgmr.msra.gmra.mrb[4].mxu0 %v35283_v9 }
 0x858   :  { %30954 = vmatpush3.bf16.msra.mxu1 %v35010_v62  ;;  %30902 = vmatpush3.bf16.msra.mxu0 %v34768_v14 }
 0x859   :  { %28174 = vmatprep.mubr.f32.mxu0 %v35287_v26  ;;  %30904 = vmatprep.subr.bf16.mxu0 %v34820_v7 }
 0x85a   :  { %31004 = vmatprep.subr.bf16.mxu1 %v34980_v61 }
 0x85b   :  { %28241 = vmatmul.mubr.f32.vlgmr.msra.gmra.mrb[26].mxu1 %v35274_v48 }
 0x85c   :  { %30906 = vmatpush3.bf16.msra.mxu0 %v34820_v7  ;;  %31006 = vmatpush3.bf16.msra.mxu1 %v34980_v61 }
 0x85d   :  { %31008 = vmatprep.subr.bf16.mxu1 %v35010_v62  ;;  %30956 = vmatprep.subr.bf16.mxu0 %v34768_v14 }
 0x85f   :  { %28175 = vmatmul.mubr.f32.vlgmr.msra.gmra.mrb[4].mxu0 %v35283_v9 }
 0x860   :  { %31010 = vmatpush3.bf16.msra.mxu1 %v35010_v62  ;;  %30958 = vmatpush3.bf16.msra.mxu0 %v34768_v14 }
 0x861   :  { %31012 = vmatprep.subr.bf16.mxu1 %v35016_v40  ;;  %30960 = vmatprep.subr.bf16.mxu0 %v34820_v7 }
 0x864   :  { %30962 = vmatpush3.bf16.msra.mxu0 %v34820_v7 }
 0x865   :  { %30964 = vmatprep.subr.bf16.mxu0 %v34828_v10 }
 0x92e   :  { %v28242_v48 = vpop.f32.mrb[26].mxu1 }
 0x92f   :  { %v32537_v57 = vadd.f32 %v28242_v48, %v35113_v37  ;;  %v6357_v46 = vpop.f32.mrb[27].mxu1 }
 0x930   :  { %v32538_v19 = vadd.f32 %v35113_v37, %v6357_v46 }
 0x931   :  { %33428 = vtanh.f32 %v32537_v57  ;;  %v25637_v44 = vmul.f32 -1.442695, %v32537_v57 }
 0x932   :  { %33430 = vtanh.f32 %v32538_v19  ;;  %v28176_v33 = vpop.f32.mrb[4].mxu0  ;;  %v25636_v12 = vmul.f32 -1.442695, %v32538_v19 }
 0x933   :  { %v32504_v16 = vadd.f32 %v28176_v33, %v721_v17  ;;  %v5816_v29 = vpop.f32.mrb[5].mxu0 }
 0x934   :  { %v32506_v9 = vadd.f32 %v5816_v29, %v711_v63 }
 0x935   :  { %33432 = vtanh.f32 %v32504_v16  ;;  %v25635_v11 = vmul.f32 -1.442695, %v32504_v16 }
 0x936   :  { %33434 = vtanh.f32 %v32506_v9  ;;  %v25634_v36 = vmul.f32 -1.442695, %v32506_v9 }
 0x937   :  { %33436 = vpow2.f32 %v25637_v44 }
 0x938   :  { %33438 = vpow2.f32 %v25636_v12 }
 0x939   :  { %33440 = vpow2.f32 %v25635_v11 }
 0x93a   :  { %33442 = vpow2.f32 %v25634_v36 }
 0x93b   :  { %v33429_v47 = vpop.eup %33428 }
 0x93c   :  { %v33431_v26 = vpop.eup %33430  ;;  %6437 = vrot.lane.b32.xlu1 %v33429_v47, %s33968_s14 }
 0x93d   :  { %6435 = vrot.lane.b32.xlu0 %v33431_v26, %s33968_s14 }
 0x93f   :  { %v33433_v37 = vpop.eup %33432 }
 0x940   :  { %v33435_v43 = vpop.eup %33434  ;;  %6389 = vrot.lane.b32.xlu1 %v33433_v37, %s33968_s14 }
 0x941   :  { %6387 = vrot.lane.b32.xlu0 %v33435_v43, %s33968_s14  ;;  %v33437_v13 = vpop.eup %33436 }
 0x942   :  { %v33439_v56 = vpop.eup %33438  ;;  %v6424_v0 = vadd.f32 1.0, %v33437_v13 }
 0x943   :  { %v33441_v52 = vpop.eup %33440  ;;  %v6423_v60 = vadd.f32 1.0, %v33439_v56 }
 0x944   :  { %v33443_v50 = vpop.eup %33442  ;;  %33444 = vrcp.f32 %v6424_v0  ;;  %v6376_v25 = vadd.f32 1.0, %v33441_v52 }
 0x945   :  { %33446 = vrcp.f32 %v6423_v60  ;;  %v6375_v15 = vadd.f32 1.0, %v33443_v50 }
 0x946   :  { %33448 = vrcp.f32 %v6376_v25 }
 0x947   :  { %33450 = vrcp.f32 %v6375_v15 }
 0x94e   :  { %v33445_v55 = vpop.eup %33444 }
 0x94f   :  { %v33447_v4 = vpop.eup %33446  ;;  %v6432_v9 = vmul.f32 %v33445_v55, %v35245_v53 }
 0x950   :  { %v33449_v19 = vpop.eup %33448  ;;  %v6431_v26 = vmul.f32 %v33447_v4, %v35247_v28 }
 0x951   :  { %v33451_v63 = vpop.eup %33450  ;;  %v6384_v12 = vmul.f32 %v33449_v19, %v35253_v38 }
 0x952   :  { %v6383_v36 = vmul.f32 %v33451_v63, %v35255_v58 }
 0x9ae   :  { %v6438_v51 = vpop.permute.xlu1 %6437 }
 0x9af   :  { %v6442_v48 = vmul.f32 %v33445_v55, %v6438_v51  ;;  %v6436_v57 = vpop.permute.xlu0 %6435 }
 0x9b0   :  { %v6441_v46 = vmul.f32 %v33447_v4, %v6436_v57 }
 0x9b1   :  { %6447 = vrot.lane.b32.xlu1 %v6442_v48, %s33969_s15 }
 0x9b2   :  { %v6390_v17 = vpop.permute.xlu1 %6389  ;;  %6445 = vrot.lane.b32.xlu0 %v6441_v46, %s33969_s15 }
 0x9b3   :  { %v6394_v33 = vmul.f32 %v33449_v19, %v6390_v17  ;;  %v6388_v16 = vpop.permute.xlu0 %6387 }
 0x9b4   :  { %v6393_v29 = vmul.f32 %v33451_v63, %v6388_v16 }
 0x9b5   :  { %6399 = vrot.lane.b32.xlu1 %v6394_v33, %s33969_s15 }
 0x9b6   :  { %6397 = vrot.lane.b32.xlu0 %v6393_v29, %s33969_s15 }
 0xa23   :  { %v6448_v47 = vpop.permute.xlu1 %6447 }
 0xa24   :  { %v35367_v37 = vadd.f32 %v6448_v47, %v6432_v9  ;;  %v6446_v43 = vpop.permute.xlu0 %6445 }
 0xa25   :  { %v35369_v44 = vadd.f32 %v6446_v43, %v6431_v26 }
 0xa26   :  { %33452 = vtanh.f32 %v35367_v37 }
 0xa27   :  { %33454 = vtanh.f32 %v35369_v44  ;;  %v6400_v11 = vpop.permute.xlu1 %6399 }
 0xa28   :  { %v35375_v13 = vadd.f32 %v6400_v11, %v6384_v12  ;;  %v6398_v53 = vpop.permute.xlu0 %6397 }
 0xa29   :  { %v35377_v56 = vadd.f32 %v6398_v53, %v6383_v36 }
 0xa2a   :  { %33456 = vtanh.f32 %v35375_v13 }
 0xa2b   :  { %33458 = vtanh.f32 %v35377_v56 }
 0xa30   :  { %v33453_v28 = vpop.eup %33452 }
 0xa31   :  { %v33455_v0 = vpop.eup %33454  ;;  %6459 = vrot.lane.b32.xlu1 %v33453_v28, %s33968_s14 }
 0xa32   :  { %6457 = vrot.lane.b32.xlu0 %v33455_v0, %s33968_s14 }
 0xa34   :  { %v33457_v38 = vpop.eup %33456 }
 0xa35   :  { %v33459_v52 = vpop.eup %33458  ;;  %6411 = vrot.lane.b32.xlu1 %v33457_v38, %s33968_s14 }
 0xa36   :  { %6409 = vrot.lane.b32.xlu0 %v33459_v52, %s33968_s14 }
 0xaa3   :  { %v6460_v58 = vpop.permute.xlu1 %6459 }
 0xaa4   :  { %v35385_v60 = vmul.f32 %v33445_v55, %v6460_v58  ;;  %v6458_v50 = vpop.permute.xlu0 %6457 }
 0xaa5   :  { %v35387_v25 = vmul.f32 %v33447_v4, %v6458_v50 }
 0xaa6   :  { %7029 = vrot.lane.b32.xlu1 %v35385_v60, %s33969_s15 }
 0xaa7   :  { %v6412_v15 = vpop.permute.xlu1 %6411  ;;  %7027 = vrot.lane.b32.xlu0 %v35387_v25, %s33969_s15 }
 0xaa8   :  { %v6416_v51 = vmul.f32 %v33449_v19, %v6412_v15  ;;  %v6410_v48 = vpop.permute.xlu0 %6409 }
 0xaa9   :  { %v6415_v57 = vmul.f32 %v33451_v63, %v6410_v48 }
 0xaaa   :  { %6469 = vrot.lane.b32.xlu1 %v6416_v51, %s33969_s15 }
 0xaab   :  { %6467 = vrot.lane.b32.xlu0 %v6415_v57, %s33969_s15 }
 0xb18   :  { %v7030_v46 = vpop.permute.xlu1 %7029 }
 0xb19   :  { %v7033_v55 = vsel %vm503_vm0, %v7030_v46, 0  ;;  %v7028_v17 = vpop.permute.xlu0 %7027 }
 0xb1a   :  { %v35396_v4 = vand.u32 4294901760, %v7033_v55  ;;  %v7031_v33 = vsel %vm503_vm0, %v7028_v17, 0  ;;  %v35476_v17 = vld [vmem:[%s38191_s5 + $0x1] ss:$0 sm:$0xff] }
 0xb1b   :  { %v35399_v16 = vand.u32 4294901760, %v7031_v33 }
 0xb1c   :  { %v7115_v29 = vsub.f32 %v7033_v55, %v35396_v4  ;;  %v6470_v9 = vpop.permute.xlu1 %6469 }
 0xb1d   :  { %v7105_v19 = vsub.f32 %v7031_v33, %v35399_v16  ;;  %6475 = vst.msk [vmem:[#allocation3 + $0x28] sm:$0xff] %vm503_vm0, %v6470_v9  ;;  %v6492_v63 = vsel %vm503_vm0, %v6470_v9, 0  ;;  %v6468_v47 = vpop.permute.xlu0 %6467 }
 0xb1e   :  { %v7116_v26 = vand.u32 4294901760, %v7115_v29  ;;  %v35405_v43 = vand.u32 4294901760, %v6492_v63  ;;  %6474 = vst.msk [vmem:[#allocation3 + $0x20] sm:$0xff] %vm503_vm0, %v6468_v47  ;;  %v6490_v12 = vsel %vm503_vm0, %v6468_v47, 0 }
 0xb1f   :  { %v35409_v11 = vand.u32 4294901760, %v6490_v12  ;;  %v7106_v36 = vand.u32 4294901760, %v7105_v19 }
 0xb20   :  { %v7117_v53 = vsub.f32 %v7115_v29, %v7116_v26  ;;  %v6574_v28 = vsub.f32 %v6492_v63, %v35405_v43 }
 0xb21   :  { %v6564_v0 = vsub.f32 %v6490_v12, %v35409_v11  ;;  %v7107_v38 = vsub.f32 %v7105_v19, %v7106_v36 }
 0xb22   :  { %v6575_v52 = vand.u32 4294901760, %v6574_v28  ;;  %v7118_v15 = vand.u32 4294901760, %v7117_v53 }
 0xb23   :  { %v7108_v58 = vand.u32 4294901760, %v7107_v38  ;;  %v6565_v50 = vand.u32 4294901760, %v6564_v0 }
 0xb24   :  { %v6576_v51 = vsub.f32 %v6574_v28, %v6575_v52 }
 0xb25   :  { %28317 = vmatprep.mubr.f32.mxu1 %v7108_v58  ;;  %v6566_v48 = vsub.f32 %v6564_v0, %v6565_v50 }
 0xb26   :  { %28318 = vmatmul.mubr.f32.vlgmr.msra.gmra.mrb[24].mxu1 %v7118_v15  ;;  %v6577_v46 = vand.u32 4294901760, %v6576_v51 }
 0xb27   :  { %31014 = vmatpush3.bf16.msra.mxu1 %v35016_v40  ;;  %28328 = vmatprep.mubr.f32.mxu1 %v35399_v16  ;;  %v6567_v57 = vand.u32 4294901760, %v6566_v48 }
 0xb28   :  { %31016 = vmatprep.subr.bf16.mxu1 %v35034_v32 }
 0xb29   :  { %28251 = vmatprep.mubr.f32.mxu0 %v6567_v57 }
 0xb2a   :  { %28252 = vmatmul.mubr.f32.vlgmr.msra.gmra.mrb[6].mxu0 %v6577_v46 }
 0xb2b   :  { %31018 = vmatpush3.bf16.msra.mxu1 %v35034_v32  ;;  %30966 = vmatpush3.bf16.msra.mxu0 %v34828_v10 }
 0xb2c   :  { %28262 = vmatprep.mubr.f32.mxu0 %v35409_v11  ;;  %31020 = vmatprep.subr.bf16.mxu1 %v35046_v1 }
 0xb2d   :  { %30968 = vmatprep.subr.bf16.mxu0 %v34877_v34 }
 0xb2e   :  { %28329 = vmatmul.mubr.f32.vlgmr.msra.gmra.mrb[24].mxu1 %v35396_v4 }
 0xb2f   :  { %31022 = vmatpush3.bf16.msra.mxu1 %v35046_v1  ;;  %30970 = vmatpush3.bf16.msra.mxu0 %v34877_v34 }
 0xb30   :  { %28339 = vmatprep.mubr.f32.mxu1 %v7105_v19  ;;  %31024 = vmatprep.subr.bf16.mxu1 %v35054_v24 }
 0xb31   :  { %30972 = vmatprep.subr.bf16.mxu0 %v34891_v59 }
 0xb32   :  { %28263 = vmatmul.mubr.f32.vlgmr.msra.gmra.mrb[6].mxu0 %v35405_v43 }
 0xb33   :  { %31026 = vmatpush3.bf16.msra.mxu1 %v35054_v24  ;;  %30974 = vmatpush3.bf16.msra.mxu0 %v34891_v59 }
 0xb34   :  { %28273 = vmatprep.mubr.f32.mxu0 %v6564_v0  ;;  %31028 = vmatprep.subr.bf16.mxu1 %v34980_v61 }
 0xb35   :  { %30976 = vmatprep.subr.bf16.mxu0 %v34903_v39 }
 0xb36   :  { %28340 = vmatmul.mubr.f32.vlgmr.msra.gmra.mrb[24].mxu1 %v7115_v29  ;;  %v35483_v29 = vld [vmem:[%s38191_s5] ss:$0 sm:$0xff] }
 0xb37   :  { %31030 = vmatpush3.bf16.msra.mxu1 %v34980_v61  ;;  %30978 = vmatpush3.bf16.msra.mxu0 %v34903_v39  ;;  %v741_v9 = vadd.f32 %v35483_v29, %v34939_v54  ;;  %v731_v19 = vadd.f32 %v35483_v29, %v34942_v49 }
 0xb38   :  { %28350 = vmatprep.mubr.f32.mxu1 %v7106_v36  ;;  %31032 = vmatprep.subr.bf16.mxu1 %v35010_v62 }
 0xb39   :  { %30980 = vmatprep.subr.bf16.mxu0 %v34768_v14 }
 0xb3a   :  { %28274 = vmatmul.mubr.f32.vlgmr.msra.gmra.mrb[6].mxu0 %v6574_v28 }
 0xb3b   :  { %31034 = vmatpush3.bf16.msra.mxu1 %v35010_v62  ;;  %30982 = vmatpush3.bf16.msra.mxu0 %v34768_v14 }
 0xb3c   :  { %28284 = vmatprep.mubr.f32.mxu0 %v6565_v50  ;;  %31036 = vmatprep.subr.bf16.mxu1 %v35078_v2 }
 0xb3d   :  { %30984 = vmatprep.subr.bf16.mxu0 %v34820_v7 }
 0xb3e   :  { %28351 = vmatmul.mubr.f32.vlgmr.msra.gmra.mrb[24].mxu1 %v7116_v26 }
 0xb3f   :  { %31038 = vmatpush3.bf16.msra.mxu1 %v35078_v2  ;;  %30986 = vmatpush3.bf16.msra.mxu0 %v34820_v7 }
 0xb40   :  { %28361 = vmatprep.mubr.f32.mxu1 %v35399_v16  ;;  %31040 = vmatprep.subr.bf16.mxu1 %v35082_v3 }
 0xb41   :  { %30988 = vmatprep.subr.bf16.mxu0 %v34925_v8 }
 0xb42   :  { %28285 = vmatmul.mubr.f32.vlgmr.msra.gmra.mrb[6].mxu0 %v6575_v52 }
 0xb43   :  { %31042 = vmatpush3.bf16.msra.mxu1 %v35082_v3  ;;  %30990 = vmatpush3.bf16.msra.mxu0 %v34925_v8 }
 0xb44   :  { %28295 = vmatprep.mubr.f32.mxu0 %v35409_v11  ;;  %31044 = vmatprep.subr.bf16.mxu1 %v34980_v61 }
 0xb45   :  { %30992 = vmatprep.subr.bf16.mxu0 %v34937_v42 }
 0xb46   :  { %28362 = vmatmul.mubr.f32.vlgmr.msra.gmra.mrb[24].mxu1 %v35396_v4 }
 0xb47   :  { %31046 = vmatpush3.bf16.msra.mxu1 %v34980_v61  ;;  %30994 = vmatpush3.bf16.msra.mxu0 %v34937_v42 }
 0xb48   :  { %28372 = vmatprep.mubr.f32.mxu1 %v35399_v16  ;;  %31048 = vmatprep.subr.bf16.mxu1 %v35010_v62 }
 0xb49   :  { %30996 = vmatprep.subr.bf16.mxu0 %v34768_v14 }
 0xb4a   :  { %28296 = vmatmul.mubr.f32.vlgmr.msra.gmra.mrb[6].mxu0 %v35405_v43 }
 0xb4b   :  { %31050 = vmatpush3.bf16.msra.mxu1 %v35010_v62  ;;  %30998 = vmatpush3.bf16.msra.mxu0 %v34768_v14 }
 0xb4c   :  { %28306 = vmatprep.mubr.f32.mxu0 %v35409_v11  ;;  %31000 = vmatprep.subr.bf16.mxu0 %v34820_v7 }
 0xb4d   :  { %31100 = vmatprep.subr.bf16.mxu1 %v34980_v61 }
 0xb4e   :  { %28373 = vmatmul.mubr.f32.vlgmr.msra.gmra.mrb[24].mxu1 %v35396_v4 }
 0xb4f   :  { %31002 = vmatpush3.bf16.msra.mxu0 %v34820_v7  ;;  %31102 = vmatpush3.bf16.msra.mxu1 %v34980_v61 }
 0xb50   :  { %31104 = vmatprep.subr.bf16.mxu1 %v35010_v62  ;;  %31052 = vmatprep.subr.bf16.mxu0 %v34768_v14 }
 0xb52   :  { %28307 = vmatmul.mubr.f32.vlgmr.msra.gmra.mrb[6].mxu0 %v35405_v43 }
 0xb53   :  { %31106 = vmatpush3.bf16.msra.mxu1 %v35010_v62  ;;  %31054 = vmatpush3.bf16.msra.mxu0 %v34768_v14 }
 0xb54   :  { %31108 = vmatprep.subr.bf16.mxu1 %v35016_v40  ;;  %31056 = vmatprep.subr.bf16.mxu0 %v34820_v7 }
 0xb57   :  { %31058 = vmatpush3.bf16.msra.mxu0 %v34820_v7 }
 0xb58   :  { %31060 = vmatprep.subr.bf16.mxu0 %v34828_v10 }
 0xc21   :  { %v28374_v55 = vpop.f32.mrb[24].mxu1 }
 0xc22   :  { %v32535_v4 = vadd.f32 %v35476_v17, %v28374_v55  ;;  %v7553_v33 = vpop.f32.mrb[25].mxu1 }
 0xc23   :  { %v32536_v16 = vadd.f32 %v35476_v17, %v7553_v33 }
 0xc24   :  { %33460 = vtanh.f32 %v32535_v4  ;;  %v25641_v54 = vmul.f32 -1.442695, %v32535_v4 }
 0xc25   :  { %33462 = vtanh.f32 %v32536_v16  ;;  %v28308_v63 = vpop.f32.mrb[6].mxu0  ;;  %v25640_v49 = vmul.f32 -1.442695, %v32536_v16 }
 0xc26   :  { %v32508_v47 = vadd.f32 %v28308_v63, %v741_v9  ;;  %v7012_v26 = vpop.f32.mrb[7].mxu0 }
 0xc27   :  { %v32510_v43 = vadd.f32 %v7012_v26, %v731_v19 }
 0xc28   :  { %33464 = vtanh.f32 %v32508_v47  ;;  %v25639_v28 = vmul.f32 -1.442695, %v32508_v47 }
 0xc29   :  { %33466 = vtanh.f32 %v32510_v43  ;;  %v25638_v0 = vmul.f32 -1.442695, %v32510_v43 }
 0xc2a   :  { %33468 = vpow2.f32 %v25641_v54 }
 0xc2b   :  { %33470 = vpow2.f32 %v25640_v49 }
 0xc2c   :  { %33472 = vpow2.f32 %v25639_v28 }
 0xc2d   :  { %33474 = vpow2.f32 %v25638_v0 }
 0xc2e   :  { %v33461_v12 = vpop.eup %33460 }
 0xc2f   :  { %v33463_v11 = vpop.eup %33462  ;;  %7633 = vrot.lane.b32.xlu1 %v33461_v12, %s33968_s14 }
 0xc30   :  { %7631 = vrot.lane.b32.xlu0 %v33463_v11, %s33968_s14 }
 0xc32   :  { %v33465_v36 = vpop.eup %33464 }
 0xc33   :  { %v33467_v53 = vpop.eup %33466  ;;  %7585 = vrot.lane.b32.xlu1 %v33465_v36, %s33968_s14 }
 0xc34   :  { %7583 = vrot.lane.b32.xlu0 %v33467_v53, %s33968_s14  ;;  %v33469_v38 = vpop.eup %33468 }
 0xc35   :  { %v33471_v52 = vpop.eup %33470  ;;  %v7620_v58 = vadd.f32 1.0, %v33469_v38 }
 0xc36   :  { %v33473_v50 = vpop.eup %33472  ;;  %v7619_v15 = vadd.f32 1.0, %v33471_v52 }
 0xc37   :  { %v33475_v51 = vpop.eup %33474  ;;  %33476 = vrcp.f32 %v7620_v58  ;;  %v7572_v48 = vadd.f32 1.0, %v33473_v50 }
 0xc38   :  { %33478 = vrcp.f32 %v7619_v15  ;;  %v7571_v57 = vadd.f32 1.0, %v33475_v51 }
 0xc39   :  { %33480 = vrcp.f32 %v7572_v48 }
 0xc3a   :  { %33482 = vrcp.f32 %v7571_v57 }
 0xc41   :  { %v33477_v46 = vpop.eup %33476 }
 0xc42   :  { %v33479_v4 = vpop.eup %33478  ;;  %v7628_v11 = vmul.f32 %v33477_v46, %v35367_v37 }
 0xc43   :  { %v33481_v19 = vpop.eup %33480  ;;  %v7627_v53 = vmul.f32 %v33479_v4, %v35369_v44 }
 0xc44   :  { %v33483_v47 = vpop.eup %33482  ;;  %v7580_v0 = vmul.f32 %v33481_v19, %v35375_v13 }
 0xc45   :  { %v7579_v52 = vmul.f32 %v33483_v47, %v35377_v56 }
 0xca1   :  { %v7634_v55 = vpop.permute.xlu1 %7633 }
 0xca2   :  { %v7638_v33 = vmul.f32 %v33477_v46, %v7634_v55  ;;  %v7632_v16 = vpop.permute.xlu0 %7631 }
 0xca3   :  { %v7637_v9 = vmul.f32 %v33479_v4, %v7632_v16 }
 0xca4   :  { %7643 = vrot.lane.b32.xlu1 %v7638_v33, %s33969_s15 }
 0xca5   :  { %v7586_v63 = vpop.permute.xlu1 %7585  ;;  %7641 = vrot.lane.b32.xlu0 %v7637_v9, %s33969_s15 }
 0xca6   :  { %v7590_v26 = vmul.f32 %v33481_v19, %v7586_v63  ;;  %v7584_v43 = vpop.permute.xlu0 %7583 }
 0xca7   :  { %v7589_v12 = vmul.f32 %v33483_v47, %v7584_v43 }
 0xca8   :  { %7595 = vrot.lane.b32.xlu1 %v7590_v26, %s33969_s15 }
 0xca9   :  { %7593 = vrot.lane.b32.xlu0 %v7589_v12, %s33969_s15 }
 0xd16   :  { %v7644_v36 = vpop.permute.xlu1 %7643 }
 0xd17   :  { %v35499_v54 = vadd.f32 %v7644_v36, %v7628_v11  ;;  %v7642_v49 = vpop.permute.xlu0 %7641 }
 0xd18   :  { %v35501_v28 = vadd.f32 %v7642_v49, %v7627_v53 }
 0xd19   :  { %33484 = vtanh.f32 %v35499_v54 }
 0xd1a   :  { %33486 = vtanh.f32 %v35501_v28  ;;  %v7596_v38 = vpop.permute.xlu1 %7595 }
 0xd1b   :  { %v35507_v58 = vadd.f32 %v7596_v38, %v7580_v0  ;;  %v7594_v37 = vpop.permute.xlu0 %7593 }
 0xd1c   :  { %v35509_v50 = vadd.f32 %v7594_v37, %v7579_v52 }
 0xd1d   :  { %33488 = vtanh.f32 %v35507_v58 }
 0xd1e   :  { %33490 = vtanh.f32 %v35509_v50 }
 0xd23   :  { %v33485_v44 = vpop.eup %33484 }
 0xd24   :  { %v33487_v15 = vpop.eup %33486  ;;  %7655 = vrot.lane.b32.xlu1 %v33485_v44, %s33968_s14 }
 0xd25   :  { %7653 = vrot.lane.b32.xlu0 %v33487_v15, %s33968_s14 }
 0xd27   :  { %v33489_v13 = vpop.eup %33488 }
 0xd28   :  { %v33491_v51 = vpop.eup %33490  ;;  %7607 = vrot.lane.b32.xlu1 %v33489_v13, %s33968_s14 }
 0xd29   :  { %7605 = vrot.lane.b32.xlu0 %v33491_v51, %s33968_s14 }
 0xd96   :  { %v7656_v56 = vpop.permute.xlu1 %7655 }
 0xd97   :  { %v35517_v48 = vmul.f32 %v33477_v46, %v7656_v56  ;;  %v7654_v57 = vpop.permute.xlu0 %7653 }
 0xd98   :  { %v35519_v55 = vmul.f32 %v33479_v4, %v7654_v57 }
 0xd99   :  { %8225 = vrot.lane.b32.xlu1 %v35517_v48, %s33969_s15 }
 0xd9a   :  { %v7608_v33 = vpop.permute.xlu1 %7607  ;;  %8223 = vrot.lane.b32.xlu0 %v35519_v55, %s33969_s15 }
 0xd9b   :  { %v7612_v16 = vmul.f32 %v33481_v19, %v7608_v33  ;;  %v7606_v9 = vpop.permute.xlu0 %7605 }
 0xd9c   :  { %v7611_v63 = vmul.f32 %v33483_v47, %v7606_v9 }
 0xd9d   :  { %7665 = vrot.lane.b32.xlu1 %v7612_v16, %s33969_s15 }
 0xd9e   :  { %7663 = vrot.lane.b32.xlu0 %v7611_v63, %s33969_s15 }
 0xe0b   :  { %v8226_v26 = vpop.permute.xlu1 %8225 }
 0xe0c   :  { %v8229_v46 = vsel %vm503_vm0, %v8226_v26, 0  ;;  %v8224_v43 = vpop.permute.xlu0 %8223 }
 0xe0d   :  { %v35528_v4 = vand.u32 4294901760, %v8229_v46  ;;  %v8227_v12 = vsel %vm503_vm0, %v8224_v43, 0 }
 0xe0e   :  { %v35531_v11 = vand.u32 4294901760, %v8227_v12 }
 0xe0f   :  { %v8311_v36 = vsub.f32 %v8229_v46, %v35528_v4  ;;  %v7666_v53 = vpop.permute.xlu1 %7665 }
 0xe10   :  { %v8301_v19 = vsub.f32 %v8227_v12, %v35531_v11  ;;  %7671 = vst.msk [vmem:[#allocation3 + $0x38] sm:$0xff] %vm503_vm0, %v7666_v53  ;;  %v7688_v47 = vsel %vm503_vm0, %v7666_v53, 0  ;;  %v7664_v49 = vpop.permute.xlu0 %7663  ;;  %v32511_v53 = vadd.f32 %v35483_v29, %v35036_v23 }
 0xe11   :  { %v8312_v0 = vand.u32 4294901760, %v8311_v36  ;;  %v35537_v38 = vand.u32 4294901760, %v7688_v47  ;;  %7670 = vst.msk [vmem:[#allocation3 + $0x30] sm:$0xff] %vm503_vm0, %v7664_v49  ;;  %v7686_v52 = vsel %vm503_vm0, %v7664_v49, 0 }
 0xe12   :  { %v35541_v37 = vand.u32 4294901760, %v7686_v52  ;;  %v8302_v44 = vand.u32 4294901760, %v8301_v19 }
 0xe13   :  { %v8313_v15 = vsub.f32 %v8311_v36, %v8312_v0  ;;  %v7770_v13 = vsub.f32 %v7688_v47, %v35537_v38 }
 0xe14   :  { %v7760_v51 = vsub.f32 %v7686_v52, %v35541_v37  ;;  %v8303_v56 = vsub.f32 %v8301_v19, %v8302_v44 }
 0xe15   :  { %v7771_v57 = vand.u32 4294901760, %v7770_v13  ;;  %v8314_v9 = vand.u32 4294901760, %v8313_v15 }
 0xe16   :  { %v8304_v33 = vand.u32 4294901760, %v8303_v56  ;;  %v7761_v16 = vand.u32 4294901760, %v7760_v51 }
 0xe17   :  { %v7772_v63 = vsub.f32 %v7770_v13, %v7771_v57 }
 0xe18   :  { %28449 = vmatprep.mubr.f32.mxu1 %v8304_v33  ;;  %v7762_v26 = vsub.f32 %v7760_v51, %v7761_v16 }
 0xe19   :  { %28450 = vmatmul.mubr.f32.vlgmr.msra.gmra.mrb[22].mxu1 %v8314_v9  ;;  %v7773_v43 = vand.u32 4294901760, %v7772_v63 }
 0xe1a   :  { %31110 = vmatpush3.bf16.msra.mxu1 %v35016_v40  ;;  %28460 = vmatprep.mubr.f32.mxu1 %v35531_v11  ;;  %v7763_v46 = vand.u32 4294901760, %v7762_v26 }
 0xe1b   :  { %31112 = vmatprep.subr.bf16.mxu1 %v35034_v32 }
 0xe1c   :  { %28383 = vmatprep.mubr.f32.mxu0 %v7763_v46 }
 0xe1d   :  { %28384 = vmatmul.mubr.f32.vlgmr.msra.gmra.mrb[8].mxu0 %v7773_v43 }
 0xe1e   :  { %31114 = vmatpush3.bf16.msra.mxu1 %v35034_v32  ;;  %31062 = vmatpush3.bf16.msra.mxu0 %v34828_v10 }
 0xe1f   :  { %28394 = vmatprep.mubr.f32.mxu0 %v35541_v37  ;;  %31116 = vmatprep.subr.bf16.mxu1 %v35046_v1 }
 0xe20   :  { %31064 = vmatprep.subr.bf16.mxu0 %v34877_v34 }
 0xe21   :  { %28461 = vmatmul.mubr.f32.vlgmr.msra.gmra.mrb[22].mxu1 %v35528_v4 }
 0xe22   :  { %31118 = vmatpush3.bf16.msra.mxu1 %v35046_v1  ;;  %31066 = vmatpush3.bf16.msra.mxu0 %v34877_v34 }
 0xe23   :  { %28471 = vmatprep.mubr.f32.mxu1 %v8301_v19  ;;  %31120 = vmatprep.subr.bf16.mxu1 %v35054_v24  ;;  %v32513_v19 = vadd.f32 %v35483_v29, %v35038_v6 }
 0xe24   :  { %31068 = vmatprep.subr.bf16.mxu0 %v34891_v59 }
 0xe25   :  { %28395 = vmatmul.mubr.f32.vlgmr.msra.gmra.mrb[8].mxu0 %v35537_v38 }
 0xe26   :  { %31122 = vmatpush3.bf16.msra.mxu1 %v35054_v24  ;;  %31070 = vmatpush3.bf16.msra.mxu0 %v34891_v59 }
 0xe27   :  { %28405 = vmatprep.mubr.f32.mxu0 %v7760_v51  ;;  %31124 = vmatprep.subr.bf16.mxu1 %v34980_v61 }
 0xe28   :  { %31072 = vmatprep.subr.bf16.mxu0 %v34903_v39 }
 0xe29   :  { %28472 = vmatmul.mubr.f32.vlgmr.msra.gmra.mrb[22].mxu1 %v8311_v36 }
 0xe2a   :  { %31126 = vmatpush3.bf16.msra.mxu1 %v34980_v61  ;;  %31074 = vmatpush3.bf16.msra.mxu0 %v34903_v39 }
 0xe2b   :  { %28482 = vmatprep.mubr.f32.mxu1 %v8302_v44  ;;  %31128 = vmatprep.subr.bf16.mxu1 %v35010_v62 }
 0xe2c   :  { %31076 = vmatprep.subr.bf16.mxu0 %v34768_v14 }
 0xe2d   :  { %28406 = vmatmul.mubr.f32.vlgmr.msra.gmra.mrb[8].mxu0 %v7770_v13 }
 0xe2e   :  { %31130 = vmatpush3.bf16.msra.mxu1 %v35010_v62  ;;  %31078 = vmatpush3.bf16.msra.mxu0 %v34768_v14 }
 0xe2f   :  { %28416 = vmatprep.mubr.f32.mxu0 %v7761_v16  ;;  %31132 = vmatprep.subr.bf16.mxu1 %v35078_v2 }
 0xe30   :  { %31080 = vmatprep.subr.bf16.mxu0 %v34820_v7 }
 0xe31   :  { %28483 = vmatmul.mubr.f32.vlgmr.msra.gmra.mrb[22].mxu1 %v8312_v0 }
 0xe32   :  { %31134 = vmatpush3.bf16.msra.mxu1 %v35078_v2  ;;  %31082 = vmatpush3.bf16.msra.mxu0 %v34820_v7 }
 0xe33   :  { %28493 = vmatprep.mubr.f32.mxu1 %v35531_v11  ;;  %31136 = vmatprep.subr.bf16.mxu1 %v35082_v3 }
 0xe34   :  { %31084 = vmatprep.subr.bf16.mxu0 %v34925_v8 }
 0xe35   :  { %28417 = vmatmul.mubr.f32.vlgmr.msra.gmra.mrb[8].mxu0 %v7771_v57 }
 0xe36   :  { %31138 = vmatpush3.bf16.msra.mxu1 %v35082_v3  ;;  %31086 = vmatpush3.bf16.msra.mxu0 %v34925_v8 }
 0xe37   :  { %28427 = vmatprep.mubr.f32.mxu0 %v35541_v37  ;;  %31140 = vmatprep.subr.bf16.mxu1 %v34980_v61 }
 0xe38   :  { %31088 = vmatprep.subr.bf16.mxu0 %v34937_v42 }
 0xe39   :  { %28494 = vmatmul.mubr.f32.vlgmr.msra.gmra.mrb[22].mxu1 %v35528_v4 }
 0xe3a   :  { %31142 = vmatpush3.bf16.msra.mxu1 %v34980_v61  ;;  %31090 = vmatpush3.bf16.msra.mxu0 %v34937_v42 }
 0xe3b   :  { %28504 = vmatprep.mubr.f32.mxu1 %v35531_v11  ;;  %31144 = vmatprep.subr.bf16.mxu1 %v35010_v62 }
 0xe3c   :  { %31092 = vmatprep.subr.bf16.mxu0 %v34768_v14 }
 0xe3d   :  { %28428 = vmatmul.mubr.f32.vlgmr.msra.gmra.mrb[8].mxu0 %v35537_v38 }
 0xe3e   :  { %31146 = vmatpush3.bf16.msra.mxu1 %v35010_v62  ;;  %31094 = vmatpush3.bf16.msra.mxu0 %v34768_v14 }
 0xe3f   :  { %28438 = vmatprep.mubr.f32.mxu0 %v35541_v37  ;;  %31096 = vmatprep.subr.bf16.mxu0 %v34820_v7 }
 0xe40   :  { %31196 = vmatprep.subr.bf16.mxu1 %v34980_v61 }
 0xe41   :  { %28505 = vmatmul.mubr.f32.vlgmr.msra.gmra.mrb[22].mxu1 %v35528_v4 }
 0xe42   :  { %31098 = vmatpush3.bf16.msra.mxu0 %v34820_v7  ;;  %31198 = vmatpush3.bf16.msra.mxu1 %v34980_v61 }
 0xe43   :  { %31200 = vmatprep.subr.bf16.mxu1 %v35010_v62  ;;  %31148 = vmatprep.subr.bf16.mxu0 %v34768_v14 }
 0xe45   :  { %28439 = vmatmul.mubr.f32.vlgmr.msra.gmra.mrb[8].mxu0 %v35537_v38 }
 0xe46   :  { %31202 = vmatpush3.bf16.msra.mxu1 %v35010_v62  ;;  %31150 = vmatpush3.bf16.msra.mxu0 %v34768_v14 }
 0xe47   :  { %31204 = vmatprep.subr.bf16.mxu1 %v35016_v40  ;;  %31152 = vmatprep.subr.bf16.mxu0 %v34820_v7 }
 0xe4a   :  { %31154 = vmatpush3.bf16.msra.mxu0 %v34820_v7 }
 0xe4b   :  { %31156 = vmatprep.subr.bf16.mxu0 %v34828_v10 }
 0xf14   :  { %v28506_v4 = vpop.f32.mrb[22].mxu1 }
 0xf15   :  { %v32533_v12 = vadd.f32 %v35476_v17, %v28506_v4  ;;  %v8749_v11 = vpop.f32.mrb[23].mxu1 }
 0xf16   :  { %v32534_v36 = vadd.f32 %v35476_v17, %v8749_v11 }
 0xf17   :  { %33492 = vtanh.f32 %v32533_v12  ;;  %v25645_v23 = vmul.f32 -1.442695, %v32533_v12 }
 0xf18   :  { %33494 = vtanh.f32 %v32534_v36  ;;  %v28440_v47 = vpop.f32.mrb[8].mxu0  ;;  %v25644_v6 = vmul.f32 -1.442695, %v32534_v36 }
 0xf19   :  { %v32512_v49 = vadd.f32 %v32511_v53, %v28440_v47  ;;  %v8208_v0 = vpop.f32.mrb[9].mxu0 }
 0xf1a   :  { %v32514_v38 = vadd.f32 %v32513_v19, %v8208_v0 }
 0xf1b   :  { %33496 = vtanh.f32 %v32512_v49  ;;  %v25643_v13 = vmul.f32 -1.442695, %v32512_v49 }
 0xf1c   :  { %33498 = vtanh.f32 %v32514_v38  ;;  %v25642_v51 = vmul.f32 -1.442695, %v32514_v38 }
 0xf1d   :  { %33500 = vpow2.f32 %v25645_v23 }
 0xf1e   :  { %33502 = vpow2.f32 %v25644_v6 }
 0xf1f   :  { %33504 = vpow2.f32 %v25643_v13 }
 0xf20   :  { %33506 = vpow2.f32 %v25642_v51 }
 0xf21   :  { %v33493_v52 = vpop.eup %33492 }
 0xf22   :  { %v33495_v37 = vpop.eup %33494  ;;  %8829 = vrot.lane.b32.xlu1 %v33493_v52, %s33968_s14 }
 0xf23   :  { %8827 = vrot.lane.b32.xlu0 %v33495_v37, %s33968_s14 }
 0xf25   :  { %v33497_v44 = vpop.eup %33496 }
 0xf26   :  { %v33499_v15 = vpop.eup %33498  ;;  %8781 = vrot.lane.b32.xlu1 %v33497_v44, %s33968_s14 }
 0xf27   :  { %8779 = vrot.lane.b32.xlu0 %v33499_v15, %s33968_s14  ;;  %v33501_v56 = vpop.eup %33500 }
 0xf28   :  { %v33503_v57 = vpop.eup %33502  ;;  %v8816_v33 = vadd.f32 1.0, %v33501_v56 }
 0xf29   :  { %v33505_v16 = vpop.eup %33504  ;;  %v8815_v9 = vadd.f32 1.0, %v33503_v57 }
 0xf2a   :  { %v33507_v63 = vpop.eup %33506  ;;  %33508 = vrcp.f32 %v8816_v33  ;;  %v8768_v26 = vadd.f32 1.0, %v33505_v16 }
 0xf2b   :  { %33510 = vrcp.f32 %v8815_v9  ;;  %v8767_v46 = vadd.f32 1.0, %v33507_v63 }
 0xf2c   :  { %33512 = vrcp.f32 %v8768_v26 }
 0xf2d   :  { %33514 = vrcp.f32 %v8767_v46 }
 0xf34   :  { %v33509_v43 = vpop.eup %33508 }
 0xf35   :  { %v33511_v12 = vpop.eup %33510  ;;  %v8824_v37 = vmul.f32 %v33509_v43, %v35499_v54 }
 0xf36   :  { %v33513_v19 = vpop.eup %33512  ;;  %v8823_v15 = vmul.f32 %v33511_v12, %v35501_v28 }
 0xf37   :  { %v33515_v49 = vpop.eup %33514  ;;  %v8776_v51 = vmul.f32 %v33513_v19, %v35507_v58 }
 0xf38   :  { %v8775_v57 = vmul.f32 %v33515_v49, %v35509_v50 }
 0xf94   :  { %v8830_v4 = vpop.permute.xlu1 %8829 }
 0xf95   :  { %v8834_v11 = vmul.f32 %v33509_v43, %v8830_v4  ;;  %v8828_v36 = vpop.permute.xlu0 %8827 }
 0xf96   :  { %v8833_v53 = vmul.f32 %v33511_v12, %v8828_v36 }
 0xf97   :  { %8839 = vrot.lane.b32.xlu1 %v8834_v11, %s33969_s15 }
 0xf98   :  { %v8782_v47 = vpop.permute.xlu1 %8781  ;;  %8837 = vrot.lane.b32.xlu0 %v8833_v53, %s33969_s15 }
 0xf99   :  { %v8786_v0 = vmul.f32 %v33513_v19, %v8782_v47  ;;  %v8780_v38 = vpop.permute.xlu0 %8779 }
 0xf9a   :  { %v8785_v52 = vmul.f32 %v33515_v49, %v8780_v38 }
 0xf9b   :  { %8791 = vrot.lane.b32.xlu1 %v8786_v0, %s33969_s15 }
 0xf9c   :  { %8789 = vrot.lane.b32.xlu0 %v8785_v52, %s33969_s15 }
0x1009   :  { %v8840_v44 = vpop.permute.xlu1 %8839 }
0x100a   :  { %v35621_v23 = vadd.f32 %v8840_v44, %v8824_v37  ;;  %v8838_v6 = vpop.permute.xlu0 %8837 }
0x100b   :  { %v35623_v13 = vadd.f32 %v8838_v6, %v8823_v15 }
0x100c   :  { %33516 = vtanh.f32 %v35621_v23 }
0x100d   :  { %33518 = vtanh.f32 %v35623_v13  ;;  %v8792_v56 = vpop.permute.xlu1 %8791 }
0x100e   :  { %v35629_v33 = vadd.f32 %v8792_v56, %v8776_v51  ;;  %v8790_v54 = vpop.permute.xlu0 %8789 }
0x100f   :  { %v35631_v16 = vadd.f32 %v8790_v54, %v8775_v57 }
0x1010   :  { %33520 = vtanh.f32 %v35629_v33 }
0x1011   :  { %33522 = vtanh.f32 %v35631_v16 }
0x1016   :  { %v33517_v28 = vpop.eup %33516 }
0x1017   :  { %v33519_v9 = vpop.eup %33518  ;;  %8851 = vrot.lane.b32.xlu1 %v33517_v28, %s33968_s14 }
0x1018   :  { %8849 = vrot.lane.b32.xlu0 %v33519_v9, %s33968_s14 }
0x101a   :  { %v33521_v58 = vpop.eup %33520 }
0x101b   :  { %v33523_v63 = vpop.eup %33522  ;;  %8803 = vrot.lane.b32.xlu1 %v33521_v58, %s33968_s14 }
0x101c   :  { %8801 = vrot.lane.b32.xlu0 %v33523_v63, %s33968_s14 }
0x1089   :  { %v8852_v50 = vpop.permute.xlu1 %8851 }
0x108a   :  { %v35639_v26 = vmul.f32 %v33509_v43, %v8852_v50  ;;  %v8850_v46 = vpop.permute.xlu0 %8849 }
0x108b   :  { %v35641_v4 = vmul.f32 %v33511_v12, %v8850_v46 }
0x108c   :  { %9419 = vrot.lane.b32.xlu1 %v35639_v26, %s33969_s15 }
0x108d   :  { %v8804_v11 = vpop.permute.xlu1 %8803  ;;  %9417 = vrot.lane.b32.xlu0 %v35641_v4, %s33969_s15 }
0x108e   :  { %v8808_v36 = vmul.f32 %v33513_v19, %v8804_v11  ;;  %v8802_v53 = vpop.permute.xlu0 %8801 }
0x108f   :  { %v8807_v47 = vmul.f32 %v33515_v49, %v8802_v53 }
0x1090   :  { %8861 = vrot.lane.b32.xlu1 %v8808_v36, %s33969_s15 }
0x1091   :  { %8859 = vrot.lane.b32.xlu0 %v8807_v47, %s33969_s15 }
0x10fe   :  { %v9420_v0 = vpop.permute.xlu1 %9419 }
0x10ff   :  { %v9423_v43 = vsel %vm503_vm0, %v9420_v0, 0  ;;  %v9418_v38 = vpop.permute.xlu0 %9417 }
0x1100   :  { %v35650_v12 = vand.u32 4294901760, %v9423_v43  ;;  %v9421_v52 = vsel %vm503_vm0, %v9418_v38, 0 }
0x1101   :  { %v35653_v37 = vand.u32 4294901760, %v9421_v52 }
0x1102   :  { %v9505_v44 = vsub.f32 %v9423_v43, %v35650_v12  ;;  %v35656_v15 = vpop.permute.xlu1 %8861 }
0x1103   :  { %v9495_v19 = vsub.f32 %v9421_v52, %v35653_v37  ;;  %v8882_v49 = vsel %vm503_vm0, %v35656_v15, 0  ;;  %v35661_v6 = vpop.permute.xlu0 %8859 }
0x1104   :  { %v9506_v51 = vand.u32 4294901760, %v9505_v44  ;;  %v35663_v56 = vand.u32 4294901760, %v8882_v49  ;;  %v8880_v57 = vsel %vm503_vm0, %v35661_v6, 0 }
0x1105   :  { %v35667_v54 = vand.u32 4294901760, %v8880_v57  ;;  %v9496_v28 = vand.u32 4294901760, %v9495_v19 }
0x1106   :  { %v9507_v9 = vsub.f32 %v9505_v44, %v9506_v51  ;;  %v8964_v58 = vsub.f32 %v8882_v49, %v35663_v56  ;;  %v32517_v49 = vadd.f32 %v35483_v29, %v35050_v45 }
0x1107   :  { %v8954_v63 = vsub.f32 %v8880_v57, %v35667_v54  ;;  %v9497_v50 = vsub.f32 %v9495_v19, %v9496_v28 }
0x1108   :  { %v8965_v46 = vand.u32 4294901760, %v8964_v58  ;;  %v9508_v53 = vand.u32 4294901760, %v9507_v9 }
0x1109   :  { %v9498_v11 = vand.u32 4294901760, %v9497_v50  ;;  %v8955_v36 = vand.u32 4294901760, %v8954_v63 }
0x110a   :  { %v8966_v47 = vsub.f32 %v8964_v58, %v8965_v46 }
0x110b   :  { %28581 = vmatprep.mubr.f32.mxu1 %v9498_v11  ;;  %v8956_v0 = vsub.f32 %v8954_v63, %v8955_v36 }
0x110c   :  { %28582 = vmatmul.mubr.f32.vlgmr.msra.gmra.mrb[20].mxu1 %v9508_v53  ;;  %v8967_v38 = vand.u32 4294901760, %v8966_v47 }
0x110d   :  { %31206 = vmatpush3.bf16.msra.mxu1 %v35016_v40  ;;  %28592 = vmatprep.mubr.f32.mxu1 %v35653_v37  ;;  %v8957_v43 = vand.u32 4294901760, %v8956_v0 }
0x110e   :  { %31208 = vmatprep.subr.bf16.mxu1 %v35034_v32 }
0x110f   :  { %28515 = vmatprep.mubr.f32.mxu0 %v8957_v43 }
0x1110   :  { %28516 = vmatmul.mubr.f32.vlgmr.msra.gmra.mrb[10].mxu0 %v8967_v38 }
0x1111   :  { %31210 = vmatpush3.bf16.msra.mxu1 %v35034_v32  ;;  %31158 = vmatpush3.bf16.msra.mxu0 %v34828_v10 }
0x1112   :  { %28526 = vmatprep.mubr.f32.mxu0 %v35667_v54  ;;  %31212 = vmatprep.subr.bf16.mxu1 %v35046_v1 }
0x1113   :  { %31160 = vmatprep.subr.bf16.mxu0 %v34877_v34 }
0x1114   :  { %28593 = vmatmul.mubr.f32.vlgmr.msra.gmra.mrb[20].mxu1 %v35650_v12 }
0x1115   :  { %31214 = vmatpush3.bf16.msra.mxu1 %v35046_v1  ;;  %31162 = vmatpush3.bf16.msra.mxu0 %v34877_v34 }
0x1116   :  { %28603 = vmatprep.mubr.f32.mxu1 %v9495_v19  ;;  %31216 = vmatprep.subr.bf16.mxu1 %v35054_v24  ;;  %v32515_v19 = vadd.f32 %v35483_v29, %v35048_v35 }
0x1117   :  { %31164 = vmatprep.subr.bf16.mxu0 %v34891_v59 }
0x1118   :  { %28527 = vmatmul.mubr.f32.vlgmr.msra.gmra.mrb[10].mxu0 %v35663_v56 }
0x1119   :  { %31218 = vmatpush3.bf16.msra.mxu1 %v35054_v24  ;;  %31166 = vmatpush3.bf16.msra.mxu0 %v34891_v59 }
0x111a   :  { %28537 = vmatprep.mubr.f32.mxu0 %v8954_v63  ;;  %31220 = vmatprep.subr.bf16.mxu1 %v34980_v61 }
0x111b   :  { %31168 = vmatprep.subr.bf16.mxu0 %v34903_v39 }
0x111c   :  { %28604 = vmatmul.mubr.f32.vlgmr.msra.gmra.mrb[20].mxu1 %v9505_v44 }
0x111d   :  { %31222 = vmatpush3.bf16.msra.mxu1 %v34980_v61  ;;  %31170 = vmatpush3.bf16.msra.mxu0 %v34903_v39 }
0x111e   :  { %28614 = vmatprep.mubr.f32.mxu1 %v9496_v28  ;;  %31224 = vmatprep.subr.bf16.mxu1 %v35010_v62 }
0x111f   :  { %31172 = vmatprep.subr.bf16.mxu0 %v34768_v14 }
0x1120   :  { %28538 = vmatmul.mubr.f32.vlgmr.msra.gmra.mrb[10].mxu0 %v8964_v58 }
0x1121   :  { %31226 = vmatpush3.bf16.msra.mxu1 %v35010_v62  ;;  %31174 = vmatpush3.bf16.msra.mxu0 %v34768_v14 }
0x1122   :  { %28548 = vmatprep.mubr.f32.mxu0 %v8955_v36  ;;  %31228 = vmatprep.subr.bf16.mxu1 %v35078_v2 }
0x1123   :  { %31176 = vmatprep.subr.bf16.mxu0 %v34820_v7 }
0x1124   :  { %28615 = vmatmul.mubr.f32.vlgmr.msra.gmra.mrb[20].mxu1 %v9506_v51 }
0x1125   :  { %31230 = vmatpush3.bf16.msra.mxu1 %v35078_v2  ;;  %31178 = vmatpush3.bf16.msra.mxu0 %v34820_v7 }
0x1126   :  { %28625 = vmatprep.mubr.f32.mxu1 %v35653_v37  ;;  %31232 = vmatprep.subr.bf16.mxu1 %v35082_v3 }
0x1127   :  { %31180 = vmatprep.subr.bf16.mxu0 %v34925_v8 }
0x1128   :  { %28549 = vmatmul.mubr.f32.vlgmr.msra.gmra.mrb[10].mxu0 %v8965_v46 }
0x1129   :  { %31234 = vmatpush3.bf16.msra.mxu1 %v35082_v3  ;;  %31182 = vmatpush3.bf16.msra.mxu0 %v34925_v8 }
0x112a   :  { %28559 = vmatprep.mubr.f32.mxu0 %v35667_v54  ;;  %31236 = vmatprep.subr.bf16.mxu1 %v34980_v61 }
0x112b   :  { %31184 = vmatprep.subr.bf16.mxu0 %v34937_v42 }
0x112c   :  { %28626 = vmatmul.mubr.f32.vlgmr.msra.gmra.mrb[20].mxu1 %v35650_v12 }
0x112d   :  { %31238 = vmatpush3.bf16.msra.mxu1 %v34980_v61  ;;  %31186 = vmatpush3.bf16.msra.mxu0 %v34937_v42 }
0x112e   :  { %28636 = vmatprep.mubr.f32.mxu1 %v35653_v37  ;;  %31240 = vmatprep.subr.bf16.mxu1 %v35010_v62 }
0x112f   :  { %31188 = vmatprep.subr.bf16.mxu0 %v34768_v14 }
0x1130   :  { %28560 = vmatmul.mubr.f32.vlgmr.msra.gmra.mrb[10].mxu0 %v35663_v56 }
0x1131   :  { %31242 = vmatpush3.bf16.msra.mxu1 %v35010_v62  ;;  %31190 = vmatpush3.bf16.msra.mxu0 %v34768_v14 }
0x1132   :  { %28570 = vmatprep.mubr.f32.mxu0 %v35667_v54  ;;  %31192 = vmatprep.subr.bf16.mxu0 %v34820_v7 }
0x1133   :  { %31292 = vmatprep.subr.bf16.mxu1 %v34980_v61 }
0x1134   :  { %28637 = vmatmul.mubr.f32.vlgmr.msra.gmra.mrb[20].mxu1 %v35650_v12 }
0x1135   :  { %31194 = vmatpush3.bf16.msra.mxu0 %v34820_v7  ;;  %31294 = vmatpush3.bf16.msra.mxu1 %v34980_v61 }
0x1136   :  { %31296 = vmatprep.subr.bf16.mxu1 %v35010_v62  ;;  %31244 = vmatprep.subr.bf16.mxu0 %v34768_v14 }
0x1138   :  { %28571 = vmatmul.mubr.f32.vlgmr.msra.gmra.mrb[10].mxu0 %v35663_v56 }
0x1139   :  { %31298 = vmatpush3.bf16.msra.mxu1 %v35010_v62  ;;  %31246 = vmatpush3.bf16.msra.mxu0 %v34768_v14 }
0x113a   :  { %31300 = vmatprep.subr.bf16.mxu1 %v35016_v40  ;;  %31248 = vmatprep.subr.bf16.mxu0 %v34820_v7 }
0x113d   :  { %31250 = vmatpush3.bf16.msra.mxu0 %v34820_v7 }
0x113e   :  { %31252 = vmatprep.subr.bf16.mxu0 %v34828_v10 }
0x1207   :  { %v28638_v12 = vpop.f32.mrb[20].mxu1 }
0x1208   :  { %v32531_v52 = vadd.f32 %v35476_v17, %v28638_v12  ;;  %v9943_v37 = vpop.f32.mrb[21].mxu1 }
0x1209   :  { %v32532_v44 = vadd.f32 %v35476_v17, %v9943_v37 }
0x120a   :  { %33524 = vtanh.f32 %v32531_v52  ;;  %v25649_v35 = vmul.f32 -1.442695, %v32531_v52 }
0x120b   :  { %33526 = vtanh.f32 %v32532_v44  ;;  %v28572_v51 = vpop.f32.mrb[10].mxu0  ;;  %v25648_v45 = vmul.f32 -1.442695, %v32532_v44 }
0x120c   :  { %v32516_v56 = vadd.f32 %v32515_v19, %v28572_v51  ;;  %v9402_v57 = vpop.f32.mrb[11].mxu0 }
0x120d   :  { %v32518_v54 = vadd.f32 %v32517_v49, %v9402_v57 }
0x120e   :  { %33528 = vtanh.f32 %v32516_v56  ;;  %v25647_v29 = vmul.f32 -1.442695, %v32516_v56 }
0x120f   :  { %33530 = vtanh.f32 %v32518_v54  ;;  %v25646_v63 = vmul.f32 -1.442695, %v32518_v54 }
0x1210   :  { %33532 = vpow2.f32 %v25649_v35 }
0x1211   :  { %33534 = vpow2.f32 %v25648_v45 }
0x1212   :  { %33536 = vpow2.f32 %v25647_v29 }
0x1213   :  { %33538 = vpow2.f32 %v25646_v63 }
0x1214   :  { %v33525_v28 = vpop.eup %33524 }
0x1215   :  { %v33527_v9 = vpop.eup %33526  ;;  %10023 = vrot.lane.b32.xlu1 %v33525_v28, %s33968_s14 }
0x1216   :  { %10021 = vrot.lane.b32.xlu0 %v33527_v9, %s33968_s14 }
0x1218   :  { %v33529_v17 = vpop.eup %33528 }
0x1219   :  { %v33531_v58 = vpop.eup %33530  ;;  %9975 = vrot.lane.b32.xlu1 %v33529_v17, %s33968_s14 }
0x121a   :  { %9973 = vrot.lane.b32.xlu0 %v33531_v58, %s33968_s14  ;;  %v33533_v50 = vpop.eup %33532 }
0x121b   :  { %v33535_v46 = vpop.eup %33534  ;;  %v10010_v11 = vadd.f32 1.0, %v33533_v50 }
0x121c   :  { %v33537_v36 = vpop.eup %33536  ;;  %v10009_v53 = vadd.f32 1.0, %v33535_v46 }
0x121d   :  { %v33539_v47 = vpop.eup %33538  ;;  %33540 = vrcp.f32 %v10010_v11  ;;  %v9962_v0 = vadd.f32 1.0, %v33537_v36 }
0x121e   :  { %33542 = vrcp.f32 %v10009_v53  ;;  %v9961_v43 = vadd.f32 1.0, %v33539_v47 }
0x121f   :  { %33544 = vrcp.f32 %v9962_v0 }
0x1220   :  { %33546 = vrcp.f32 %v9961_v43 }
0x1227   :  { %v33541_v38 = vpop.eup %33540 }
0x1228   :  { %v33543_v52 = vpop.eup %33542  ;;  %v10018_v9 = vmul.f32 %v33541_v38, %v35621_v23 }
0x1229   :  { %v33545_v49 = vpop.eup %33544  ;;  %v10017_v58 = vmul.f32 %v33543_v52, %v35623_v13 }
0x122a   :  { %v33547_v56 = vpop.eup %33546  ;;  %v9970_v63 = vmul.f32 %v33545_v49, %v35629_v33 }
0x122b   :  { %v9969_v46 = vmul.f32 %v33547_v56, %v35631_v16 }
0x1287   :  { %v10024_v12 = vpop.permute.xlu1 %10023 }
0x1288   :  { %v10028_v37 = vmul.f32 %v33541_v38, %v10024_v12  ;;  %v10022_v44 = vpop.permute.xlu0 %10021 }
0x1289   :  { %v10027_v19 = vmul.f32 %v33543_v52, %v10022_v44 }
0x128a   :  { %10033 = vrot.lane.b32.xlu1 %v10028_v37, %s33969_s15 }
0x128b   :  { %v9976_v51 = vpop.permute.xlu1 %9975  ;;  %10031 = vrot.lane.b32.xlu0 %v10027_v19, %s33969_s15 }
0x128c   :  { %v9980_v57 = vmul.f32 %v33545_v49, %v9976_v51  ;;  %v9974_v54 = vpop.permute.xlu0 %9973 }
0x128d   :  { %v9979_v28 = vmul.f32 %v33547_v56, %v9974_v54 }
0x128e   :  { %9985 = vrot.lane.b32.xlu1 %v9980_v57, %s33969_s15 }
0x128f   :  { %9983 = vrot.lane.b32.xlu0 %v9979_v28, %s33969_s15 }
0x12fc   :  { %v10034_v17 = vpop.permute.xlu1 %10033 }
0x12fd   :  { %v35747_v35 = vadd.f32 %v10034_v17, %v10018_v9  ;;  %v10032_v45 = vpop.permute.xlu0 %10031 }
0x12fe   :  { %v35749_v29 = vadd.f32 %v10032_v45, %v10017_v58 }
0x12ff   :  { %33548 = vtanh.f32 %v35747_v35 }
0x1300   :  { %33550 = vtanh.f32 %v35749_v29  ;;  %v9986_v50 = vpop.permute.xlu1 %9985 }
0x1301   :  { %v35755_v11 = vadd.f32 %v9986_v50, %v9970_v63  ;;  %v9984_v23 = vpop.permute.xlu0 %9983 }
0x1302   :  { %v35757_v36 = vadd.f32 %v9984_v23, %v9969_v46 }
0x1303   :  { %33552 = vtanh.f32 %v35755_v11 }
0x1304   :  { %33554 = vtanh.f32 %v35757_v36 }
0x1309   :  { %v33549_v13 = vpop.eup %33548 }
0x130a   :  { %v33551_v53 = vpop.eup %33550  ;;  %10045 = vrot.lane.b32.xlu1 %v33549_v13, %s33968_s14 }
0x130b   :  { %10043 = vrot.lane.b32.xlu0 %v33551_v53, %s33968_s14 }
0x130d   :  { %v33553_v33 = vpop.eup %33552 }
0x130e   :  { %v33555_v47 = vpop.eup %33554  ;;  %9997 = vrot.lane.b32.xlu1 %v33553_v33, %s33968_s14 }
0x130f   :  { %9995 = vrot.lane.b32.xlu0 %v33555_v47, %s33968_s14 }
0x137c   :  { %v10046_v16 = vpop.permute.xlu1 %10045 }
0x137d   :  { %v35765_v0 = vmul.f32 %v33541_v38, %v10046_v16  ;;  %v10044_v43 = vpop.permute.xlu0 %10043 }
0x137e   :  { %v35767_v12 = vmul.f32 %v33543_v52, %v10044_v43 }
0x137f   :  { %10613 = vrot.lane.b32.xlu1 %v35765_v0, %s33969_s15 }
0x1380   :  { %v9998_v37 = vpop.permute.xlu1 %9997  ;;  %10611 = vrot.lane.b32.xlu0 %v35767_v12, %s33969_s15 }
0x1381   :  { %v10002_v44 = vmul.f32 %v33545_v49, %v9998_v37  ;;  %v9996_v19 = vpop.permute.xlu0 %9995 }
0x1382   :  { %v10001_v51 = vmul.f32 %v33547_v56, %v9996_v19 }
0x1383   :  { %10055 = vrot.lane.b32.xlu1 %v10002_v44, %s33969_s15 }
0x1384   :  { %10053 = vrot.lane.b32.xlu0 %v10001_v51, %s33969_s15 }
0x13f1   :  { %v10614_v57 = vpop.permute.xlu1 %10613 }
0x13f2   :  { %v10617_v38 = vsel %vm503_vm0, %v10614_v57, 0  ;;  %v10612_v54 = vpop.permute.xlu0 %10611 }
0x13f3   :  { %v35776_v52 = vand.u32 4294901760, %v10617_v38  ;;  %v10615_v28 = vsel %vm503_vm0, %v10612_v54, 0 }
0x13f4   :  { %v35779_v9 = vand.u32 4294901760, %v10615_v28 }
0x13f5   :  { %v10699_v17 = vsub.f32 %v10617_v38, %v35776_v52  ;;  %v35782_v58 = vpop.permute.xlu1 %10055 }
0x13f6   :  { %v10689_v49 = vsub.f32 %v10615_v28, %v35779_v9  ;;  %v10076_v56 = vsel %vm503_vm0, %v35782_v58, 0  ;;  %v35787_v45 = vpop.permute.xlu0 %10053  ;;  %v35860_v28 = vld [vmem:[%s38191_s5 + $0x1] ss:$0 sm:$0xff] }
0x13f7   :  { %v10700_v63 = vand.u32 4294901760, %v10699_v17  ;;  %v35789_v50 = vand.u32 4294901760, %v10076_v56  ;;  %v10074_v46 = vsel %vm503_vm0, %v35787_v45, 0 }
0x13f8   :  { %v35793_v23 = vand.u32 4294901760, %v10074_v46  ;;  %v10690_v13 = vand.u32 4294901760, %v10689_v49 }
0x13f9   :  { %v10701_v53 = vsub.f32 %v10699_v17, %v10700_v63  ;;  %v10158_v33 = vsub.f32 %v10076_v56, %v35789_v50  ;;  %v35867_v56 = vld [vmem:[%s38191_s5] ss:$0 sm:$0xff] }
0x13fa   :  { %v10148_v47 = vsub.f32 %v10074_v46, %v35793_v23  ;;  %v10691_v16 = vsub.f32 %v10689_v49, %v10690_v13 }
0x13fb   :  { %v10159_v43 = vand.u32 4294901760, %v10158_v33  ;;  %v10702_v19 = vand.u32 4294901760, %v10701_v53 }
0x13fc   :  { %v10692_v37 = vand.u32 4294901760, %v10691_v16  ;;  %v10149_v44 = vand.u32 4294901760, %v10148_v47 }
0x13fd   :  { %v10160_v51 = vsub.f32 %v10158_v33, %v10159_v43 }
0x13fe   :  { %28713 = vmatprep.mubr.f32.mxu1 %v10692_v37  ;;  %v10150_v57 = vsub.f32 %v10148_v47, %v10149_v44 }
0x13ff   :  { %28714 = vmatmul.mubr.f32.vlgmr.msra.gmra.mrb[18].mxu1 %v10702_v19  ;;  %v10161_v54 = vand.u32 4294901760, %v10160_v51 }
0x1400   :  { %31302 = vmatpush3.bf16.msra.mxu1 %v35016_v40  ;;  %28724 = vmatprep.mubr.f32.mxu1 %v35779_v9  ;;  %v10151_v38 = vand.u32 4294901760, %v10150_v57 }
0x1401   :  { %31304 = vmatprep.subr.bf16.mxu1 %v35034_v32 }
0x1402   :  { %28647 = vmatprep.mubr.f32.mxu0 %v10151_v38 }
0x1403   :  { %28648 = vmatmul.mubr.f32.vlgmr.msra.gmra.mrb[12].mxu0 %v10161_v54 }
0x1404   :  { %31306 = vmatpush3.bf16.msra.mxu1 %v35034_v32  ;;  %31254 = vmatpush3.bf16.msra.mxu0 %v34828_v10 }
0x1405   :  { %28658 = vmatprep.mubr.f32.mxu0 %v35793_v23  ;;  %31308 = vmatprep.subr.bf16.mxu1 %v35046_v1 }
0x1406   :  { %31256 = vmatprep.subr.bf16.mxu0 %v34877_v34 }
0x1407   :  { %28725 = vmatmul.mubr.f32.vlgmr.msra.gmra.mrb[18].mxu1 %v35776_v52 }
0x1408   :  { %31310 = vmatpush3.bf16.msra.mxu1 %v35046_v1  ;;  %31258 = vmatpush3.bf16.msra.mxu0 %v34877_v34 }
0x1409   :  { %28735 = vmatprep.mubr.f32.mxu1 %v10689_v49  ;;  %31312 = vmatprep.subr.bf16.mxu1 %v35054_v24 }
0x140a   :  { %31260 = vmatprep.subr.bf16.mxu0 %v34891_v59 }
0x140b   :  { %28659 = vmatmul.mubr.f32.vlgmr.msra.gmra.mrb[12].mxu0 %v35789_v50 }
0x140c   :  { %31314 = vmatpush3.bf16.msra.mxu1 %v35054_v24  ;;  %31262 = vmatpush3.bf16.msra.mxu0 %v34891_v59 }
0x140d   :  { %28669 = vmatprep.mubr.f32.mxu0 %v10148_v47  ;;  %31316 = vmatprep.subr.bf16.mxu1 %v34980_v61 }
0x140e   :  { %31264 = vmatprep.subr.bf16.mxu0 %v34903_v39 }
0x140f   :  { %28736 = vmatmul.mubr.f32.vlgmr.msra.gmra.mrb[18].mxu1 %v10699_v17 }
0x1410   :  { %31318 = vmatpush3.bf16.msra.mxu1 %v34980_v61  ;;  %31266 = vmatpush3.bf16.msra.mxu0 %v34903_v39 }
0x1411   :  { %28746 = vmatprep.mubr.f32.mxu1 %v10690_v13  ;;  %31320 = vmatprep.subr.bf16.mxu1 %v35010_v62 }
0x1412   :  { %31268 = vmatprep.subr.bf16.mxu0 %v34768_v14 }
0x1413   :  { %28670 = vmatmul.mubr.f32.vlgmr.msra.gmra.mrb[12].mxu0 %v10158_v33 }
0x1414   :  { %31322 = vmatpush3.bf16.msra.mxu1 %v35010_v62  ;;  %31270 = vmatpush3.bf16.msra.mxu0 %v34768_v14 }
0x1415   :  { %28680 = vmatprep.mubr.f32.mxu0 %v10149_v44  ;;  %31324 = vmatprep.subr.bf16.mxu1 %v35078_v2 }
0x1416   :  { %31272 = vmatprep.subr.bf16.mxu0 %v34820_v7 }
0x1417   :  { %28747 = vmatmul.mubr.f32.vlgmr.msra.gmra.mrb[18].mxu1 %v10700_v63  ;;  %v32519_v63 = vadd.f32 %v35867_v56, %v35056_v31 }
0x1418   :  { %31326 = vmatpush3.bf16.msra.mxu1 %v35078_v2  ;;  %31274 = vmatpush3.bf16.msra.mxu0 %v34820_v7 }
0x1419   :  { %28757 = vmatprep.mubr.f32.mxu1 %v35779_v9  ;;  %31328 = vmatprep.subr.bf16.mxu1 %v35082_v3 }
0x141a   :  { %31276 = vmatprep.subr.bf16.mxu0 %v34925_v8 }
0x141b   :  { %28681 = vmatmul.mubr.f32.vlgmr.msra.gmra.mrb[12].mxu0 %v10159_v43 }
0x141c   :  { %31330 = vmatpush3.bf16.msra.mxu1 %v35082_v3  ;;  %31278 = vmatpush3.bf16.msra.mxu0 %v34925_v8 }
0x141d   :  { %28691 = vmatprep.mubr.f32.mxu0 %v35793_v23  ;;  %31332 = vmatprep.subr.bf16.mxu1 %v34980_v61 }
0x141e   :  { %31280 = vmatprep.subr.bf16.mxu0 %v34937_v42 }
0x141f   :  { %28758 = vmatmul.mubr.f32.vlgmr.msra.gmra.mrb[18].mxu1 %v35776_v52 }
0x1420   :  { %31334 = vmatpush3.bf16.msra.mxu1 %v34980_v61  ;;  %31282 = vmatpush3.bf16.msra.mxu0 %v34937_v42 }
0x1421   :  { %28768 = vmatprep.mubr.f32.mxu1 %v35779_v9  ;;  %31336 = vmatprep.subr.bf16.mxu1 %v35010_v62 }
0x1422   :  { %31284 = vmatprep.subr.bf16.mxu0 %v34768_v14 }
0x1423   :  { %28692 = vmatmul.mubr.f32.vlgmr.msra.gmra.mrb[12].mxu0 %v35789_v50 }
0x1424   :  { %31338 = vmatpush3.bf16.msra.mxu1 %v35010_v62  ;;  %31286 = vmatpush3.bf16.msra.mxu0 %v34768_v14 }
0x1425   :  { %28702 = vmatprep.mubr.f32.mxu0 %v35793_v23  ;;  %31288 = vmatprep.subr.bf16.mxu0 %v34820_v7 }
0x1426   :  { %31388 = vmatprep.subr.bf16.mxu1 %v34980_v61 }
0x1427   :  { %28769 = vmatmul.mubr.f32.vlgmr.msra.gmra.mrb[18].mxu1 %v35776_v52 }
0x1428   :  { %31290 = vmatpush3.bf16.msra.mxu0 %v34820_v7  ;;  %31390 = vmatpush3.bf16.msra.mxu1 %v34980_v61 }
0x1429   :  { %31392 = vmatprep.subr.bf16.mxu1 %v35010_v62  ;;  %31340 = vmatprep.subr.bf16.mxu0 %v34768_v14 }
0x142b   :  { %28703 = vmatmul.mubr.f32.vlgmr.msra.gmra.mrb[12].mxu0 %v35789_v50  ;;  %v32521_v50 = vadd.f32 %v35867_v56, %v35058_v21 }
0x142c   :  { %31394 = vmatpush3.bf16.msra.mxu1 %v35010_v62  ;;  %31342 = vmatpush3.bf16.msra.mxu0 %v34768_v14 }
0x142d   :  { %31396 = vmatprep.subr.bf16.mxu1 %v35016_v40  ;;  %31344 = vmatprep.subr.bf16.mxu0 %v34820_v7 }
0x1430   :  { %31346 = vmatpush3.bf16.msra.mxu0 %v34820_v7 }
0x1431   :  { %31348 = vmatprep.subr.bf16.mxu0 %v34828_v10 }
0x14fa   :  { %v28770_v52 = vpop.f32.mrb[18].mxu1 }
0x14fb   :  { %v32529_v9 = vadd.f32 %v35860_v28, %v28770_v52  ;;  %v11137_v17 = vpop.f32.mrb[19].mxu1 }
0x14fc   :  { %v32530_v49 = vadd.f32 %v35860_v28, %v11137_v17 }
0x14fd   :  { %33556 = vtanh.f32 %v32529_v9  ;;  %v25653_v31 = vmul.f32 -1.442695, %v32529_v9 }
0x14fe   :  { %33558 = vtanh.f32 %v32530_v49  ;;  %v28704_v46 = vpop.f32.mrb[12].mxu0  ;;  %v25652_v21 = vmul.f32 -1.442695, %v32530_v49 }
0x14ff   :  { %v32520_v23 = vadd.f32 %v32519_v63, %v28704_v46  ;;  %v10596_v13 = vpop.f32.mrb[13].mxu0 }
0x1500   :  { %v32522_v53 = vadd.f32 %v32521_v50, %v10596_v13 }
0x1501   :  { %33560 = vtanh.f32 %v32520_v23  ;;  %v25651_v37 = vmul.f32 -1.442695, %v32520_v23 }
0x1502   :  { %33562 = vtanh.f32 %v32522_v53  ;;  %v25650_v44 = vmul.f32 -1.442695, %v32522_v53 }
0x1503   :  { %33564 = vpow2.f32 %v25653_v31 }
0x1504   :  { %33566 = vpow2.f32 %v25652_v21 }
0x1505   :  { %33568 = vpow2.f32 %v25651_v37 }
0x1506   :  { %33570 = vpow2.f32 %v25650_v44 }
0x1507   :  { %v33557_v33 = vpop.eup %33556 }
0x1508   :  { %v33559_v47 = vpop.eup %33558  ;;  %11217 = vrot.lane.b32.xlu1 %v33557_v33, %s33968_s14 }
0x1509   :  { %11215 = vrot.lane.b32.xlu0 %v33559_v47, %s33968_s14 }
0x150b   :  { %v33561_v16 = vpop.eup %33560 }
0x150c   :  { %v33563_v43 = vpop.eup %33562  ;;  %11169 = vrot.lane.b32.xlu1 %v33561_v16, %s33968_s14 }
0x150d   :  { %11167 = vrot.lane.b32.xlu0 %v33563_v43, %s33968_s14  ;;  %v33565_v19 = vpop.eup %33564 }
0x150e   :  { %v33567_v51 = vpop.eup %33566  ;;  %v11204_v57 = vadd.f32 1.0, %v33565_v19 }
0x150f   :  { %v33569_v38 = vpop.eup %33568  ;;  %v11203_v54 = vadd.f32 1.0, %v33567_v51 }
0x1510   :  { %v33571_v52 = vpop.eup %33570  ;;  %33572 = vrcp.f32 %v11204_v57  ;;  %v11156_v17 = vadd.f32 1.0, %v33569_v38 }
0x1511   :  { %33574 = vrcp.f32 %v11203_v54  ;;  %v11155_v63 = vadd.f32 1.0, %v33571_v52 }
0x1512   :  { %33576 = vrcp.f32 %v11156_v17 }
0x1513   :  { %33578 = vrcp.f32 %v11155_v63 }
0x151a   :  { %v33573_v9 = vpop.eup %33572 }
0x151b   :  { %v33575_v50 = vpop.eup %33574  ;;  %v11212_v21 = vmul.f32 %v33573_v9, %v35747_v35 }
0x151c   :  { %v33577_v53 = vpop.eup %33576  ;;  %v11211_v44 = vmul.f32 %v33575_v50, %v35749_v29 }
0x151d   :  { %v33579_v47 = vpop.eup %33578  ;;  %v11164_v38 = vmul.f32 %v33577_v53, %v35755_v11 }
0x151e   :  { %v11163_v52 = vmul.f32 %v33579_v47, %v35757_v36 }
0x157a   :  { %v11218_v49 = vpop.permute.xlu1 %11217 }
0x157b   :  { %v11222_v46 = vmul.f32 %v33573_v9, %v11218_v49  ;;  %v11216_v23 = vpop.permute.xlu0 %11215 }
0x157c   :  { %v11221_v13 = vmul.f32 %v33575_v50, %v11216_v23 }
0x157d   :  { %11227 = vrot.lane.b32.xlu1 %v11222_v46, %s33969_s15 }
0x157e   :  { %v11170_v33 = vpop.permute.xlu1 %11169  ;;  %11225 = vrot.lane.b32.xlu0 %v11221_v13, %s33969_s15 }
0x157f   :  { %v11174_v16 = vmul.f32 %v33577_v53, %v11170_v33  ;;  %v11168_v43 = vpop.permute.xlu0 %11167 }
0x1580   :  { %v11173_v31 = vmul.f32 %v33579_v47, %v11168_v43 }
0x1581   :  { %11179 = vrot.lane.b32.xlu1 %v11174_v16, %s33969_s15 }
0x1582   :  { %11177 = vrot.lane.b32.xlu0 %v11173_v31, %s33969_s15 }
0x15ef   :  { %v11228_v37 = vpop.permute.xlu1 %11227 }
0x15f0   :  { %v35883_v19 = vadd.f32 %v11228_v37, %v11212_v21  ;;  %v11226_v51 = vpop.permute.xlu0 %11225 }
0x15f1   :  { %v35885_v57 = vadd.f32 %v11226_v51, %v11211_v44 }
0x15f2   :  { %33580 = vtanh.f32 %v35883_v19 }
0x15f3   :  { %33582 = vtanh.f32 %v35885_v57  ;;  %v11180_v54 = vpop.permute.xlu1 %11179 }
0x15f4   :  { %v35891_v17 = vadd.f32 %v11180_v54, %v11164_v38  ;;  %v11178_v35 = vpop.permute.xlu0 %11177 }
0x15f5   :  { %v35893_v63 = vadd.f32 %v11178_v35, %v11163_v52 }
0x15f6   :  { %33584 = vtanh.f32 %v35891_v17 }
0x15f7   :  { %33586 = vtanh.f32 %v35893_v63 }
0x15fc   :  { %v33581_v29 = vpop.eup %33580 }
0x15fd   :  { %v33583_v49 = vpop.eup %33582  ;;  %11239 = vrot.lane.b32.xlu1 %v33581_v29, %s33968_s14 }
0x15fe   :  { %11237 = vrot.lane.b32.xlu0 %v33583_v49, %s33968_s14 }
0x1600   :  { %v33585_v11 = vpop.eup %33584 }
0x1601   :  { %v33587_v46 = vpop.eup %33586  ;;  %11191 = vrot.lane.b32.xlu1 %v33585_v11, %s33968_s14 }
0x1602   :  { %11189 = vrot.lane.b32.xlu0 %v33587_v46, %s33968_s14 }
0x166f   :  { %v11240_v36 = vpop.permute.xlu1 %11239 }
0x1670   :  { %v35901_v23 = vmul.f32 %v33573_v9, %v11240_v36  ;;  %v11238_v13 = vpop.permute.xlu0 %11237 }
0x1671   :  { %v35903_v33 = vmul.f32 %v33575_v50, %v11238_v13 }
0x1672   :  { %11806 = vrot.lane.b32.xlu1 %v35901_v23, %s33969_s15 }
0x1673   :  { %v11192_v16 = vpop.permute.xlu1 %11191  ;;  %11804 = vrot.lane.b32.xlu0 %v35903_v33, %s33969_s15 }
0x1674   :  { %v11196_v43 = vmul.f32 %v33577_v53, %v11192_v16  ;;  %v11190_v31 = vpop.permute.xlu0 %11189 }
0x1675   :  { %v11195_v21 = vmul.f32 %v33579_v47, %v11190_v31 }
0x1676   :  { %11249 = vrot.lane.b32.xlu1 %v11196_v43, %s33969_s15 }
0x1677   :  { %11247 = vrot.lane.b32.xlu0 %v11195_v21, %s33969_s15 }
0x16e4   :  { %v11807_v37 = vpop.permute.xlu1 %11806 }
0x16e5   :  { %v11810_v9 = vsel %vm503_vm0, %v11807_v37, 0  ;;  %v11805_v44 = vpop.permute.xlu0 %11804 }
0x16e6   :  { %v35912_v50 = vand.u32 4294901760, %v11810_v9  ;;  %v11808_v51 = vsel %vm503_vm0, %v11805_v44, 0 }
0x16e7   :  { %v35915_v38 = vand.u32 4294901760, %v11808_v51 }
0x16e8   :  { %v11892_v54 = vsub.f32 %v11810_v9, %v35912_v50  ;;  %v35918_v52 = vpop.permute.xlu1 %11249 }
0x16e9   :  { %38322 = vst [vmem:[#allocation26_spill] sm:$0xff] %v35918_v52  ;;  %v11882_v53 = vsub.f32 %v11808_v51, %v35915_v38  ;;  %v11270_v47 = vsel %vm503_vm0, %v35918_v52, 0  ;;  %v35923_v35 = vpop.permute.xlu0 %11247 }
0x16ea   :  { %38323 = vst [vmem:[#allocation24_spill] sm:$0xff] %v35923_v35  ;;  %v11893_v29 = vand.u32 4294901760, %v11892_v54  ;;  %v35925_v49 = vand.u32 4294901760, %v11270_v47  ;;  %v11268_v11 = vsel %vm503_vm0, %v35923_v35, 0 }
0x16eb   :  { %v35929_v46 = vand.u32 4294901760, %v11268_v11  ;;  %v11883_v36 = vand.u32 4294901760, %v11882_v53 }
0x16ec   :  { %v11894_v13 = vsub.f32 %v11892_v54, %v11893_v29  ;;  %v11352_v16 = vsub.f32 %v11270_v47, %v35925_v49 }
0x16ed   :  { %v11342_v43 = vsub.f32 %v11268_v11, %v35929_v46  ;;  %v11884_v31 = vsub.f32 %v11882_v53, %v11883_v36 }
0x16ee   :  { %v11353_v21 = vand.u32 4294901760, %v11352_v16  ;;  %v11895_v44 = vand.u32 4294901760, %v11894_v13 }
0x16ef   :  { %v11885_v37 = vand.u32 4294901760, %v11884_v31  ;;  %v11343_v9 = vand.u32 4294901760, %v11342_v43 }
0x16f0   :  { %v11354_v51 = vsub.f32 %v11352_v16, %v11353_v21 }
0x16f1   :  { %28845 = vmatprep.mubr.f32.mxu1 %v11885_v37  ;;  %v11344_v18 = vsub.f32 %v11342_v43, %v11343_v9 }
0x16f2   :  { %28846 = vmatmul.mubr.f32.vlgmr.msra.gmra.mrb[16].mxu1 %v11895_v44  ;;  %v11355_v52 = vand.u32 4294901760, %v11354_v51 }
0x16f3   :  { %31398 = vmatpush3.bf16.msra.mxu1 %v35016_v40  ;;  %28856 = vmatprep.mubr.f32.mxu1 %v35915_v38  ;;  %v11345_v35 = vand.u32 4294901760, %v11344_v18 }
0x16f4   :  { %31400 = vmatprep.subr.bf16.mxu1 %v35034_v32 }
0x16f5   :  { %28779 = vmatprep.mubr.f32.mxu0 %v11345_v35 }
0x16f6   :  { %28780 = vmatmul.mubr.f32.vlgmr.msra.gmra.mrb[14].mxu0 %v11355_v52 }
0x16f7   :  { %31402 = vmatpush3.bf16.msra.mxu1 %v35034_v32  ;;  %31350 = vmatpush3.bf16.msra.mxu0 %v34828_v10 }
0x16f8   :  { %28790 = vmatprep.mubr.f32.mxu0 %v35929_v46  ;;  %31404 = vmatprep.subr.bf16.mxu1 %v35046_v1 }
0x16f9   :  { %31352 = vmatprep.subr.bf16.mxu0 %v34877_v34 }
0x16fa   :  { %28857 = vmatmul.mubr.f32.vlgmr.msra.gmra.mrb[16].mxu1 %v35912_v50 }
0x16fb   :  { %31406 = vmatpush3.bf16.msra.mxu1 %v35046_v1  ;;  %31354 = vmatpush3.bf16.msra.mxu0 %v34877_v34 }
0x16fc   :  { %28867 = vmatprep.mubr.f32.mxu1 %v11882_v53  ;;  %31408 = vmatprep.subr.bf16.mxu1 %v35054_v24 }
0x16fd   :  { %31356 = vmatprep.subr.bf16.mxu0 %v34891_v59 }
0x16fe   :  { %28791 = vmatmul.mubr.f32.vlgmr.msra.gmra.mrb[14].mxu0 %v35925_v49 }
0x16ff   :  { %31410 = vmatpush3.bf16.msra.mxu1 %v35054_v24  ;;  %31358 = vmatpush3.bf16.msra.mxu0 %v34891_v59 }
0x1700   :  { %28801 = vmatprep.mubr.f32.mxu0 %v11342_v43  ;;  %31412 = vmatprep.subr.bf16.mxu1 %v34980_v61 }
0x1701   :  { %31360 = vmatprep.subr.bf16.mxu0 %v34903_v39 }
0x1702   :  { %28868 = vmatmul.mubr.f32.vlgmr.msra.gmra.mrb[16].mxu1 %v11892_v54 }
0x1703   :  { %31414 = vmatpush3.bf16.msra.mxu1 %v34980_v61  ;;  %31362 = vmatpush3.bf16.msra.mxu0 %v34903_v39  ;;  %v32523_v39 = vadd.f32 %v35867_v56, %v35064_v41 }
0x1704   :  { %28878 = vmatprep.mubr.f32.mxu1 %v11883_v36  ;;  %31416 = vmatprep.subr.bf16.mxu1 %v35010_v62 }
0x1705   :  { %31364 = vmatprep.subr.bf16.mxu0 %v34768_v14 }
0x1706   :  { %28802 = vmatmul.mubr.f32.vlgmr.msra.gmra.mrb[14].mxu0 %v11352_v16 }
0x1707   :  { %31418 = vmatpush3.bf16.msra.mxu1 %v35010_v62  ;;  %31366 = vmatpush3.bf16.msra.mxu0 %v34768_v14 }
0x1708   :  { %28812 = vmatprep.mubr.f32.mxu0 %v11343_v9  ;;  %31420 = vmatprep.subr.bf16.mxu1 %v35078_v2 }
0x1709   :  { %31368 = vmatprep.subr.bf16.mxu0 %v34820_v7 }
0x170a   :  { %28879 = vmatmul.mubr.f32.vlgmr.msra.gmra.mrb[16].mxu1 %v11893_v29 }
0x170b   :  { %31422 = vmatpush3.bf16.msra.mxu1 %v35078_v2  ;;  %31370 = vmatpush3.bf16.msra.mxu0 %v34820_v7 }
0x170c   :  { %28889 = vmatprep.mubr.f32.mxu1 %v35915_v38  ;;  %31424 = vmatprep.subr.bf16.mxu1 %v35082_v3 }
0x170d   :  { %31372 = vmatprep.subr.bf16.mxu0 %v34925_v8 }
0x170e   :  { %28813 = vmatmul.mubr.f32.vlgmr.msra.gmra.mrb[14].mxu0 %v11353_v21 }
0x170f   :  { %31426 = vmatpush3.bf16.msra.mxu1 %v35082_v3  ;;  %31374 = vmatpush3.bf16.msra.mxu0 %v34925_v8 }
0x1710   :  { %28823 = vmatprep.mubr.f32.mxu0 %v35929_v46  ;;  %31428 = vmatprep.subr.bf16.mxu1 %v34980_v61 }
0x1711   :  { %31376 = vmatprep.subr.bf16.mxu0 %v34937_v42 }
0x1712   :  { %28890 = vmatmul.mubr.f32.vlgmr.msra.gmra.mrb[16].mxu1 %v35912_v50 }
0x1713   :  { %31430 = vmatpush3.bf16.msra.mxu1 %v34980_v61  ;;  %31378 = vmatpush3.bf16.msra.mxu0 %v34937_v42 }
0x1714   :  { %28900 = vmatprep.mubr.f32.mxu1 %v35915_v38  ;;  %31432 = vmatprep.subr.bf16.mxu1 %v35010_v62 }
0x1715   :  { %31380 = vmatprep.subr.bf16.mxu0 %v34768_v14 }
0x1716   :  { %28824 = vmatmul.mubr.f32.vlgmr.msra.gmra.mrb[14].mxu0 %v35925_v49 }
0x1717   :  { %31434 = vmatpush3.bf16.msra.mxu1 %v35010_v62  ;;  %31382 = vmatpush3.bf16.msra.mxu0 %v34768_v14  ;;  %v32525_v14 = vadd.f32 %v35867_v56, %v35066_v22 }
0x1718   :  { %28834 = vmatprep.mubr.f32.mxu0 %v35929_v46  ;;  %31384 = vmatprep.subr.bf16.mxu0 %v34820_v7 }
0x171a   :  { %28901 = vmatmul.mubr.f32.vlgmr.msra.gmra.mrb[16].mxu1 %v35912_v50 }
0x171b   :  { %31386 = vmatpush3.bf16.msra.mxu0 %v34820_v7 }
0x171e   :  { %28835 = vmatmul.mubr.f32.vlgmr.msra.gmra.mrb[14].mxu0 %v35925_v49 }
0x17ed   :  { %v28902_v10 = vpop.f32.mrb[16].mxu1 }
0x17ee   :  { %v32527_v18 = vadd.f32 %v35860_v28, %v28902_v10  ;;  %v12330_v34 = vpop.f32.mrb[17].mxu1 }
0x17ef   :  { %v32528_v59 = vadd.f32 %v35860_v28, %v12330_v34 }
0x17f0   :  { %33588 = vtanh.f32 %v32527_v18  ;;  %v25657_v24 = vmul.f32 -1.442695, %v32527_v18 }
0x17f1   :  { %33590 = vtanh.f32 %v32528_v59  ;;  %v28836_v8 = vpop.f32.mrb[14].mxu0  ;;  %v25656_v41 = vmul.f32 -1.442695, %v32528_v59 }
0x17f2   :  { %v32524_v42 = vadd.f32 %v32523_v39, %v28836_v8  ;;  %v11790_v61 = vpop.f32.mrb[15].mxu0 }
0x17f3   :  { %v32526_v7 = vadd.f32 %v32525_v14, %v11790_v61 }
0x17f4   :  { %33592 = vtanh.f32 %v32524_v42  ;;  %v25655_v22 = vmul.f32 -1.442695, %v32524_v42 }
0x17f5   :  { %33594 = vtanh.f32 %v32526_v7  ;;  %v25654_v2 = vmul.f32 -1.442695, %v32526_v7 }
0x17f6   :  { %33596 = vpow2.f32 %v25657_v24 }
0x17f7   :  { %33598 = vpow2.f32 %v25656_v41 }
0x17f8   :  { %33600 = vpow2.f32 %v25655_v22  ;;  %v36064_v22 = vld [vmem:[%s38189_s3 + $0xd0] sm:$0xff] }
0x17f9   :  { %33602 = vpow2.f32 %v25654_v2  ;;  %v36069_v2 = vld [vmem:[%s38189_s3 + $0xd8] sm:$0xff] }
0x17fa   :  { %v33589_v62 = vpop.eup %33588 }
0x17fb   :  { %v33591_v40 = vpop.eup %33590  ;;  %12410 = vrot.lane.b32.xlu1 %v33589_v62, %s33968_s14  ;;  %v36038_v62 = vld [vmem:[%s38189_s3 + $0x80] sm:$0xff] }
0x17fc   :  { %12408 = vrot.lane.b32.xlu0 %v33591_v40, %s33968_s14 }
0x17fe   :  { %v33593_v32 = vpop.eup %33592 }
0x17ff   :  { %v33595_v1 = vpop.eup %33594  ;;  %12362 = vrot.lane.b32.xlu1 %v33593_v32, %s33968_s14  ;;  %v12541_v32 = vand.u32 4294901760, %v36038_v62 }
0x1800   :  { %12360 = vrot.lane.b32.xlu0 %v33595_v1, %s33968_s14  ;;  %v33597_v3 = vpop.eup %33596 }
0x1801   :  { %v33599_v28 = vpop.eup %33598  ;;  %v12397_v56 = vadd.f32 1.0, %v33597_v3  ;;  %v36074_v3 = vld [vmem:[%s38189_s3 + $0x90] sm:$0xff] }
0x1802   :  { %v33601_v50 = vpop.eup %33600  ;;  %v12396_v38 = vadd.f32 1.0, %v33599_v28  ;;  %v13762_v28 = vand.u32 4294901760, %v36064_v22 }
0x1803   :  { %v33603_v54 = vpop.eup %33602  ;;  %33604 = vrcp.f32 %v12397_v56  ;;  %v12349_v52 = vadd.f32 1.0, %v33601_v50  ;;  %v13765_v56 = vand.u32 4294901760, %v36069_v2  ;;  %v36082_v50 = vld [vmem:[%s38189_s3 + $0x98] sm:$0xff] }
0x1804   :  { %33606 = vrcp.f32 %v12396_v38  ;;  %v12348_v53 = vadd.f32 1.0, %v33603_v54  ;;  %v12547_v38 = vand.u32 4294901760, %v36074_v3  ;;  %v12550_v54 = vand.u32 4294901760, %v36082_v50 }
0x1805   :  { %33608 = vrcp.f32 %v12349_v52  ;;  %v36093_v52 = vpack.c.bf16 %v13765_v56, %v13762_v28 }
0x1806   :  { %33610 = vrcp.f32 %v12348_v53  ;;  %v36099_v53 = vpack.c.bf16 %v12550_v54, %v12547_v38 }
0x180d   :  { %v35993_v47 = vpop.eup %33604 }
0x180e   :  { %v35995_v29 = vpop.eup %33606  ;;  %v12405_v37 = vmul.f32 %v35993_v47, %v35883_v19 }
0x180f   :  { %v36000_v36 = vpop.eup %33608  ;;  %v12404_v44 = vmul.f32 %v35995_v29, %v35885_v57 }
0x1810   :  { %v36003_v16 = vpop.eup %33610  ;;  %v12357_v34 = vmul.f32 %v36000_v36, %v35891_v17  ;;  %v36028_v17 = vld [vmem:[%s38189_s3 + $0xc0] sm:$0xff] }
0x1811   :  { %v12356_v39 = vmul.f32 %v36003_v16, %v35893_v63  ;;  %v36033_v63 = vld [vmem:[%s38189_s3 + $0xc8] sm:$0xff] }
0x1812   :  { %v13759_v40 = vand.u32 4294901760, %v36033_v63 }
0x186d   :  { %v12411_v35 = vpop.permute.xlu1 %12410 }
0x186e   :  { %v12415_v49 = vmul.f32 %v35993_v47, %v12411_v35  ;;  %v12409_v11 = vpop.permute.xlu0 %12408  ;;  %v36104_v35 = vld [vmem:[%s38189_s3 + $0xe0] sm:$0xff] }
0x186f   :  { %v12414_v46 = vmul.f32 %v35995_v29, %v12409_v11  ;;  %v36114_v11 = vld [vmem:[%s38189_s3 + $0xa0] sm:$0xff] }
0x1870   :  { %12420 = vrot.lane.b32.xlu1 %v12415_v49, %s33969_s15  ;;  %v36109_v49 = vld [vmem:[%s38189_s3 + $0xe8] sm:$0xff] }
0x1871   :  { %v12363_v13 = vpop.permute.xlu1 %12362  ;;  %12418 = vrot.lane.b32.xlu0 %v12414_v46, %s33969_s15 }
0x1872   :  { %v12367_v43 = vmul.f32 %v36000_v36, %v12363_v13  ;;  %v12361_v31 = vpop.permute.xlu0 %12360  ;;  %v13768_v13 = vand.u32 4294901760, %v36104_v35 }
0x1873   :  { %v12366_v21 = vmul.f32 %v36003_v16, %v12361_v31  ;;  %v36122_v31 = vld [vmem:[%s38189_s3 + $0xa8] sm:$0xff] }
0x1874   :  { %12372 = vrot.lane.b32.xlu1 %v12367_v43, %s33969_s15  ;;  %v13771_v43 = vand.u32 4294901760, %v36109_v49 }
0x1875   :  { %12370 = vrot.lane.b32.xlu0 %v12366_v21, %s33969_s15  ;;  %v12553_v21 = vand.u32 4294901760, %v36114_v11 }
0x18e2   :  { %v12421_v9 = vpop.permute.xlu1 %12420 }
0x18e3   :  { %v12425_v51 = vadd.f32 %v12421_v9, %v12405_v37  ;;  %v12419_v10 = vpop.permute.xlu0 %12418 }
0x18e4   :  { %v12424_v18 = vadd.f32 %v12419_v10, %v12404_v44  ;;  %v12556_v44 = vand.u32 4294901760, %v36122_v31  ;;  %v36135_v10 = vpack.c.bf16 %v13771_v43, %v13768_v13 }
0x18e5   :  { %33612 = vtanh.f32 %v12425_v51 }
0x18e6   :  { %33614 = vtanh.f32 %v12424_v18  ;;  %v12373_v59 = vpop.permute.xlu1 %12372  ;;  %v36152_v18 = vld [vmem:[%s38189_s3 + $0xf8] sm:$0xff] }
0x18e7   :  { %v12377_v14 = vadd.f32 %v12373_v59, %v12357_v34  ;;  %v12371_v8 = vpop.permute.xlu0 %12370  ;;  %v36157_v34 = vld [vmem:[%s38189_s3 + $0xb0] sm:$0xff] }
0x18e8   :  { %v12376_v42 = vadd.f32 %v12371_v8, %v12356_v39  ;;  %v36168_v8 = vld [vmem:[%s38189_s3 + $0xb8] sm:$0xff] }
0x18e9   :  { %33616 = vtanh.f32 %v12377_v14  ;;  %v13777_v14 = vand.u32 4294901760, %v36152_v18 }
0x18ea   :  { %33618 = vtanh.f32 %v12376_v42  ;;  %v12559_v42 = vand.u32 4294901760, %v36157_v34 }
0x18ef   :  { %v33613_v19 = vpop.eup %33612 }
0x18f0   :  { %v33615_v61 = vpop.eup %33614  ;;  %12432 = vrot.lane.b32.xlu1 %v33613_v19, %s33968_s14 }
0x18f1   :  { %12430 = vrot.lane.b32.xlu0 %v33615_v61, %s33968_s14  ;;  %v12562_v61 = vand.u32 4294901760, %v36168_v8 }
0x18f3   :  { %v33617_v57 = vpop.eup %33616 }
0x18f4   :  { %v33619_v7 = vpop.eup %33618  ;;  %12384 = vrot.lane.b32.xlu1 %v33617_v57, %s33968_s14 }
0x18f5   :  { %12382 = vrot.lane.b32.xlu0 %v33619_v7, %s33968_s14  ;;  %v36189_v7 = vpack.c.bf16 %v12562_v61, %v12559_v42 }
0x18f8   :  { %11259 = vrot.lane.b32.xlu1 %v35901_v23, %s33968_s14  ;;  %v13756_v23 = vand.u32 4294901760, %v36028_v17 }
0x18f9   :  { %11257 = vrot.lane.b32.xlu0 %v35903_v33, %s33968_s14  ;;  %v36045_v33 = vld [vmem:[%s38189_s3 + $0x88] sm:$0xff] }
0x18fa   :  { %v12544_v1 = vand.u32 4294901760, %v36045_v33  ;;  %v36053_v24 = vpack.c.bf16 %v13759_v40, %v13756_v23 }
0x18fc   :  { %v36059_v41 = vpack.c.bf16 %v12544_v1, %v12541_v32  ;;  %31532 = vmatprep.subr.bf16.mxu1 %v36053_v24 }
0x18fd   :  { %31534 = vmatpush3.bf16.msra.mxu1 %v36053_v24 }
0x18fe   :  { %31436 = vmatprep.subr.bf16.mxu0 %v36059_v41  ;;  %31536 = vmatprep.subr.bf16.mxu1 %v36093_v52 }
0x18ff   :  { %31438 = vmatpush3.bf16.msra.mxu0 %v36059_v41 }
0x1900   :  { %31440 = vmatprep.subr.bf16.mxu0 %v36099_v53 }
0x1901   :  { %31538 = vmatpush3.bf16.msra.mxu1 %v36093_v52 }
0x1902   :  { %31540 = vmatprep.subr.bf16.mxu1 %v36135_v10 }
0x1903   :  { %31442 = vmatpush3.bf16.msra.mxu0 %v36099_v53 }
0x1905   :  { %31542 = vmatpush3.bf16.msra.mxu1 %v36135_v10 }
0x1962   :  { %v12433_v46 = vpop.permute.xlu1 %12432 }
0x1963   :  { %v12437_v37 = vmul.f32 %v35993_v47, %v12433_v46  ;;  %v12431_v9 = vpop.permute.xlu0 %12430  ;;  %v36142_v47 = vpack.c.bf16 %v12556_v44, %v12553_v21 }
0x1964   :  { %v12436_v51 = vmul.f32 %v35995_v29, %v12431_v9  ;;  %v36147_v29 = vld [vmem:[%s38189_s3 + $0xf0] sm:$0xff] }
0x1965   :  { %12452 = vrot.lane.b32.xlu1 %v12437_v37, %s33968_s14  ;;  %v13774_v39 = vand.u32 4294901760, %v36147_v29  ;;  %31444 = vmatprep.subr.bf16.mxu0 %v36142_v47 }
0x1966   :  { %v36159_v59 = vpop.permute.xlu1 %12384  ;;  %12450 = vrot.lane.b32.xlu0 %v12436_v51, %s33968_s14  ;;  %31446 = vmatpush3.bf16.msra.mxu0 %v36142_v47 }
0x1967   :  { %v36171_v19 = vpop.permute.xlu0 %12382  ;;  %v36181_v57 = vpack.c.bf16 %v13777_v14, %v13774_v39  ;;  %31448 = vmatprep.subr.bf16.mxu0 %v36189_v7 }
0x1969   :  { %10065 = vrot.lane.b32.xlu1 %v35765_v0, %s33968_s14  ;;  %31544 = vmatprep.subr.bf16.mxu1 %v36181_v57  ;;  %v36204_v0 = vsub.f32 %v36028_v17, %v13756_v23  ;;  %v36228_v23 = vsub.f32 %v36064_v22, %v13762_v28  ;;  %v36247_v22 = vsub.f32 %v36045_v33, %v12544_v1 }
0x196a   :  { %v11260_v46 = vpop.permute.xlu1 %11259  ;;  %10063 = vrot.lane.b32.xlu0 %v35767_v12, %s33968_s14  ;;  %31546 = vmatpush3.bf16.msra.mxu1 %v36181_v57  ;;  %v36209_v12 = vsub.f32 %v36033_v63, %v13759_v40 }
0x196b   :  { %11264 = vst.msk [vmem:[#allocation3 + $0x18] sm:$0xff] %vm4092_vm1, %v11260_v46  ;;  %v11258_v37 = vpop.permute.xlu0 %11257  ;;  %31450 = vmatpush3.bf16.msra.mxu0 %v36189_v7  ;;  %v38242_v9 = vand.u32 4294901760, %v36204_v0  ;;  %38324 = vst [vmem:[#allocation15_spill] sm:$0xff] %v36228_v23  ;;  %v36278_v46 = vsub.f32 %v36082_v50, %v12550_v54 }
0x196c   :  { %11263 = vst.msk [vmem:[#allocation3 + $0x10] sm:$0xff] %vm4092_vm1, %v11258_v37  ;;  %v38241_v51 = vand.u32 4294901760, %v36209_v12  ;;  %v36290_v37 = vsub.f32 %v36109_v49, %v13771_v43 }
0x196d   :  { %8871 = vrot.lane.b32.xlu1 %v35639_v26, %s33968_s14  ;;  %v13992_v26 = vsub.f32 %v36204_v0, %v38242_v9  ;;  %38327 = vst [vmem:[#allocation22_spill] sm:$0xff] %v36278_v46 }
0x196e   :  { %8869 = vrot.lane.b32.xlu0 %v35641_v4, %s33968_s14  ;;  %v13999_v17 = vsub.f32 %v36209_v12, %v38241_v51  ;;  %38329 = vst [vmem:[#allocation18_spill] sm:$0xff] %v36290_v37  ;;  %v38233_v54 = vand.u32 4294901760, %v36290_v37 }
0x196f   :  { %v13993_v63 = vand.u32 4294901760, %v13992_v26 }
0x1970   :  { %v14000_v4 = vand.u32 4294901760, %v13999_v17 }
0x1971   :  { %7676 = vrot.lane.b32.xlu1 %v35517_v48, %s33968_s14  ;;  %v36233_v48 = vsub.f32 %v36069_v2, %v13765_v56  ;;  %v38238_v2 = vand.u32 4294901760, %v36228_v23  ;;  %v38239_v56 = vand.u32 4294901760, %v36247_v22 }
0x1972   :  { %7674 = vrot.lane.b32.xlu0 %v35519_v55, %s33968_s14  ;;  %v36237_v40 = vpack.c.bf16 %v14000_v4, %v13993_v63  ;;  %v36242_v55 = vsub.f32 %v36038_v62, %v12541_v32  ;;  %v36318_v4 = vsub.f32 %v36122_v31, %v12556_v44  ;;  %v36334_v31 = vsub.f32 %v36147_v29, %v13774_v39 }
0x1973   :  { %38325 = vst [vmem:[#allocation17_spill] sm:$0xff] %v36233_v48  ;;  %v38237_v28 = vand.u32 4294901760, %v36233_v48  ;;  %v14006_v62 = vsub.f32 %v36228_v23, %v38238_v2  ;;  %v12784_v1 = vsub.f32 %v36247_v22, %v38239_v56  ;;  %v36350_v39 = vsub.f32 %v36157_v34, %v12559_v42 }
0x1974   :  { %31548 = vmatprep.subr.bf16.mxu1 %v36237_v40  ;;  %38331 = vst [vmem:[#allocation21_spill] sm:$0xff] %v36318_v4  ;;  %38332 = vst [vmem:[#allocation27_spill] sm:$0xff] %v36334_v31 }
0x1975   :  { %6480 = vrot.lane.b32.xlu1 %v35385_v60, %s33968_s14  ;;  %v38240_v60 = vand.u32 4294901760, %v36242_v55  ;;  %v14013_v33 = vsub.f32 %v36233_v48, %v38237_v28  ;;  %v12785_v17 = vand.u32 4294901760, %v12784_v1  ;;  %v38230_v1 = vand.u32 4294901760, %v36334_v31  ;;  %38334 = vst [vmem:[#allocation28_spill] sm:$0xff] %v36350_v39 }
0x1976   :  { %6478 = vrot.lane.b32.xlu0 %v35387_v25, %s33968_s14  ;;  %v36265_v25 = vsub.f32 %v36074_v3, %v12547_v38  ;;  %v14007_v3 = vand.u32 4294901760, %v14006_v62  ;;  %v12388_v62 = vmul.f32 %v36003_v16, %v36171_v19  ;;  %v38231_v19 = vand.u32 4294901760, %v36318_v4 }
0x1977   :  { %v12777_v32 = vsub.f32 %v36242_v55, %v38240_v60  ;;  %v14014_v38 = vand.u32 4294901760, %v14013_v33  ;;  %v14027_v33 = vsub.f32 %v36290_v37, %v38233_v54  ;;  %v14034_v34 = vsub.f32 %v36334_v31, %v38230_v1 }
0x1978   :  { %38326 = vst [vmem:[#allocation19_spill] sm:$0xff] %v36265_v25  ;;  %v38228_v42 = vand.u32 4294901760, %v36350_v39 }
0x1979   :  { %5284 = vrot.lane.b32.xlu1 %v35263_v5, %s33968_s14  ;;  %v36285_v5 = vsub.f32 %v36104_v35, %v13768_v13  ;;  %v12778_v26 = vand.u32 4294901760, %v12777_v32  ;;  %v36292_v63 = vpack.c.bf16 %v14014_v38, %v14007_v3  ;;  %v38235_v13 = vand.u32 4294901760, %v36278_v46 }
0x197a   :  { %5282 = vrot.lane.b32.xlu0 %v35265_v27, %s33968_s14  ;;  %v38236_v27 = vand.u32 4294901760, %v36265_v25  ;;  %v14028_v16 = vand.u32 4294901760, %v14027_v33 }
0x197b   :  { %38328 = vst [vmem:[#allocation23_spill] sm:$0xff] %v36285_v5  ;;  %v38234_v50 = vand.u32 4294901760, %v36285_v5  ;;  %v36299_v35 = vpack.c.bf16 %v12785_v17, %v12778_v26  ;;  %v12812_v26 = vsub.f32 %v36318_v4, %v38231_v19 }
0x197c   :  { %v12791_v43 = vsub.f32 %v36265_v25, %v38236_v27 }
0x197d   :  { %4087 = vrot.lane.b32.xlu1 %v35141_v20, %s33968_s14  ;;  %v14020_v49 = vsub.f32 %v36285_v5, %v38234_v50  ;;  %v36313_v20 = vsub.f32 %v36114_v11, %v12553_v21  ;;  %31452 = vmatprep.subr.bf16.mxu0 %v36299_v35  ;;  %v12798_v11 = vsub.f32 %v36278_v46, %v38235_v13 }
0x197e   :  { %4085 = vrot.lane.b32.xlu0 %v35143_v30, %s33968_s14  ;;  %v12389_v30 = vmul.f32 %v36000_v36, %v36159_v59  ;;  %v12792_v32 = vand.u32 4294901760, %v12791_v43  ;;  %v36339_v36 = vsub.f32 %v36152_v18, %v13777_v14  ;;  %v36355_v18 = vsub.f32 %v36168_v8, %v12562_v61 }
0x197f   :  { %38330 = vst [vmem:[#allocation20_spill] sm:$0xff] %v36313_v20  ;;  %v14021_v21 = vand.u32 4294901760, %v14020_v49  ;;  %v12799_v44 = vand.u32 4294901760, %v12798_v11  ;;  %v38232_v59 = vand.u32 4294901760, %v36313_v20  ;;  %v12813_v49 = vand.u32 4294901760, %v12812_v26 }
0x1980   :  { %38333 = vst [vmem:[#allocation25_spill] sm:$0xff] %v36339_v36  ;;  %v38229_v29 = vand.u32 4294901760, %v36339_v36  ;;  %38335 = vst [vmem:[#allocation29_spill] sm:$0xff] %v36355_v18  ;;  %v38227_v61 = vand.u32 4294901760, %v36355_v18  ;;  %v14035_v43 = vand.u32 4294901760, %v14034_v34  ;;  %v36393_v26 = vpack.c.bf16 %v36233_v48, %v36228_v23 }
0x1981   :  { %12442 = vrot.lane.b32.xlu1 %v12389_v30, %s33969_s15  ;;  %v36357_v14 = vpack.c.bf16 %v14028_v16, %v14021_v21  ;;  %v36359_v3 = vpack.c.bf16 %v12799_v44, %v12792_v32  ;;  %v12805_v38 = vsub.f32 %v36313_v20, %v38232_v59  ;;  %v36397_v34 = vpack.c.bf16 %v36290_v37, %v36285_v5 }
0x1982   :  { %12440 = vrot.lane.b32.xlu0 %v12388_v62, %s33969_s15  ;;  %v14041_v8 = vsub.f32 %v36339_v36, %v38229_v29  ;;  %v12819_v62 = vsub.f32 %v36350_v39, %v38228_v42  ;;  %v12826_v33 = vsub.f32 %v36355_v18, %v38227_v61  ;;  %v12461_v61 = vld [vmem:[#allocation3 + $0x18] sm:$0xff] }
0x1983   :  { %v12806_v17 = vand.u32 4294901760, %v12805_v38  ;;  %v36389_v38 = vpack.c.bf16 %v36209_v12, %v36204_v0  ;;  %v12502_v19 = vsel %vm12491_vm2, %v12461_v61, 0 }
0x1984   :  { %v14042_v30 = vand.u32 4294901760, %v14041_v8  ;;  %v12820_v32 = vand.u32 4294901760, %v12819_v62  ;;  %v12827_v16 = vand.u32 4294901760, %v12826_v33  ;;  %v36401_v8 = vpack.c.bf16 %v36247_v22, %v36242_v55  ;;  %v12460_v62 = vld [vmem:[#allocation3 + $0x10] sm:$0xff] }
0x1985   :  { %v36381_v11 = vpack.c.bf16 %v12813_v49, %v12806_v17  ;;  %v36405_v17 = vpack.c.bf16 %v36278_v46, %v36265_v25  ;;  %v36409_v49 = vpack.c.bf16 %v36339_v36, %v36334_v31  ;;  %v36427_v50 = vand.u32 4294901760, %v12502_v19 }
0x1986   :  { %v36383_v21 = vpack.c.bf16 %v14042_v30, %v14035_v43  ;;  %v36385_v44 = vpack.c.bf16 %v12827_v16, %v12820_v32  ;;  %v36413_v43 = vpack.c.bf16 %v36318_v4, %v36313_v20  ;;  %v36417_v30 = vpack.c.bf16 %v36355_v18, %v36350_v39 }
0x1987   :  { %v12499_v16 = vsel %vm12491_vm2, %v12460_v62, 0 }
0x1988   :  { %v36423_v1 = vand.u32 4294901760, %v12499_v16 }
0x198a   :  { %v36432_v13 = vsub.f32 %v12499_v16, %v36423_v1 }
0x19d7   :  { %v12453_v33 = vpop.permute.xlu1 %12452 }
0x19d8   :  { %12457 = vst.msk [vmem:[#allocation3 + $0x8] sm:$0xff] %vm4092_vm1, %v12453_v33  ;;  %v12451_v32 = vpop.permute.xlu0 %12450 }
0x19d9   :  { %12456 = vst.msk [vmem:[#allocation3] sm:$0xff] %vm4092_vm1, %v12451_v32 }
0x19db   :  { %v10066_v42 = vpop.permute.xlu1 %10065 }
0x19dc   :  { %10070 = vst.msk [vmem:[#allocation3 + $0x28] sm:$0xff] %vm4092_vm1, %v10066_v42  ;;  %v10064_v29 = vpop.permute.xlu0 %10063 }
0x19dd   :  { %10069 = vst.msk [vmem:[#allocation3 + $0x20] sm:$0xff] %vm4092_vm1, %v10064_v29 }
0x19df   :  { %v8872_v59 = vpop.permute.xlu1 %8871  ;;  %v12459_v54 = vld [vmem:[#allocation3 + $0x8] sm:$0xff] }
0x19e0   :  { %8876 = vst.msk [vmem:[#allocation3 + $0x38] sm:$0xff] %vm4092_vm1, %v8872_v59  ;;  %v8870_v33 = vpop.permute.xlu0 %8869  ;;  %v12458_v32 = vld [vmem:[#allocation3] sm:$0xff]  ;;  %v12496_v62 = vsel %vm12491_vm2, %v12459_v54, 0  ;;  %v36444_v59 = vsub.f32 %v12502_v19, %v36427_v50 }
0x19e1   :  { %8875 = vst.msk [vmem:[#allocation3 + $0x30] sm:$0xff] %vm4092_vm1, %v8870_v33  ;;  %v12493_v42 = vsel %vm12491_vm2, %v12458_v32, 0  ;;  %v36436_v61 = vand.u32 4294901760, %v12496_v62  ;;  %v36451_v33 = vand.u32 4294901760, %v36432_v13 }
0x19e2   :  { %v36438_v29 = vand.u32 4294901760, %v12493_v42 }
0x19e3   :  { %v7677_v27 = vpop.permute.xlu1 %7676  ;;  %v36441_v28 = vsub.f32 %v12496_v62, %v36436_v61  ;;  %v12463_v2 = vld [vmem:[#allocation3 + $0x28] sm:$0xff]  ;;  %38336 = vst [vmem:[#allocation31_spill] sm:$0xff] %v36451_v33  ;;  %v12636_v18 = vsub.f32 %v36432_v13, %v36451_v33 }
0x19e4   :  { %7682 = vst.msk [vmem:[#allocation3 + $0x48] sm:$0xff] %vm4092_vm1, %v7677_v27  ;;  %v7675_v54 = vpop.permute.xlu0 %7674  ;;  %v36448_v16 = vsub.f32 %v12493_v42, %v36438_v29  ;;  %v12462_v32 = vld [vmem:[#allocation3 + $0x20] sm:$0xff]  ;;  %v12508_v56 = vsel %vm12491_vm2, %v12463_v2, 0 }
0x19e5   :  { %8866 = vst.msk [vmem:[#allocation3 + $0x48] sm:$0xff] %vm503_vm0, %v35656_v15  ;;  %v36458_v19 = vand.u32 4294901760, %v36441_v28  ;;  %v12505_v27 = vsel %vm12491_vm2, %v12462_v32, 0  ;;  %v36461_v62 = vand.u32 4294901760, %v12508_v56 }
0x19e6   :  { %7681 = vst.msk [vmem:[#allocation3 + $0x40] sm:$0xff] %vm4092_vm1, %v7675_v54  ;;  %v36466_v42 = vand.u32 4294901760, %v36448_v16  ;;  %v36468_v60 = vand.u32 4294901760, %v12505_v27  ;;  %v36473_v54 = vand.u32 4294901760, %v36444_v59 }
0x19e7   :  { %38337 = vst [vmem:[#allocation30_spill] sm:$0xff] %v36458_v19  ;;  %8865 = vst.msk [vmem:[#allocation3 + $0x40] sm:$0xff] %vm503_vm0, %v35661_v6  ;;  %v6481_v2 = vpop.permute.xlu1 %6480  ;;  %v12626_v15 = vsub.f32 %v36441_v28, %v36458_v19  ;;  %v36476_v51 = vsub.f32 %v12508_v56, %v36461_v62  ;;  %v12465_v32 = vld [vmem:[#allocation3 + $0x38] sm:$0xff] }
0x19e8   :  { %38338 = vst [vmem:[#allocation32_spill] sm:$0xff] %v36473_v54  ;;  %6486 = vst.msk [vmem:[#allocation3 + $0x58] sm:$0xff] %vm4092_vm1, %v6481_v2  ;;  %v6479_v9 = vpop.permute.xlu0 %6478  ;;  %v12616_v6 = vsub.f32 %v36448_v16, %v36466_v42  ;;  %v36484_v39 = vsub.f32 %v12505_v27, %v36468_v60  ;;  %v12464_v36 = vld [vmem:[#allocation3 + $0x30] sm:$0xff]  ;;  %v12514_v31 = vsel %vm12491_vm2, %v12465_v32, 0 }
0x19e9   :  { %10060 = vst.msk [vmem:[#allocation3 + $0x58] sm:$0xff] %vm503_vm0, %v35782_v58  ;;  %v12511_v56 = vsel %vm12491_vm2, %v12464_v36, 0  ;;  %v36491_v2 = vand.u32 4294901760, %v12514_v31  ;;  %v12627_v32 = vand.u32 4294901760, %v12626_v15  ;;  %v12646_v58 = vsub.f32 %v36444_v59, %v36473_v54  ;;  %v38341_v54 = vld [vmem:[#allocation26_spill] sm:$0xff] }
0x19ea   :  { %6485 = vst.msk [vmem:[#allocation3 + $0x50] sm:$0xff] %vm4092_vm1, %v6479_v9  ;;  %v12617_v4 = vand.u32 4294901760, %v12616_v6  ;;  %v36496_v20 = vand.u32 4294901760, %v36484_v39  ;;  %v36498_v27 = vand.u32 4294901760, %v12511_v56  ;;  %v36503_v9 = vand.u32 4294901760, %v36476_v51 }
0x19eb   :  { %10059 = vst.msk [vmem:[#allocation3 + $0x50] sm:$0xff] %vm503_vm0, %v35787_v45  ;;  %v5285_v37 = vpop.permute.xlu1 %5284  ;;  %v36506_v36 = vsub.f32 %v12514_v31, %v36491_v2  ;;  %v12637_v6 = vand.u32 4294901760, %v12636_v18 }
0x19ec   :  { %38339 = vst [vmem:[#allocation16_spill] sm:$0xff] %v36496_v20  ;;  %38340 = vst [vmem:[#allocation33_spill] sm:$0xff] %v36503_v9  ;;  %28919 = vmatprep.mubr.f32.mxu0 %v12617_v4  ;;  %29159 = vmatprep.mubr.f32.mxu1 %v12617_v4  ;;  %v5283_v45 = vpop.permute.xlu0 %5282  ;;  %v12656_v5 = vsub.f32 %v36484_v39, %v36496_v20  ;;  %v36512_v15 = vsub.f32 %v12511_v56, %v36498_v27  ;;  %v12467_v46 = vld [vmem:[#allocation3 + $0x48] sm:$0xff]  ;;  %v12647_v20 = vand.u32 4294901760, %v12646_v58 }
0x19ed   :  { %5290 = vst.msk [vmem:[#allocation3 + $0x68] sm:$0xff] %vm4092_vm1, %v5285_v37  ;;  %5289 = vst.msk [vmem:[#allocation3 + $0x60] sm:$0xff] %vm4092_vm1, %v5283_v45  ;;  %28920 = vmatmul.mubr.f32.vlgmr.msra.gmra.mrb[16].mxu0 %v12627_v32  ;;  %29160 = vmatmul.mubr.f32.vlgmr.msra.gmra.mrb[32].mxu1 %v12627_v32  ;;  %v12520_v37 = vsel %vm12491_vm2, %v12467_v46, 0  ;;  %v38342_v4 = vld [vmem:[#allocation24_spill] sm:$0xff]  ;;  %v36525_v56 = vand.u32 4294901760, %v36506_v36  ;;  %v12666_v46 = vsub.f32 %v36476_v51, %v36503_v9 }
0x19ee   :  { %11254 = vst.msk [vmem:[#allocation3 + $0x68] sm:$0xff] %vm503_vm0, %v38341_v54  ;;  %v12466_v31 = vld [vmem:[#allocation3 + $0x40] sm:$0xff]  ;;  %11253 = vst.msk [vmem:[#allocation3 + $0x60] sm:$0xff] %vm503_vm0, %v38342_v4  ;;  %31550 = vmatpush3.bf16.msra.mxu1 %v36237_v40  ;;  %28922 = vmatprep.mubr.f32.mxu0 %v12637_v6  ;;  %v36522_v18 = vand.u32 4294901760, %v36512_v15  ;;  %v36528_v45 = vand.u32 4294901760, %v12520_v37  ;;  %v12657_v25 = vand.u32 4294901760, %v12656_v5 }
0x19ef   :  { %38344 = vst [vmem:[#allocation24_spill] sm:$0xff] %v36525_v56  ;;  %v12517_v54 = vsel %vm12491_vm2, %v12466_v31, 0  ;;  %29162 = vmatprep.mubr.f32.mxu1 %v12637_v6  ;;  %v4088_v32 = vpop.permute.xlu1 %4087  ;;  %31552 = vmatprep.subr.bf16.mxu1 %v36292_v63  ;;  %v12686_v5 = vsub.f32 %v36506_v36, %v36525_v56 }
0x19f0   :  { %38343 = vst [vmem:[#allocation26_spill] sm:$0xff] %v36522_v18  ;;  %v36533_v40 = vand.u32 4294901760, %v12517_v54  ;;  %4094 = vst.msk [vmem:[#allocation3 + $0x78] sm:$0xff] %vm4092_vm1, %v4088_v32  ;;  %v4086_v4 = vpop.permute.xlu0 %4085  ;;  %v12676_v33 = vsub.f32 %v36512_v15, %v36522_v18  ;;  %v36539_v31 = vsub.f32 %v12520_v37, %v36528_v45  ;;  %31454 = vmatpush3.bf16.msra.mxu0 %v36299_v35  ;;  %v12469_v58 = vld [vmem:[#allocation3 + $0x58] sm:$0xff] }
0x19f1   :  { %4093 = vst.msk [vmem:[#allocation3 + $0x70] sm:$0xff] %vm4092_vm1, %v4086_v4  ;;  %28923 = vmatmul.mubr.f32.gmra.mrb[18].mxu0 %v12647_v20  ;;  %29163 = vmatmul.mubr.f32.gmra.mrb[34].mxu1 %v12647_v20  ;;  %v12526_v32 = vsel %vm12491_vm2, %v12469_v58, 0  ;;  %v12667_v20 = vand.u32 4294901760, %v12666_v46 }
0x19f2   :  { %v36544_v6 = vsub.f32 %v12517_v54, %v36533_v40  ;;  %v12468_v9 = vld [vmem:[#allocation3 + $0x50] sm:$0xff]  ;;  %28925 = vmatprep.mubr.f32.mxu0 %v12657_v25  ;;  %29165 = vmatprep.mubr.f32.mxu1 %v12657_v25  ;;  %v36550_v37 = vand.u32 4294901760, %v36539_v31  ;;  %v36553_v18 = vand.u32 4294901760, %v12526_v32  ;;  %v12677_v56 = vand.u32 4294901760, %v12676_v33 }
0x19f3   :  { %v12523_v35 = vsel %vm12491_vm2, %v12468_v9, 0  ;;  %v12443_v4 = vpop.permute.xlu1 %12442  ;;  %31554 = vmatpush3.bf16.msra.mxu1 %v36292_v63  ;;  %31456 = vmatprep.subr.bf16.mxu0 %v36359_v3 }
0x19f4   :  { %38345 = vst [vmem:[#allocation34_spill] sm:$0xff] %v36550_v37  ;;  %v36557_v54 = vand.u32 4294901760, %v36544_v6  ;;  %v36559_v58 = vand.u32 4294901760, %v12523_v35  ;;  %12447 = vst.msk [vmem:[#allocation3 + $0x78] sm:$0xff] %vm503_vm0, %v12443_v4  ;;  %v12441_v25 = vpop.permute.xlu0 %12440  ;;  %31556 = vmatprep.subr.bf16.mxu1 %v36357_v14  ;;  %v36565_v9 = vsub.f32 %v12526_v32, %v36553_v18  ;;  %31458 = vmatpush3.bf16.msra.mxu0 %v36359_v3  ;;  %v12687_v32 = vand.u32 4294901760, %v12686_v5 }
0x19f5   :  { %v12471_v46 = vld [vmem:[#allocation3 + $0x68] sm:$0xff]  ;;  %12446 = vst.msk [vmem:[#allocation3 + $0x70] sm:$0xff] %vm503_vm0, %v12441_v25  ;;  %28926 = vmatmul.mubr.f32.gmra.mrb[20].mxu0 %v12667_v20  ;;  %29166 = vmatmul.mubr.f32.gmra.mrb[36].mxu1 %v12667_v20  ;;  %v12470_v4 = vld [vmem:[#allocation3 + $0x60] sm:$0xff]  ;;  %v12706_v3 = vsub.f32 %v36539_v31, %v36550_v37 }
0x19f6   :  { %38346 = vst [vmem:[#allocation35_spill] sm:$0xff] %v36557_v54  ;;  %v12696_v63 = vsub.f32 %v36544_v6, %v36557_v54  ;;  %v36572_v19 = vsub.f32 %v12523_v35, %v36559_v58  ;;  %v12532_v33 = vsel %vm12491_vm2, %v12471_v46, 0  ;;  %28928 = vmatprep.mubr.f32.mxu0 %v12677_v56  ;;  %29168 = vmatprep.mubr.f32.mxu1 %v12677_v56  ;;  %v12529_v48 = vsel %vm12491_vm2, %v12470_v4, 0 }
0x19f7   :  { %v36578_v25 = vand.u32 4294901760, %v12532_v33  ;;  %31558 = vmatpush3.bf16.msra.mxu1 %v36357_v14  ;;  %v36585_v35 = vand.u32 4294901760, %v36565_v9  ;;  %v36587_v46 = vand.u32 4294901760, %v12529_v48  ;;  %31460 = vmatprep.subr.bf16.mxu0 %v36381_v11 }
0x19f8   :  { %v12697_v20 = vand.u32 4294901760, %v12696_v63  ;;  %v36582_v54 = vand.u32 4294901760, %v36572_v19  ;;  %31560 = vmatprep.subr.bf16.mxu1 %v36383_v21  ;;  %31462 = vmatpush3.bf16.msra.mxu0 %v36381_v11  ;;  %v12707_v63 = vand.u32 4294901760, %v12706_v3 }
0x19f9   :  { %38348 = vst [vmem:[#allocation37_spill] sm:$0xff] %v36585_v35  ;;  %v36592_v56 = vsub.f32 %v12532_v33, %v36578_v25  ;;  %28929 = vmatmul.mubr.f32.gmra.mrb[22].mxu0 %v12687_v32  ;;  %29169 = vmatmul.mubr.f32.gmra.mrb[38].mxu1 %v12687_v32  ;;  %v36598_v5 = vsub.f32 %v12529_v48, %v36587_v46 }
0x19fa   :  { %38347 = vst [vmem:[#allocation36_spill] sm:$0xff] %v36582_v54  ;;  %v12716_v14 = vsub.f32 %v36572_v19, %v36582_v54  ;;  %28931 = vmatprep.mubr.f32.mxu0 %v12697_v20  ;;  %29171 = vmatprep.mubr.f32.mxu1 %v12697_v20  ;;  %v12726_v37 = vsub.f32 %v36565_v9, %v36585_v35 }
0x19fb   :  { %v36603_v33 = vand.u32 4294901760, %v36598_v5  ;;  %v36606_v11 = vand.u32 4294901760, %v36592_v56  ;;  %31562 = vmatpush3.bf16.msra.mxu1 %v36383_v21  ;;  %v12473_v32 = vld [vmem:[#allocation3 + $0x78] sm:$0xff]  ;;  %31464 = vmatprep.subr.bf16.mxu0 %v36385_v44 }
0x19fc   :  { %v12717_v4 = vand.u32 4294901760, %v12716_v14  ;;  %v12472_v48 = vld [vmem:[#allocation3 + $0x70] sm:$0xff]  ;;  %v12538_v54 = vsel %vm12491_vm2, %v12473_v32, 0  ;;  %31466 = vmatpush3.bf16.msra.mxu0 %v36385_v44  ;;  %31564 = vmatprep.subr.bf16.mxu1 %v36389_v38  ;;  %v12727_v35 = vand.u32 4294901760, %v12726_v37 }
0x19fd   :  { %38349 = vst [vmem:[#allocation38_spill] sm:$0xff] %v36606_v11  ;;  %28932 = vmatmul.mubr.f32.gmra.mrb[24].mxu0 %v12707_v63  ;;  %29172 = vmatmul.mubr.f32.gmra.mrb[40].mxu1 %v12707_v63  ;;  %v12736_v3 = vsub.f32 %v36598_v5, %v36603_v33  ;;  %v12535_v20 = vsel %vm12491_vm2, %v12472_v48, 0  ;;  %v36616_v14 = vand.u32 4294901760, %v12538_v54  ;;  %v12746_v44 = vsub.f32 %v36592_v56, %v36606_v11 }
0x19fe   :  { %28934 = vmatprep.mubr.f32.mxu0 %v12717_v4  ;;  %29174 = vmatprep.mubr.f32.mxu1 %v12717_v4  ;;  %v36618_v21 = vand.u32 4294901760, %v12535_v20 }
0x19ff   :  { %v12737_v23 = vand.u32 4294901760, %v12736_v3  ;;  %v36623_v32 = vsub.f32 %v12538_v54, %v36616_v14  ;;  %31468 = vmatprep.subr.bf16.mxu0 %v36401_v8  ;;  %v12747_v4 = vand.u32 4294901760, %v12746_v44  ;;  %v38374_v44 = vld [vmem:[#allocation27_spill] sm:$0xff] }
0x1a00   :  { %v36627_v63 = vsub.f32 %v12535_v20, %v36618_v21 }
0x1a01   :  { %28935 = vmatmul.mubr.f32.gmra.mrb[26].mxu0 %v12727_v35  ;;  %29175 = vmatmul.mubr.f32.gmra.mrb[42].mxu1 %v12727_v35  ;;  %v36630_v48 = vand.u32 4294901760, %v36623_v32 }
0x1a02   :  { %28937 = vmatprep.mubr.f32.mxu0 %v12737_v23  ;;  %29177 = vmatprep.mubr.f32.mxu1 %v12737_v23  ;;  %v36633_v37 = vand.u32 4294901760, %v36627_v63  ;;  %v38350_v23 = vand.u32 4294901760, %v36204_v0 }
0x1a03   :  { %v12766_v54 = vsub.f32 %v36623_v32, %v36630_v48 }
0x1a04   :  { %v12756_v3 = vsub.f32 %v36627_v63, %v36633_v37 }
0x1a05   :  { %28938 = vmatmul.mubr.f32.gmra.mrb[28].mxu0 %v12747_v4  ;;  %29178 = vmatmul.mubr.f32.gmra.mrb[44].mxu1 %v12747_v4  ;;  %v12767_v11 = vand.u32 4294901760, %v12766_v54 }
0x1a06   :  { %v12757_v20 = vand.u32 4294901760, %v12756_v3  ;;  %v38378_v3 = vld [vmem:[#allocation33_spill] sm:$0xff] }
0x1a08   :  { %28940 = vmatprep.mubr.f32.mxu0 %v12757_v20  ;;  %29180 = vmatprep.mubr.f32.mxu1 %v12757_v20  ;;  %v38379_v20 = vld [vmem:[#allocation26_spill] sm:$0xff] }
0x1a09   :  { %28941 = vmatmul.mubr.f32.gmra.mrb[30].mxu0 %v12767_v11  ;;  %29181 = vmatmul.mubr.f32.gmra.mrb[46].mxu1 %v12767_v11 }
0x1a0a   :  { %28959 = vmatprep.mubr.f32.mxu0 %v36438_v29  ;;  %29199 = vmatprep.mubr.f32.mxu1 %v36438_v29 }
0x1a0d   :  { %28960 = vmatmul.mubr.f32.vlgmr.msra.gmra.mrb[16].mxu0 %v36436_v61  ;;  %29200 = vmatmul.mubr.f32.vlgmr.msra.gmra.mrb[32].mxu1 %v36436_v61 }
0x1a0e   :  { %31566 = vmatpush3.bf16.msra.mxu1 %v36389_v38  ;;  %28962 = vmatprep.mubr.f32.mxu0 %v36423_v1 }
0x1a0f   :  { %29202 = vmatprep.mubr.f32.mxu1 %v36423_v1  ;;  %31568 = vmatprep.subr.bf16.mxu1 %v36393_v26 }
0x1a10   :  { %31470 = vmatpush3.bf16.msra.mxu0 %v36401_v8  ;;  %v38359_v8 = vld [vmem:[#allocation31_spill] sm:$0xff] }
0x1a11   :  { %28963 = vmatmul.mubr.f32.gmra.mrb[18].mxu0 %v36427_v50  ;;  %29203 = vmatmul.mubr.f32.gmra.mrb[34].mxu1 %v36427_v50 }
0x1a12   :  { %28965 = vmatprep.mubr.f32.mxu0 %v36468_v60  ;;  %29205 = vmatprep.mubr.f32.mxu1 %v36468_v60 }
0x1a13   :  { %31570 = vmatpush3.bf16.msra.mxu1 %v36393_v26  ;;  %31472 = vmatprep.subr.bf16.mxu0 %v36405_v17 }
0x1a14   :  { %31572 = vmatprep.subr.bf16.mxu1 %v36397_v34  ;;  %31474 = vmatpush3.bf16.msra.mxu0 %v36405_v17  ;;  %v38360_v17 = vld [vmem:[#allocation19_spill] sm:$0xff] }
0x1a15   :  { %28966 = vmatmul.mubr.f32.gmra.mrb[20].mxu0 %v36461_v62  ;;  %29206 = vmatmul.mubr.f32.gmra.mrb[36].mxu1 %v36461_v62 }
0x1a16   :  { %28968 = vmatprep.mubr.f32.mxu0 %v36498_v27  ;;  %29208 = vmatprep.mubr.f32.mxu1 %v36498_v27 }
0x1a17   :  { %31574 = vmatpush3.bf16.msra.mxu1 %v36397_v34  ;;  %31476 = vmatprep.subr.bf16.mxu0 %v36413_v43  ;;  %v38358_v34 = vld [vmem:[#allocation30_spill] sm:$0xff] }
0x1a18   :  { %31576 = vmatprep.subr.bf16.mxu1 %v36409_v49  ;;  %31478 = vmatpush3.bf16.msra.mxu0 %v36413_v43  ;;  %v38362_v43 = vld [vmem:[#allocation22_spill] sm:$0xff] }
0x1a19   :  { %28969 = vmatmul.mubr.f32.gmra.mrb[22].mxu0 %v36491_v2  ;;  %29209 = vmatmul.mubr.f32.gmra.mrb[38].mxu1 %v36491_v2 }
0x1a1a   :  { %28971 = vmatprep.mubr.f32.mxu0 %v36533_v40  ;;  %29211 = vmatprep.mubr.f32.mxu1 %v36533_v40 }
0x1a1b   :  { %31578 = vmatpush3.bf16.msra.mxu1 %v36409_v49  ;;  %31480 = vmatprep.subr.bf16.mxu0 %v36417_v30  ;;  %v38361_v49 = vand.u32 4294901760, %v38360_v17  ;;  %v36851_v17 = vld [vmem:[#allocation6 + $0x78] sm:$0xff] }
0x1a1c   :  { %31482 = vmatpush3.bf16.msra.mxu0 %v36417_v30  ;;  %31580 = vmatprep.subr.bf16.mxu1 %v36053_v24  ;;  %v38363_v30 = vand.u32 4294901760, %v38362_v43 }
0x1a1d   :  { %28972 = vmatmul.mubr.f32.gmra.mrb[24].mxu0 %v36528_v45  ;;  %29212 = vmatmul.mubr.f32.gmra.mrb[40].mxu1 %v36528_v45 }
0x1a1e   :  { %28974 = vmatprep.mubr.f32.mxu0 %v36559_v58  ;;  %29214 = vmatprep.mubr.f32.mxu1 %v36559_v58 }
0x1a1f   :  { %31484 = vmatprep.subr.bf16.mxu0 %v36059_v41 }
0x1a21   :  { %28975 = vmatmul.mubr.f32.gmra.mrb[26].mxu0 %v36553_v18  ;;  %29215 = vmatmul.mubr.f32.gmra.mrb[42].mxu1 %v36553_v18 }
0x1a22   :  { %28977 = vmatprep.mubr.f32.mxu0 %v36587_v46  ;;  %29217 = vmatprep.mubr.f32.mxu1 %v36587_v46 }
0x1a25   :  { %28978 = vmatmul.mubr.f32.gmra.mrb[28].mxu0 %v36578_v25  ;;  %29218 = vmatmul.mubr.f32.gmra.mrb[44].mxu1 %v36578_v25 }
0x1a26   :  { %28980 = vmatprep.mubr.f32.mxu0 %v36618_v21  ;;  %29220 = vmatprep.mubr.f32.mxu1 %v36618_v21 }
0x1a29   :  { %28981 = vmatmul.mubr.f32.gmra.mrb[30].mxu0 %v36616_v14  ;;  %29221 = vmatmul.mubr.f32.gmra.mrb[46].mxu1 %v36616_v14 }
0x1a2a   :  { %28999 = vmatprep.mubr.f32.mxu0 %v36448_v16  ;;  %29239 = vmatprep.mubr.f32.mxu1 %v36448_v16  ;;  %v38364_v16 = vld [vmem:[#allocation23_spill] sm:$0xff] }
0x1a2d   :  { %29000 = vmatmul.mubr.f32.vlgmr.msra.gmra.mrb[16].mxu0 %v36441_v28  ;;  %29240 = vmatmul.mubr.f32.vlgmr.msra.gmra.mrb[32].mxu1 %v36441_v28  ;;  %v38351_v28 = vand.u32 4294901760, %v36209_v12  ;;  %v38354_v12 = vld [vmem:[#allocation15_spill] sm:$0xff] }
0x1a2e   :  { %31582 = vmatpush3.bf16.msra.mxu1 %v36053_v24  ;;  %29002 = vmatprep.mubr.f32.mxu0 %v36432_v13 }
0x1a2f   :  { %29242 = vmatprep.mubr.f32.mxu1 %v36432_v13  ;;  %31584 = vmatprep.subr.bf16.mxu1 %v36093_v52  ;;  %v31595_v13 = vpack.c.bf16 %v38351_v28, %v38350_v23  ;;  %v38380_v23 = vld [vmem:[#allocation28_spill] sm:$0xff] }
0x1a30   :  { %31486 = vmatpush3.bf16.msra.mxu0 %v36059_v41  ;;  %v38381_v28 = vand.u32 4294901760, %v38380_v23 }
0x1a31   :  { %29003 = vmatmul.mubr.f32.gmra.mrb[18].mxu0 %v36444_v59  ;;  %29243 = vmatmul.mubr.f32.gmra.mrb[34].mxu1 %v36444_v59  ;;  %v31503_v59 = vpack.c.bf16 %v38363_v30, %v38361_v49 }
0x1a32   :  { %29005 = vmatprep.mubr.f32.mxu0 %v36484_v39  ;;  %29245 = vmatprep.mubr.f32.mxu1 %v36484_v39  ;;  %v38353_v39 = vand.u32 4294901760, %v36247_v22  ;;  %v38356_v22 = vld [vmem:[#allocation17_spill] sm:$0xff] }
0x1a33   :  { %31586 = vmatpush3.bf16.msra.mxu1 %v36093_v52  ;;  %31488 = vmatprep.subr.bf16.mxu0 %v36099_v53  ;;  %v38357_v38 = vand.u32 4294901760, %v38356_v22  ;;  %v38387_v22 = vld [vmem:[#allocation36_spill] sm:$0xff] }
0x1a34   :  { %31588 = vmatprep.subr.bf16.mxu1 %v36135_v10  ;;  %31490 = vmatpush3.bf16.msra.mxu0 %v36099_v53 }
0x1a35   :  { %29006 = vmatmul.mubr.f32.gmra.mrb[20].mxu0 %v36476_v51  ;;  %29246 = vmatmul.mubr.f32.gmra.mrb[36].mxu1 %v36476_v51  ;;  %v38352_v51 = vand.u32 4294901760, %v36242_v55  ;;  %v38355_v55 = vand.u32 4294901760, %v38354_v12  ;;  %v38385_v12 = vld [vmem:[#allocation35_spill] sm:$0xff] }
0x1a36   :  { %29008 = vmatprep.mubr.f32.mxu0 %v36512_v15  ;;  %29248 = vmatprep.mubr.f32.mxu1 %v36512_v15 }
0x1a37   :  { %31590 = vmatpush3.bf16.msra.mxu1 %v36135_v10  ;;  %31492 = vmatprep.subr.bf16.mxu0 %v36142_v47  ;;  %v31499_v0 = vpack.c.bf16 %v38353_v39, %v38352_v51  ;;  %v31599_v26 = vpack.c.bf16 %v38357_v38, %v38355_v55  ;;  %v38386_v55 = vld [vmem:[#allocation34_spill] sm:$0xff]  ;;  %v38388_v38 = vld [vmem:[#allocation37_spill] sm:$0xff] }
0x1a38   :  { %31592 = vmatprep.subr.bf16.mxu1 %v36181_v57  ;;  %31494 = vmatpush3.bf16.msra.mxu0 %v36142_v47 }
0x1a39   :  { %29009 = vmatmul.mubr.f32.gmra.mrb[22].mxu0 %v36506_v36  ;;  %29249 = vmatmul.mubr.f32.gmra.mrb[38].mxu1 %v36506_v36 }
0x1a3a   :  { %29011 = vmatprep.mubr.f32.mxu0 %v36544_v6  ;;  %29251 = vmatprep.mubr.f32.mxu1 %v36544_v6  ;;  %v38369_v6 = vld [vmem:[#allocation16_spill] sm:$0xff] }
0x1a3b   :  { %31594 = vmatpush3.bf16.msra.mxu1 %v36181_v57  ;;  %31496 = vmatprep.subr.bf16.mxu0 %v36189_v7 }
0x1a3c   :  { %31498 = vmatpush3.bf16.msra.mxu0 %v36189_v7  ;;  %31596 = vmatprep.subr.bf16.mxu1 %v31595_v13 }
0x1a3d   :  { %29012 = vmatmul.mubr.f32.gmra.mrb[24].mxu0 %v36539_v31  ;;  %29252 = vmatmul.mubr.f32.gmra.mrb[40].mxu1 %v36539_v31  ;;  %v38368_v31 = vld [vmem:[#allocation32_spill] sm:$0xff] }
0x1a3e   :  { %29014 = vmatprep.mubr.f32.mxu0 %v36572_v19  ;;  %29254 = vmatprep.mubr.f32.mxu1 %v36572_v19  ;;  %v38365_v19 = vand.u32 4294901760, %v38364_v16 }
0x1a3f   :  { %31500 = vmatprep.subr.bf16.mxu0 %v31499_v0 }
0x1a41   :  { %29015 = vmatmul.mubr.f32.gmra.mrb[26].mxu0 %v36565_v9  ;;  %29255 = vmatmul.mubr.f32.gmra.mrb[42].mxu1 %v36565_v9  ;;  %v38370_v9 = vld [vmem:[#allocation20_spill] sm:$0xff] }
0x1a42   :  { %29017 = vmatprep.mubr.f32.mxu0 %v36598_v5  ;;  %29257 = vmatprep.mubr.f32.mxu1 %v36598_v5  ;;  %v38371_v35 = vand.u32 4294901760, %v38370_v9 }
0x1a45   :  { %29018 = vmatmul.mubr.f32.gmra.mrb[28].mxu0 %v36592_v56  ;;  %29258 = vmatmul.mubr.f32.gmra.mrb[44].mxu1 %v36592_v56  ;;  %v38372_v56 = vld [vmem:[#allocation21_spill] sm:$0xff] }
0x1a46   :  { %29020 = vmatprep.mubr.f32.mxu0 %v36627_v63  ;;  %29260 = vmatprep.mubr.f32.mxu1 %v36627_v63  ;;  %v38373_v5 = vand.u32 4294901760, %v38372_v56  ;;  %v38376_v63 = vld [vmem:[#allocation25_spill] sm:$0xff] }
0x1a47   :  { %v38377_v4 = vand.u32 4294901760, %v38376_v63 }
0x1a48   :  { %v31507_v11 = vpack.c.bf16 %v38373_v5, %v38371_v35 }
0x1a49   :  { %29021 = vmatmul.mubr.f32.gmra.mrb[30].mxu0 %v36623_v32  ;;  %29261 = vmatmul.mubr.f32.gmra.mrb[46].mxu1 %v36623_v32  ;;  %v38375_v32 = vand.u32 4294901760, %v38374_v44 }
0x1a4a   :  { %29039 = vmatprep.mubr.f32.mxu0 %v36466_v42  ;;  %29279 = vmatprep.mubr.f32.mxu1 %v36466_v42  ;;  %v38366_v42 = vld [vmem:[#allocation18_spill] sm:$0xff] }
0x1a4b   :  { %v38367_v36 = vand.u32 4294901760, %v38366_v42  ;;  %v31607_v54 = vpack.c.bf16 %v38377_v4, %v38375_v32 }
0x1a4d   :  { %29040 = vmatmul.mubr.f32.vlgmr.msra.gmra.mrb[16].mxu0 %v38358_v34  ;;  %29280 = vmatmul.mubr.f32.vlgmr.msra.gmra.mrb[32].mxu1 %v38358_v34  ;;  %v31603_v15 = vpack.c.bf16 %v38367_v36, %v38365_v19  ;;  %v14955_v34 = vld [vmem:[#allocation6 + $0x48] sm:$0xff]  ;;  %v15507_v19 = vand.u32 4294901760, %v36851_v17 }
0x1a4e   :  { %31598 = vmatpush3.bf16.msra.mxu1 %v31595_v13  ;;  %29042 = vmatprep.mubr.f32.mxu0 %v38359_v8  ;;  %v38382_v13 = vld [vmem:[#allocation29_spill] sm:$0xff] }
0x1a4f   :  { %29282 = vmatprep.mubr.f32.mxu1 %v38359_v8  ;;  %31600 = vmatprep.subr.bf16.mxu1 %v31599_v26  ;;  %v38383_v51 = vand.u32 4294901760, %v38382_v13  ;;  %v14969_v8 = vand.u32 4294901760, %v14955_v34  ;;  %v38390_v13 = vmov 0.0  }
0x1a50   :  { %31502 = vmatpush3.bf16.msra.mxu0 %v31499_v0  ;;  %v38384_v0 = vld [vmem:[#allocation24_spill] sm:$0xff] }
0x1a51   :  { %29043 = vmatmul.mubr.f32.gmra.mrb[18].mxu0 %v38368_v31  ;;  %29283 = vmatmul.mubr.f32.gmra.mrb[34].mxu1 %v38368_v31  ;;  %v31511_v39 = vpack.c.bf16 %v38383_v51, %v38381_v28  ;;  %v36855_v43 = vsub.f32 %v14955_v34, %v14969_v8  ;;  %v14957_v31 = vld [vmem:[#allocation6 + $0x58] sm:$0xff] }
0x1a52   :  { %29045 = vmatprep.mubr.f32.mxu0 %v38369_v6  ;;  %29285 = vmatprep.mubr.f32.mxu1 %v38369_v6  ;;  %v14975_v5 = vand.u32 4294901760, %v14957_v31 }
0x1a53   :  { %31602 = vmatpush3.bf16.msra.mxu1 %v31599_v26  ;;  %31504 = vmatprep.subr.bf16.mxu0 %v31503_v59  ;;  %v38389_v26 = vld [vmem:[#allocation38_spill] sm:$0xff]  ;;  %v15064_v36 = vand.u32 4294901760, %v36855_v43 }
0x1a54   :  { %31604 = vmatprep.subr.bf16.mxu1 %v31603_v15  ;;  %31506 = vmatpush3.bf16.msra.mxu0 %v31503_v59 }
0x1a55   :  { %29046 = vmatmul.mubr.f32.gmra.mrb[20].mxu0 %v38378_v3  ;;  %29286 = vmatmul.mubr.f32.gmra.mrb[36].mxu1 %v38378_v3  ;;  %v15065_v44 = vsub.f32 %v36855_v43, %v15064_v36 }
0x1a56   :  { %29048 = vmatprep.mubr.f32.mxu0 %v38379_v20  ;;  %29288 = vmatprep.mubr.f32.mxu1 %v38379_v20 }
0x1a57   :  { %31606 = vmatpush3.bf16.msra.mxu1 %v31603_v15  ;;  %31508 = vmatprep.subr.bf16.mxu0 %v31507_v11  ;;  %v14956_v15 = vld [vmem:[#allocation6 + $0x50] sm:$0xff] }
0x1a58   :  { %31608 = vmatprep.subr.bf16.mxu1 %v31607_v54  ;;  %31510 = vmatpush3.bf16.msra.mxu0 %v31507_v11  ;;  %v14972_v56 = vand.u32 4294901760, %v14956_v15 }
0x1a59   :  { %29049 = vmatmul.mubr.f32.gmra.mrb[22].mxu0 %v38384_v0  ;;  %29289 = vmatmul.mubr.f32.gmra.mrb[38].mxu1 %v38384_v0 }
0x1a5a   :  { %29051 = vmatprep.mubr.f32.mxu0 %v38385_v12  ;;  %29291 = vmatprep.mubr.f32.mxu1 %v38385_v12 }
0x1a5b   :  { %31610 = vmatpush3.bf16.msra.mxu1 %v31607_v54  ;;  %31512 = vmatprep.subr.bf16.mxu0 %v31511_v39  ;;  %v15066_v54 = vand.u32 4294901760, %v15065_v44 }
0x1a5c   :  { %31514 = vmatpush3.bf16.msra.mxu0 %v31511_v39  ;;  %31612 = vmatprep.subr.bf16.mxu1 %v36053_v24 }
0x1a5d   :  { %29052 = vmatmul.mubr.f32.gmra.mrb[24].mxu0 %v38386_v55  ;;  %29292 = vmatmul.mubr.f32.gmra.mrb[40].mxu1 %v38386_v55 }
0x1a5e   :  { %29054 = vmatprep.mubr.f32.mxu0 %v38387_v22  ;;  %29294 = vmatprep.mubr.f32.mxu1 %v38387_v22 }
0x1a5f   :  { %31516 = vmatprep.subr.bf16.mxu0 %v36059_v41 }
0x1a61   :  { %29055 = vmatmul.mubr.f32.gmra.mrb[26].mxu0 %v38388_v38  ;;  %29295 = vmatmul.mubr.f32.gmra.mrb[42].mxu1 %v38388_v38 }
0x1a62   :  { %29057 = vmatprep.mubr.f32.mxu0 %v36603_v33  ;;  %29297 = vmatprep.mubr.f32.mxu1 %v36603_v33  ;;  %v14959_v33 = vld [vmem:[#allocation6 + $0x60] sm:$0xff] }
0x1a65   :  { %29058 = vmatmul.mubr.f32.gmra.mrb[28].mxu0 %v38389_v26  ;;  %29298 = vmatmul.mubr.f32.gmra.mrb[44].mxu1 %v38389_v26 }
0x1a66   :  { %29060 = vmatprep.mubr.f32.mxu0 %v36633_v37  ;;  %29300 = vmatprep.mubr.f32.mxu1 %v36633_v37  ;;  %v14954_v37 = vld [vmem:[#allocation6 + $0x40] sm:$0xff] }
0x1a69   :  { %29061 = vmatmul.mubr.f32.gmra.mrb[30].mxu0 %v36630_v48  ;;  %29301 = vmatmul.mubr.f32.gmra.mrb[46].mxu1 %v36630_v48  ;;  %v14960_v48 = vld [vmem:[#allocation6 + $0x68] sm:$0xff] }
0x1a6a   :  { %29079 = vmatprep.mubr.f32.mxu0 %v36438_v29  ;;  %29319 = vmatprep.mubr.f32.mxu1 %v36438_v29 }
0x1a6d   :  { %29080 = vmatmul.mubr.f32.vlgmr.msra.gmra.mrb[16].mxu0 %v36436_v61  ;;  %29320 = vmatmul.mubr.f32.vlgmr.msra.gmra.mrb[32].mxu1 %v36436_v61 }
0x1a6e   :  { %31614 = vmatpush3.bf16.msra.mxu1 %v36053_v24  ;;  %29082 = vmatprep.mubr.f32.mxu0 %v36423_v1  ;;  %v15498_v24 = vand.u32 4294901760, %v14959_v33 }
0x1a6f   :  { %29322 = vmatprep.mubr.f32.mxu1 %v36423_v1  ;;  %31616 = vmatprep.subr.bf16.mxu1 %v36093_v52 }
0x1a70   :  { %31518 = vmatpush3.bf16.msra.mxu0 %v36059_v41  ;;  %v15501_v41 = vand.u32 4294901760, %v14960_v48 }
0x1a71   :  { %29083 = vmatmul.mubr.f32.gmra.mrb[18].mxu0 %v36427_v50  ;;  %29323 = vmatmul.mubr.f32.gmra.mrb[34].mxu1 %v36427_v50 }
0x1a72   :  { %29085 = vmatprep.mubr.f32.mxu0 %v36468_v60  ;;  %29325 = vmatprep.mubr.f32.mxu1 %v36468_v60 }
0x1a73   :  { %31618 = vmatpush3.bf16.msra.mxu1 %v36093_v52  ;;  %31520 = vmatprep.subr.bf16.mxu0 %v36099_v53  ;;  %v14966_v52 = vand.u32 4294901760, %v14954_v37 }
0x1a74   :  { %31620 = vmatprep.subr.bf16.mxu1 %v36135_v10  ;;  %31522 = vmatpush3.bf16.msra.mxu0 %v36099_v53  ;;  %v36824_v53 = vpack.c.bf16 %v15501_v41, %v15498_v24 }
0x1a75   :  { %29086 = vmatmul.mubr.f32.gmra.mrb[20].mxu0 %v36461_v62  ;;  %29326 = vmatmul.mubr.f32.gmra.mrb[36].mxu1 %v36461_v62  ;;  %v36853_v49 = vsub.f32 %v14954_v37, %v14966_v52  ;;  %v37079_v37 = vld [vmem:[%s38191_s5 + $0x2] ss:$0 sm:$0xff] }
0x1a76   :  { %29088 = vmatprep.mubr.f32.mxu0 %v36498_v27  ;;  %29328 = vmatprep.mubr.f32.mxu1 %v36498_v27 }
0x1a77   :  { %31622 = vmatpush3.bf16.msra.mxu1 %v36135_v10  ;;  %31524 = vmatprep.subr.bf16.mxu0 %v36142_v47  ;;  %v36832_v10 = vpack.c.bf16 %v14969_v8, %v14966_v52  ;;  %v15057_v42 = vand.u32 4294901760, %v36853_v49 }
0x1a78   :  { %31624 = vmatprep.subr.bf16.mxu1 %v36181_v57  ;;  %31526 = vmatpush3.bf16.msra.mxu0 %v36142_v47  ;;  %v36841_v47 = vsub.f32 %v14959_v33, %v15498_v24 }
0x1a79   :  { %29089 = vmatmul.mubr.f32.gmra.mrb[22].mxu0 %v36491_v2  ;;  %29329 = vmatmul.mubr.f32.gmra.mrb[38].mxu1 %v36491_v2  ;;  %v15058_v11 = vsub.f32 %v36853_v49, %v15057_v42  ;;  %v37008_v22 = vpack.c.bf16 %v15064_v36, %v15057_v42 }
0x1a7a   :  { %29091 = vmatprep.mubr.f32.mxu0 %v36533_v40  ;;  %29331 = vmatprep.mubr.f32.mxu1 %v36533_v40  ;;  %v15589_v30 = vand.u32 4294901760, %v36841_v47 }
0x1a7b   :  { %31626 = vmatpush3.bf16.msra.mxu1 %v36181_v57  ;;  %31528 = vmatprep.subr.bf16.mxu0 %v36189_v7  ;;  %v36843_v57 = vsub.f32 %v14960_v48, %v15501_v41  ;;  %v15059_v4 = vand.u32 4294901760, %v15058_v11  ;;  %v37074_v41 = vld [vmem:[%s38191_s5 + $0x3] ss:$0 sm:$0xff] }
0x1a7c   :  { %31530 = vmatpush3.bf16.msra.mxu0 %v36189_v7  ;;  %31676 = vmatprep.subr.bf16.mxu1 %v36824_v53  ;;  %v36849_v7 = vld [vmem:[#allocation6 + $0x70] sm:$0xff]  ;;  %v15590_v6 = vsub.f32 %v36841_v47, %v15589_v30 }
0x1a7d   :  { %29092 = vmatmul.mubr.f32.gmra.mrb[24].mxu0 %v36528_v45  ;;  %29332 = vmatmul.mubr.f32.gmra.mrb[40].mxu1 %v36528_v45  ;;  %v15596_v59 = vand.u32 4294901760, %v36843_v57  ;;  %v15504_v16 = vand.u32 4294901760, %v36849_v7  ;;  %v36976_v0 = vpack.c.bf16 %v36843_v57, %v36841_v47 }
0x1a7e   :  { %29094 = vmatprep.mubr.f32.mxu0 %v36559_v58  ;;  %29334 = vmatprep.mubr.f32.mxu1 %v36559_v58  ;;  %v15591_v32 = vand.u32 4294901760, %v15590_v6 }
0x1a7f   :  { %31628 = vmatprep.subr.bf16.mxu0 %v36832_v10  ;;  %v15597_v9 = vsub.f32 %v36843_v57, %v15596_v59  ;;  %v36877_v35 = vpack.c.bf16 %v15507_v19, %v15504_v16  ;;  %v37020_v38 = vpack.c.bf16 %v15596_v59, %v15589_v30 }
0x1a81   :  { %29095 = vmatmul.mubr.f32.gmra.mrb[26].mxu0 %v36553_v18  ;;  %29335 = vmatmul.mubr.f32.gmra.mrb[42].mxu1 %v36553_v18  ;;  %v15598_v63 = vand.u32 4294901760, %v15597_v9 }
0x1a82   :  { %29097 = vmatprep.mubr.f32.mxu0 %v36587_v46  ;;  %29337 = vmatprep.mubr.f32.mxu1 %v36587_v46 }
0x1a83   :  { %v36894_v3 = vpack.c.bf16 %v15598_v63, %v15591_v32 }
0x1a85   :  { %29098 = vmatmul.mubr.f32.gmra.mrb[28].mxu0 %v36578_v25  ;;  %29338 = vmatmul.mubr.f32.gmra.mrb[44].mxu1 %v36578_v25 }
0x1a86   :  { %29100 = vmatprep.mubr.f32.mxu0 %v36618_v21  ;;  %29340 = vmatprep.mubr.f32.mxu1 %v36618_v21 }
0x1a89   :  { %29101 = vmatmul.mubr.f32.gmra.mrb[30].mxu0 %v36616_v14  ;;  %29341 = vmatmul.mubr.f32.gmra.mrb[46].mxu1 %v36616_v14 }
0x1a8a   :  { %29119 = vmatprep.mubr.f32.mxu0 %v36438_v29  ;;  %29359 = vmatprep.mubr.f32.mxu1 %v36438_v29  ;;  %v36891_v29 = vpack.c.bf16 %v14975_v5, %v14972_v56 }
0x1a8d   :  { %29120 = vmatmul.mubr.f32.vlgmr.msra.gmra.mrb[16].mxu0 %v36436_v61  ;;  %29360 = vmatmul.mubr.f32.vlgmr.msra.gmra.mrb[32].mxu1 %v36436_v61 }
0x1a8e   :  { %31678 = vmatpush3.bf16.msra.mxu1 %v36824_v53  ;;  %29122 = vmatprep.mubr.f32.mxu0 %v36423_v1 }
0x1a8f   :  { %29362 = vmatprep.mubr.f32.mxu1 %v36423_v1  ;;  %31680 = vmatprep.subr.bf16.mxu1 %v36877_v35  ;;  %v36902_v1 = vpack.c.bf16 %v15066_v54, %v15059_v4 }
0x1a90   :  { %31630 = vmatpush3.bf16.msra.mxu0 %v36832_v10 }
0x1a91   :  { %29123 = vmatmul.mubr.f32.gmra.mrb[18].mxu0 %v36427_v50  ;;  %29363 = vmatmul.mubr.f32.gmra.mrb[34].mxu1 %v36427_v50  ;;  %v36917_v50 = vsub.f32 %v14957_v31, %v14975_v5 }
0x1a92   :  { %29125 = vmatprep.mubr.f32.mxu0 %v36468_v60  ;;  %29365 = vmatprep.mubr.f32.mxu1 %v36468_v60  ;;  %v36915_v60 = vsub.f32 %v14956_v15, %v14972_v56 }
0x1a93   :  { %31682 = vmatpush3.bf16.msra.mxu1 %v36877_v35  ;;  %31632 = vmatprep.subr.bf16.mxu0 %v36891_v29 }
0x1a94   :  { %31634 = vmatpush3.bf16.msra.mxu0 %v36891_v29  ;;  %31684 = vmatprep.subr.bf16.mxu1 %v36894_v3  ;;  %v15071_v61 = vand.u32 4294901760, %v36915_v60  ;;  %v36980_v12 = vpack.c.bf16 %v36917_v50, %v36915_v60 }
0x1a95   :  { %29126 = vmatmul.mubr.f32.gmra.mrb[20].mxu0 %v36461_v62  ;;  %29366 = vmatmul.mubr.f32.gmra.mrb[36].mxu1 %v36461_v62  ;;  %v15078_v62 = vand.u32 4294901760, %v36917_v50 }
0x1a96   :  { %29128 = vmatprep.mubr.f32.mxu0 %v36498_v27  ;;  %29368 = vmatprep.mubr.f32.mxu1 %v36498_v27  ;;  %v36929_v27 = vsub.f32 %v36851_v17, %v15507_v19 }
0x1a97   :  { %31636 = vmatprep.subr.bf16.mxu0 %v36902_v1  ;;  %v37026_v26 = vpack.c.bf16 %v15078_v62, %v15071_v61 }
0x1a98   :  { %v15610_v20 = vand.u32 4294901760, %v36929_v27 }
0x1a99   :  { %29129 = vmatmul.mubr.f32.gmra.mrb[22].mxu0 %v36491_v2  ;;  %29369 = vmatmul.mubr.f32.gmra.mrb[38].mxu1 %v36491_v2  ;;  %v36926_v2 = vsub.f32 %v36849_v7, %v15504_v16 }
0x1a9a   :  { %29131 = vmatprep.mubr.f32.mxu0 %v36533_v40  ;;  %29371 = vmatprep.mubr.f32.mxu1 %v36533_v40  ;;  %v15079_v40 = vsub.f32 %v36917_v50, %v15078_v62  ;;  %v15611_v28 = vsub.f32 %v36929_v27, %v15610_v20 }
0x1a9b   :  { %v36990_v55 = vpack.c.bf16 %v36929_v27, %v36926_v2 }
0x1a9c   :  { %v15612_v51 = vand.u32 4294901760, %v15611_v28 }
0x1a9d   :  { %29132 = vmatmul.mubr.f32.gmra.mrb[24].mxu0 %v36528_v45  ;;  %29372 = vmatmul.mubr.f32.gmra.mrb[40].mxu1 %v36528_v45  ;;  %v15072_v45 = vsub.f32 %v36915_v60, %v15071_v61 }
0x1a9e   :  { %29134 = vmatprep.mubr.f32.mxu0 %v36559_v58  ;;  %29374 = vmatprep.mubr.f32.mxu1 %v36559_v58  ;;  %v15603_v58 = vand.u32 4294901760, %v36926_v2 }
0x1aa0   :  { %v15604_v23 = vsub.f32 %v36926_v2, %v15603_v58  ;;  %v37038_v33 = vpack.c.bf16 %v15610_v20, %v15603_v58 }
0x1aa1   :  { %29135 = vmatmul.mubr.f32.gmra.mrb[26].mxu0 %v36553_v18  ;;  %29375 = vmatmul.mubr.f32.gmra.mrb[42].mxu1 %v36553_v18  ;;  %v15073_v18 = vand.u32 4294901760, %v15072_v45 }
0x1aa2   :  { %29137 = vmatprep.mubr.f32.mxu0 %v36587_v46  ;;  %29377 = vmatprep.mubr.f32.mxu1 %v36587_v46  ;;  %v15080_v46 = vand.u32 4294901760, %v15079_v40 }
0x1aa5   :  { %29138 = vmatmul.mubr.f32.gmra.mrb[28].mxu0 %v36578_v25  ;;  %29378 = vmatmul.mubr.f32.gmra.mrb[44].mxu1 %v36578_v25  ;;  %v36957_v25 = vpack.c.bf16 %v15080_v46, %v15073_v18 }
0x1aa6   :  { %29140 = vmatprep.mubr.f32.mxu0 %v36618_v21  ;;  %29380 = vmatprep.mubr.f32.mxu1 %v36618_v21  ;;  %v15605_v21 = vand.u32 4294901760, %v15604_v23 }
0x1aa8   :  { %v36963_v39 = vpack.c.bf16 %v15612_v51, %v15605_v21 }
0x1aa9   :  { %29141 = vmatmul.mubr.f32.gmra.mrb[30].mxu0 %v36616_v14  ;;  %29381 = vmatmul.mubr.f32.gmra.mrb[46].mxu1 %v36616_v14  ;;  %v36967_v14 = vpack.c.bf16 %v36855_v43, %v36853_v49 }
0x1aaa   :  { %29391 = vmatprep.mubr.f32.mxu0 %v38390_v13  ;;  %29457 = vmatprep.mubr.f32.mxu1 %v38390_v13 }
0x1aad   :  { %29392 = vmatmul.mubr.f32.vlgmr.msra.gmra.mrb[16].mxu0 %v38390_v13 }
0x1aae   :  { %31638 = vmatpush3.bf16.msra.mxu0 %v36902_v1  ;;  %29402 = vmatprep.mubr.f32.mxu0 %v38390_v13 }
0x1aaf   :  { %31640 = vmatprep.subr.bf16.mxu0 %v36957_v25 }
0x1ab1   :  { %29458 = vmatmul.mubr.f32.vlgmr.msra.gmra.mrb[46].mxu1 %v38390_v13 }
0x1ab2   :  { %31686 = vmatpush3.bf16.msra.mxu1 %v36894_v3  ;;  %31642 = vmatpush3.bf16.msra.mxu0 %v36957_v25 }
0x1ab3   :  { %31688 = vmatprep.subr.bf16.mxu1 %v36963_v39  ;;  %31644 = vmatprep.subr.bf16.mxu0 %v36967_v14 }
0x1ab4   :  { %29468 = vmatprep.mubr.f32.mxu1 %v38390_v13 }
0x1ab5   :  { %29403 = vmatmul.mubr.f32.vlgmr.msra.gmra.mrb[16].mxu0 %v38390_v13 }
0x1ab6   :  { %31690 = vmatpush3.bf16.msra.mxu1 %v36963_v39  ;;  %31646 = vmatpush3.bf16.msra.mxu0 %v36967_v14 }
0x1ab7   :  { %31692 = vmatprep.subr.bf16.mxu1 %v36976_v0  ;;  %31648 = vmatprep.subr.bf16.mxu0 %v36980_v12 }
0x1ab8   :  { %29413 = vmatprep.mubr.f32.mxu0 %v38390_v13 }
0x1ab9   :  { %29469 = vmatmul.mubr.f32.vlgmr.msra.gmra.mrb[46].mxu1 %v38390_v13 }
0x1aba   :  { %31694 = vmatpush3.bf16.msra.mxu1 %v36976_v0  ;;  %31650 = vmatpush3.bf16.msra.mxu0 %v36980_v12 }
0x1abb   :  { %31696 = vmatprep.subr.bf16.mxu1 %v36990_v55  ;;  %31652 = vmatprep.subr.bf16.mxu0 %v36832_v10 }
0x1abc   :  { %29479 = vmatprep.mubr.f32.mxu1 %v38390_v13 }
0x1abd   :  { %29414 = vmatmul.mubr.f32.vlgmr.msra.gmra.mrb[16].mxu0 %v38390_v13 }
0x1abe   :  { %31698 = vmatpush3.bf16.msra.mxu1 %v36990_v55  ;;  %31654 = vmatpush3.bf16.msra.mxu0 %v36832_v10 }
0x1abf   :  { %31700 = vmatprep.subr.bf16.mxu1 %v36824_v53  ;;  %31656 = vmatprep.subr.bf16.mxu0 %v36891_v29 }
0x1ac0   :  { %29424 = vmatprep.mubr.f32.mxu0 %v38390_v13 }
0x1ac1   :  { %29480 = vmatmul.mubr.f32.vlgmr.msra.gmra.mrb[46].mxu1 %v38390_v13 }
0x1ac2   :  { %31702 = vmatpush3.bf16.msra.mxu1 %v36824_v53  ;;  %31658 = vmatpush3.bf16.msra.mxu0 %v36891_v29 }
0x1ac3   :  { %31704 = vmatprep.subr.bf16.mxu1 %v36877_v35  ;;  %31660 = vmatprep.subr.bf16.mxu0 %v37008_v22 }
0x1ac4   :  { %29490 = vmatprep.mubr.f32.mxu1 %v38390_v13 }
0x1ac5   :  { %29425 = vmatmul.mubr.f32.vlgmr.msra.gmra.mrb[16].mxu0 %v38390_v13 }
0x1ac6   :  { %31706 = vmatpush3.bf16.msra.mxu1 %v36877_v35  ;;  %31662 = vmatpush3.bf16.msra.mxu0 %v37008_v22 }
0x1ac7   :  { %31708 = vmatprep.subr.bf16.mxu1 %v37020_v38  ;;  %31664 = vmatprep.subr.bf16.mxu0 %v37026_v26 }
0x1ac8   :  { %29435 = vmatprep.mubr.f32.mxu0 %v38390_v13 }
0x1ac9   :  { %29491 = vmatmul.mubr.f32.vlgmr.msra.gmra.mrb[46].mxu1 %v38390_v13 }
0x1aca   :  { %31710 = vmatpush3.bf16.msra.mxu1 %v37020_v38  ;;  %31666 = vmatpush3.bf16.msra.mxu0 %v37026_v26 }
0x1acb   :  { %31712 = vmatprep.subr.bf16.mxu1 %v37038_v33  ;;  %31668 = vmatprep.subr.bf16.mxu0 %v36832_v10 }
0x1acc   :  { %29501 = vmatprep.mubr.f32.mxu1 %v38390_v13 }
0x1acd   :  { %29436 = vmatmul.mubr.f32.vlgmr.msra.gmra.mrb[16].mxu0 %v38390_v13 }
0x1ace   :  { %31714 = vmatpush3.bf16.msra.mxu1 %v37038_v33  ;;  %31670 = vmatpush3.bf16.msra.mxu0 %v36832_v10 }
0x1acf   :  { %31716 = vmatprep.subr.bf16.mxu1 %v36824_v53  ;;  %31672 = vmatprep.subr.bf16.mxu0 %v36891_v29 }
0x1ad0   :  { %29446 = vmatprep.mubr.f32.mxu0 %v38390_v13 }
0x1ad1   :  { %29502 = vmatmul.mubr.f32.vlgmr.msra.gmra.mrb[46].mxu1 %v38390_v13 }
0x1ad2   :  { %31718 = vmatpush3.bf16.msra.mxu1 %v36824_v53  ;;  %31674 = vmatpush3.bf16.msra.mxu0 %v36891_v29 }
0x1ad3   :  { %31720 = vmatprep.subr.bf16.mxu1 %v36877_v35  ;;  %29512 = vmatprep.mubr.f32.mxu1 %v38390_v13 }
0x1ad4   :  { %31724 = vmatprep.subr.bf16.mxu0 %v36832_v10 }
0x1ad5   :  { %29447 = vmatmul.mubr.f32.vlgmr.msra.gmra.mrb[16].mxu0 %v38390_v13 }
0x1ad6   :  { %31722 = vmatpush3.bf16.msra.mxu1 %v36877_v35  ;;  %31726 = vmatpush3.bf16.msra.mxu0 %v36832_v10 }
0x1ad7   :  { %31772 = vmatprep.subr.bf16.mxu1 %v36824_v53  ;;  %31728 = vmatprep.subr.bf16.mxu0 %v36891_v29 }
0x1ad9   :  { %29513 = vmatmul.mubr.f32.vlgmr.msra.gmra.mrb[46].mxu1 %v38390_v13 }
0x1ada   :  { %31774 = vmatpush3.bf16.msra.mxu1 %v36824_v53  ;;  %31730 = vmatpush3.bf16.msra.mxu0 %v36891_v29 }
0x1adb   :  { %31776 = vmatprep.subr.bf16.mxu1 %v36877_v35  ;;  %31732 = vmatprep.subr.bf16.mxu0 %v36902_v1 }
0x1ade   :  { %31778 = vmatpush3.bf16.msra.mxu1 %v36877_v35 }
0x1adf   :  { %31780 = vmatprep.subr.bf16.mxu1 %v36894_v3 }
0x1ba8   :  { %v29448_v48 = vpop.f32.mrb[16].mxu0 }
0x1ba9   :  { %v15483_v24 = vpop.f32.mrb[17].mxu0  ;;  %v32543_v57 = vadd.f32 %v29448_v48, %v37079_v37 }
0x1baa   :  { %v32544_v7 = vadd.f32 %v37079_v37, %v15483_v24 }
0x1bab   :  { %v25679_v19 = vmul.f32 -1.442695, %v32543_v57 }
0x1bac   :  { %v29514_v34 = vpop.f32.mrb[46].mxu1  ;;  %v25678_v42 = vmul.f32 -1.442695, %v32544_v7 }
0x1bad   :  { %v32573_v52 = vadd.f32 %v29514_v34, %v37074_v41  ;;  %v16015_v8 = vpop.f32.mrb[47].mxu1 }
0x1bae   :  { %v32574_v47 = vadd.f32 %v37074_v41, %v16015_v8 }
0x1baf   :  { %33620 = vtanh.f32 %v32573_v52  ;;  %v25681_v59 = vmul.f32 -1.442695, %v32573_v52 }
0x1bb0   :  { %33622 = vtanh.f32 %v32574_v47  ;;  %v25680_v16 = vmul.f32 -1.442695, %v32574_v47 }
0x1bb1   :  { %33624 = vtanh.f32 %v32543_v57 }
0x1bb2   :  { %33626 = vtanh.f32 %v32544_v7 }
0x1bb3   :  { %33628 = vpow2.f32 %v25681_v59 }
0x1bb4   :  { %33630 = vpow2.f32 %v25680_v16 }
0x1bb5   :  { %33632 = vpow2.f32 %v25679_v19 }
0x1bb6   :  { %33634 = vpow2.f32 %v25678_v42 }
0x1bb9   :  { %v33621_v17 = vpop.eup %33620 }
0x1bba   :  { %v33623_v49 = vpop.eup %33622  ;;  %16095 = vrot.lane.b32.xlu1 %v33621_v17, %s33968_s14 }
0x1bbb   :  { %16093 = vrot.lane.b32.xlu0 %v33623_v49, %s33968_s14  ;;  %v33625_v43 = vpop.eup %33624 }
0x1bbc   :  { %v33627_v30 = vpop.eup %33626 }
0x1bbd   :  { %v33629_v36 = vpop.eup %33628 }
0x1bbe   :  { %16047 = vrot.lane.b32.xlu1 %v33625_v43, %s33968_s14  ;;  %v33631_v15 = vpop.eup %33630  ;;  %v16082_v31 = vadd.f32 1.0, %v33629_v36 }
0x1bbf   :  { %16045 = vrot.lane.b32.xlu0 %v33627_v30, %s33968_s14  ;;  %v33633_v6 = vpop.eup %33632  ;;  %v16081_v9 = vadd.f32 1.0, %v33631_v15 }
0x1bc0   :  { %v33635_v56 = vpop.eup %33634  ;;  %v16034_v5 = vadd.f32 1.0, %v33633_v6  ;;  %33636 = vrcp.f32 %v16082_v31 }
0x1bc1   :  { %v16033_v11 = vadd.f32 1.0, %v33635_v56  ;;  %33638 = vrcp.f32 %v16081_v9 }
0x1bc2   :  { %33640 = vrcp.f32 %v16034_v5 }
0x1bc3   :  { %33642 = vrcp.f32 %v16033_v11 }
0x1bca   :  { %v33637_v44 = vpop.eup %33636 }
0x1bcb   :  { %v33639_v63 = vpop.eup %33638  ;;  %v16090_v40 = vmul.f32 0.0, %v33637_v44 }
0x1bcc   :  { %v33641_v50 = vpop.eup %33640  ;;  %v16089_v20 = vmul.f32 0.0, %v33639_v63 }
0x1bcd   :  { %v33643_v62 = vpop.eup %33642  ;;  %v16042_v28 = vmul.f32 0.0, %v33641_v50 }
0x1bce   :  { %v16041_v21 = vmul.f32 0.0, %v33643_v62 }
0x1c2c   :  { %v16096_v32 = vpop.permute.xlu1 %16095 }
0x1c2d   :  { %v16100_v4 = vmul.f32 %v33637_v44, %v16096_v32  ;;  %v16094_v54 = vpop.permute.xlu0 %16093 }
0x1c2e   :  { %v16099_v60 = vmul.f32 %v33639_v63, %v16094_v54 }
0x1c2f   :  { %16105 = vrot.lane.b32.xlu1 %v16100_v4, %s33969_s15 }
0x1c30   :  { %v16048_v61 = vpop.permute.xlu1 %16047  ;;  %16103 = vrot.lane.b32.xlu0 %v16099_v60, %s33969_s15 }
0x1c31   :  { %v16052_v2 = vmul.f32 %v33641_v50, %v16048_v61  ;;  %v16046_v27 = vpop.permute.xlu0 %16045 }
0x1c32   :  { %v16051_v45 = vmul.f32 %v33643_v62, %v16046_v27 }
0x1c33   :  { %16057 = vrot.lane.b32.xlu1 %v16052_v2, %s33969_s15 }
0x1c34   :  { %16055 = vrot.lane.b32.xlu0 %v16051_v45, %s33969_s15 }
0x1ca1   :  { %v16106_v58 = vpop.permute.xlu1 %16105 }
0x1ca2   :  { %v37093_v18 = vadd.f32 %v16106_v58, %v16090_v40  ;;  %v16104_v46 = vpop.permute.xlu0 %16103 }
0x1ca3   :  { %v37095_v23 = vadd.f32 %v16104_v46, %v16089_v20 }
0x1ca4   :  { %33644 = vtanh.f32 %v37093_v18 }
0x1ca5   :  { %33646 = vtanh.f32 %v37095_v23  ;;  %v16058_v13 = vpop.permute.xlu1 %16057 }
0x1ca6   :  { %v37099_v51 = vadd.f32 %v16058_v13, %v16042_v28  ;;  %v16056_v48 = vpop.permute.xlu0 %16055 }
0x1ca7   :  { %v37101_v24 = vadd.f32 %v16056_v48, %v16041_v21 }
0x1ca8   :  { %33648 = vtanh.f32 %v37099_v51 }
0x1ca9   :  { %33650 = vtanh.f32 %v37101_v24 }
0x1cae   :  { %v33645_v34 = vpop.eup %33644 }
0x1caf   :  { %v33647_v52 = vpop.eup %33646  ;;  %16117 = vrot.lane.b32.xlu1 %v33645_v34, %s33968_s14 }
0x1cb0   :  { %16115 = vrot.lane.b32.xlu0 %v33647_v52, %s33968_s14 }
0x1cb2   :  { %v33649_v8 = vpop.eup %33648 }
0x1cb3   :  { %v33651_v47 = vpop.eup %33650  ;;  %16069 = vrot.lane.b32.xlu1 %v33649_v8, %s33968_s14 }
0x1cb4   :  { %16067 = vrot.lane.b32.xlu0 %v33651_v47, %s33968_s14 }
0x1d21   :  { %v16118_v57 = vpop.permute.xlu1 %16117 }
0x1d22   :  { %v37109_v7 = vmul.f32 %v33637_v44, %v16118_v57  ;;  %v16116_v17 = vpop.permute.xlu0 %16115 }
0x1d23   :  { %v37111_v49 = vmul.f32 %v33639_v63, %v16116_v17 }
0x1d24   :  { %16684 = vrot.lane.b32.xlu1 %v37109_v7, %s33969_s15 }
0x1d25   :  { %v16070_v43 = vpop.permute.xlu1 %16069  ;;  %16682 = vrot.lane.b32.xlu0 %v37111_v49, %s33969_s15 }
0x1d26   :  { %v16074_v30 = vmul.f32 %v33641_v50, %v16070_v43  ;;  %v16068_v59 = vpop.permute.xlu0 %16067 }
0x1d27   :  { %v16073_v16 = vmul.f32 %v33643_v62, %v16068_v59 }
0x1d28   :  { %16127 = vrot.lane.b32.xlu1 %v16074_v30, %s33969_s15 }
0x1d29   :  { %16125 = vrot.lane.b32.xlu0 %v16073_v16, %s33969_s15 }
0x1d96   :  { %v16685_v19 = vpop.permute.xlu1 %16684 }
0x1d97   :  { %v16688_v42 = vsel %vm503_vm0, %v16685_v19, 0  ;;  %v16683_v36 = vpop.permute.xlu0 %16682 }
0x1d98   :  { %v37120_v15 = vand.u32 4294901760, %v16688_v42  ;;  %v16686_v31 = vsel %vm503_vm0, %v16683_v36, 0 }
0x1d99   :  { %v37123_v6 = vand.u32 4294901760, %v16686_v31 }
0x1d9a   :  { %v16770_v9 = vsub.f32 %v16688_v42, %v37120_v15  ;;  %v16128_v56 = vpop.permute.xlu1 %16127 }
0x1d9b   :  { %v16760_v5 = vsub.f32 %v16686_v31, %v37123_v6  ;;  %16132 = vst.msk [vmem:[#allocation9 + $0x8] sm:$0xff] %vm503_vm0, %v16128_v56  ;;  %v16148_v11 = vsel %vm503_vm0, %v16128_v56, 0  ;;  %v16126_v44 = vpop.permute.xlu0 %16125 }
0x1d9c   :  { %v16771_v32 = vand.u32 4294901760, %v16770_v9  ;;  %v37129_v63 = vand.u32 4294901760, %v16148_v11  ;;  %16131 = vst.msk [vmem:[#allocation9] sm:$0xff] %vm503_vm0, %v16126_v44  ;;  %v16146_v4 = vsel %vm503_vm0, %v16126_v44, 0 }
0x1d9d   :  { %v37133_v54 = vand.u32 4294901760, %v16146_v4  ;;  %v16761_v60 = vand.u32 4294901760, %v16760_v5 }
0x1d9e   :  { %v16772_v50 = vsub.f32 %v16770_v9, %v16771_v32  ;;  %v16230_v61 = vsub.f32 %v16148_v11, %v37129_v63 }
0x1d9f   :  { %v16220_v62 = vsub.f32 %v16146_v4, %v37133_v54  ;;  %v16762_v2 = vsub.f32 %v16760_v5, %v16761_v60 }
0x1da0   :  { %v16231_v27 = vand.u32 4294901760, %v16230_v61  ;;  %v16773_v58 = vand.u32 4294901760, %v16772_v50 }
0x1da1   :  { %v16763_v45 = vand.u32 4294901760, %v16762_v2  ;;  %v16221_v40 = vand.u32 4294901760, %v16220_v62 }
0x1da2   :  { %v16232_v20 = vsub.f32 %v16230_v61, %v16231_v27 }
0x1da3   :  { %29589 = vmatprep.mubr.f32.mxu1 %v16763_v45  ;;  %v16222_v46 = vsub.f32 %v16220_v62, %v16221_v40 }
0x1da4   :  { %29590 = vmatmul.mubr.f32.vlgmr.msra.gmra.mrb[44].mxu1 %v16773_v58  ;;  %v16233_v13 = vand.u32 4294901760, %v16232_v20 }
0x1da5   :  { %31782 = vmatpush3.bf16.msra.mxu1 %v36894_v3  ;;  %29600 = vmatprep.mubr.f32.mxu1 %v37123_v6  ;;  %v16223_v28 = vand.u32 4294901760, %v16222_v46 }
0x1da6   :  { %31784 = vmatprep.subr.bf16.mxu1 %v36963_v39 }
0x1da7   :  { %29523 = vmatprep.mubr.f32.mxu0 %v16223_v28 }
0x1da8   :  { %29524 = vmatmul.mubr.f32.vlgmr.msra.gmra.mrb[18].mxu0 %v16233_v13 }
0x1da9   :  { %31786 = vmatpush3.bf16.msra.mxu1 %v36963_v39  ;;  %31734 = vmatpush3.bf16.msra.mxu0 %v36902_v1 }
0x1daa   :  { %29534 = vmatprep.mubr.f32.mxu0 %v37133_v54  ;;  %31788 = vmatprep.subr.bf16.mxu1 %v36976_v0 }
0x1dab   :  { %31736 = vmatprep.subr.bf16.mxu0 %v36957_v25 }
0x1dac   :  { %29601 = vmatmul.mubr.f32.vlgmr.msra.gmra.mrb[44].mxu1 %v37120_v15 }
0x1dad   :  { %31790 = vmatpush3.bf16.msra.mxu1 %v36976_v0  ;;  %31738 = vmatpush3.bf16.msra.mxu0 %v36957_v25 }
0x1dae   :  { %29611 = vmatprep.mubr.f32.mxu1 %v16760_v5  ;;  %31792 = vmatprep.subr.bf16.mxu1 %v36990_v55 }
0x1daf   :  { %31740 = vmatprep.subr.bf16.mxu0 %v36967_v14 }
0x1db0   :  { %29535 = vmatmul.mubr.f32.vlgmr.msra.gmra.mrb[18].mxu0 %v37129_v63 }
0x1db1   :  { %31794 = vmatpush3.bf16.msra.mxu1 %v36990_v55  ;;  %31742 = vmatpush3.bf16.msra.mxu0 %v36967_v14 }
0x1db2   :  { %29545 = vmatprep.mubr.f32.mxu0 %v16220_v62  ;;  %31796 = vmatprep.subr.bf16.mxu1 %v36824_v53 }
0x1db3   :  { %31744 = vmatprep.subr.bf16.mxu0 %v36980_v12 }
0x1db4   :  { %29612 = vmatmul.mubr.f32.vlgmr.msra.gmra.mrb[44].mxu1 %v16770_v9 }
0x1db5   :  { %31798 = vmatpush3.bf16.msra.mxu1 %v36824_v53  ;;  %31746 = vmatpush3.bf16.msra.mxu0 %v36980_v12 }
0x1db6   :  { %29622 = vmatprep.mubr.f32.mxu1 %v16761_v60  ;;  %31800 = vmatprep.subr.bf16.mxu1 %v36877_v35 }
0x1db7   :  { %31748 = vmatprep.subr.bf16.mxu0 %v36832_v10 }
0x1db8   :  { %29546 = vmatmul.mubr.f32.vlgmr.msra.gmra.mrb[18].mxu0 %v16230_v61 }
0x1db9   :  { %31802 = vmatpush3.bf16.msra.mxu1 %v36877_v35  ;;  %31750 = vmatpush3.bf16.msra.mxu0 %v36832_v10 }
0x1dba   :  { %29556 = vmatprep.mubr.f32.mxu0 %v16221_v40  ;;  %31804 = vmatprep.subr.bf16.mxu1 %v37020_v38 }
0x1dbb   :  { %31752 = vmatprep.subr.bf16.mxu0 %v36891_v29 }
0x1dbc   :  { %29623 = vmatmul.mubr.f32.vlgmr.msra.gmra.mrb[44].mxu1 %v16771_v32 }
0x1dbd   :  { %31806 = vmatpush3.bf16.msra.mxu1 %v37020_v38  ;;  %31754 = vmatpush3.bf16.msra.mxu0 %v36891_v29 }
0x1dbe   :  { %29633 = vmatprep.mubr.f32.mxu1 %v37123_v6  ;;  %31808 = vmatprep.subr.bf16.mxu1 %v37038_v33 }
0x1dbf   :  { %31756 = vmatprep.subr.bf16.mxu0 %v37008_v22 }
0x1dc0   :  { %29557 = vmatmul.mubr.f32.vlgmr.msra.gmra.mrb[18].mxu0 %v16231_v27 }
0x1dc1   :  { %31810 = vmatpush3.bf16.msra.mxu1 %v37038_v33  ;;  %31758 = vmatpush3.bf16.msra.mxu0 %v37008_v22 }
0x1dc2   :  { %29567 = vmatprep.mubr.f32.mxu0 %v37133_v54  ;;  %31812 = vmatprep.subr.bf16.mxu1 %v36824_v53 }
0x1dc3   :  { %31760 = vmatprep.subr.bf16.mxu0 %v37026_v26 }
0x1dc4   :  { %29634 = vmatmul.mubr.f32.vlgmr.msra.gmra.mrb[44].mxu1 %v37120_v15 }
0x1dc5   :  { %31814 = vmatpush3.bf16.msra.mxu1 %v36824_v53  ;;  %31762 = vmatpush3.bf16.msra.mxu0 %v37026_v26 }
0x1dc6   :  { %29644 = vmatprep.mubr.f32.mxu1 %v37123_v6  ;;  %31816 = vmatprep.subr.bf16.mxu1 %v36877_v35 }
0x1dc7   :  { %31764 = vmatprep.subr.bf16.mxu0 %v36832_v10 }
0x1dc8   :  { %29568 = vmatmul.mubr.f32.vlgmr.msra.gmra.mrb[18].mxu0 %v37129_v63 }
0x1dc9   :  { %31818 = vmatpush3.bf16.msra.mxu1 %v36877_v35  ;;  %31766 = vmatpush3.bf16.msra.mxu0 %v36832_v10 }
0x1dca   :  { %29578 = vmatprep.mubr.f32.mxu0 %v37133_v54  ;;  %31768 = vmatprep.subr.bf16.mxu0 %v36891_v29 }
0x1dcb   :  { %31868 = vmatprep.subr.bf16.mxu1 %v36824_v53 }
0x1dcc   :  { %29645 = vmatmul.mubr.f32.vlgmr.msra.gmra.mrb[44].mxu1 %v37120_v15 }
0x1dcd   :  { %31770 = vmatpush3.bf16.msra.mxu0 %v36891_v29  ;;  %31870 = vmatpush3.bf16.msra.mxu1 %v36824_v53 }
0x1dce   :  { %31872 = vmatprep.subr.bf16.mxu1 %v36877_v35  ;;  %31820 = vmatprep.subr.bf16.mxu0 %v36832_v10 }
0x1dd0   :  { %29579 = vmatmul.mubr.f32.vlgmr.msra.gmra.mrb[18].mxu0 %v37129_v63 }
0x1dd1   :  { %31874 = vmatpush3.bf16.msra.mxu1 %v36877_v35  ;;  %31822 = vmatpush3.bf16.msra.mxu0 %v36832_v10 }
0x1dd2   :  { %31876 = vmatprep.subr.bf16.mxu1 %v36894_v3  ;;  %31824 = vmatprep.subr.bf16.mxu0 %v36891_v29 }
0x1dd5   :  { %31826 = vmatpush3.bf16.msra.mxu0 %v36891_v29 }
0x1dd6   :  { %31828 = vmatprep.subr.bf16.mxu0 %v36902_v1 }
0x1e9f   :  { %v29646_v21 = vpop.f32.mrb[44].mxu1 }
0x1ea0   :  { %v32571_v48 = vadd.f32 %v29646_v21, %v37074_v41  ;;  %v17208_v34 = vpop.f32.mrb[45].mxu1 }
0x1ea1   :  { %v32572_v52 = vadd.f32 %v37074_v41, %v17208_v34 }
0x1ea2   :  { %33652 = vtanh.f32 %v32571_v48  ;;  %v25685_v19 = vmul.f32 -1.442695, %v32571_v48 }
0x1ea3   :  { %33654 = vtanh.f32 %v32572_v52  ;;  %v29580_v8 = vpop.f32.mrb[18].mxu0  ;;  %v25684_v42 = vmul.f32 -1.442695, %v32572_v52 }
0x1ea4   :  { %v32545_v47 = vadd.f32 %v29580_v8, %v37079_v37  ;;  %v16668_v57 = vpop.f32.mrb[19].mxu0 }
0x1ea5   :  { %v32546_v17 = vadd.f32 %v37079_v37, %v16668_v57 }
0x1ea6   :  { %33656 = vtanh.f32 %v32545_v47  ;;  %v25683_v36 = vmul.f32 -1.442695, %v32545_v47 }
0x1ea7   :  { %33658 = vtanh.f32 %v32546_v17  ;;  %v25682_v15 = vmul.f32 -1.442695, %v32546_v17 }
0x1ea8   :  { %33660 = vpow2.f32 %v25685_v19 }
0x1ea9   :  { %33662 = vpow2.f32 %v25684_v42 }
0x1eaa   :  { %33664 = vpow2.f32 %v25683_v36 }
0x1eab   :  { %33666 = vpow2.f32 %v25682_v15 }
0x1eac   :  { %v33653_v43 = vpop.eup %33652 }
0x1ead   :  { %v33655_v30 = vpop.eup %33654  ;;  %17288 = vrot.lane.b32.xlu1 %v33653_v43, %s33968_s14 }
0x1eae   :  { %17286 = vrot.lane.b32.xlu0 %v33655_v30, %s33968_s14 }
0x1eb0   :  { %v33657_v59 = vpop.eup %33656 }
0x1eb1   :  { %v33659_v16 = vpop.eup %33658  ;;  %17240 = vrot.lane.b32.xlu1 %v33657_v59, %s33968_s14 }
0x1eb2   :  { %17238 = vrot.lane.b32.xlu0 %v33659_v16, %s33968_s14  ;;  %v33661_v31 = vpop.eup %33660 }
0x1eb3   :  { %v33663_v6 = vpop.eup %33662  ;;  %v17275_v9 = vadd.f32 1.0, %v33661_v31 }
0x1eb4   :  { %v33665_v56 = vpop.eup %33664  ;;  %v17274_v5 = vadd.f32 1.0, %v33663_v6 }
0x1eb5   :  { %v33667_v11 = vpop.eup %33666  ;;  %33668 = vrcp.f32 %v17275_v9  ;;  %v17227_v44 = vadd.f32 1.0, %v33665_v56 }
0x1eb6   :  { %33670 = vrcp.f32 %v17274_v5  ;;  %v17226_v32 = vadd.f32 1.0, %v33667_v11 }
0x1eb7   :  { %33672 = vrcp.f32 %v17227_v44 }
0x1eb8   :  { %33674 = vrcp.f32 %v17226_v32 }
0x1ebf   :  { %v33669_v63 = vpop.eup %33668 }
0x1ec0   :  { %v33671_v54 = vpop.eup %33670  ;;  %v17283_v20 = vmul.f32 %v33669_v63, %v37093_v18 }
0x1ec1   :  { %v33673_v62 = vpop.eup %33672  ;;  %v17282_v28 = vmul.f32 %v33671_v54, %v37095_v23 }
0x1ec2   :  { %v33675_v27 = vpop.eup %33674  ;;  %v17235_v34 = vmul.f32 %v33673_v62, %v37099_v51 }
0x1ec3   :  { %v17234_v8 = vmul.f32 %v33675_v27, %v37101_v24 }
0x1f1f   :  { %v17289_v4 = vpop.permute.xlu1 %17288 }
0x1f20   :  { %v17293_v60 = vmul.f32 %v33669_v63, %v17289_v4  ;;  %v17287_v50 = vpop.permute.xlu0 %17286 }
0x1f21   :  { %v17292_v61 = vmul.f32 %v33671_v54, %v17287_v50 }
0x1f22   :  { %17298 = vrot.lane.b32.xlu1 %v17293_v60, %s33969_s15 }
0x1f23   :  { %v17241_v2 = vpop.permute.xlu1 %17240  ;;  %17296 = vrot.lane.b32.xlu0 %v17292_v61, %s33969_s15 }
0x1f24   :  { %v17245_v45 = vmul.f32 %v33673_v62, %v17241_v2  ;;  %v17239_v40 = vpop.permute.xlu0 %17238 }
0x1f25   :  { %v17244_v58 = vmul.f32 %v33675_v27, %v17239_v40 }
0x1f26   :  { %17250 = vrot.lane.b32.xlu1 %v17245_v45, %s33969_s15 }
0x1f27   :  { %17248 = vrot.lane.b32.xlu0 %v17244_v58, %s33969_s15 }
0x1f94   :  { %v17299_v46 = vpop.permute.xlu1 %17298 }
0x1f95   :  { %v37211_v13 = vadd.f32 %v17299_v46, %v17283_v20  ;;  %v17297_v21 = vpop.permute.xlu0 %17296 }
0x1f96   :  { %v37213_v48 = vadd.f32 %v17297_v21, %v17282_v28 }
0x1f97   :  { %33676 = vtanh.f32 %v37211_v13 }
0x1f98   :  { %33678 = vtanh.f32 %v37213_v48  ;;  %v17251_v52 = vpop.permute.xlu1 %17250 }
0x1f99   :  { %v37219_v47 = vadd.f32 %v17251_v52, %v17235_v34  ;;  %v17249_v18 = vpop.permute.xlu0 %17248 }
0x1f9a   :  { %v37221_v57 = vadd.f32 %v17249_v18, %v17234_v8 }
0x1f9b   :  { %33680 = vtanh.f32 %v37219_v47 }
0x1f9c   :  { %33682 = vtanh.f32 %v37221_v57 }
0x1fa1   :  { %v33677_v23 = vpop.eup %33676 }
0x1fa2   :  { %v33679_v17 = vpop.eup %33678  ;;  %17310 = vrot.lane.b32.xlu1 %v33677_v23, %s33968_s14 }
0x1fa3   :  { %17308 = vrot.lane.b32.xlu0 %v33679_v17, %s33968_s14 }
0x1fa5   :  { %v33681_v51 = vpop.eup %33680 }
0x1fa6   :  { %v33683_v43 = vpop.eup %33682  ;;  %17262 = vrot.lane.b32.xlu1 %v33681_v51, %s33968_s14 }
0x1fa7   :  { %17260 = vrot.lane.b32.xlu0 %v33683_v43, %s33968_s14 }
0x2014   :  { %v17311_v24 = vpop.permute.xlu1 %17310 }
0x2015   :  { %v37229_v30 = vmul.f32 %v33669_v63, %v17311_v24  ;;  %v17309_v59 = vpop.permute.xlu0 %17308 }
0x2016   :  { %v37231_v16 = vmul.f32 %v33671_v54, %v17309_v59 }
0x2017   :  { %17878 = vrot.lane.b32.xlu1 %v37229_v30, %s33969_s15 }
0x2018   :  { %v17263_v19 = vpop.permute.xlu1 %17262  ;;  %17876 = vrot.lane.b32.xlu0 %v37231_v16, %s33969_s15 }
0x2019   :  { %v17267_v42 = vmul.f32 %v33673_v62, %v17263_v19  ;;  %v17261_v36 = vpop.permute.xlu0 %17260 }
0x201a   :  { %v17266_v15 = vmul.f32 %v33675_v27, %v17261_v36 }
0x201b   :  { %17320 = vrot.lane.b32.xlu1 %v17267_v42, %s33969_s15 }
0x201c   :  { %17318 = vrot.lane.b32.xlu0 %v17266_v15, %s33969_s15 }
0x2089   :  { %v17879_v31 = vpop.permute.xlu1 %17878 }
0x208a   :  { %v17882_v6 = vsel %vm503_vm0, %v17879_v31, 0  ;;  %v17877_v9 = vpop.permute.xlu0 %17876 }
0x208b   :  { %v37240_v56 = vand.u32 4294901760, %v17882_v6  ;;  %v17880_v5 = vsel %vm503_vm0, %v17877_v9, 0 }
0x208c   :  { %v37243_v11 = vand.u32 4294901760, %v17880_v5 }
0x208d   :  { %v17964_v44 = vsub.f32 %v17882_v6, %v37240_v56  ;;  %v17321_v32 = vpop.permute.xlu1 %17320 }
0x208e   :  { %v17954_v63 = vsub.f32 %v17880_v5, %v37243_v11  ;;  %17326 = vst.msk [vmem:[#allocation9 + $0x18] sm:$0xff] %vm503_vm0, %v17321_v32  ;;  %v17342_v4 = vsel %vm503_vm0, %v17321_v32, 0  ;;  %v17319_v54 = vpop.permute.xlu0 %17318 }
0x208f   :  { %v17965_v60 = vand.u32 4294901760, %v17964_v44  ;;  %v37249_v50 = vand.u32 4294901760, %v17342_v4  ;;  %17325 = vst.msk [vmem:[#allocation9 + $0x10] sm:$0xff] %vm503_vm0, %v17319_v54  ;;  %v17340_v61 = vsel %vm503_vm0, %v17319_v54, 0 }
0x2090   :  { %v37253_v62 = vand.u32 4294901760, %v17340_v61  ;;  %v17955_v2 = vand.u32 4294901760, %v17954_v63 }
0x2091   :  { %v17966_v27 = vsub.f32 %v17964_v44, %v17965_v60  ;;  %v17424_v45 = vsub.f32 %v17342_v4, %v37249_v50 }
0x2092   :  { %v17414_v40 = vsub.f32 %v17340_v61, %v37253_v62  ;;  %v17956_v58 = vsub.f32 %v17954_v63, %v17955_v2 }
0x2093   :  { %v17425_v20 = vand.u32 4294901760, %v17424_v45  ;;  %v17967_v21 = vand.u32 4294901760, %v17966_v27 }
0x2094   :  { %v17957_v46 = vand.u32 4294901760, %v17956_v58  ;;  %v17415_v28 = vand.u32 4294901760, %v17414_v40 }
0x2095   :  { %v17426_v34 = vsub.f32 %v17424_v45, %v17425_v20 }
0x2096   :  { %29721 = vmatprep.mubr.f32.mxu1 %v17957_v46  ;;  %v17416_v52 = vsub.f32 %v17414_v40, %v17415_v28 }
0x2097   :  { %29722 = vmatmul.mubr.f32.vlgmr.msra.gmra.mrb[42].mxu1 %v17967_v21  ;;  %v17427_v18 = vand.u32 4294901760, %v17426_v34 }
0x2098   :  { %31878 = vmatpush3.bf16.msra.mxu1 %v36894_v3  ;;  %29732 = vmatprep.mubr.f32.mxu1 %v37243_v11  ;;  %v17417_v8 = vand.u32 4294901760, %v17416_v52 }
0x2099   :  { %31880 = vmatprep.subr.bf16.mxu1 %v36963_v39 }
0x209a   :  { %29655 = vmatprep.mubr.f32.mxu0 %v17417_v8 }
0x209b   :  { %29656 = vmatmul.mubr.f32.vlgmr.msra.gmra.mrb[20].mxu0 %v17427_v18 }
0x209c   :  { %31882 = vmatpush3.bf16.msra.mxu1 %v36963_v39  ;;  %31830 = vmatpush3.bf16.msra.mxu0 %v36902_v1 }
0x209d   :  { %29666 = vmatprep.mubr.f32.mxu0 %v37253_v62  ;;  %31884 = vmatprep.subr.bf16.mxu1 %v36976_v0 }
0x209e   :  { %31832 = vmatprep.subr.bf16.mxu0 %v36957_v25 }
0x209f   :  { %29733 = vmatmul.mubr.f32.vlgmr.msra.gmra.mrb[42].mxu1 %v37240_v56 }
0x20a0   :  { %31886 = vmatpush3.bf16.msra.mxu1 %v36976_v0  ;;  %31834 = vmatpush3.bf16.msra.mxu0 %v36957_v25 }
0x20a1   :  { %29743 = vmatprep.mubr.f32.mxu1 %v17954_v63  ;;  %31888 = vmatprep.subr.bf16.mxu1 %v36990_v55 }
0x20a2   :  { %31836 = vmatprep.subr.bf16.mxu0 %v36967_v14 }
0x20a3   :  { %29667 = vmatmul.mubr.f32.vlgmr.msra.gmra.mrb[20].mxu0 %v37249_v50 }
0x20a4   :  { %31890 = vmatpush3.bf16.msra.mxu1 %v36990_v55  ;;  %31838 = vmatpush3.bf16.msra.mxu0 %v36967_v14 }
0x20a5   :  { %29677 = vmatprep.mubr.f32.mxu0 %v17414_v40  ;;  %31892 = vmatprep.subr.bf16.mxu1 %v36824_v53 }
0x20a6   :  { %31840 = vmatprep.subr.bf16.mxu0 %v36980_v12 }
0x20a7   :  { %29744 = vmatmul.mubr.f32.vlgmr.msra.gmra.mrb[42].mxu1 %v17964_v44 }
0x20a8   :  { %31894 = vmatpush3.bf16.msra.mxu1 %v36824_v53  ;;  %31842 = vmatpush3.bf16.msra.mxu0 %v36980_v12 }
0x20a9   :  { %29754 = vmatprep.mubr.f32.mxu1 %v17955_v2  ;;  %31896 = vmatprep.subr.bf16.mxu1 %v36877_v35 }
0x20aa   :  { %31844 = vmatprep.subr.bf16.mxu0 %v36832_v10 }
0x20ab   :  { %29678 = vmatmul.mubr.f32.vlgmr.msra.gmra.mrb[20].mxu0 %v17424_v45 }
0x20ac   :  { %31898 = vmatpush3.bf16.msra.mxu1 %v36877_v35  ;;  %31846 = vmatpush3.bf16.msra.mxu0 %v36832_v10 }
0x20ad   :  { %29688 = vmatprep.mubr.f32.mxu0 %v17415_v28  ;;  %31900 = vmatprep.subr.bf16.mxu1 %v37020_v38 }
0x20ae   :  { %31848 = vmatprep.subr.bf16.mxu0 %v36891_v29 }
0x20af   :  { %29755 = vmatmul.mubr.f32.vlgmr.msra.gmra.mrb[42].mxu1 %v17965_v60 }
0x20b0   :  { %31902 = vmatpush3.bf16.msra.mxu1 %v37020_v38  ;;  %31850 = vmatpush3.bf16.msra.mxu0 %v36891_v29 }
0x20b1   :  { %29765 = vmatprep.mubr.f32.mxu1 %v37243_v11  ;;  %31904 = vmatprep.subr.bf16.mxu1 %v37038_v33 }
0x20b2   :  { %31852 = vmatprep.subr.bf16.mxu0 %v37008_v22 }
0x20b3   :  { %29689 = vmatmul.mubr.f32.vlgmr.msra.gmra.mrb[20].mxu0 %v17425_v20 }
0x20b4   :  { %31906 = vmatpush3.bf16.msra.mxu1 %v37038_v33  ;;  %31854 = vmatpush3.bf16.msra.mxu0 %v37008_v22 }
0x20b5   :  { %29699 = vmatprep.mubr.f32.mxu0 %v37253_v62  ;;  %31908 = vmatprep.subr.bf16.mxu1 %v36824_v53 }
0x20b6   :  { %31856 = vmatprep.subr.bf16.mxu0 %v37026_v26 }
0x20b7   :  { %29766 = vmatmul.mubr.f32.vlgmr.msra.gmra.mrb[42].mxu1 %v37240_v56 }
0x20b8   :  { %31910 = vmatpush3.bf16.msra.mxu1 %v36824_v53  ;;  %31858 = vmatpush3.bf16.msra.mxu0 %v37026_v26 }
0x20b9   :  { %29776 = vmatprep.mubr.f32.mxu1 %v37243_v11  ;;  %31912 = vmatprep.subr.bf16.mxu1 %v36877_v35 }
0x20ba   :  { %31860 = vmatprep.subr.bf16.mxu0 %v36832_v10 }
0x20bb   :  { %29700 = vmatmul.mubr.f32.vlgmr.msra.gmra.mrb[20].mxu0 %v37249_v50 }
0x20bc   :  { %31914 = vmatpush3.bf16.msra.mxu1 %v36877_v35  ;;  %31862 = vmatpush3.bf16.msra.mxu0 %v36832_v10 }
0x20bd   :  { %29710 = vmatprep.mubr.f32.mxu0 %v37253_v62  ;;  %31864 = vmatprep.subr.bf16.mxu0 %v36891_v29 }
0x20be   :  { %31964 = vmatprep.subr.bf16.mxu1 %v36824_v53 }
0x20bf   :  { %29777 = vmatmul.mubr.f32.vlgmr.msra.gmra.mrb[42].mxu1 %v37240_v56 }
0x20c0   :  { %31866 = vmatpush3.bf16.msra.mxu0 %v36891_v29  ;;  %31966 = vmatpush3.bf16.msra.mxu1 %v36824_v53 }
0x20c1   :  { %31968 = vmatprep.subr.bf16.mxu1 %v36877_v35  ;;  %31916 = vmatprep.subr.bf16.mxu0 %v36832_v10 }
0x20c3   :  { %29711 = vmatmul.mubr.f32.vlgmr.msra.gmra.mrb[20].mxu0 %v37249_v50 }
0x20c4   :  { %31970 = vmatpush3.bf16.msra.mxu1 %v36877_v35  ;;  %31918 = vmatpush3.bf16.msra.mxu0 %v36832_v10 }
0x20c5   :  { %31972 = vmatprep.subr.bf16.mxu1 %v36894_v3  ;;  %31920 = vmatprep.subr.bf16.mxu0 %v36891_v29 }
0x20c8   :  { %31922 = vmatpush3.bf16.msra.mxu0 %v36891_v29 }
0x20c9   :  { %31924 = vmatprep.subr.bf16.mxu0 %v36902_v1 }
0x2192   :  { %v29778_v23 = vpop.f32.mrb[42].mxu1 }
0x2193   :  { %v32569_v17 = vadd.f32 %v29778_v23, %v37074_v41  ;;  %v18402_v51 = vpop.f32.mrb[43].mxu1 }
0x2194   :  { %v32570_v43 = vadd.f32 %v37074_v41, %v18402_v51 }
0x2195   :  { %33684 = vtanh.f32 %v32569_v17  ;;  %v25689_v41 = vmul.f32 -1.442695, %v32569_v17 }
0x2196   :  { %33686 = vtanh.f32 %v32570_v43  ;;  %v29712_v24 = vpop.f32.mrb[20].mxu0  ;;  %v25688_v9 = vmul.f32 -1.442695, %v32570_v43 }
0x2197   :  { %v32547_v59 = vadd.f32 %v29712_v24, %v37079_v37  ;;  %v17862_v19 = vpop.f32.mrb[21].mxu0 }
0x2198   :  { %v32548_v42 = vadd.f32 %v37079_v37, %v17862_v19 }
0x2199   :  { %33688 = vtanh.f32 %v32547_v59  ;;  %v25687_v56 = vmul.f32 -1.442695, %v32547_v59 }
0x219a   :  { %33690 = vtanh.f32 %v32548_v42  ;;  %v25686_v37 = vmul.f32 -1.442695, %v32548_v42 }
0x219b   :  { %33692 = vpow2.f32 %v25689_v41 }
0x219c   :  { %33694 = vpow2.f32 %v25688_v9 }
0x219d   :  { %33696 = vpow2.f32 %v25687_v56 }
0x219e   :  { %33698 = vpow2.f32 %v25686_v37 }
0x219f   :  { %v33685_v36 = vpop.eup %33684 }
0x21a0   :  { %v33687_v15 = vpop.eup %33686  ;;  %18482 = vrot.lane.b32.xlu1 %v33685_v36, %s33968_s14 }
0x21a1   :  { %18480 = vrot.lane.b32.xlu0 %v33687_v15, %s33968_s14 }
0x21a3   :  { %v33689_v31 = vpop.eup %33688 }
0x21a4   :  { %v33691_v6 = vpop.eup %33690  ;;  %18434 = vrot.lane.b32.xlu1 %v33689_v31, %s33968_s14 }
0x21a5   :  { %18432 = vrot.lane.b32.xlu0 %v33691_v6, %s33968_s14  ;;  %v33693_v5 = vpop.eup %33692 }
0x21a6   :  { %v33695_v11 = vpop.eup %33694  ;;  %v18469_v44 = vadd.f32 1.0, %v33693_v5 }
0x21a7   :  { %v33697_v32 = vpop.eup %33696  ;;  %v18468_v63 = vadd.f32 1.0, %v33695_v11 }
0x21a8   :  { %v33699_v4 = vpop.eup %33698  ;;  %33700 = vrcp.f32 %v18469_v44  ;;  %v18421_v54 = vadd.f32 1.0, %v33697_v32 }
0x21a9   :  { %33702 = vrcp.f32 %v18468_v63  ;;  %v18420_v60 = vadd.f32 1.0, %v33699_v4 }
0x21aa   :  { %33704 = vrcp.f32 %v18421_v54 }
0x21ab   :  { %33706 = vrcp.f32 %v18420_v60 }
0x21b2   :  { %v33701_v50 = vpop.eup %33700 }
0x21b3   :  { %v33703_v62 = vpop.eup %33702  ;;  %v18477_v34 = vmul.f32 %v33701_v50, %v37211_v13 }
0x21b4   :  { %v33705_v40 = vpop.eup %33704  ;;  %v18476_v8 = vmul.f32 %v33703_v62, %v37213_v48 }
0x21b5   :  { %v33707_v20 = vpop.eup %33706  ;;  %v18429_v51 = vmul.f32 %v33705_v40, %v37219_v47 }
0x21b6   :  { %v18428_v24 = vmul.f32 %v33707_v20, %v37221_v57 }
0x2212   :  { %v18483_v61 = vpop.permute.xlu1 %18482 }
0x2213   :  { %v18487_v2 = vmul.f32 %v33701_v50, %v18483_v61  ;;  %v18481_v27 = vpop.permute.xlu0 %18480 }
0x2214   :  { %v18486_v45 = vmul.f32 %v33703_v62, %v18481_v27 }
0x2215   :  { %18492 = vrot.lane.b32.xlu1 %v18487_v2, %s33969_s15 }
0x2216   :  { %v18435_v58 = vpop.permute.xlu1 %18434  ;;  %18490 = vrot.lane.b32.xlu0 %v18486_v45, %s33969_s15 }
0x2217   :  { %v18439_v46 = vmul.f32 %v33705_v40, %v18435_v58  ;;  %v18433_v28 = vpop.permute.xlu0 %18432 }
0x2218   :  { %v18438_v21 = vmul.f32 %v33707_v20, %v18433_v28 }
0x2219   :  { %18444 = vrot.lane.b32.xlu1 %v18439_v46, %s33969_s15 }
0x221a   :  { %18442 = vrot.lane.b32.xlu0 %v18438_v21, %s33969_s15 }
0x2287   :  { %v18493_v52 = vpop.permute.xlu1 %18492 }
0x2288   :  { %v37331_v18 = vadd.f32 %v18493_v52, %v18477_v34  ;;  %v18491_v23 = vpop.permute.xlu0 %18490 }
0x2289   :  { %v37333_v17 = vadd.f32 %v18491_v23, %v18476_v8 }
0x228a   :  { %33708 = vtanh.f32 %v37331_v18 }
0x228b   :  { %33710 = vtanh.f32 %v37333_v17  ;;  %v18445_v43 = vpop.permute.xlu1 %18444 }
0x228c   :  { %v37339_v59 = vadd.f32 %v18445_v43, %v18429_v51  ;;  %v18443_v13 = vpop.permute.xlu0 %18442 }
0x228d   :  { %v37341_v19 = vadd.f32 %v18443_v13, %v18428_v24 }
0x228e   :  { %33712 = vtanh.f32 %v37339_v59 }
0x228f   :  { %33714 = vtanh.f32 %v37341_v19 }
0x2294   :  { %v33709_v48 = vpop.eup %33708 }
0x2295   :  { %v33711_v42 = vpop.eup %33710  ;;  %18504 = vrot.lane.b32.xlu1 %v33709_v48, %s33968_s14 }
0x2296   :  { %18502 = vrot.lane.b32.xlu0 %v33711_v42, %s33968_s14  ;;  %v37440_v42 = vld [vmem:[%s38191_s5 + $0x3] ss:$0 sm:$0xff] }
0x2298   :  { %v33713_v47 = vpop.eup %33712 }
0x2299   :  { %v33715_v36 = vpop.eup %33714  ;;  %18456 = vrot.lane.b32.xlu1 %v33713_v47, %s33968_s14 }
0x229a   :  { %18454 = vrot.lane.b32.xlu0 %v33715_v36, %s33968_s14 }
0x2307   :  { %v18505_v57 = vpop.permute.xlu1 %18504 }
0x2308   :  { %v37349_v15 = vmul.f32 %v33701_v50, %v18505_v57  ;;  %v18503_v31 = vpop.permute.xlu0 %18502 }
0x2309   :  { %v37351_v6 = vmul.f32 %v33703_v62, %v18503_v31 }
0x230a   :  { %19072 = vrot.lane.b32.xlu1 %v37349_v15, %s33969_s15 }
0x230b   :  { %v18457_v41 = vpop.permute.xlu1 %18456  ;;  %19070 = vrot.lane.b32.xlu0 %v37351_v6, %s33969_s15 }
0x230c   :  { %v18461_v9 = vmul.f32 %v33705_v40, %v18457_v41  ;;  %v18455_v56 = vpop.permute.xlu0 %18454  ;;  %v37447_v41 = vld [vmem:[%s38191_s5 + $0x2] ss:$0 sm:$0xff] }
0x230d   :  { %v18460_v37 = vmul.f32 %v33707_v20, %v18455_v56 }
0x230e   :  { %18514 = vrot.lane.b32.xlu1 %v18461_v9, %s33969_s15 }
0x230f   :  { %18512 = vrot.lane.b32.xlu0 %v18460_v37, %s33969_s15 }
0x237c   :  { %v19073_v5 = vpop.permute.xlu1 %19072 }
0x237d   :  { %v19076_v11 = vsel %vm503_vm0, %v19073_v5, 0  ;;  %v19071_v44 = vpop.permute.xlu0 %19070 }
0x237e   :  { %v37360_v32 = vand.u32 4294901760, %v19076_v11  ;;  %v19074_v63 = vsel %vm503_vm0, %v19071_v44, 0 }
0x237f   :  { %v37363_v4 = vand.u32 4294901760, %v19074_v63 }
0x2380   :  { %v19158_v54 = vsub.f32 %v19076_v11, %v37360_v32  ;;  %v18515_v60 = vpop.permute.xlu1 %18514 }
0x2381   :  { %v19148_v50 = vsub.f32 %v19074_v63, %v37363_v4  ;;  %18520 = vst.msk [vmem:[#allocation9 + $0x28] sm:$0xff] %vm503_vm0, %v18515_v60  ;;  %v18536_v61 = vsel %vm503_vm0, %v18515_v60, 0  ;;  %v18513_v62 = vpop.permute.xlu0 %18512 }
0x2382   :  { %v19159_v2 = vand.u32 4294901760, %v19158_v54  ;;  %v37369_v27 = vand.u32 4294901760, %v18536_v61  ;;  %18519 = vst.msk [vmem:[#allocation9 + $0x20] sm:$0xff] %vm503_vm0, %v18513_v62  ;;  %v18534_v45 = vsel %vm503_vm0, %v18513_v62, 0 }
0x2383   :  { %v37373_v40 = vand.u32 4294901760, %v18534_v45  ;;  %v19149_v58 = vand.u32 4294901760, %v19148_v50 }
0x2384   :  { %v19160_v20 = vsub.f32 %v19158_v54, %v19159_v2  ;;  %v18618_v46 = vsub.f32 %v18536_v61, %v37369_v27 }
0x2385   :  { %v18608_v28 = vsub.f32 %v18534_v45, %v37373_v40  ;;  %v19150_v21 = vsub.f32 %v19148_v50, %v19149_v58 }
0x2386   :  { %v18619_v34 = vand.u32 4294901760, %v18618_v46  ;;  %v19161_v51 = vand.u32 4294901760, %v19160_v20 }
0x2387   :  { %v19151_v52 = vand.u32 4294901760, %v19150_v21  ;;  %v18609_v8 = vand.u32 4294901760, %v18608_v28 }
0x2388   :  { %v18620_v23 = vsub.f32 %v18618_v46, %v18619_v34 }
0x2389   :  { %29853 = vmatprep.mubr.f32.mxu1 %v19151_v52  ;;  %v18610_v43 = vsub.f32 %v18608_v28, %v18609_v8 }
0x238a   :  { %29854 = vmatmul.mubr.f32.vlgmr.msra.gmra.mrb[40].mxu1 %v19161_v51  ;;  %v18621_v13 = vand.u32 4294901760, %v18620_v23 }
0x238b   :  { %31974 = vmatpush3.bf16.msra.mxu1 %v36894_v3  ;;  %29864 = vmatprep.mubr.f32.mxu1 %v37363_v4  ;;  %v18611_v24 = vand.u32 4294901760, %v18610_v43 }
0x238c   :  { %31976 = vmatprep.subr.bf16.mxu1 %v36963_v39 }
0x238d   :  { %29787 = vmatprep.mubr.f32.mxu0 %v18611_v24 }
0x238e   :  { %29788 = vmatmul.mubr.f32.vlgmr.msra.gmra.mrb[22].mxu0 %v18621_v13 }
0x238f   :  { %31978 = vmatpush3.bf16.msra.mxu1 %v36963_v39  ;;  %31926 = vmatpush3.bf16.msra.mxu0 %v36902_v1 }
0x2390   :  { %29798 = vmatprep.mubr.f32.mxu0 %v37373_v40  ;;  %31980 = vmatprep.subr.bf16.mxu1 %v36976_v0 }
0x2391   :  { %31928 = vmatprep.subr.bf16.mxu0 %v36957_v25 }
0x2392   :  { %29865 = vmatmul.mubr.f32.vlgmr.msra.gmra.mrb[40].mxu1 %v37360_v32 }
0x2393   :  { %31982 = vmatpush3.bf16.msra.mxu1 %v36976_v0  ;;  %31930 = vmatpush3.bf16.msra.mxu0 %v36957_v25 }
0x2394   :  { %29875 = vmatprep.mubr.f32.mxu1 %v19148_v50  ;;  %31984 = vmatprep.subr.bf16.mxu1 %v36990_v55 }
0x2395   :  { %31932 = vmatprep.subr.bf16.mxu0 %v36967_v14 }
0x2396   :  { %29799 = vmatmul.mubr.f32.vlgmr.msra.gmra.mrb[22].mxu0 %v37369_v27 }
0x2397   :  { %31986 = vmatpush3.bf16.msra.mxu1 %v36990_v55  ;;  %31934 = vmatpush3.bf16.msra.mxu0 %v36967_v14 }
0x2398   :  { %29809 = vmatprep.mubr.f32.mxu0 %v18608_v28  ;;  %31988 = vmatprep.subr.bf16.mxu1 %v36824_v53 }
0x2399   :  { %31936 = vmatprep.subr.bf16.mxu0 %v36980_v12 }
0x239a   :  { %29876 = vmatmul.mubr.f32.vlgmr.msra.gmra.mrb[40].mxu1 %v19158_v54 }
0x239b   :  { %31990 = vmatpush3.bf16.msra.mxu1 %v36824_v53  ;;  %31938 = vmatpush3.bf16.msra.mxu0 %v36980_v12 }
0x239c   :  { %29886 = vmatprep.mubr.f32.mxu1 %v19149_v58  ;;  %31992 = vmatprep.subr.bf16.mxu1 %v36877_v35 }
0x239d   :  { %31940 = vmatprep.subr.bf16.mxu0 %v36832_v10 }
0x239e   :  { %29810 = vmatmul.mubr.f32.vlgmr.msra.gmra.mrb[22].mxu0 %v18618_v46 }
0x239f   :  { %31994 = vmatpush3.bf16.msra.mxu1 %v36877_v35  ;;  %31942 = vmatpush3.bf16.msra.mxu0 %v36832_v10 }
0x23a0   :  { %29820 = vmatprep.mubr.f32.mxu0 %v18609_v8  ;;  %31996 = vmatprep.subr.bf16.mxu1 %v37020_v38 }
0x23a1   :  { %31944 = vmatprep.subr.bf16.mxu0 %v36891_v29 }
0x23a2   :  { %29887 = vmatmul.mubr.f32.vlgmr.msra.gmra.mrb[40].mxu1 %v19159_v2 }
0x23a3   :  { %31998 = vmatpush3.bf16.msra.mxu1 %v37020_v38  ;;  %31946 = vmatpush3.bf16.msra.mxu0 %v36891_v29 }
0x23a4   :  { %29897 = vmatprep.mubr.f32.mxu1 %v37363_v4  ;;  %32000 = vmatprep.subr.bf16.mxu1 %v37038_v33 }
0x23a5   :  { %31948 = vmatprep.subr.bf16.mxu0 %v37008_v22 }
0x23a6   :  { %29821 = vmatmul.mubr.f32.vlgmr.msra.gmra.mrb[22].mxu0 %v18619_v34 }
0x23a7   :  { %32002 = vmatpush3.bf16.msra.mxu1 %v37038_v33  ;;  %31950 = vmatpush3.bf16.msra.mxu0 %v37008_v22 }
0x23a8   :  { %29831 = vmatprep.mubr.f32.mxu0 %v37373_v40  ;;  %32004 = vmatprep.subr.bf16.mxu1 %v36824_v53 }
0x23a9   :  { %31952 = vmatprep.subr.bf16.mxu0 %v37026_v26 }
0x23aa   :  { %29898 = vmatmul.mubr.f32.vlgmr.msra.gmra.mrb[40].mxu1 %v37360_v32 }
0x23ab   :  { %32006 = vmatpush3.bf16.msra.mxu1 %v36824_v53  ;;  %31954 = vmatpush3.bf16.msra.mxu0 %v37026_v26 }
0x23ac   :  { %29908 = vmatprep.mubr.f32.mxu1 %v37363_v4  ;;  %32008 = vmatprep.subr.bf16.mxu1 %v36877_v35 }
0x23ad   :  { %31956 = vmatprep.subr.bf16.mxu0 %v36832_v10 }
0x23ae   :  { %29832 = vmatmul.mubr.f32.vlgmr.msra.gmra.mrb[22].mxu0 %v37369_v27 }
0x23af   :  { %32010 = vmatpush3.bf16.msra.mxu1 %v36877_v35  ;;  %31958 = vmatpush3.bf16.msra.mxu0 %v36832_v10 }
0x23b0   :  { %29842 = vmatprep.mubr.f32.mxu0 %v37373_v40  ;;  %31960 = vmatprep.subr.bf16.mxu0 %v36891_v29 }
0x23b1   :  { %32060 = vmatprep.subr.bf16.mxu1 %v36824_v53 }
0x23b2   :  { %29909 = vmatmul.mubr.f32.vlgmr.msra.gmra.mrb[40].mxu1 %v37360_v32 }
0x23b3   :  { %31962 = vmatpush3.bf16.msra.mxu0 %v36891_v29  ;;  %32062 = vmatpush3.bf16.msra.mxu1 %v36824_v53 }
0x23b4   :  { %32064 = vmatprep.subr.bf16.mxu1 %v36877_v35  ;;  %32012 = vmatprep.subr.bf16.mxu0 %v36832_v10 }
0x23b6   :  { %29843 = vmatmul.mubr.f32.vlgmr.msra.gmra.mrb[22].mxu0 %v37369_v27 }
0x23b7   :  { %32066 = vmatpush3.bf16.msra.mxu1 %v36877_v35  ;;  %32014 = vmatpush3.bf16.msra.mxu0 %v36832_v10 }
0x23b8   :  { %32068 = vmatprep.subr.bf16.mxu1 %v36894_v3  ;;  %32016 = vmatprep.subr.bf16.mxu0 %v36891_v29 }
0x23bb   :  { %32018 = vmatpush3.bf16.msra.mxu0 %v36891_v29 }
0x23bc   :  { %32020 = vmatprep.subr.bf16.mxu0 %v36902_v1 }
0x2485   :  { %v29910_v48 = vpop.f32.mrb[40].mxu1 }
0x2486   :  { %v32567_v47 = vadd.f32 %v37440_v42, %v29910_v48  ;;  %v19596_v36 = vpop.f32.mrb[41].mxu1 }
0x2487   :  { %v32568_v57 = vadd.f32 %v37440_v42, %v19596_v36 }
0x2488   :  { %33716 = vtanh.f32 %v32567_v47  ;;  %v25693_v63 = vmul.f32 -1.442695, %v32567_v47 }
0x2489   :  { %33718 = vtanh.f32 %v32568_v57  ;;  %v29844_v31 = vpop.f32.mrb[22].mxu0  ;;  %v25692_v4 = vmul.f32 -1.442695, %v32568_v57 }
0x248a   :  { %v32549_v9 = vadd.f32 %v37447_v41, %v29844_v31  ;;  %v19056_v56 = vpop.f32.mrb[23].mxu0 }
0x248b   :  { %v32550_v37 = vadd.f32 %v37447_v41, %v19056_v56 }
0x248c   :  { %33720 = vtanh.f32 %v32549_v9  ;;  %v25691_v54 = vmul.f32 -1.442695, %v32549_v9 }
0x248d   :  { %33722 = vtanh.f32 %v32550_v37  ;;  %v25690_v60 = vmul.f32 -1.442695, %v32550_v37 }
0x248e   :  { %33724 = vpow2.f32 %v25693_v63 }
0x248f   :  { %33726 = vpow2.f32 %v25692_v4 }
0x2490   :  { %33728 = vpow2.f32 %v25691_v54 }
0x2491   :  { %33730 = vpow2.f32 %v25690_v60 }
0x2492   :  { %v33717_v5 = vpop.eup %33716 }
0x2493   :  { %v33719_v11 = vpop.eup %33718  ;;  %19676 = vrot.lane.b32.xlu1 %v33717_v5, %s33968_s14 }
0x2494   :  { %19674 = vrot.lane.b32.xlu0 %v33719_v11, %s33968_s14 }
0x2496   :  { %v33721_v44 = vpop.eup %33720 }
0x2497   :  { %v33723_v32 = vpop.eup %33722  ;;  %19628 = vrot.lane.b32.xlu1 %v33721_v44, %s33968_s14 }
0x2498   :  { %19626 = vrot.lane.b32.xlu0 %v33723_v32, %s33968_s14  ;;  %v33725_v50 = vpop.eup %33724 }
0x2499   :  { %v33727_v61 = vpop.eup %33726  ;;  %v19663_v62 = vadd.f32 1.0, %v33725_v50 }
0x249a   :  { %v33729_v2 = vpop.eup %33728  ;;  %v19662_v27 = vadd.f32 1.0, %v33727_v61 }
0x249b   :  { %v33731_v45 = vpop.eup %33730  ;;  %33732 = vrcp.f32 %v19663_v62  ;;  %v19615_v40 = vadd.f32 1.0, %v33729_v2 }
0x249c   :  { %33734 = vrcp.f32 %v19662_v27  ;;  %v19614_v58 = vadd.f32 1.0, %v33731_v45 }
0x249d   :  { %33736 = vrcp.f32 %v19615_v40 }
0x249e   :  { %33738 = vrcp.f32 %v19614_v58 }
0x24a5   :  { %v33733_v20 = vpop.eup %33732 }
0x24a6   :  { %v33735_v28 = vpop.eup %33734  ;;  %v19671_v48 = vmul.f32 %v33733_v20, %v37331_v18 }
0x24a7   :  { %v33737_v8 = vpop.eup %33736  ;;  %v19670_v36 = vmul.f32 %v33735_v28, %v37333_v17 }
0x24a8   :  { %v33739_v51 = vpop.eup %33738  ;;  %v19623_v56 = vmul.f32 %v33737_v8, %v37339_v59 }
0x24a9   :  { %v19622_v5 = vmul.f32 %v33739_v51, %v37341_v19 }
0x2505   :  { %v19677_v46 = vpop.permute.xlu1 %19676 }
0x2506   :  { %v19681_v21 = vmul.f32 %v33733_v20, %v19677_v46  ;;  %v19675_v34 = vpop.permute.xlu0 %19674 }
0x2507   :  { %v19680_v52 = vmul.f32 %v33735_v28, %v19675_v34 }
0x2508   :  { %19686 = vrot.lane.b32.xlu1 %v19681_v21, %s33969_s15 }
0x2509   :  { %v19629_v23 = vpop.permute.xlu1 %19628  ;;  %19684 = vrot.lane.b32.xlu0 %v19680_v52, %s33969_s15 }
0x250a   :  { %v19633_v43 = vmul.f32 %v33737_v8, %v19629_v23  ;;  %v19627_v24 = vpop.permute.xlu0 %19626 }
0x250b   :  { %v19632_v13 = vmul.f32 %v33739_v51, %v19627_v24 }
0x250c   :  { %19638 = vrot.lane.b32.xlu1 %v19633_v43, %s33969_s15 }
0x250d   :  { %19636 = vrot.lane.b32.xlu0 %v19632_v13, %s33969_s15 }
0x257a   :  { %v19687_v47 = vpop.permute.xlu1 %19686 }
0x257b   :  { %v37461_v57 = vadd.f32 %v19687_v47, %v19671_v48  ;;  %v19685_v31 = vpop.permute.xlu0 %19684 }
0x257c   :  { %v37463_v9 = vadd.f32 %v19685_v31, %v19670_v36 }
0x257d   :  { %33740 = vtanh.f32 %v37461_v57 }
0x257e   :  { %33742 = vtanh.f32 %v37463_v9  ;;  %v19639_v37 = vpop.permute.xlu1 %19638 }
0x257f   :  { %v37469_v11 = vadd.f32 %v19639_v37, %v19623_v56  ;;  %v19637_v18 = vpop.permute.xlu0 %19636 }
0x2580   :  { %v37471_v44 = vadd.f32 %v19637_v18, %v19622_v5 }
0x2581   :  { %33744 = vtanh.f32 %v37469_v11 }
0x2582   :  { %33746 = vtanh.f32 %v37471_v44 }
0x2587   :  { %v33741_v17 = vpop.eup %33740 }
0x2588   :  { %v33743_v32 = vpop.eup %33742  ;;  %19698 = vrot.lane.b32.xlu1 %v33741_v17, %s33968_s14 }
0x2589   :  { %19696 = vrot.lane.b32.xlu0 %v33743_v32, %s33968_s14 }
0x258b   :  { %v33745_v59 = vpop.eup %33744 }
0x258c   :  { %v33747_v63 = vpop.eup %33746  ;;  %19650 = vrot.lane.b32.xlu1 %v33745_v59, %s33968_s14 }
0x258d   :  { %19648 = vrot.lane.b32.xlu0 %v33747_v63, %s33968_s14 }
0x25fa   :  { %v19699_v19 = vpop.permute.xlu1 %19698 }
0x25fb   :  { %v37479_v4 = vmul.f32 %v33733_v20, %v19699_v19  ;;  %v19697_v54 = vpop.permute.xlu0 %19696 }
0x25fc   :  { %v37481_v60 = vmul.f32 %v33735_v28, %v19697_v54 }
0x25fd   :  { %20266 = vrot.lane.b32.xlu1 %v37479_v4, %s33969_s15 }
0x25fe   :  { %v19651_v50 = vpop.permute.xlu1 %19650  ;;  %20264 = vrot.lane.b32.xlu0 %v37481_v60, %s33969_s15 }
0x25ff   :  { %v19655_v61 = vmul.f32 %v33737_v8, %v19651_v50  ;;  %v19649_v62 = vpop.permute.xlu0 %19648 }
0x2600   :  { %v19654_v2 = vmul.f32 %v33739_v51, %v19649_v62 }
0x2601   :  { %19708 = vrot.lane.b32.xlu1 %v19655_v61, %s33969_s15 }
0x2602   :  { %19706 = vrot.lane.b32.xlu0 %v19654_v2, %s33969_s15 }
0x266f   :  { %v20267_v27 = vpop.permute.xlu1 %20266 }
0x2670   :  { %v20270_v45 = vsel %vm503_vm0, %v20267_v27, 0  ;;  %v20265_v40 = vpop.permute.xlu0 %20264 }
0x2671   :  { %v37490_v58 = vand.u32 4294901760, %v20270_v45  ;;  %v20268_v20 = vsel %vm503_vm0, %v20265_v40, 0 }
0x2672   :  { %v37493_v46 = vand.u32 4294901760, %v20268_v20 }
0x2673   :  { %v20352_v28 = vsub.f32 %v20270_v45, %v37490_v58  ;;  %v19709_v21 = vpop.permute.xlu1 %19708 }
0x2674   :  { %v20342_v34 = vsub.f32 %v20268_v20, %v37493_v46  ;;  %19714 = vst.msk [vmem:[#allocation9 + $0x38] sm:$0xff] %vm503_vm0, %v19709_v21  ;;  %v19730_v52 = vsel %vm503_vm0, %v19709_v21, 0  ;;  %v19707_v8 = vpop.permute.xlu0 %19706 }
0x2675   :  { %v20353_v23 = vand.u32 4294901760, %v20352_v28  ;;  %v37499_v51 = vand.u32 4294901760, %v19730_v52  ;;  %19713 = vst.msk [vmem:[#allocation9 + $0x30] sm:$0xff] %vm503_vm0, %v19707_v8  ;;  %v19728_v43 = vsel %vm503_vm0, %v19707_v8, 0 }
0x2676   :  { %v20343_v24 = vand.u32 4294901760, %v20342_v34  ;;  %v37503_v13 = vand.u32 4294901760, %v19728_v43 }
0x2677   :  { %v20354_v48 = vsub.f32 %v20352_v28, %v20353_v23  ;;  %v19812_v47 = vsub.f32 %v19730_v52, %v37499_v51 }
0x2678   :  { %v19802_v36 = vsub.f32 %v19728_v43, %v37503_v13  ;;  %v20344_v31 = vsub.f32 %v20342_v34, %v20343_v24 }
0x2679   :  { %v19813_v56 = vand.u32 4294901760, %v19812_v47  ;;  %v20355_v18 = vand.u32 4294901760, %v20354_v48 }
0x267a   :  { %v20345_v37 = vand.u32 4294901760, %v20344_v31  ;;  %v19803_v5 = vand.u32 4294901760, %v19802_v36 }
0x267b   :  { %v19814_v17 = vsub.f32 %v19812_v47, %v19813_v56 }
0x267c   :  { %29985 = vmatprep.mubr.f32.mxu1 %v20345_v37  ;;  %v19804_v32 = vsub.f32 %v19802_v36, %v19803_v5 }
0x267d   :  { %29986 = vmatmul.mubr.f32.vlgmr.msra.gmra.mrb[38].mxu1 %v20355_v18  ;;  %v19815_v63 = vand.u32 4294901760, %v19814_v17 }
0x267e   :  { %32070 = vmatpush3.bf16.msra.mxu1 %v36894_v3  ;;  %29996 = vmatprep.mubr.f32.mxu1 %v37493_v46  ;;  %v19805_v59 = vand.u32 4294901760, %v19804_v32 }
0x267f   :  { %32072 = vmatprep.subr.bf16.mxu1 %v36963_v39 }
0x2680   :  { %29919 = vmatprep.mubr.f32.mxu0 %v19805_v59 }
0x2681   :  { %29920 = vmatmul.mubr.f32.vlgmr.msra.gmra.mrb[24].mxu0 %v19815_v63 }
0x2682   :  { %32074 = vmatpush3.bf16.msra.mxu1 %v36963_v39  ;;  %32022 = vmatpush3.bf16.msra.mxu0 %v36902_v1 }
0x2683   :  { %29930 = vmatprep.mubr.f32.mxu0 %v37503_v13  ;;  %32076 = vmatprep.subr.bf16.mxu1 %v36976_v0 }
0x2684   :  { %32024 = vmatprep.subr.bf16.mxu0 %v36957_v25 }
0x2685   :  { %29997 = vmatmul.mubr.f32.vlgmr.msra.gmra.mrb[38].mxu1 %v37490_v58 }
0x2686   :  { %32078 = vmatpush3.bf16.msra.mxu1 %v36976_v0  ;;  %32026 = vmatpush3.bf16.msra.mxu0 %v36957_v25 }
0x2687   :  { %30007 = vmatprep.mubr.f32.mxu1 %v20342_v34  ;;  %32080 = vmatprep.subr.bf16.mxu1 %v36990_v55 }
0x2688   :  { %32028 = vmatprep.subr.bf16.mxu0 %v36967_v14 }
0x2689   :  { %29931 = vmatmul.mubr.f32.vlgmr.msra.gmra.mrb[24].mxu0 %v37499_v51 }
0x268a   :  { %32082 = vmatpush3.bf16.msra.mxu1 %v36990_v55  ;;  %32030 = vmatpush3.bf16.msra.mxu0 %v36967_v14 }
0x268b   :  { %29941 = vmatprep.mubr.f32.mxu0 %v19802_v36  ;;  %32084 = vmatprep.subr.bf16.mxu1 %v36824_v53 }
0x268c   :  { %32032 = vmatprep.subr.bf16.mxu0 %v36980_v12 }
0x268d   :  { %30008 = vmatmul.mubr.f32.vlgmr.msra.gmra.mrb[38].mxu1 %v20352_v28 }
0x268e   :  { %32086 = vmatpush3.bf16.msra.mxu1 %v36824_v53  ;;  %32034 = vmatpush3.bf16.msra.mxu0 %v36980_v12 }
0x268f   :  { %30018 = vmatprep.mubr.f32.mxu1 %v20343_v24  ;;  %32088 = vmatprep.subr.bf16.mxu1 %v36877_v35 }
0x2690   :  { %32036 = vmatprep.subr.bf16.mxu0 %v36832_v10 }
0x2691   :  { %29942 = vmatmul.mubr.f32.vlgmr.msra.gmra.mrb[24].mxu0 %v19812_v47 }
0x2692   :  { %32090 = vmatpush3.bf16.msra.mxu1 %v36877_v35  ;;  %32038 = vmatpush3.bf16.msra.mxu0 %v36832_v10 }
0x2693   :  { %29952 = vmatprep.mubr.f32.mxu0 %v19803_v5  ;;  %32092 = vmatprep.subr.bf16.mxu1 %v37020_v38 }
0x2694   :  { %32040 = vmatprep.subr.bf16.mxu0 %v36891_v29 }
0x2695   :  { %30019 = vmatmul.mubr.f32.vlgmr.msra.gmra.mrb[38].mxu1 %v20353_v23 }
0x2696   :  { %32094 = vmatpush3.bf16.msra.mxu1 %v37020_v38  ;;  %32042 = vmatpush3.bf16.msra.mxu0 %v36891_v29 }
0x2697   :  { %30029 = vmatprep.mubr.f32.mxu1 %v37493_v46  ;;  %32096 = vmatprep.subr.bf16.mxu1 %v37038_v33 }
0x2698   :  { %32044 = vmatprep.subr.bf16.mxu0 %v37008_v22 }
0x2699   :  { %29953 = vmatmul.mubr.f32.vlgmr.msra.gmra.mrb[24].mxu0 %v19813_v56 }
0x269a   :  { %32098 = vmatpush3.bf16.msra.mxu1 %v37038_v33  ;;  %32046 = vmatpush3.bf16.msra.mxu0 %v37008_v22 }
0x269b   :  { %29963 = vmatprep.mubr.f32.mxu0 %v37503_v13  ;;  %32100 = vmatprep.subr.bf16.mxu1 %v36824_v53 }
0x269c   :  { %32048 = vmatprep.subr.bf16.mxu0 %v37026_v26 }
0x269d   :  { %30030 = vmatmul.mubr.f32.vlgmr.msra.gmra.mrb[38].mxu1 %v37490_v58 }
0x269e   :  { %32102 = vmatpush3.bf16.msra.mxu1 %v36824_v53  ;;  %32050 = vmatpush3.bf16.msra.mxu0 %v37026_v26 }
0x269f   :  { %30040 = vmatprep.mubr.f32.mxu1 %v37493_v46  ;;  %32104 = vmatprep.subr.bf16.mxu1 %v36877_v35 }
0x26a0   :  { %32052 = vmatprep.subr.bf16.mxu0 %v36832_v10 }
0x26a1   :  { %29964 = vmatmul.mubr.f32.vlgmr.msra.gmra.mrb[24].mxu0 %v37499_v51 }
0x26a2   :  { %32106 = vmatpush3.bf16.msra.mxu1 %v36877_v35  ;;  %32054 = vmatpush3.bf16.msra.mxu0 %v36832_v10 }
0x26a3   :  { %29974 = vmatprep.mubr.f32.mxu0 %v37503_v13  ;;  %32056 = vmatprep.subr.bf16.mxu0 %v36891_v29 }
0x26a4   :  { %32156 = vmatprep.subr.bf16.mxu1 %v36824_v53 }
0x26a5   :  { %30041 = vmatmul.mubr.f32.vlgmr.msra.gmra.mrb[38].mxu1 %v37490_v58 }
0x26a6   :  { %32058 = vmatpush3.bf16.msra.mxu0 %v36891_v29  ;;  %32158 = vmatpush3.bf16.msra.mxu1 %v36824_v53 }
0x26a7   :  { %32160 = vmatprep.subr.bf16.mxu1 %v36877_v35  ;;  %32108 = vmatprep.subr.bf16.mxu0 %v36832_v10 }
0x26a9   :  { %29975 = vmatmul.mubr.f32.vlgmr.msra.gmra.mrb[24].mxu0 %v37499_v51 }
0x26aa   :  { %32162 = vmatpush3.bf16.msra.mxu1 %v36877_v35  ;;  %32110 = vmatpush3.bf16.msra.mxu0 %v36832_v10 }
0x26ab   :  { %32164 = vmatprep.subr.bf16.mxu1 %v36894_v3  ;;  %32112 = vmatprep.subr.bf16.mxu0 %v36891_v29 }
0x26ae   :  { %32114 = vmatpush3.bf16.msra.mxu0 %v36891_v29 }
0x26af   :  { %32116 = vmatprep.subr.bf16.mxu0 %v36902_v1 }
0x2778   :  { %v30042_v19 = vpop.f32.mrb[38].mxu1 }
0x2779   :  { %v32565_v54 = vadd.f32 %v37440_v42, %v30042_v19  ;;  %v20790_v50 = vpop.f32.mrb[39].mxu1 }
0x277a   :  { %v32566_v61 = vadd.f32 %v37440_v42, %v20790_v50 }
0x277b   :  { %33748 = vtanh.f32 %v32565_v54  ;;  %v25697_v28 = vmul.f32 -1.442695, %v32565_v54 }
0x277c   :  { %33750 = vtanh.f32 %v32566_v61  ;;  %v29976_v62 = vpop.f32.mrb[24].mxu0  ;;  %v25696_v21 = vmul.f32 -1.442695, %v32566_v61 }
0x277d   :  { %v32551_v2 = vadd.f32 %v37447_v41, %v29976_v62  ;;  %v20250_v27 = vpop.f32.mrb[25].mxu0 }
0x277e   :  { %v32552_v45 = vadd.f32 %v37447_v41, %v20250_v27 }
0x277f   :  { %33752 = vtanh.f32 %v32551_v2  ;;  %v25695_v34 = vmul.f32 -1.442695, %v32551_v2 }
0x2780   :  { %33754 = vtanh.f32 %v32552_v45  ;;  %v25694_v52 = vmul.f32 -1.442695, %v32552_v45 }
0x2781   :  { %33756 = vpow2.f32 %v25697_v28 }
0x2782   :  { %33758 = vpow2.f32 %v25696_v21 }
0x2783   :  { %33760 = vpow2.f32 %v25695_v34 }
0x2784   :  { %33762 = vpow2.f32 %v25694_v52 }
0x2785   :  { %v33749_v40 = vpop.eup %33748 }
0x2786   :  { %v33751_v58 = vpop.eup %33750  ;;  %20870 = vrot.lane.b32.xlu1 %v33749_v40, %s33968_s14 }
0x2787   :  { %20868 = vrot.lane.b32.xlu0 %v33751_v58, %s33968_s14 }
0x2789   :  { %v33753_v20 = vpop.eup %33752 }
0x278a   :  { %v33755_v46 = vpop.eup %33754  ;;  %20822 = vrot.lane.b32.xlu1 %v33753_v20, %s33968_s14 }
0x278b   :  { %20820 = vrot.lane.b32.xlu0 %v33755_v46, %s33968_s14  ;;  %v33757_v8 = vpop.eup %33756 }
0x278c   :  { %v33759_v23 = vpop.eup %33758  ;;  %v20857_v51 = vadd.f32 1.0, %v33757_v8 }
0x278d   :  { %v33761_v43 = vpop.eup %33760  ;;  %v20856_v24 = vadd.f32 1.0, %v33759_v23 }
0x278e   :  { %v33763_v13 = vpop.eup %33762  ;;  %33764 = vrcp.f32 %v20857_v51  ;;  %v20809_v48 = vadd.f32 1.0, %v33761_v43 }
0x278f   :  { %33766 = vrcp.f32 %v20856_v24  ;;  %v20808_v47 = vadd.f32 1.0, %v33763_v13 }
0x2790   :  { %33768 = vrcp.f32 %v20809_v48 }
0x2791   :  { %33770 = vrcp.f32 %v20808_v47 }
0x2798   :  { %v33765_v36 = vpop.eup %33764 }
0x2799   :  { %v33767_v56 = vpop.eup %33766  ;;  %v20865_v50 = vmul.f32 %v33765_v36, %v37461_v57 }
0x279a   :  { %v33769_v17 = vpop.eup %33768  ;;  %v20864_v62 = vmul.f32 %v33767_v56, %v37463_v9 }
0x279b   :  { %v33771_v59 = vpop.eup %33770  ;;  %v20817_v40 = vmul.f32 %v33769_v17, %v37469_v11 }
0x279c   :  { %v20816_v20 = vmul.f32 %v33771_v59, %v37471_v44 }
0x27f8   :  { %v20871_v31 = vpop.permute.xlu1 %20870 }
0x27f9   :  { %v20875_v37 = vmul.f32 %v33765_v36, %v20871_v31  ;;  %v20869_v5 = vpop.permute.xlu0 %20868 }
0x27fa   :  { %v20874_v18 = vmul.f32 %v33767_v56, %v20869_v5 }
0x27fb   :  { %20880 = vrot.lane.b32.xlu1 %v20875_v37, %s33969_s15 }
0x27fc   :  { %v20823_v32 = vpop.permute.xlu1 %20822  ;;  %20878 = vrot.lane.b32.xlu0 %v20874_v18, %s33969_s15 }
0x27fd   :  { %v20827_v63 = vmul.f32 %v33769_v17, %v20823_v32  ;;  %v20821_v19 = vpop.permute.xlu0 %20820 }
0x27fe   :  { %v20826_v54 = vmul.f32 %v33771_v59, %v20821_v19 }
0x27ff   :  { %20832 = vrot.lane.b32.xlu1 %v20827_v63, %s33969_s15 }
0x2800   :  { %20830 = vrot.lane.b32.xlu0 %v20826_v54, %s33969_s15 }
0x286d   :  { %v20881_v61 = vpop.permute.xlu1 %20880 }
0x286e   :  { %v37581_v2 = vadd.f32 %v20881_v61, %v20865_v50  ;;  %v20879_v27 = vpop.permute.xlu0 %20878 }
0x286f   :  { %v37583_v45 = vadd.f32 %v20879_v27, %v20864_v62 }
0x2870   :  { %33772 = vtanh.f32 %v37581_v2 }
0x2871   :  { %33774 = vtanh.f32 %v37583_v45  ;;  %v20833_v58 = vpop.permute.xlu1 %20832 }
0x2872   :  { %v37589_v46 = vadd.f32 %v20833_v58, %v20817_v40  ;;  %v20831_v57 = vpop.permute.xlu0 %20830 }
0x2873   :  { %v37591_v28 = vadd.f32 %v20831_v57, %v20816_v20 }
0x2874   :  { %33776 = vtanh.f32 %v37589_v46 }
0x2875   :  { %33778 = vtanh.f32 %v37591_v28 }
0x287a   :  { %v33773_v9 = vpop.eup %33772 }
0x287b   :  { %v33775_v21 = vpop.eup %33774  ;;  %20892 = vrot.lane.b32.xlu1 %v33773_v9, %s33968_s14 }
0x287c   :  { %20890 = vrot.lane.b32.xlu0 %v33775_v21, %s33968_s14 }
0x287e   :  { %v33777_v11 = vpop.eup %33776 }
0x287f   :  { %v33779_v34 = vpop.eup %33778  ;;  %20844 = vrot.lane.b32.xlu1 %v33777_v11, %s33968_s14 }
0x2880   :  { %20842 = vrot.lane.b32.xlu0 %v33779_v34, %s33968_s14 }
0x28ed   :  { %v20893_v44 = vpop.permute.xlu1 %20892 }
0x28ee   :  { %v37599_v52 = vmul.f32 %v33765_v36, %v20893_v44  ;;  %v20891_v8 = vpop.permute.xlu0 %20890 }
0x28ef   :  { %v37601_v23 = vmul.f32 %v33767_v56, %v20891_v8 }
0x28f0   :  { %21458 = vrot.lane.b32.xlu1 %v37599_v52, %s33969_s15 }
0x28f1   :  { %v20845_v51 = vpop.permute.xlu1 %20844  ;;  %21456 = vrot.lane.b32.xlu0 %v37601_v23, %s33969_s15 }
0x28f2   :  { %v20849_v43 = vmul.f32 %v33769_v17, %v20845_v51  ;;  %v20843_v24 = vpop.permute.xlu0 %20842 }
0x28f3   :  { %v20848_v13 = vmul.f32 %v33771_v59, %v20843_v24 }
0x28f4   :  { %20902 = vrot.lane.b32.xlu1 %v20849_v43, %s33969_s15 }
0x28f5   :  { %20900 = vrot.lane.b32.xlu0 %v20848_v13, %s33969_s15 }
0x2962   :  { %v21459_v48 = vpop.permute.xlu1 %21458 }
0x2963   :  { %v21462_v47 = vsel %vm503_vm0, %v21459_v48, 0  ;;  %v21457_v36 = vpop.permute.xlu0 %21456 }
0x2964   :  { %v37610_v31 = vand.u32 4294901760, %v21462_v47  ;;  %v21460_v56 = vsel %vm503_vm0, %v21457_v36, 0 }
0x2965   :  { %v37613_v37 = vand.u32 4294901760, %v21460_v56 }
0x2966   :  { %v21544_v5 = vsub.f32 %v21462_v47, %v37610_v31  ;;  %v37616_v18 = vpop.permute.xlu1 %20902 }
0x2967   :  { %v21534_v17 = vsub.f32 %v21460_v56, %v37613_v37  ;;  %v20922_v32 = vsel %vm503_vm0, %v37616_v18, 0  ;;  %v37621_v59 = vpop.permute.xlu0 %20900 }
0x2968   :  { %v21545_v63 = vand.u32 4294901760, %v21544_v5  ;;  %v37623_v19 = vand.u32 4294901760, %v20922_v32  ;;  %v20920_v54 = vsel %vm503_vm0, %v37621_v59, 0 }
0x2969   :  { %v21535_v50 = vand.u32 4294901760, %v21534_v17  ;;  %v37627_v61 = vand.u32 4294901760, %v20920_v54 }
0x296a   :  { %v21546_v62 = vsub.f32 %v21544_v5, %v21545_v63  ;;  %v21004_v27 = vsub.f32 %v20922_v32, %v37623_v19 }
0x296b   :  { %v20994_v40 = vsub.f32 %v20920_v54, %v37627_v61  ;;  %v21536_v58 = vsub.f32 %v21534_v17, %v21535_v50 }
0x296c   :  { %v21005_v20 = vand.u32 4294901760, %v21004_v27  ;;  %v21547_v21 = vand.u32 4294901760, %v21546_v62 }
0x296d   :  { %v21537_v57 = vand.u32 4294901760, %v21536_v58  ;;  %v20995_v9 = vand.u32 4294901760, %v20994_v40 }
0x296e   :  { %v21006_v11 = vsub.f32 %v21004_v27, %v21005_v20 }
0x296f   :  { %30117 = vmatprep.mubr.f32.mxu1 %v21537_v57  ;;  %v20996_v34 = vsub.f32 %v20994_v40, %v20995_v9 }
0x2970   :  { %30118 = vmatmul.mubr.f32.vlgmr.msra.gmra.mrb[36].mxu1 %v21547_v21  ;;  %v21007_v8 = vand.u32 4294901760, %v21006_v11 }
0x2971   :  { %32166 = vmatpush3.bf16.msra.mxu1 %v36894_v3  ;;  %30128 = vmatprep.mubr.f32.mxu1 %v37613_v37  ;;  %v20997_v44 = vand.u32 4294901760, %v20996_v34 }
0x2972   :  { %32168 = vmatprep.subr.bf16.mxu1 %v36963_v39 }
0x2973   :  { %30051 = vmatprep.mubr.f32.mxu0 %v20997_v44 }
0x2974   :  { %30052 = vmatmul.mubr.f32.vlgmr.msra.gmra.mrb[26].mxu0 %v21007_v8 }
0x2975   :  { %32170 = vmatpush3.bf16.msra.mxu1 %v36963_v39  ;;  %32118 = vmatpush3.bf16.msra.mxu0 %v36902_v1 }
0x2976   :  { %30062 = vmatprep.mubr.f32.mxu0 %v37627_v61  ;;  %32172 = vmatprep.subr.bf16.mxu1 %v36976_v0 }
0x2977   :  { %32120 = vmatprep.subr.bf16.mxu0 %v36957_v25 }
0x2978   :  { %30129 = vmatmul.mubr.f32.vlgmr.msra.gmra.mrb[36].mxu1 %v37610_v31 }
0x2979   :  { %32174 = vmatpush3.bf16.msra.mxu1 %v36976_v0  ;;  %32122 = vmatpush3.bf16.msra.mxu0 %v36957_v25 }
0x297a   :  { %30139 = vmatprep.mubr.f32.mxu1 %v21534_v17  ;;  %32176 = vmatprep.subr.bf16.mxu1 %v36990_v55 }
0x297b   :  { %32124 = vmatprep.subr.bf16.mxu0 %v36967_v14 }
0x297c   :  { %30063 = vmatmul.mubr.f32.vlgmr.msra.gmra.mrb[26].mxu0 %v37623_v19 }
0x297d   :  { %32178 = vmatpush3.bf16.msra.mxu1 %v36990_v55  ;;  %32126 = vmatpush3.bf16.msra.mxu0 %v36967_v14 }
0x297e   :  { %30073 = vmatprep.mubr.f32.mxu0 %v20994_v40  ;;  %32180 = vmatprep.subr.bf16.mxu1 %v36824_v53 }
0x297f   :  { %32128 = vmatprep.subr.bf16.mxu0 %v36980_v12 }
0x2980   :  { %30140 = vmatmul.mubr.f32.vlgmr.msra.gmra.mrb[36].mxu1 %v21544_v5 }
0x2981   :  { %32182 = vmatpush3.bf16.msra.mxu1 %v36824_v53  ;;  %32130 = vmatpush3.bf16.msra.mxu0 %v36980_v12 }
0x2982   :  { %30150 = vmatprep.mubr.f32.mxu1 %v21535_v50  ;;  %32184 = vmatprep.subr.bf16.mxu1 %v36877_v35 }
0x2983   :  { %32132 = vmatprep.subr.bf16.mxu0 %v36832_v10 }
0x2984   :  { %30074 = vmatmul.mubr.f32.vlgmr.msra.gmra.mrb[26].mxu0 %v21004_v27 }
0x2985   :  { %32186 = vmatpush3.bf16.msra.mxu1 %v36877_v35  ;;  %32134 = vmatpush3.bf16.msra.mxu0 %v36832_v10 }
0x2986   :  { %30084 = vmatprep.mubr.f32.mxu0 %v20995_v9  ;;  %32188 = vmatprep.subr.bf16.mxu1 %v37020_v38 }
0x2987   :  { %32136 = vmatprep.subr.bf16.mxu0 %v36891_v29 }
0x2988   :  { %30151 = vmatmul.mubr.f32.vlgmr.msra.gmra.mrb[36].mxu1 %v21545_v63 }
0x2989   :  { %32190 = vmatpush3.bf16.msra.mxu1 %v37020_v38  ;;  %32138 = vmatpush3.bf16.msra.mxu0 %v36891_v29 }
0x298a   :  { %30161 = vmatprep.mubr.f32.mxu1 %v37613_v37  ;;  %32192 = vmatprep.subr.bf16.mxu1 %v37038_v33 }
0x298b   :  { %32140 = vmatprep.subr.bf16.mxu0 %v37008_v22 }
0x298c   :  { %30085 = vmatmul.mubr.f32.vlgmr.msra.gmra.mrb[26].mxu0 %v21005_v20 }
0x298d   :  { %32194 = vmatpush3.bf16.msra.mxu1 %v37038_v33  ;;  %32142 = vmatpush3.bf16.msra.mxu0 %v37008_v22 }
0x298e   :  { %30095 = vmatprep.mubr.f32.mxu0 %v37627_v61  ;;  %32196 = vmatprep.subr.bf16.mxu1 %v36824_v53 }
0x298f   :  { %32144 = vmatprep.subr.bf16.mxu0 %v37026_v26 }
0x2990   :  { %30162 = vmatmul.mubr.f32.vlgmr.msra.gmra.mrb[36].mxu1 %v37610_v31 }
0x2991   :  { %32198 = vmatpush3.bf16.msra.mxu1 %v36824_v53  ;;  %32146 = vmatpush3.bf16.msra.mxu0 %v37026_v26 }
0x2992   :  { %30172 = vmatprep.mubr.f32.mxu1 %v37613_v37  ;;  %32200 = vmatprep.subr.bf16.mxu1 %v36877_v35 }
0x2993   :  { %32148 = vmatprep.subr.bf16.mxu0 %v36832_v10 }
0x2994   :  { %30096 = vmatmul.mubr.f32.vlgmr.msra.gmra.mrb[26].mxu0 %v37623_v19 }
0x2995   :  { %32202 = vmatpush3.bf16.msra.mxu1 %v36877_v35  ;;  %32150 = vmatpush3.bf16.msra.mxu0 %v36832_v10 }
0x2996   :  { %30106 = vmatprep.mubr.f32.mxu0 %v37627_v61  ;;  %32152 = vmatprep.subr.bf16.mxu0 %v36891_v29 }
0x2997   :  { %32252 = vmatprep.subr.bf16.mxu1 %v36824_v53 }
0x2998   :  { %30173 = vmatmul.mubr.f32.vlgmr.msra.gmra.mrb[36].mxu1 %v37610_v31 }
0x2999   :  { %32154 = vmatpush3.bf16.msra.mxu0 %v36891_v29  ;;  %32254 = vmatpush3.bf16.msra.mxu1 %v36824_v53 }
0x299a   :  { %32256 = vmatprep.subr.bf16.mxu1 %v36877_v35  ;;  %32204 = vmatprep.subr.bf16.mxu0 %v36832_v10 }
0x299c   :  { %30107 = vmatmul.mubr.f32.vlgmr.msra.gmra.mrb[26].mxu0 %v37623_v19 }
0x299d   :  { %32258 = vmatpush3.bf16.msra.mxu1 %v36877_v35  ;;  %32206 = vmatpush3.bf16.msra.mxu0 %v36832_v10 }
0x299e   :  { %32260 = vmatprep.subr.bf16.mxu1 %v36894_v3  ;;  %32208 = vmatprep.subr.bf16.mxu0 %v36891_v29 }
0x29a1   :  { %32210 = vmatpush3.bf16.msra.mxu0 %v36891_v29 }
0x29a2   :  { %32212 = vmatprep.subr.bf16.mxu0 %v36902_v1 }
0x2a6b   :  { %v30174_v51 = vpop.f32.mrb[36].mxu1 }
0x2a6c   :  { %v32563_v43 = vadd.f32 %v37440_v42, %v30174_v51  ;;  %v21982_v24 = vpop.f32.mrb[37].mxu1 }
0x2a6d   :  { %v32564_v13 = vadd.f32 %v37440_v42, %v21982_v24 }
0x2a6e   :  { %33780 = vtanh.f32 %v32563_v43  ;;  %v25701_v42 = vmul.f32 -1.442695, %v32563_v43 }
0x2a6f   :  { %33782 = vtanh.f32 %v32564_v13  ;;  %v30108_v48 = vpop.f32.mrb[26].mxu0  ;;  %v25700_v32 = vmul.f32 -1.442695, %v32564_v13 }
0x2a70   :  { %v32553_v47 = vadd.f32 %v37447_v41, %v30108_v48  ;;  %v21442_v36 = vpop.f32.mrb[27].mxu0 }
0x2a71   :  { %v32554_v31 = vadd.f32 %v37447_v41, %v21442_v36 }
0x2a72   :  { %33784 = vtanh.f32 %v32553_v47  ;;  %v25699_v63 = vmul.f32 -1.442695, %v32553_v47 }
0x2a73   :  { %33786 = vtanh.f32 %v32554_v31  ;;  %v25698_v41 = vmul.f32 -1.442695, %v32554_v31 }
0x2a74   :  { %33788 = vpow2.f32 %v25701_v42 }
0x2a75   :  { %33790 = vpow2.f32 %v25700_v32 }
0x2a76   :  { %33792 = vpow2.f32 %v25699_v63 }
0x2a77   :  { %33794 = vpow2.f32 %v25698_v41 }
0x2a78   :  { %v33781_v56 = vpop.eup %33780 }
0x2a79   :  { %v33783_v37 = vpop.eup %33782  ;;  %22062 = vrot.lane.b32.xlu1 %v33781_v56, %s33968_s14 }
0x2a7a   :  { %22060 = vrot.lane.b32.xlu0 %v33783_v37, %s33968_s14 }
0x2a7c   :  { %v33785_v5 = vpop.eup %33784 }
0x2a7d   :  { %v33787_v17 = vpop.eup %33786  ;;  %22014 = vrot.lane.b32.xlu1 %v33785_v5, %s33968_s14 }
0x2a7e   :  { %22012 = vrot.lane.b32.xlu0 %v33787_v17, %s33968_s14  ;;  %v33789_v19 = vpop.eup %33788 }
0x2a7f   :  { %v33791_v54 = vpop.eup %33790  ;;  %v22049_v50 = vadd.f32 1.0, %v33789_v19 }
0x2a80   :  { %v33793_v61 = vpop.eup %33792  ;;  %v22048_v62 = vadd.f32 1.0, %v33791_v54 }
0x2a81   :  { %v33795_v27 = vpop.eup %33794  ;;  %33796 = vrcp.f32 %v22049_v50  ;;  %v22001_v40 = vadd.f32 1.0, %v33793_v61 }
0x2a82   :  { %33798 = vrcp.f32 %v22048_v62  ;;  %v22000_v58 = vadd.f32 1.0, %v33795_v27 }
0x2a83   :  { %33800 = vrcp.f32 %v22001_v40 }
0x2a84   :  { %33802 = vrcp.f32 %v22000_v58 }
0x2a8b   :  { %v33797_v20 = vpop.eup %33796 }
0x2a8c   :  { %v33799_v9 = vpop.eup %33798  ;;  %v22057_v48 = vmul.f32 %v33797_v20, %v37581_v2 }
0x2a8d   :  { %v33801_v44 = vpop.eup %33800  ;;  %v22056_v36 = vmul.f32 %v33799_v9, %v37583_v45 }
0x2a8e   :  { %v33803_v51 = vpop.eup %33802  ;;  %v22009_v5 = vmul.f32 %v33801_v44, %v37589_v46 }
0x2a8f   :  { %v22008_v42 = vmul.f32 %v33803_v51, %v37591_v28 }
0x2aeb   :  { %v22063_v57 = vpop.permute.xlu1 %22062 }
0x2aec   :  { %v22067_v21 = vmul.f32 %v33797_v20, %v22063_v57  ;;  %v22061_v11 = vpop.permute.xlu0 %22060 }
0x2aed   :  { %v22066_v34 = vmul.f32 %v33799_v9, %v22061_v11 }
0x2aee   :  { %22072 = vrot.lane.b32.xlu1 %v22067_v21, %s33969_s15 }
0x2aef   :  { %v22015_v8 = vpop.permute.xlu1 %22014  ;;  %22070 = vrot.lane.b32.xlu0 %v22066_v34, %s33969_s15 }
0x2af0   :  { %v22019_v43 = vmul.f32 %v33801_v44, %v22015_v8  ;;  %v22013_v24 = vpop.permute.xlu0 %22012 }
0x2af1   :  { %v22018_v13 = vmul.f32 %v33803_v51, %v22013_v24 }
0x2af2   :  { %22024 = vrot.lane.b32.xlu1 %v22019_v43, %s33969_s15 }
0x2af3   :  { %22022 = vrot.lane.b32.xlu0 %v22018_v13, %s33969_s15 }
0x2b60   :  { %v22073_v47 = vpop.permute.xlu1 %22072 }
0x2b61   :  { %v37705_v31 = vadd.f32 %v22073_v47, %v22057_v48  ;;  %v22071_v56 = vpop.permute.xlu0 %22070 }
0x2b62   :  { %v37707_v37 = vadd.f32 %v22071_v56, %v22056_v36 }
0x2b63   :  { %33804 = vtanh.f32 %v37705_v31 }
0x2b64   :  { %33806 = vtanh.f32 %v37707_v37  ;;  %v22025_v17 = vpop.permute.xlu1 %22024 }
0x2b65   :  { %v37713_v32 = vadd.f32 %v22025_v17, %v22009_v5  ;;  %v22023_v2 = vpop.permute.xlu0 %22022 }
0x2b66   :  { %v37715_v63 = vadd.f32 %v22023_v2, %v22008_v42 }
0x2b67   :  { %33808 = vtanh.f32 %v37713_v32 }
0x2b68   :  { %33810 = vtanh.f32 %v37715_v63 }
0x2b6d   :  { %v33805_v45 = vpop.eup %33804 }
0x2b6e   :  { %v33807_v41 = vpop.eup %33806  ;;  %22084 = vrot.lane.b32.xlu1 %v33805_v45, %s33968_s14 }
0x2b6f   :  { %22082 = vrot.lane.b32.xlu0 %v33807_v41, %s33968_s14 }
0x2b71   :  { %v33809_v46 = vpop.eup %33808 }
0x2b72   :  { %v33811_v19 = vpop.eup %33810  ;;  %22036 = vrot.lane.b32.xlu1 %v33809_v46, %s33968_s14 }
0x2b73   :  { %22034 = vrot.lane.b32.xlu0 %v33811_v19, %s33968_s14 }
0x2be0   :  { %v22085_v28 = vpop.permute.xlu1 %22084 }
0x2be1   :  { %v37723_v54 = vmul.f32 %v33797_v20, %v22085_v28  ;;  %v22083_v50 = vpop.permute.xlu0 %22082 }
0x2be2   :  { %v37725_v61 = vmul.f32 %v33799_v9, %v22083_v50 }
0x2be3   :  { %22650 = vrot.lane.b32.xlu1 %v37723_v54, %s33969_s15 }
0x2be4   :  { %v22037_v62 = vpop.permute.xlu1 %22036  ;;  %22648 = vrot.lane.b32.xlu0 %v37725_v61, %s33969_s15 }
0x2be5   :  { %v22041_v27 = vmul.f32 %v33801_v44, %v22037_v62  ;;  %v22035_v40 = vpop.permute.xlu0 %22034 }
0x2be6   :  { %v22040_v58 = vmul.f32 %v33803_v51, %v22035_v40 }
0x2be7   :  { %22094 = vrot.lane.b32.xlu1 %v22041_v27, %s33969_s15 }
0x2be8   :  { %22092 = vrot.lane.b32.xlu0 %v22040_v58, %s33969_s15  ;;  %v37818_v58 = vld [vmem:[%s38191_s5 + $0x3] ss:$0 sm:$0xff] }
0x2c55   :  { %v22651_v57 = vpop.permute.xlu1 %22650 }
0x2c56   :  { %v22654_v20 = vsel %vm503_vm0, %v22651_v57, 0  ;;  %v22649_v21 = vpop.permute.xlu0 %22648 }
0x2c57   :  { %v37734_v9 = vand.u32 4294901760, %v22654_v20  ;;  %v22652_v11 = vsel %vm503_vm0, %v22649_v21, 0 }
0x2c58   :  { %v37737_v34 = vand.u32 4294901760, %v22652_v11 }
0x2c59   :  { %v22736_v8 = vsub.f32 %v22654_v20, %v37734_v9  ;;  %v37740_v43 = vpop.permute.xlu1 %22094 }
0x2c5a   :  { %v22726_v44 = vsub.f32 %v22652_v11, %v37737_v34  ;;  %v22114_v51 = vsel %vm503_vm0, %v37740_v43, 0  ;;  %v37745_v24 = vpop.permute.xlu0 %22092  ;;  %v37825_v11 = vld [vmem:[%s38191_s5 + $0x2] ss:$0 sm:$0xff] }
0x2c5b   :  { %v22737_v13 = vand.u32 4294901760, %v22736_v8  ;;  %v37747_v48 = vand.u32 4294901760, %v22114_v51  ;;  %v22112_v47 = vsel %vm503_vm0, %v37745_v24, 0 }
0x2c5c   :  { %v22727_v36 = vand.u32 4294901760, %v22726_v44  ;;  %v37751_v56 = vand.u32 4294901760, %v22112_v47 }
0x2c5d   :  { %v22738_v5 = vsub.f32 %v22736_v8, %v22737_v13  ;;  %v22196_v17 = vsub.f32 %v22114_v51, %v37747_v48 }
0x2c5e   :  { %v22186_v42 = vsub.f32 %v22112_v47, %v37751_v56  ;;  %v22728_v2 = vsub.f32 %v22726_v44, %v22727_v36 }
0x2c5f   :  { %v22197_v45 = vand.u32 4294901760, %v22196_v17  ;;  %v22739_v19 = vand.u32 4294901760, %v22738_v5 }
0x2c60   :  { %v22729_v41 = vand.u32 4294901760, %v22728_v2  ;;  %v22187_v46 = vand.u32 4294901760, %v22186_v42 }
0x2c61   :  { %v22198_v28 = vsub.f32 %v22196_v17, %v22197_v45 }
0x2c62   :  { %30249 = vmatprep.mubr.f32.mxu1 %v22729_v41  ;;  %v22188_v50 = vsub.f32 %v22186_v42, %v22187_v46 }
0x2c63   :  { %30250 = vmatmul.mubr.f32.vlgmr.msra.gmra.mrb[34].mxu1 %v22739_v19  ;;  %v22199_v27 = vand.u32 4294901760, %v22198_v28 }
0x2c64   :  { %32262 = vmatpush3.bf16.msra.mxu1 %v36894_v3  ;;  %30260 = vmatprep.mubr.f32.mxu1 %v37737_v34  ;;  %v22189_v62 = vand.u32 4294901760, %v22188_v50 }
0x2c65   :  { %32264 = vmatprep.subr.bf16.mxu1 %v36963_v39 }
0x2c66   :  { %30183 = vmatprep.mubr.f32.mxu0 %v22189_v62 }
0x2c67   :  { %30184 = vmatmul.mubr.f32.vlgmr.msra.gmra.mrb[28].mxu0 %v22199_v27 }
0x2c68   :  { %32266 = vmatpush3.bf16.msra.mxu1 %v36963_v39  ;;  %32214 = vmatpush3.bf16.msra.mxu0 %v36902_v1 }
0x2c69   :  { %30194 = vmatprep.mubr.f32.mxu0 %v37751_v56  ;;  %32268 = vmatprep.subr.bf16.mxu1 %v36976_v0 }
0x2c6a   :  { %32216 = vmatprep.subr.bf16.mxu0 %v36957_v25 }
0x2c6b   :  { %30261 = vmatmul.mubr.f32.vlgmr.msra.gmra.mrb[34].mxu1 %v37734_v9 }
0x2c6c   :  { %32270 = vmatpush3.bf16.msra.mxu1 %v36976_v0  ;;  %32218 = vmatpush3.bf16.msra.mxu0 %v36957_v25 }
0x2c6d   :  { %30271 = vmatprep.mubr.f32.mxu1 %v22726_v44  ;;  %32272 = vmatprep.subr.bf16.mxu1 %v36990_v55 }
0x2c6e   :  { %32220 = vmatprep.subr.bf16.mxu0 %v36967_v14 }
0x2c6f   :  { %30195 = vmatmul.mubr.f32.vlgmr.msra.gmra.mrb[28].mxu0 %v37747_v48 }
0x2c70   :  { %32274 = vmatpush3.bf16.msra.mxu1 %v36990_v55  ;;  %32222 = vmatpush3.bf16.msra.mxu0 %v36967_v14 }
0x2c71   :  { %30205 = vmatprep.mubr.f32.mxu0 %v22186_v42  ;;  %32276 = vmatprep.subr.bf16.mxu1 %v36824_v53 }
0x2c72   :  { %32224 = vmatprep.subr.bf16.mxu0 %v36980_v12 }
0x2c73   :  { %30272 = vmatmul.mubr.f32.vlgmr.msra.gmra.mrb[34].mxu1 %v22736_v8 }
0x2c74   :  { %32278 = vmatpush3.bf16.msra.mxu1 %v36824_v53  ;;  %32226 = vmatpush3.bf16.msra.mxu0 %v36980_v12 }
0x2c75   :  { %30282 = vmatprep.mubr.f32.mxu1 %v22727_v36  ;;  %32280 = vmatprep.subr.bf16.mxu1 %v36877_v35 }
0x2c76   :  { %32228 = vmatprep.subr.bf16.mxu0 %v36832_v10 }
0x2c77   :  { %30206 = vmatmul.mubr.f32.vlgmr.msra.gmra.mrb[28].mxu0 %v22196_v17 }
0x2c78   :  { %32282 = vmatpush3.bf16.msra.mxu1 %v36877_v35  ;;  %32230 = vmatpush3.bf16.msra.mxu0 %v36832_v10 }
0x2c79   :  { %30216 = vmatprep.mubr.f32.mxu0 %v22187_v46  ;;  %32284 = vmatprep.subr.bf16.mxu1 %v37020_v38 }
0x2c7a   :  { %32232 = vmatprep.subr.bf16.mxu0 %v36891_v29 }
0x2c7b   :  { %30283 = vmatmul.mubr.f32.vlgmr.msra.gmra.mrb[34].mxu1 %v22737_v13 }
0x2c7c   :  { %32286 = vmatpush3.bf16.msra.mxu1 %v37020_v38  ;;  %32234 = vmatpush3.bf16.msra.mxu0 %v36891_v29 }
0x2c7d   :  { %30293 = vmatprep.mubr.f32.mxu1 %v37737_v34  ;;  %32288 = vmatprep.subr.bf16.mxu1 %v37038_v33 }
0x2c7e   :  { %32236 = vmatprep.subr.bf16.mxu0 %v37008_v22 }
0x2c7f   :  { %30217 = vmatmul.mubr.f32.vlgmr.msra.gmra.mrb[28].mxu0 %v22197_v45 }
0x2c80   :  { %32290 = vmatpush3.bf16.msra.mxu1 %v37038_v33  ;;  %32238 = vmatpush3.bf16.msra.mxu0 %v37008_v22 }
0x2c81   :  { %30227 = vmatprep.mubr.f32.mxu0 %v37751_v56  ;;  %32292 = vmatprep.subr.bf16.mxu1 %v36824_v53 }
0x2c82   :  { %32240 = vmatprep.subr.bf16.mxu0 %v37026_v26 }
0x2c83   :  { %30294 = vmatmul.mubr.f32.vlgmr.msra.gmra.mrb[34].mxu1 %v37734_v9 }
0x2c84   :  { %32294 = vmatpush3.bf16.msra.mxu1 %v36824_v53  ;;  %32242 = vmatpush3.bf16.msra.mxu0 %v37026_v26 }
0x2c85   :  { %30304 = vmatprep.mubr.f32.mxu1 %v37737_v34  ;;  %32296 = vmatprep.subr.bf16.mxu1 %v36877_v35 }
0x2c86   :  { %32244 = vmatprep.subr.bf16.mxu0 %v36832_v10 }
0x2c87   :  { %30228 = vmatmul.mubr.f32.vlgmr.msra.gmra.mrb[28].mxu0 %v37747_v48 }
0x2c88   :  { %32298 = vmatpush3.bf16.msra.mxu1 %v36877_v35  ;;  %32246 = vmatpush3.bf16.msra.mxu0 %v36832_v10 }
0x2c89   :  { %30238 = vmatprep.mubr.f32.mxu0 %v37751_v56  ;;  %32248 = vmatprep.subr.bf16.mxu0 %v36891_v29 }
0x2c8a   :  { %32348 = vmatprep.subr.bf16.mxu1 %v36824_v53 }
0x2c8b   :  { %30305 = vmatmul.mubr.f32.vlgmr.msra.gmra.mrb[34].mxu1 %v37734_v9 }
0x2c8c   :  { %32250 = vmatpush3.bf16.msra.mxu0 %v36891_v29  ;;  %32350 = vmatpush3.bf16.msra.mxu1 %v36824_v53 }
0x2c8d   :  { %32352 = vmatprep.subr.bf16.mxu1 %v36877_v35  ;;  %32300 = vmatprep.subr.bf16.mxu0 %v36832_v10 }
0x2c8f   :  { %30239 = vmatmul.mubr.f32.vlgmr.msra.gmra.mrb[28].mxu0 %v37747_v48 }
0x2c90   :  { %32354 = vmatpush3.bf16.msra.mxu1 %v36877_v35  ;;  %32302 = vmatpush3.bf16.msra.mxu0 %v36832_v10 }
0x2c91   :  { %32356 = vmatprep.subr.bf16.mxu1 %v36894_v3  ;;  %32304 = vmatprep.subr.bf16.mxu0 %v36891_v29 }
0x2c94   :  { %32306 = vmatpush3.bf16.msra.mxu0 %v36891_v29 }
0x2c95   :  { %32308 = vmatprep.subr.bf16.mxu0 %v36902_v1 }
0x2d5e   :  { %v30306_v40 = vpop.f32.mrb[34].mxu1 }
0x2d5f   :  { %v32561_v57 = vadd.f32 %v37818_v58, %v30306_v40  ;;  %v23174_v20 = vpop.f32.mrb[35].mxu1 }
0x2d60   :  { %v32562_v21 = vadd.f32 %v37818_v58, %v23174_v20 }
0x2d61   :  { %33812 = vtanh.f32 %v32561_v57  ;;  %v25705_v36 = vmul.f32 -1.442695, %v32561_v57 }
0x2d62   :  { %33814 = vtanh.f32 %v32562_v21  ;;  %v30240_v9 = vpop.f32.mrb[28].mxu0  ;;  %v25704_v56 = vmul.f32 -1.442695, %v32562_v21 }
0x2d63   :  { %v32555_v34 = vadd.f32 %v37825_v11, %v30240_v9  ;;  %v22634_v8 = vpop.f32.mrb[29].mxu0 }
0x2d64   :  { %v32556_v44 = vadd.f32 %v37825_v11, %v22634_v8 }
0x2d65   :  { %33816 = vtanh.f32 %v32555_v34  ;;  %v25703_v5 = vmul.f32 -1.442695, %v32555_v34 }
0x2d66   :  { %33818 = vtanh.f32 %v32556_v44  ;;  %v25702_v17 = vmul.f32 -1.442695, %v32556_v44 }
0x2d67   :  { %33820 = vpow2.f32 %v25705_v36 }
0x2d68   :  { %33822 = vpow2.f32 %v25704_v56 }
0x2d69   :  { %33824 = vpow2.f32 %v25703_v5 }
0x2d6a   :  { %33826 = vpow2.f32 %v25702_v17 }
0x2d6b   :  { %v33813_v51 = vpop.eup %33812 }
0x2d6c   :  { %v33815_v13 = vpop.eup %33814  ;;  %23254 = vrot.lane.b32.xlu1 %v33813_v51, %s33968_s14 }
0x2d6d   :  { %23252 = vrot.lane.b32.xlu0 %v33815_v13, %s33968_s14 }
0x2d6f   :  { %v33817_v48 = vpop.eup %33816 }
0x2d70   :  { %v33819_v47 = vpop.eup %33818  ;;  %23206 = vrot.lane.b32.xlu1 %v33817_v48, %s33968_s14 }
0x2d71   :  { %23204 = vrot.lane.b32.xlu0 %v33819_v47, %s33968_s14  ;;  %v33821_v42 = vpop.eup %33820 }
0x2d72   :  { %v33823_v2 = vpop.eup %33822  ;;  %v23241_v45 = vadd.f32 1.0, %v33821_v42 }
0x2d73   :  { %v33825_v41 = vpop.eup %33824  ;;  %v23240_v46 = vadd.f32 1.0, %v33823_v2 }
0x2d74   :  { %v33827_v19 = vpop.eup %33826  ;;  %33828 = vrcp.f32 %v23241_v45  ;;  %v23193_v28 = vadd.f32 1.0, %v33825_v41 }
0x2d75   :  { %33830 = vrcp.f32 %v23240_v46  ;;  %v23192_v50 = vadd.f32 1.0, %v33827_v19 }
0x2d76   :  { %33832 = vrcp.f32 %v23193_v28 }
0x2d77   :  { %33834 = vrcp.f32 %v23192_v50 }
0x2d7e   :  { %v33829_v62 = vpop.eup %33828 }
0x2d7f   :  { %v33831_v40 = vpop.eup %33830  ;;  %v23249_v48 = vmul.f32 %v33829_v62, %v37705_v31 }
0x2d80   :  { %v33833_v9 = vpop.eup %33832  ;;  %v23248_v36 = vmul.f32 %v33831_v40, %v37707_v37 }
0x2d81   :  { %v33835_v8 = vpop.eup %33834  ;;  %v23201_v42 = vmul.f32 %v33833_v9, %v37713_v32 }
0x2d82   :  { %v23200_v45 = vmul.f32 %v33835_v8, %v37715_v63 }
0x2dde   :  { %v23255_v27 = vpop.permute.xlu1 %23254 }
0x2ddf   :  { %v23259_v57 = vmul.f32 %v33829_v62, %v23255_v27  ;;  %v23253_v20 = vpop.permute.xlu0 %23252 }
0x2de0   :  { %v23258_v21 = vmul.f32 %v33831_v40, %v23253_v20 }
0x2de1   :  { %23264 = vrot.lane.b32.xlu1 %v23259_v57, %s33969_s15 }
0x2de2   :  { %v23207_v34 = vpop.permute.xlu1 %23206  ;;  %23262 = vrot.lane.b32.xlu0 %v23258_v21, %s33969_s15 }
0x2de3   :  { %v23211_v44 = vmul.f32 %v33833_v9, %v23207_v34  ;;  %v23205_v51 = vpop.permute.xlu0 %23204 }
0x2de4   :  { %v23210_v13 = vmul.f32 %v33835_v8, %v23205_v51 }
0x2de5   :  { %23216 = vrot.lane.b32.xlu1 %v23211_v44, %s33969_s15 }
0x2de6   :  { %23214 = vrot.lane.b32.xlu0 %v23210_v13, %s33969_s15 }
0x2e53   :  { %v23265_v47 = vpop.permute.xlu1 %23264 }
0x2e54   :  { %v37839_v56 = vadd.f32 %v23265_v47, %v23249_v48  ;;  %v23263_v5 = vpop.permute.xlu0 %23262 }
0x2e55   :  { %v37841_v17 = vadd.f32 %v23263_v5, %v23248_v36 }
0x2e56   :  { %33836 = vtanh.f32 %v37839_v56 }
0x2e57   :  { %33838 = vtanh.f32 %v37841_v17  ;;  %v23217_v2 = vpop.permute.xlu1 %23216 }
0x2e58   :  { %v37847_v41 = vadd.f32 %v23217_v2, %v23201_v42  ;;  %v23215_v31 = vpop.permute.xlu0 %23214 }
0x2e59   :  { %v37849_v46 = vadd.f32 %v23215_v31, %v23200_v45 }
0x2e5a   :  { %33840 = vtanh.f32 %v37847_v41 }
0x2e5b   :  { %33842 = vtanh.f32 %v37849_v46 }
0x2e60   :  { %v33837_v37 = vpop.eup %33836 }
0x2e61   :  { %v33839_v19 = vpop.eup %33838  ;;  %23276 = vrot.lane.b32.xlu1 %v33837_v37, %s33968_s14 }
0x2e62   :  { %23274 = vrot.lane.b32.xlu0 %v33839_v19, %s33968_s14 }
0x2e64   :  { %v33841_v32 = vpop.eup %33840 }
0x2e65   :  { %v33843_v28 = vpop.eup %33842  ;;  %23228 = vrot.lane.b32.xlu1 %v33841_v32, %s33968_s14 }
0x2e66   :  { %23226 = vrot.lane.b32.xlu0 %v33843_v28, %s33968_s14 }
0x2ed3   :  { %v23277_v63 = vpop.permute.xlu1 %23276 }
0x2ed4   :  { %v37857_v50 = vmul.f32 %v33829_v62, %v23277_v63  ;;  %v23275_v27 = vpop.permute.xlu0 %23274 }
0x2ed5   :  { %v37859_v57 = vmul.f32 %v33831_v40, %v23275_v27 }
0x2ed6   :  { %23842 = vrot.lane.b32.xlu1 %v37857_v50, %s33969_s15 }
0x2ed7   :  { %v23229_v20 = vpop.permute.xlu1 %23228  ;;  %23840 = vrot.lane.b32.xlu0 %v37859_v57, %s33969_s15 }
0x2ed8   :  { %v23233_v21 = vmul.f32 %v33833_v9, %v23229_v20  ;;  %v23227_v34 = vpop.permute.xlu0 %23226 }
0x2ed9   :  { %v23232_v44 = vmul.f32 %v33835_v8, %v23227_v34 }
0x2eda   :  { %23286 = vrot.lane.b32.xlu1 %v23233_v21, %s33969_s15 }
0x2edb   :  { %23284 = vrot.lane.b32.xlu0 %v23232_v44, %s33969_s15 }
0x2f48   :  { %v23843_v51 = vpop.permute.xlu1 %23842 }
0x2f49   :  { %v23846_v62 = vsel %vm503_vm0, %v23843_v51, 0  ;;  %v23841_v13 = vpop.permute.xlu0 %23840 }
0x2f4a   :  { %v37868_v40 = vand.u32 4294901760, %v23846_v62  ;;  %v23844_v48 = vsel %vm503_vm0, %v23841_v13, 0 }
0x2f4b   :  { %v37871_v47 = vand.u32 4294901760, %v23844_v48 }
0x2f4c   :  { %v23928_v36 = vsub.f32 %v23846_v62, %v37868_v40  ;;  %v37874_v5 = vpop.permute.xlu1 %23286 }
0x2f4d   :  { %v23918_v9 = vsub.f32 %v23844_v48, %v37871_v47  ;;  %v23306_v8 = vsel %vm503_vm0, %v37874_v5, 0  ;;  %v37879_v42 = vpop.permute.xlu0 %23284 }
0x2f4e   :  { %v23929_v2 = vand.u32 4294901760, %v23928_v36  ;;  %v37881_v45 = vand.u32 4294901760, %v23306_v8  ;;  %v23304_v31 = vsel %vm503_vm0, %v37879_v42, 0 }
0x2f4f   :  { %v23919_v37 = vand.u32 4294901760, %v23918_v9  ;;  %v37885_v19 = vand.u32 4294901760, %v23304_v31 }
0x2f50   :  { %v23930_v32 = vsub.f32 %v23928_v36, %v23929_v2  ;;  %v23388_v28 = vsub.f32 %v23306_v8, %v37881_v45 }
0x2f51   :  { %v23378_v63 = vsub.f32 %v23304_v31, %v37885_v19  ;;  %v23920_v27 = vsub.f32 %v23918_v9, %v23919_v37 }
0x2f52   :  { %v23389_v20 = vand.u32 4294901760, %v23388_v28  ;;  %v23931_v44 = vand.u32 4294901760, %v23930_v32 }
0x2f53   :  { %v23921_v21 = vand.u32 4294901760, %v23920_v27  ;;  %v23379_v34 = vand.u32 4294901760, %v23378_v63 }
0x2f54   :  { %v23390_v51 = vsub.f32 %v23388_v28, %v23389_v20 }
0x2f55   :  { %30381 = vmatprep.mubr.f32.mxu1 %v23921_v21  ;;  %v23380_v62 = vsub.f32 %v23378_v63, %v23379_v34 }
0x2f56   :  { %30382 = vmatmul.mubr.f32.vlgmr.msra.gmra.mrb[32].mxu1 %v23931_v44  ;;  %v23391_v48 = vand.u32 4294901760, %v23390_v51 }
0x2f57   :  { %32358 = vmatpush3.bf16.msra.mxu1 %v36894_v3  ;;  %30392 = vmatprep.mubr.f32.mxu1 %v37871_v47  ;;  %v23381_v13 = vand.u32 4294901760, %v23380_v62 }
0x2f58   :  { %32360 = vmatprep.subr.bf16.mxu1 %v36963_v39 }
0x2f59   :  { %30315 = vmatprep.mubr.f32.mxu0 %v23381_v13 }
0x2f5a   :  { %30316 = vmatmul.mubr.f32.vlgmr.msra.gmra.mrb[30].mxu0 %v23391_v48 }
0x2f5b   :  { %32362 = vmatpush3.bf16.msra.mxu1 %v36963_v39  ;;  %32310 = vmatpush3.bf16.msra.mxu0 %v36902_v1 }
0x2f5c   :  { %30326 = vmatprep.mubr.f32.mxu0 %v37885_v19  ;;  %32364 = vmatprep.subr.bf16.mxu1 %v36976_v0 }
0x2f5d   :  { %32312 = vmatprep.subr.bf16.mxu0 %v36957_v25 }
0x2f5e   :  { %30393 = vmatmul.mubr.f32.vlgmr.msra.gmra.mrb[32].mxu1 %v37868_v40 }
0x2f5f   :  { %32366 = vmatpush3.bf16.msra.mxu1 %v36976_v0  ;;  %32314 = vmatpush3.bf16.msra.mxu0 %v36957_v25 }
0x2f60   :  { %30403 = vmatprep.mubr.f32.mxu1 %v23918_v9  ;;  %32368 = vmatprep.subr.bf16.mxu1 %v36990_v55 }
0x2f61   :  { %32316 = vmatprep.subr.bf16.mxu0 %v36967_v14 }
0x2f62   :  { %30327 = vmatmul.mubr.f32.vlgmr.msra.gmra.mrb[30].mxu0 %v37881_v45 }
0x2f63   :  { %32370 = vmatpush3.bf16.msra.mxu1 %v36990_v55  ;;  %32318 = vmatpush3.bf16.msra.mxu0 %v36967_v14 }
0x2f64   :  { %30337 = vmatprep.mubr.f32.mxu0 %v23378_v63  ;;  %32372 = vmatprep.subr.bf16.mxu1 %v36824_v53 }
0x2f65   :  { %32320 = vmatprep.subr.bf16.mxu0 %v36980_v12 }
0x2f66   :  { %30404 = vmatmul.mubr.f32.vlgmr.msra.gmra.mrb[32].mxu1 %v23928_v36 }
0x2f67   :  { %32374 = vmatpush3.bf16.msra.mxu1 %v36824_v53  ;;  %32322 = vmatpush3.bf16.msra.mxu0 %v36980_v12 }
0x2f68   :  { %30414 = vmatprep.mubr.f32.mxu1 %v23919_v37  ;;  %32376 = vmatprep.subr.bf16.mxu1 %v36877_v35 }
0x2f69   :  { %32324 = vmatprep.subr.bf16.mxu0 %v36832_v10 }
0x2f6a   :  { %30338 = vmatmul.mubr.f32.vlgmr.msra.gmra.mrb[30].mxu0 %v23388_v28 }
0x2f6b   :  { %32378 = vmatpush3.bf16.msra.mxu1 %v36877_v35  ;;  %32326 = vmatpush3.bf16.msra.mxu0 %v36832_v10 }
0x2f6c   :  { %30348 = vmatprep.mubr.f32.mxu0 %v23379_v34  ;;  %32380 = vmatprep.subr.bf16.mxu1 %v37020_v38 }
0x2f6d   :  { %32328 = vmatprep.subr.bf16.mxu0 %v36891_v29 }
0x2f6e   :  { %30415 = vmatmul.mubr.f32.vlgmr.msra.gmra.mrb[32].mxu1 %v23929_v2 }
0x2f6f   :  { %32382 = vmatpush3.bf16.msra.mxu1 %v37020_v38  ;;  %32330 = vmatpush3.bf16.msra.mxu0 %v36891_v29 }
0x2f70   :  { %30425 = vmatprep.mubr.f32.mxu1 %v37871_v47  ;;  %32384 = vmatprep.subr.bf16.mxu1 %v37038_v33 }
0x2f71   :  { %32332 = vmatprep.subr.bf16.mxu0 %v37008_v22 }
0x2f72   :  { %30349 = vmatmul.mubr.f32.vlgmr.msra.gmra.mrb[30].mxu0 %v23389_v20 }
0x2f73   :  { %32386 = vmatpush3.bf16.msra.mxu1 %v37038_v33  ;;  %32334 = vmatpush3.bf16.msra.mxu0 %v37008_v22 }
0x2f74   :  { %30359 = vmatprep.mubr.f32.mxu0 %v37885_v19  ;;  %32388 = vmatprep.subr.bf16.mxu1 %v36824_v53 }
0x2f75   :  { %32336 = vmatprep.subr.bf16.mxu0 %v37026_v26 }
0x2f76   :  { %30426 = vmatmul.mubr.f32.vlgmr.msra.gmra.mrb[32].mxu1 %v37868_v40 }
0x2f77   :  { %32390 = vmatpush3.bf16.msra.mxu1 %v36824_v53  ;;  %32338 = vmatpush3.bf16.msra.mxu0 %v37026_v26 }
0x2f78   :  { %30436 = vmatprep.mubr.f32.mxu1 %v37871_v47  ;;  %32392 = vmatprep.subr.bf16.mxu1 %v36877_v35 }
0x2f79   :  { %32340 = vmatprep.subr.bf16.mxu0 %v36832_v10 }
0x2f7a   :  { %30360 = vmatmul.mubr.f32.vlgmr.msra.gmra.mrb[30].mxu0 %v37881_v45 }
0x2f7b   :  { %32394 = vmatpush3.bf16.msra.mxu1 %v36877_v35  ;;  %32342 = vmatpush3.bf16.msra.mxu0 %v36832_v10 }
0x2f7c   :  { %30370 = vmatprep.mubr.f32.mxu0 %v37885_v19  ;;  %32344 = vmatprep.subr.bf16.mxu0 %v36891_v29 }
0x2f7e   :  { %30437 = vmatmul.mubr.f32.vlgmr.msra.gmra.mrb[32].mxu1 %v37868_v40 }
0x2f7f   :  { %32346 = vmatpush3.bf16.msra.mxu0 %v36891_v29 }
0x2f82   :  { %30371 = vmatmul.mubr.f32.vlgmr.msra.gmra.mrb[30].mxu0 %v37881_v45 }
0x3051   :  { %v30438_v53 = vpop.f32.mrb[32].mxu1 }
0x3052   :  { %v32559_v3 = vadd.f32 %v37818_v58, %v30438_v53  ;;  %v24366_v1 = vpop.f32.mrb[33].mxu1 }
0x3053   :  { %v32560_v25 = vadd.f32 %v37818_v58, %v24366_v1 }
0x3054   :  { %33844 = vtanh.f32 %v32559_v3  ;;  %v25709_v22 = vmul.f32 -1.442695, %v32559_v3 }
0x3055   :  { %33846 = vtanh.f32 %v32560_v25  ;;  %v30372_v35 = vpop.f32.mrb[30].mxu0  ;;  %v25708_v38 = vmul.f32 -1.442695, %v32560_v25 }
0x3056   :  { %v32557_v10 = vadd.f32 %v37825_v11, %v30372_v35  ;;  %v23826_v39 = vpop.f32.mrb[31].mxu0 }
0x3057   :  { %v32558_v14 = vadd.f32 %v37825_v11, %v23826_v39 }
0x3058   :  { %33848 = vtanh.f32 %v32557_v10  ;;  %v25707_v26 = vmul.f32 -1.442695, %v32557_v10 }
0x3059   :  { %33850 = vtanh.f32 %v32558_v14  ;;  %v25706_v33 = vmul.f32 -1.442695, %v32558_v14 }
0x305a   :  { %33852 = vpow2.f32 %v25709_v22 }
0x305b   :  { %33854 = vpow2.f32 %v25708_v38 }
0x305c   :  { %33856 = vpow2.f32 %v25707_v26 }
0x305d   :  { %33858 = vpow2.f32 %v25706_v33  ;;  %v24500_v33 = vld [vmem:[%s38192_s6 + $0x30] sm:$0xff] }
0x305e   :  { %v33845_v0 = vpop.eup %33844 }
0x305f   :  { %v33847_v29 = vpop.eup %33846  ;;  %24446 = vrot.lane.b32.xlu1 %v33845_v0, %s33968_s14 }
0x3060   :  { %24444 = vrot.lane.b32.xlu0 %v33847_v29, %s33968_s14 }
0x3062   :  { %v33849_v12 = vpop.eup %33848 }
0x3063   :  { %v33851_v55 = vpop.eup %33850  ;;  %24398 = vrot.lane.b32.xlu1 %v33849_v12, %s33968_s14 }
0x3064   :  { %24396 = vrot.lane.b32.xlu0 %v33851_v55, %s33968_s14  ;;  %v33853_v58 = vpop.eup %33852 }
0x3065   :  { %v33855_v11 = vpop.eup %33854  ;;  %v24433_v40 = vadd.f32 1.0, %v33853_v58  ;;  %v24501_v58 = vld [vmem:[%s38192_s6 + $0x38] sm:$0xff] }
0x3066   :  { %v33857_v47 = vpop.eup %33856  ;;  %v24432_v36 = vadd.f32 1.0, %v33855_v11  ;;  %v24517_v11 = vand.u32 4294901760, %v24500_v33 }
0x3067   :  { %v33859_v9 = vpop.eup %33858  ;;  %33860 = vrcp.f32 %v24433_v40  ;;  %v24385_v8 = vadd.f32 1.0, %v33857_v47  ;;  %v24520_v40 = vand.u32 4294901760, %v24501_v58 }
0x3068   :  { %33862 = vrcp.f32 %v24432_v36  ;;  %v24384_v2 = vadd.f32 1.0, %v33859_v9 }
0x3069   :  { %33864 = vrcp.f32 %v24385_v8  ;;  %v37991_v9 = vpack.c.bf16 %v24520_v40, %v24517_v11 }
0x306a   :  { %33866 = vrcp.f32 %v24384_v2 }
0x3071   :  { %v37947_v45 = vpop.eup %33860 }
0x3072   :  { %v37949_v37 = vpop.eup %33862  ;;  %v24441_v51 = vmul.f32 %v37947_v45, %v37839_v56 }
0x3073   :  { %v37954_v63 = vpop.eup %33864  ;;  %v24440_v13 = vmul.f32 %v37949_v37, %v37841_v17 }
0x3074   :  { %v37957_v20 = vpop.eup %33866  ;;  %v24393_v1 = vmul.f32 %v37954_v63, %v37847_v41  ;;  %v24498_v41 = vld [vmem:[%s38192_s6 + $0x20] sm:$0xff] }
0x3075   :  { %v24392_v35 = vmul.f32 %v37957_v20, %v37849_v46  ;;  %v24499_v46 = vld [vmem:[%s38192_s6 + $0x28] sm:$0xff]  ;;  %v24511_v12 = vand.u32 4294901760, %v24498_v41 }
0x3076   :  { %v24514_v55 = vand.u32 4294901760, %v24499_v46 }
0x3077   :  { %v24601_v38 = vsub.f32 %v24498_v41, %v24511_v12 }
0x3078   :  { %v37981_v22 = vpack.c.bf16 %v24514_v55, %v24511_v12  ;;  %v24608_v26 = vsub.f32 %v24499_v46, %v24514_v55 }
0x3079   :  { %v24602_v47 = vand.u32 4294901760, %v24601_v38 }
0x307a   :  { %32396 = vmatprep.subr.bf16.mxu0 %v37981_v22  ;;  %v24609_v36 = vand.u32 4294901760, %v24608_v26 }
0x307b   :  { %32398 = vmatpush3.bf16.msra.mxu0 %v37981_v22  ;;  %v24603_v8 = vsub.f32 %v24601_v38, %v24602_v47 }
0x307c   :  { %v24610_v2 = vsub.f32 %v24608_v26, %v24609_v36  ;;  %32400 = vmatprep.subr.bf16.mxu0 %v37991_v9 }
0x307f   :  { %32402 = vmatpush3.bf16.msra.mxu0 %v37991_v9 }
0x30d1   :  { %v24447_v31 = vpop.permute.xlu1 %24446 }
0x30d2   :  { %v24451_v19 = vmul.f32 %v37947_v45, %v24447_v31  ;;  %v24445_v32 = vpop.permute.xlu0 %24444  ;;  %v24615_v31 = vsub.f32 %v24500_v33, %v24517_v11 }
0x30d3   :  { %v24450_v28 = vmul.f32 %v37949_v37, %v24445_v32 }
0x30d4   :  { %24456 = vrot.lane.b32.xlu1 %v24451_v19, %s33969_s15  ;;  %v24622_v19 = vsub.f32 %v24501_v58, %v24520_v40  ;;  %v24495_v58 = vld [vmem:[%s38192_s6 + $0x8] sm:$0xff] }
0x30d5   :  { %v24399_v27 = vpop.permute.xlu1 %24398  ;;  %24454 = vrot.lane.b32.xlu0 %v24450_v28, %s33969_s15  ;;  %v24604_v28 = vand.u32 4294901760, %v24603_v8 }
0x30d6   :  { %v24403_v21 = vmul.f32 %v37954_v63, %v24399_v27  ;;  %v24397_v34 = vpop.permute.xlu0 %24396  ;;  %v24611_v27 = vand.u32 4294901760, %v24610_v2 }
0x30d7   :  { %v24402_v44 = vmul.f32 %v37957_v20, %v24397_v34 }
0x30d8   :  { %24408 = vrot.lane.b32.xlu1 %v24403_v21, %s33969_s15  ;;  %v24616_v21 = vand.u32 4294901760, %v24615_v31 }
0x30d9   :  { %24406 = vrot.lane.b32.xlu0 %v24402_v44, %s33969_s15 }
0x3146   :  { %v24457_v62 = vpop.permute.xlu1 %24456 }
0x3147   :  { %v24461_v48 = vadd.f32 %v24457_v62, %v24441_v51  ;;  %v24455_v53 = vpop.permute.xlu0 %24454  ;;  %v24623_v51 = vand.u32 4294901760, %v24622_v19 }
0x3148   :  { %v24460_v3 = vadd.f32 %v24455_v53, %v24440_v13  ;;  %v37997_v13 = vpack.c.bf16 %v24611_v27, %v24604_v28 }
0x3149   :  { %33868 = vtanh.f32 %v24461_v48  ;;  %v24617_v48 = vsub.f32 %v24615_v31, %v24616_v21  ;;  %v24624_v53 = vsub.f32 %v24622_v19, %v24623_v51 }
0x314a   :  { %33870 = vtanh.f32 %v24460_v3  ;;  %v24409_v25 = vpop.permute.xlu1 %24408  ;;  %32404 = vmatprep.subr.bf16.mxu0 %v37997_v13 }
0x314b   :  { %v24413_v10 = vadd.f32 %v24409_v25, %v24393_v1  ;;  %v24407_v39 = vpop.permute.xlu0 %24406  ;;  %v24618_v1 = vand.u32 4294901760, %v24617_v48 }
0x314c   :  { %v24412_v14 = vadd.f32 %v24407_v39, %v24392_v35  ;;  %v24625_v35 = vand.u32 4294901760, %v24624_v53  ;;  %v38006_v39 = vpack.c.bf16 %v24608_v26, %v24601_v38  ;;  %v24494_v26 = vld [vmem:[%s38192_s6] sm:$0xff] }
0x314d   :  { %33872 = vtanh.f32 %v24413_v10  ;;  %v25043_v40 = vand.u32 4294901760, %v24494_v26 }
0x314e   :  { %33874 = vtanh.f32 %v24412_v14  ;;  %v38012_v14 = vpack.c.bf16 %v24622_v19, %v24615_v31  ;;  %v24496_v31 = vld [vmem:[%s38192_s6 + $0x10] sm:$0xff]  ;;  %v24497_v19 = vld [vmem:[%s38192_s6 + $0x18] sm:$0xff]  ;;  %s33970_s6 = smov [#allocation9]  }
0x314f   :  { %v25049_v28 = vand.u32 4294901760, %v24496_v31  ;;  %v25052_v27 = vand.u32 4294901760, %v24497_v19  ;;  %s25590_s16 = sshll.u32 %s33970_s6, 4  ;;  %s25591_s16 = int_to_ptr.vmem [resolvable:$true] %s25590_s16 }
0x3150   :  { %s33910_s17 = scalar_lea.vmem %s25591_s16, 2048  ;;  %p33915_p9 = scmp.lt.s32.totalorder %s25591_s16, %s25591_s16 }
0x3151   :  { %v25147_v48 = vsub.f32 %v24496_v31, %v25049_v28  ;;  %v25154_v53 = vsub.f32 %v24497_v19, %v25052_v27  ;;  %p33911_p8 = scmp.ne.s32.totalorder %s25591_s16, %s33910_s17  ;;  %p33916_p10 = scmp.lt.s32.totalorder %s33910_s17, %s33910_s17 }
0x3153   :  { %v33869_v56 = vpop.eup %33868  ;;  %p33917_p11 = por %p33916_p10, %p33915_p9 }
0x3154   :  { %v33871_v0 = vpop.eup %33870  ;;  %24468 = vrot.lane.b32.xlu1 %v33869_v56, %s33968_s14 }
0x3155   :  { %24466 = vrot.lane.b32.xlu0 %v33871_v0, %s33968_s14  ;;  %p33918_p12 = pnand %p33917_p11, %p33911_p8 }
0x3157   :  { %v33873_v17 = vpop.eup %33872 }
0x3158   :  { %v33875_v29 = vpop.eup %33874  ;;  %24420 = vrot.lane.b32.xlu1 %v33873_v17, %s33968_s14 }
0x3159   :  { %24418 = vrot.lane.b32.xlu0 %v33875_v29, %s33968_s14 }
0x31c6   :  { %v24469_v32 = vpop.permute.xlu1 %24468 }
0x31c7   :  { %v24473_v34 = vmul.f32 %v37947_v45, %v24469_v32  ;;  %v24467_v44 = vpop.permute.xlu0 %24466  ;;  %v38123_v32 = vsub.f32 %v24494_v26, %v25043_v40 }
0x31c8   :  { %v24472_v62 = vmul.f32 %v37949_v37, %v24467_v44  ;;  %v32407_v37 = vpack.c.bf16 %v24625_v35, %v24618_v1 }
0x31c9   :  { %24504 = vrot.lane.b32.xlu1 %v24473_v34, %s33969_s15 }
0x31ca   :  { %v24421_v3 = vpop.permute.xlu1 %24420  ;;  %24502 = vrot.lane.b32.xlu0 %v24472_v62, %s33969_s15 }
0x31cb   :  { %v24425_v45 = vmul.f32 %v37954_v63, %v24421_v3  ;;  %v24419_v25 = vpop.permute.xlu0 %24418 }
0x31cc   :  { %v24424_v10 = vmul.f32 %v37957_v20, %v24419_v25 }
0x31cd   :  { %24478 = vrot.lane.b32.xlu1 %v24425_v45, %s33969_s15 }
0x31ce   :  { %24476 = vrot.lane.b32.xlu0 %v24424_v10, %s33969_s15  ;;  %v25148_v10 = vand.u32 4294901760, %v25147_v48 }
0x31d1   :  { %16137 = vrot.lane.b32.xlu1 %v37109_v7, %s33968_s14  ;;  %v38026_v7 = vpack.c.bf16 %v24609_v36, %v24602_v47  ;;  %v25046_v36 = vand.u32 4294901760, %v24495_v58 }
0x31d2   :  { %16135 = vrot.lane.b32.xlu0 %v37111_v49, %s33968_s14  ;;  %v38032_v49 = vpack.c.bf16 %v24623_v51, %v24616_v21  ;;  %v25134_v51 = vand.u32 4294901760, %v38123_v32 }
0x31d3   :  { %v25140_v21 = vsub.f32 %v24495_v58, %v25046_v36  ;;  %v32443_v1 = vpack.c.bf16 %v25046_v36, %v25043_v40 }
0x31d4   :  { %v25135_v45 = vsub.f32 %v38123_v32, %v25134_v51 }
0x31d5   :  { %17331 = vrot.lane.b32.xlu1 %v37229_v30, %s33968_s14 }
0x31d6   :  { %17329 = vrot.lane.b32.xlu0 %v37231_v16, %s33968_s14 }
0x31d9   :  { %18525 = vrot.lane.b32.xlu1 %v37349_v15, %s33968_s14 }
0x31da   :  { %18523 = vrot.lane.b32.xlu0 %v37351_v6, %s33968_s14 }
0x31dd   :  { %19719 = vrot.lane.b32.xlu1 %v37479_v4, %s33968_s14 }
0x31de   :  { %19717 = vrot.lane.b32.xlu0 %v37481_v60, %s33968_s14 }
0x31e1   :  { %20912 = vrot.lane.b32.xlu1 %v37599_v52, %s33968_s14 }
0x31e2   :  { %20910 = vrot.lane.b32.xlu0 %v37601_v23, %s33968_s14 }
0x31e5   :  { %22104 = vrot.lane.b32.xlu1 %v37723_v54, %s33968_s14 }
0x31e6   :  { %22102 = vrot.lane.b32.xlu0 %v37725_v61, %s33968_s14 }
0x31e9   :  { %23296 = vrot.lane.b32.xlu1 %v37857_v50, %s33968_s14 }
0x31ea   :  { %23294 = vrot.lane.b32.xlu0 %v37859_v57, %s33968_s14 }
0x31ed   :  { %24488 = vrot.lane.b32.xlu1 %v24473_v34, %s33968_s14 }
0x31ee   :  { %24486 = vrot.lane.b32.xlu0 %v24472_v62, %s33968_s14 }
0x323b   :  { %v24505_v30 = vpop.permute.xlu1 %24504 }
0x323c   :  { %v24508_v16 = vsel %vm503_vm0, %v24505_v30, 0  ;;  %v24503_v15 = vpop.permute.xlu0 %24502  ;;  %v25149_v30 = vsub.f32 %v25147_v48, %v25148_v10 }
0x323d   :  { %v38045_v6 = vand.u32 4294901760, %v24508_v16  ;;  %v24506_v4 = vsel %vm503_vm0, %v24503_v15, 0 }
0x323e   :  { %v38048_v60 = vand.u32 4294901760, %v24506_v4 }
0x323f   :  { %v38051_v52 = vsub.f32 %v24508_v16, %v38045_v6  ;;  %v38053_v23 = vpop.permute.xlu1 %24478 }
0x3240   :  { %v24580_v54 = vsub.f32 %v24506_v4, %v38048_v60  ;;  %v24477_v61 = vpop.permute.xlu0 %24476  ;;  %v25040_v34 = vsel %vm503_vm0, %v38053_v23, 0 }
0x3241   :  { %v24591_v50 = vand.u32 4294901760, %v38051_v52  ;;  %v25038_v11 = vsel %vm503_vm0, %v24477_v61, 0  ;;  %v38131_v62 = vand.u32 4294901760, %v25040_v34 }
0x3242   :  { %v24581_v57 = vand.u32 4294901760, %v24580_v54  ;;  %v38109_v8 = vand.u32 4294901760, %v25038_v11 }
0x3243   :  { %v24592_v63 = vsub.f32 %v38051_v52, %v24591_v50  ;;  %v16138_v20 = vpop.permute.xlu1 %16137  ;;  %v25122_v25 = vsub.f32 %v25040_v34, %v38131_v62 }
0x3244   :  { %16143 = vst.msk [vmem:[#allocation9 + $0x78] sm:$0xff] %vm4092_vm1, %v16138_v20  ;;  %v16136_v56 = vpop.permute.xlu0 %16135  ;;  %v24582_v0 = vsub.f32 %v24580_v54, %v24581_v57  ;;  %v25112_v44 = vsub.f32 %v25038_v11, %v38109_v8 }
0x3245   :  { %24483 = vst.msk [vmem:[#allocation9 + $0x78] sm:$0xff] %vm503_vm0, %v38053_v23  ;;  %v24593_v29 = vand.u32 4294901760, %v24592_v63 }
0x3246   :  { %16142 = vst.msk [vmem:[#allocation9 + $0x70] sm:$0xff] %vm4092_vm1, %v16136_v56  ;;  %v24583_v17 = vand.u32 4294901760, %v24582_v0  ;;  %v25113_v3 = vand.u32 4294901760, %v25112_v44 }
0x3247   :  { %24482 = vst.msk [vmem:[#allocation9 + $0x70] sm:$0xff] %vm503_vm0, %v24477_v61  ;;  %v17332_v41 = vpop.permute.xlu1 %17331  ;;  %v32459_v61 = vpack.c.bf16 %v25140_v21, %v38123_v32 }
0x3248   :  { %17337 = vst.msk [vmem:[#allocation9 + $0x68] sm:$0xff] %vm4092_vm1, %v17332_v41  ;;  %30447 = vmatprep.mubr.f32.mxu0 %v24583_v17  ;;  %v17330_v46 = vpop.permute.xlu0 %17329 }
0x3249   :  { %23291 = vst.msk [vmem:[#allocation9 + $0x68] sm:$0xff] %vm503_vm0, %v37874_v5  ;;  %30448 = vmatmul.mubr.f32.vlgmr.msra.gmra.mrb[32].mxu0 %v24593_v29 }
0x324a   :  { %17336 = vst.msk [vmem:[#allocation9 + $0x60] sm:$0xff] %vm4092_vm1, %v17330_v46  ;;  %32406 = vmatpush3.bf16.msra.mxu0 %v37997_v13  ;;  %30458 = vmatprep.mubr.f32.mxu0 %v38048_v60  ;;  %v25141_v13 = vand.u32 4294901760, %v25140_v21 }
0x324b   :  { %23290 = vst.msk [vmem:[#allocation9 + $0x60] sm:$0xff] %vm503_vm0, %v37879_v42  ;;  %v18526_v12 = vpop.permute.xlu1 %18525  ;;  %32408 = vmatprep.subr.bf16.mxu0 %v32407_v37 }
0x324c   :  { %18531 = vst.msk [vmem:[#allocation9 + $0x58] sm:$0xff] %vm4092_vm1, %v18526_v12  ;;  %v18524_v55 = vpop.permute.xlu0 %18523  ;;  %v25142_v35 = vsub.f32 %v25140_v21, %v25141_v13 }
0x324d   :  { %22099 = vst.msk [vmem:[#allocation9 + $0x58] sm:$0xff] %vm503_vm0, %v37740_v43 }
0x324e   :  { %18530 = vst.msk [vmem:[#allocation9 + $0x50] sm:$0xff] %vm4092_vm1, %v18524_v55  ;;  %32410 = vmatpush3.bf16.msra.mxu0 %v32407_v37  ;;  %v25155_v37 = vand.u32 4294901760, %v25154_v53 }
0x324f   :  { %22098 = vst.msk [vmem:[#allocation9 + $0x50] sm:$0xff] %vm503_vm0, %v37745_v24  ;;  %v19720_v5 = vpop.permute.xlu1 %19719  ;;  %32412 = vmatprep.subr.bf16.mxu0 %v38006_v39 }
0x3250   :  { %19725 = vst.msk [vmem:[#allocation9 + $0x48] sm:$0xff] %vm4092_vm1, %v19720_v5  ;;  %v19718_v42 = vpop.permute.xlu0 %19717  ;;  %v25156_v16 = vsub.f32 %v25154_v53, %v25155_v37 }
0x3251   :  { %20907 = vst.msk [vmem:[#allocation9 + $0x48] sm:$0xff] %vm503_vm0, %v37616_v18  ;;  %30459 = vmatmul.mubr.f32.vlgmr.msra.gmra.mrb[32].mxu0 %v38045_v6 }
0x3252   :  { %19724 = vst.msk [vmem:[#allocation9 + $0x40] sm:$0xff] %vm4092_vm1, %v19718_v42  ;;  %32414 = vmatpush3.bf16.msra.mxu0 %v38006_v39  ;;  %30469 = vmatprep.mubr.f32.mxu0 %v24580_v54  ;;  %v25114_v39 = vsub.f32 %v25112_v44, %v25113_v3  ;;  %v25157_v23 = vand.u32 4294901760, %v25156_v16 }
0x3253   :  { %20906 = vst.msk [vmem:[#allocation9 + $0x40] sm:$0xff] %vm503_vm0, %v37621_v59  ;;  %v20913_v43 = vpop.permute.xlu1 %20912  ;;  %32416 = vmatprep.subr.bf16.mxu0 %v38012_v14 }
0x3254   :  { %20917 = vst.msk [vmem:[#allocation9 + $0x38] sm:$0xff] %vm4092_vm1, %v20913_v43  ;;  %v20911_v24 = vpop.permute.xlu0 %20910  ;;  %v25115_v15 = vand.u32 4294901760, %v25114_v39 }
0x3255   :  { %20916 = vst.msk [vmem:[#allocation9 + $0x30] sm:$0xff] %vm4092_vm1, %v20911_v24 }
0x3256   :  { %32418 = vmatpush3.bf16.msra.mxu0 %v38012_v14  ;;  %v32447_v14 = vpack.c.bf16 %v25052_v27, %v25049_v28 }
0x3257   :  { %v22105_v18 = vpop.permute.xlu1 %22104  ;;  %32420 = vmatprep.subr.bf16.mxu0 %v37981_v22 }
0x3258   :  { %22109 = vst.msk [vmem:[#allocation9 + $0x28] sm:$0xff] %vm4092_vm1, %v22105_v18  ;;  %v22103_v38 = vpop.permute.xlu0 %22102 }
0x3259   :  { %22108 = vst.msk [vmem:[#allocation9 + $0x20] sm:$0xff] %vm4092_vm1, %v22103_v38  ;;  %30470 = vmatmul.mubr.f32.vlgmr.msra.gmra.mrb[32].mxu0 %v38051_v52  ;;  %v25150_v52 = vand.u32 4294901760, %v25149_v30 }
0x325a   :  { %32422 = vmatpush3.bf16.msra.mxu0 %v37981_v22  ;;  %30480 = vmatprep.mubr.f32.mxu0 %v24581_v57  ;;  %v32479_v57 = vpack.c.bf16 %v25155_v37, %v25148_v10 }
0x325b   :  { %v23297_v59 = vpop.permute.xlu1 %23296  ;;  %32424 = vmatprep.subr.bf16.mxu0 %v37991_v9  ;;  %v32455_v54 = vpack.c.bf16 %v25157_v23, %v25150_v52 }
0x325c   :  { %23301 = vst.msk [vmem:[#allocation9 + $0x18] sm:$0xff] %vm4092_vm1, %v23297_v59  ;;  %v23295_v33 = vpop.permute.xlu0 %23294 }
0x325d   :  { %23300 = vst.msk [vmem:[#allocation9 + $0x10] sm:$0xff] %vm4092_vm1, %v23295_v33 }
0x325e   :  { %32426 = vmatpush3.bf16.msra.mxu0 %v37991_v9 }
0x325f   :  { %v24489_v47 = vpop.permute.xlu1 %24488  ;;  %32428 = vmatprep.subr.bf16.mxu0 %v38026_v7 }
0x3260   :  { %24493 = vst.msk [vmem:[#allocation9 + $0x8] sm:$0xff] %vm4092_vm1, %v24489_v47  ;;  %v24487_v2 = vpop.permute.xlu0 %24486 }
0x3261   :  { %24492 = vst.msk [vmem:[#allocation9] sm:$0xff] %vm4092_vm1, %v24487_v2  ;;  %30481 = vmatmul.mubr.f32.vlgmr.msra.gmra.mrb[32].mxu0 %v24591_v50  ;;  %v32475_v50 = vpack.c.bf16 %v25141_v13, %v25134_v51 }
0x3262   :  { %32430 = vmatpush3.bf16.msra.mxu0 %v38026_v7  ;;  %30491 = vmatprep.mubr.f32.mxu0 %v38048_v60  ;;  %v25136_v7 = vand.u32 4294901760, %v25135_v45 }
0x3263   :  { %32432 = vmatprep.subr.bf16.mxu0 %v38032_v49 }
0x3266   :  { %32434 = vmatpush3.bf16.msra.mxu0 %v38032_v49  ;;  %v25123_v49 = vand.u32 4294901760, %v25122_v25 }
0x3267   :  { %32436 = vmatprep.subr.bf16.mxu0 %v37981_v22 }
0x3268   :  { %v25124_v4 = vsub.f32 %v25122_v25, %v25123_v49 }
0x3269   :  { %30492 = vmatmul.mubr.f32.vlgmr.msra.gmra.mrb[32].mxu0 %v38045_v6 }
0x326a   :  { %32438 = vmatpush3.bf16.msra.mxu0 %v37981_v22  ;;  %30502 = vmatprep.mubr.f32.mxu0 %v38048_v60  ;;  %v25143_v22 = vand.u32 4294901760, %v25142_v35 }
0x326b   :  { %32440 = vmatprep.subr.bf16.mxu0 %v37991_v9 }
0x326c   :  { %v32451_v60 = vpack.c.bf16 %v25143_v22, %v25136_v7 }
0x326e   :  { %32442 = vmatpush3.bf16.msra.mxu0 %v37991_v9  ;;  %v25125_v9 = vand.u32 4294901760, %v25124_v4 }
0x326f   :  { %32444 = vmatprep.subr.bf16.mxu0 %v32443_v1 }
0x3271   :  { %30503 = vmatmul.mubr.f32.vlgmr.msra.gmra.mrb[32].mxu0 %v38045_v6  ;;  %v32463_v6 = vpack.c.bf16 %v25154_v53, %v25147_v48 }
0x3272   :  { %32446 = vmatpush3.bf16.msra.mxu0 %v32443_v1  ;;  %30513 = vmatprep.mubr.f32.mxu0 %v25115_v15 }
0x3273   :  { %32448 = vmatprep.subr.bf16.mxu0 %v32447_v14 }
0x3276   :  { %32450 = vmatpush3.bf16.msra.mxu0 %v32447_v14 }
0x3277   :  { %32452 = vmatprep.subr.bf16.mxu0 %v32451_v60 }
0x3279   :  { %30514 = vmatmul.mubr.f32.vlgmr.msra.gmra.mrb[32].mxu0 %v25125_v9 }
0x327a   :  { %32454 = vmatpush3.bf16.msra.mxu0 %v32451_v60  ;;  %30524 = vmatprep.mubr.f32.mxu0 %v38109_v8 }
0x327b   :  { %32456 = vmatprep.subr.bf16.mxu0 %v32455_v54 }
0x327e   :  { %32458 = vmatpush3.bf16.msra.mxu0 %v32455_v54 }
0x327f   :  { %32460 = vmatprep.subr.bf16.mxu0 %v32459_v61 }
0x3281   :  { %30525 = vmatmul.mubr.f32.vlgmr.msra.gmra.mrb[32].mxu0 %v38131_v62 }
0x3282   :  { %32462 = vmatpush3.bf16.msra.mxu0 %v32459_v61  ;;  %30535 = vmatprep.mubr.f32.mxu0 %v25112_v44 }
0x3283   :  { %32464 = vmatprep.subr.bf16.mxu0 %v32463_v6 }
0x3286   :  { %32466 = vmatpush3.bf16.msra.mxu0 %v32463_v6 }
0x3287   :  { %32468 = vmatprep.subr.bf16.mxu0 %v32443_v1 }
0x3289   :  { %30536 = vmatmul.mubr.f32.vlgmr.msra.gmra.mrb[32].mxu0 %v25122_v25 }
0x328a   :  { %32470 = vmatpush3.bf16.msra.mxu0 %v32443_v1  ;;  %30546 = vmatprep.mubr.f32.mxu0 %v25113_v3 }
0x328b   :  { %32472 = vmatprep.subr.bf16.mxu0 %v32447_v14 }
0x328e   :  { %32474 = vmatpush3.bf16.msra.mxu0 %v32447_v14 }
0x328f   :  { %32476 = vmatprep.subr.bf16.mxu0 %v32475_v50 }
0x3291   :  { %30547 = vmatmul.mubr.f32.vlgmr.msra.gmra.mrb[32].mxu0 %v25123_v49 }
0x3292   :  { %32478 = vmatpush3.bf16.msra.mxu0 %v32475_v50  ;;  %30557 = vmatprep.mubr.f32.mxu0 %v38109_v8 }
0x3293   :  { %32480 = vmatprep.subr.bf16.mxu0 %v32479_v57 }
0x3296   :  { %32482 = vmatpush3.bf16.msra.mxu0 %v32479_v57 }
0x3297   :  { %32484 = vmatprep.subr.bf16.mxu0 %v32443_v1 }
0x3299   :  { %30558 = vmatmul.mubr.f32.vlgmr.msra.gmra.mrb[32].mxu0 %v38131_v62 }
0x329a   :  { %32486 = vmatpush3.bf16.msra.mxu0 %v32443_v1  ;;  %30568 = vmatprep.mubr.f32.mxu0 %v38109_v8 }
0x329b   :  { %32488 = vmatprep.subr.bf16.mxu0 %v32447_v14 }
0x329e   :  { %32490 = vmatpush3.bf16.msra.mxu0 %v32447_v14 }
0x32a1   :  { %30569 = vmatmul.mubr.f32.vlgmr.msra.gmra.mrb[32].mxu0 %v38131_v62 }
0x32a2   :  { %33921 = shalt.err (!%p33918_p12)
}
0x32a3   :  { %s33922_s22 = scalar_lea.hbm %s38194_s8, 2048 }
0x32a4   :  { %p33923_p13 = scmp.ne.s32.totalorder %s38194_s8, %s33922_s22  ;;  %p33926_p0 = scmp.lt.u32.totalorder %s33922_s22, %s38194_s8 }
0x32a6   :  { %p33928_p1 = pnand %p33926_p0, %p33923_p13 }
0x32a8   :  { %33931 = shalt.err (!%p33928_p1)
}
0x32a9   :  { %25596 = dma.vmem_to_hbm [thread:$0]  %s25591_s16, 2048, %s38194_s8, [#allocation8], %s33961_s19, %s33961_s19, %s33962_s20  }
0x32aa   :  { %v25710_v63 = vld [vmem:[%s38193_s7] ss:$0 sm:$0xff]  ;;  %s33971_s27 = smov [#allocation10]  }
0x32ab   :  { %s25602_s4 = sshll.u32 %s33971_s27, 4  ;;  %s25603_s4 = int_to_ptr.vmem [resolvable:$true] %s25602_s4 }
0x32ac   :  { %s33932_s7 = scalar_lea.vmem %s25603_s4, 512  ;;  %p33937_p3 = scmp.lt.s32.totalorder %s25603_s4, %s25603_s4 }
0x32ad   :  { %p33933_p2 = scmp.ne.s32.totalorder %s25603_s4, %s33932_s7  ;;  %p33938_p4 = scmp.lt.s32.totalorder %s33932_s7, %s33932_s7 }
0x32af   :  { %p33939_p5 = por %p33938_p4, %p33937_p3 }
0x32b1   :  { %p33940_p6 = pnand %p33939_p5, %p33933_p2 }
0x3374   :  { %v30570_v20 = vpop.f32.mrb[32].mxu0 }
0x3375   :  { %v25578_v56 = vadd.f32 %v30570_v20, %v25710_v63  ;;  %v25560_v0 = vpop.f32.mrb[33].mxu0 }
0x3376   :  { %v25577_v17 = vadd.f32 %v25710_v63, %v25560_v0 }
0x3377   :  { %33876 = vtanh.f32 %v25578_v56 }
0x3378   :  { %33878 = vtanh.f32 %v25577_v17 }
0x3381   :  { %v33877_v29 = vpop.eup %33876 }
0x3382   :  { %v33879_v41 = vpop.eup %33878  ;;  %25582 = vst.msk [vmem:[#allocation10 + $0x8] sm:$0xff] %vm503_vm0, %v33877_v29  ;;  %25584 = vst.msk [vmem:[#allocation10 + $0x18] sm:$0xff] %vm503_vm0, %v33877_v29 }
0x3383   :  { %25581 = vst.msk [vmem:[#allocation10] sm:$0xff] %vm503_vm0, %v33879_v41  ;;  %25583 = vst.msk [vmem:[#allocation10 + $0x10] sm:$0xff] %vm503_vm0, %v33879_v41 }
0x3384   :  { %33943 = shalt.err (!%p33940_p6)
}
0x3385   :  { %s33944_s29 = scalar_lea.hbm %s38195_s9, 512 }
0x3386   :  { %p33945_p7 = scmp.ne.s32.totalorder %s38195_s9, %s33944_s29  ;;  %p33948_p8 = scmp.lt.u32.totalorder %s33944_s29, %s38195_s9 }
0x3388   :  { %p33950_p9 = pnand %p33948_p8, %p33945_p7 }
0x338a   :  { %33953 = shalt.err (!%p33950_p9)
}
0x338b   :  { %25608 = dma.vmem_to_hbm [thread:$0]  %s25603_s4, 512, %s38195_s9, [#allocation11], %s33961_s19, %s33961_s19, %s33962_s20  }
0x338c   :  { %33956 = dma.done.wait [#allocation8], 2048  }
0x338d   :  { %33957 = vsyncadd [#allocation8], 4294965248 }
0x338e   :  { %33958 = dma.done.wait [#allocation11], 512  }
0x338f   :  { %33959 = vsyncadd [#allocation11], 4294966784 }
0x3390   :  { %25615 = vsyncpa [#allocation7], 1 }
0x3391   :  { %25616 = vsyncpa [#allocation8], 1 }
0x3392   :  { %25617 = vsyncpa [#allocation11], 1 }

</bundles_post_ra>
